<compile_context>
chip_gen: v7x
topology: tpu7x:2x2x1
jax: 0.10.0
libtpu: 0.0.40
codegen_flags: <defaults>
</compile_context>

<pallas_src>
import numpy as np
import jax
import jax.numpy as jnp
from jax import lax
from jax.experimental import pallas as pl
from jax.experimental.pallas import tpu as pltpu

K = 5      # conv kernel size
PAD = 2    # conv padding
H1 = 28    # conv1 spatial
C1 = 16    # conv1 out channels
H2 = 14    # after pool1
C2 = 32    # conv2 out channels
H3 = 7     # after pool2
NCLS = 10


# ---------------------------------------------------------------------------
# The single fused Pallas kernel (one grid step == one batch element)
# ---------------------------------------------------------------------------
def cnn_fused_kernel(x_ref, t1_ref, b1r_ref, r1_ref, s1e_ref, s1o_ref,
                     e1e_ref, e1o_ref, t2_ref, b2r_ref, r2_ref, s2e_ref,
                     s2o_ref, e2e_ref, e2o_ref, wfc_ref, bfc_ref, out_ref):
    f32 = jnp.float32
    x = x_ref[0]                                                  # (28, 28)

    # ---- conv1 (5x5, stride 1, pad 2) as 5 (row-shift @ Toeplitz) matmuls ----
    a1 = jnp.zeros((x.shape[0], t1_ref.shape[2]), f32)            # (28, 448) lanes = (w, c1)
    for kh in range(K):
        rows = jnp.dot(r1_ref[kh], x, preferred_element_type=f32)            # (28, 28)
        a1 = a1 + jnp.dot(rows, t1_ref[kh], preferred_element_type=f32)      # (28, 448)
    a1 = jnp.maximum(a1 + b1r_ref[...], 0.0)                      # bias + ReLU

    # ---- maxpool 2x2 (rows via selection matmul, lanes via selection matmul) ----
    ph = jnp.maximum(jnp.dot(s1e_ref[...], a1, preferred_element_type=f32),
                     jnp.dot(s1o_ref[...], a1, preferred_element_type=f32))  # (14, 448)
    p1 = jnp.maximum(jnp.dot(ph, e1e_ref[...], preferred_element_type=f32),
                     jnp.dot(ph, e1o_ref[...], preferred_element_type=f32))  # (14, 224)

    # ---- conv2 (5x5, stride 1, pad 2) ----
    a2 = jnp.zeros((p1.shape[0], t2_ref.shape[2]), f32)           # (14, 448) lanes = (w, c2)
    for kh in range(K):
        rows = jnp.dot(r2_ref[kh], p1, preferred_element_type=f32)           # (14, 224)
        a2 = a2 + jnp.dot(rows, t2_ref[kh], preferred_element_type=f32)      # (14, 448)
    a2 = jnp.maximum(a2 + b2r_ref[...], 0.0)

    # ---- maxpool 2x2 ----
    qh = jnp.maximum(jnp.dot(s2e_ref[...], a2, preferred_element_type=f32),
                     jnp.dot(s2o_ref[...], a2, preferred_element_type=f32))  # (7, 448)
    p2 = jnp.maximum(jnp.dot(qh, e2e_ref[...], preferred_element_type=f32),
                     jnp.dot(qh, e2o_ref[...], preferred_element_type=f32))  # (7, 224)

    # ---- FC (weight rows pre-permuted to this (h, w, c) layout; no flatten transpose) ----
    acc = bfc_ref[...]                                            # (1, 10)
    for h in range(H3):
        acc = acc + jnp.dot(p2[h:h + 1, :], wfc_ref[h],
                            preferred_element_type=f32)           # (1, 10)
    out_ref[0] = acc


# ---------------------------------------------------------------------------
# One-time (host-side, numpy) weight / constant-matrix preparation
# ---------------------------------------------------------------------------
def prepare_params(w1, b1, w2, b2, wfc, bfc):
    w1 = np.asarray(w1, np.float32)    # (16, 1, 5, 5)  OIHW
    b1 = np.asarray(b1, np.float32)    # (16,)
    w2 = np.asarray(w2, np.float32)    # (32, 16, 5, 5) OIHW
    b2 = np.asarray(b2, np.float32)    # (32,)
    wfc = np.asarray(wfc, np.float32)  # (10, 1568)  columns in torch NCHW-flatten order
    bfc = np.asarray(bfc, np.float32)  # (10,)

    # conv1 Toeplitz weights: T1[kh][wp, w*16+co] = w1[co,0,kh, wp-w+2]
    T1 = np.zeros((K, H1, H1 * C1), np.float32)
    for kh in range(K):
        for w in range(H1):
            for kw in range(K):
                wp = w + kw - PAD
                if 0 <= wp < H1:
                    T1[kh, wp, w * C1:(w + 1) * C1] = w1[:, 0, kh, kw]
    # conv1 row-shift (vertical padding folded in): (R1[kh] @ x)[h] = x[h+kh-2]
    R1 = np.zeros((K, H1, H1), np.float32)
    for kh in range(K):
        for h in range(H1):
            src = h + kh - PAD
            if 0 <= src < H1:
                R1[kh, h, src] = 1.0
    b1r = np.tile(b1, H1).reshape(1, H1 * C1)

    # pool1 selection matrices (rows then lane blocks)
    S1e = np.zeros((H2, H1), np.float32)
    S1o = np.zeros((H2, H1), np.float32)
    for i in range(H2):
        S1e[i, 2 * i] = 1.0
        S1o[i, 2 * i + 1] = 1.0
    E1e = np.zeros((H1 * C1, H2 * C1), np.float32)
    E1o = np.zeros((H1 * C1, H2 * C1), np.float32)
    for j in range(H2):
        for c in range(C1):
            E1e[(2 * j) * C1 + c, j * C1 + c] = 1.0
            E1o[(2 * j + 1) * C1 + c, j * C1 + c] = 1.0

    # conv2 Toeplitz weights: T2[kh][wp*16+ci, w*32+co] = w2[co,ci,kh, wp-w+2]
    T2 = np.zeros((K, H2 * C1, H2 * C2), np.float32)
    for kh in range(K):
        for w in range(H2):
            for kw in range(K):
                wp = w + kw - PAD
                if 0 <= wp < H2:
                    T2[kh, wp * C1:(wp + 1) * C1, w * C2:(w + 1) * C2] = w2[:, :, kh, kw].T
    R2 = np.zeros((K, H2, H2), np.float32)
    for kh in range(K):
        for h in range(H2):
            src = h + kh - PAD
            if 0 <= src < H2:
                R2[kh, h, src] = 1.0
    b2r = np.tile(b2, H2).reshape(1, H2 * C2)

    # pool2 selection matrices
    S2e = np.zeros((H3, H2), np.float32)
    S2o = np.zeros((H3, H2), np.float32)
    for i in range(H3):
        S2e[i, 2 * i] = 1.0
        S2o[i, 2 * i + 1] = 1.0
    E2e = np.zeros((H2 * C2, H3 * C2), np.float32)
    E2o = np.zeros((H2 * C2, H3 * C2), np.float32)
    for j in range(H3):
        for c in range(C2):
            E2e[(2 * j) * C2 + c, j * C2 + c] = 1.0
            E2o[(2 * j + 1) * C2 + c, j * C2 + c] = 1.0

    # FC weight permuted from torch (c, h, w) flatten order to the kernel's (h | w, c) layout
    WfcR = np.zeros((H3, H3 * C2, NCLS), np.float32)
    for h in range(H3):
        for w in range(H3):
            for co in range(C2):
                WfcR[h, w * C2 + co, :] = wfc[:, co * H3 * H3 + h * H3 + w]
    bfc2 = bfc.reshape(1, NCLS)

    arrays = (T1, b1r, R1, S1e, S1o, E1e, E1o,
              T2, b2r, R2, S2e, S2o, E2e, E2o, WfcR, bfc2)
    return tuple(jnp.asarray(a) for a in arrays)


# ---------------------------------------------------------------------------
# Forward pass: ONE pallas_call, grid over batch
# ---------------------------------------------------------------------------
def cnn_forward(x_nchw, prepped):
    B, C, H, W = x_nchw.shape
    assert C == 1 and H == H1 and W == H1, "CNN expects (B, 1, 28, 28) inputs"
    x3 = x_nchw.reshape(B, H, W)    # squeeze the single channel (pure metadata reshape)

    def c2(a):      # 2-D constant, resident in VMEM across the batch grid
        return pl.BlockSpec(a.shape, lambda b: (0, 0))

    def c3(a):      # 3-D constant
        return pl.BlockSpec(a.shape, lambda b: (0, 0, 0))

    (T1, b1r, R1, S1e, S1o, E1e, E1o,
     T2, b2r, R2, S2e, S2o, E2e, E2o, WfcR, bfc2) = prepped

    in_specs = [
        pl.BlockSpec((1, H, W), lambda b: (b, 0, 0)),           # per-sample input tile
        c3(T1), c2(b1r), c3(R1), c2(S1e), c2(S1o), c2(E1e), c2(E1o),
        c3(T2), c2(b2r), c3(R2), c2(S2e), c2(S2o), c2(E2e), c2(E2o),
        c3(WfcR), c2(bfc2),
    ]

    out = pl.pallas_call(
        cnn_fused_kernel,
        out_shape=jax.ShapeDtypeStruct((B, 1, NCLS), jnp.float32),
        grid=(B,),
        in_specs=in_specs,
        out_specs=pl.BlockSpec((1, 1, NCLS), lambda b: (b, 0, 0)),
        compiler_params=pltpu.CompilerParams(dimension_semantics=("parallel",)),
    )(x3, *prepped)
    return out.reshape(B, NCLS)


# Pure-JAX/XLA reference for verification (same math as the PyTorch module).
def cnn_reference(x_nchw, params):
    w1, b1, w2, b2, wfc, bfc = params

    def conv(x, w, b):
        y = lax.conv_general_dilated(
            x, w, window_strides=(1, 1), padding=((PAD, PAD), (PAD, PAD)),
            dimension_numbers=("NCHW", "OIHW", "NCHW"))
        return jnp.maximum(y + b[None, :, None, None], 0.0)

    def pool(x):
        return lax.reduce_window(x, -jnp.inf, lax.max,
                                 (1, 1, 2, 2), (1, 1, 2, 2), "VALID")

    y = pool(conv(x_nchw, w1, b1))
    y = pool(conv(y, w2, b2))
    flat = y.reshape(y.shape[0], -1)
    return flat @ wfc.T + bfc


if __name__ == "__main__":
    key = jax.random.PRNGKey(0)
    k1, k2, k3, k4, k5, k6, kx = jax.random.split(key, 7)

    # Deterministic synthetic parameters (torch shapes: OIHW conv weights, (out,in) linear weight).
    w1 = jax.random.normal(k1, (16, 1, 5, 5), jnp.float32) * 0.1
    b1 = jax.random.normal(k2, (16,), jnp.float32) * 0.1
    w2 = jax.random.normal(k3, (32, 16, 5, 5), jnp.float32) * 0.05
    b2 = jax.random.normal(k4, (32,), jnp.float32) * 0.05
    wfc = jax.random.normal(k5, (10, 32 * 7 * 7), jnp.float32) * 0.02
    bfc = jax.random.normal(k6, (10,), jnp.float32) * 0.02
    params = (w1, b1, w2, b2, wfc, bfc)

    # Input: batch=2, single channel, 28x28 (required by the 32*7*7 flatten).
    x = jax.random.normal(kx, (2, 1, 28, 28), jnp.float32)

    # One-time weight re-layout (outside the hot path / outside jit).
    prepped = prepare_params(w1, b1, w2, b2, wfc, bfc)

    fwd = jax.jit(cnn_forward)
    out = jax.block_until_ready(fwd(x, prepped))

    ref = jax.block_until_ready(cnn_reference(x, params))
    assert out.shape == (2, 10), out.shape
    if not np.allclose(np.asarray(out), np.asarray(ref), atol=2e-3, rtol=2e-3):
        raise RuntimeError("Pallas CNN output does not match reference")

    print("KERNEL_OK")
</pallas_src>

<mosaic_0001>
module attributes {stable_mosaic.version = 11 : i64} {
  func.func @cnn_fused_kernel(%arg0: i32, %arg1: memref<1x28x28xf32, #tpu.memory_space<vmem>>, %arg2: memref<5x28x448xf32, #tpu.memory_space<vmem>>, %arg3: memref<1x448xf32, #tpu.memory_space<vmem>>, %arg4: memref<5x28x28xf32, #tpu.memory_space<vmem>>, %arg5: memref<14x28xf32, #tpu.memory_space<vmem>>, %arg6: memref<14x28xf32, #tpu.memory_space<vmem>>, %arg7: memref<448x224xf32, #tpu.memory_space<vmem>>, %arg8: memref<448x224xf32, #tpu.memory_space<vmem>>, %arg9: memref<5x224x448xf32, #tpu.memory_space<vmem>>, %arg10: memref<1x448xf32, #tpu.memory_space<vmem>>, %arg11: memref<5x14x14xf32, #tpu.memory_space<vmem>>, %arg12: memref<7x14xf32, #tpu.memory_space<vmem>>, %arg13: memref<7x14xf32, #tpu.memory_space<vmem>>, %arg14: memref<448x224xf32, #tpu.memory_space<vmem>>, %arg15: memref<448x224xf32, #tpu.memory_space<vmem>>, %arg16: memref<7x224x10xf32, #tpu.memory_space<vmem>>, %arg17: memref<1x10xf32, #tpu.memory_space<vmem>>, %arg18: memref<1x1x10xf32, #tpu.memory_space<vmem>>) attributes {dimension_semantics = [#tpu.dimension_semantics<parallel>], iteration_bounds = array<i64: 2>, scalar_prefetch = 0 : i64, scratch_operands = 0 : i64, tpu.core_type = #tpu.core_type<tc>, window_params = [{transform_indices = @transform_0, window_bounds = array<i64: 1, 28, 28>}, {pipeline_mode = #tpu.pipeline_mode<synchronous>, transform_indices = @transform_1, window_bounds = array<i64: 5, 28, 448>}, {pipeline_mode = #tpu.pipeline_mode<synchronous>, transform_indices = @transform_2, window_bounds = array<i64: 1, 448>}, {pipeline_mode = #tpu.pipeline_mode<synchronous>, transform_indices = @transform_3, window_bounds = array<i64: 5, 28, 28>}, {pipeline_mode = #tpu.pipeline_mode<synchronous>, transform_indices = @transform_4, window_bounds = array<i64: 14, 28>}, {pipeline_mode = #tpu.pipeline_mode<synchronous>, transform_indices = @transform_5, window_bounds = array<i64: 14, 28>}, {pipeline_mode = #tpu.pipeline_mode<synchronous>, transform_indices = @transform_6, window_bounds = array<i64: 448, 224>}, {pipeline_mode = #tpu.pipeline_mode<synchronous>, transform_indices = @transform_7, window_bounds = array<i64: 448, 224>}, {pipeline_mode = #tpu.pipeline_mode<synchronous>, transform_indices = @transform_8, window_bounds = array<i64: 5, 224, 448>}, {pipeline_mode = #tpu.pipeline_mode<synchronous>, transform_indices = @transform_9, window_bounds = array<i64: 1, 448>}, {pipeline_mode = #tpu.pipeline_mode<synchronous>, transform_indices = @transform_10, window_bounds = array<i64: 5, 14, 14>}, {pipeline_mode = #tpu.pipeline_mode<synchronous>, transform_indices = @transform_11, window_bounds = array<i64: 7, 14>}, {pipeline_mode = #tpu.pipeline_mode<synchronous>, transform_indices = @transform_12, window_bounds = array<i64: 7, 14>}, {pipeline_mode = #tpu.pipeline_mode<synchronous>, transform_indices = @transform_13, window_bounds = array<i64: 448, 224>}, {pipeline_mode = #tpu.pipeline_mode<synchronous>, transform_indices = @transform_14, window_bounds = array<i64: 448, 224>}, {pipeline_mode = #tpu.pipeline_mode<synchronous>, transform_indices = @transform_15, window_bounds = array<i64: 7, 224, 10>}, {pipeline_mode = #tpu.pipeline_mode<synchronous>, transform_indices = @transform_16, window_bounds = array<i64: 1, 10>}, {transform_indices = @transform_17, window_bounds = array<i64: 1, 1, 10>}]} {
    %c0 = arith.constant 0 : index
    %c0_0 = arith.constant 0 : index
    %c0_1 = arith.constant 0 : index
    %0 = vector.load %arg1[%c0, %c0_0, %c0_1] : memref<1x28x28xf32, #tpu.memory_space<vmem>>, vector<1x28x28xf32>
    %1 = vector.shape_cast %0 : vector<1x28x28xf32> to vector<28x28xf32>
    %cst = arith.constant 0.000000e+00 : f32
    %2 = vector.broadcast %cst : f32 to vector<28x448xf32>
    %c0_2 = arith.constant 0 : index
    %c0_3 = arith.constant 0 : index
    %c0_4 = arith.constant 0 : index
    %3 = vector.load %arg4[%c0_2, %c0_3, %c0_4] : memref<5x28x28xf32, #tpu.memory_space<vmem>>, vector<1x28x28xf32>
    %4 = vector.shape_cast %3 : vector<1x28x28xf32> to vector<28x28xf32>
    %cst_5 = arith.constant dense<0.000000e+00> : vector<28x28xf32>
    %5 = tpu.matmul %4, %1, %cst_5 {dimension_numbers = #tpu.dot_dimension_numbers<[1], [0], [0], [1], [0, 0, 1, 1], [], []>} : vector<28x28xf32>, vector<28x28xf32>, vector<28x28xf32> -> vector<28x28xf32>
    %c0_6 = arith.constant 0 : index
    %c0_7 = arith.constant 0 : index
    %c0_8 = arith.constant 0 : index
    %6 = vector.load %arg2[%c0_6, %c0_7, %c0_8] : memref<5x28x448xf32, #tpu.memory_space<vmem>>, vector<1x28x448xf32>
    %7 = vector.shape_cast %6 : vector<1x28x448xf32> to vector<28x448xf32>
    %cst_9 = arith.constant dense<0.000000e+00> : vector<28x448xf32>
    %8 = tpu.matmul %5, %7, %cst_9 {dimension_numbers = #tpu.dot_dimension_numbers<[1], [0], [0], [1], [0, 0, 1, 1], [], []>} : vector<28x28xf32>, vector<28x448xf32>, vector<28x448xf32> -> vector<28x448xf32>
    %9 = arith.addf %2, %8 : vector<28x448xf32>
    %c1 = arith.constant 1 : index
    %c0_10 = arith.constant 0 : index
    %c0_11 = arith.constant 0 : index
    %10 = vector.load %arg4[%c1, %c0_10, %c0_11] : memref<5x28x28xf32, #tpu.memory_space<vmem>>, vector<1x28x28xf32>
    %11 = vector.shape_cast %10 : vector<1x28x28xf32> to vector<28x28xf32>
    %cst_12 = arith.constant dense<0.000000e+00> : vector<28x28xf32>
    %12 = tpu.matmul %11, %1, %cst_12 {dimension_numbers = #tpu.dot_dimension_numbers<[1], [0], [0], [1], [0, 0, 1, 1], [], []>} : vector<28x28xf32>, vector<28x28xf32>, vector<28x28xf32> -> vector<28x28xf32>
    %c1_13 = arith.constant 1 : index
    %c0_14 = arith.constant 0 : index
    %c0_15 = arith.constant 0 : index
    %13 = vector.load %arg2[%c1_13, %c0_14, %c0_15] : memref<5x28x448xf32, #tpu.memory_space<vmem>>, vector<1x28x448xf32>
    %14 = vector.shape_cast %13 : vector<1x28x448xf32> to vector<28x448xf32>
    %cst_16 = arith.constant dense<0.000000e+00> : vector<28x448xf32>
    %15 = tpu.matmul %12, %14, %cst_16 {dimension_numbers = #tpu.dot_dimension_numbers<[1], [0], [0], [1], [0, 0, 1, 1], [], []>} : vector<28x28xf32>, vector<28x448xf32>, vector<28x448xf32> -> vector<28x448xf32>
    %16 = arith.addf %9, %15 : vector<28x448xf32>
    %c2 = arith.constant 2 : index
    %c0_17 = arith.constant 0 : index
    %c0_18 = arith.constant 0 : index
    %17 = vector.load %arg4[%c2, %c0_17, %c0_18] : memref<5x28x28xf32, #tpu.memory_space<vmem>>, vector<1x28x28xf32>
    %18 = vector.shape_cast %17 : vector<1x28x28xf32> to vector<28x28xf32>
    %cst_19 = arith.constant dense<0.000000e+00> : vector<28x28xf32>
    %19 = tpu.matmul %18, %1, %cst_19 {dimension_numbers = #tpu.dot_dimension_numbers<[1], [0], [0], [1], [0, 0, 1, 1], [], []>} : vector<28x28xf32>, vector<28x28xf32>, vector<28x28xf32> -> vector<28x28xf32>
    %c2_20 = arith.constant 2 : index
    %c0_21 = arith.constant 0 : index
    %c0_22 = arith.constant 0 : index
    %20 = vector.load %arg2[%c2_20, %c0_21, %c0_22] : memref<5x28x448xf32, #tpu.memory_space<vmem>>, vector<1x28x448xf32>
    %21 = vector.shape_cast %20 : vector<1x28x448xf32> to vector<28x448xf32>
    %cst_23 = arith.constant dense<0.000000e+00> : vector<28x448xf32>
    %22 = tpu.matmul %19, %21, %cst_23 {dimension_numbers = #tpu.dot_dimension_numbers<[1], [0], [0], [1], [0, 0, 1, 1], [], []>} : vector<28x28xf32>, vector<28x448xf32>, vector<28x448xf32> -> vector<28x448xf32>
    %23 = arith.addf %16, %22 : vector<28x448xf32>
    %c3 = arith.constant 3 : index
    %c0_24 = arith.constant 0 : index
    %c0_25 = arith.constant 0 : index
    %24 = vector.load %arg4[%c3, %c0_24, %c0_25] : memref<5x28x28xf32, #tpu.memory_space<vmem>>, vector<1x28x28xf32>
    %25 = vector.shape_cast %24 : vector<1x28x28xf32> to vector<28x28xf32>
    %cst_26 = arith.constant dense<0.000000e+00> : vector<28x28xf32>
    %26 = tpu.matmul %25, %1, %cst_26 {dimension_numbers = #tpu.dot_dimension_numbers<[1], [0], [0], [1], [0, 0, 1, 1], [], []>} : vector<28x28xf32>, vector<28x28xf32>, vector<28x28xf32> -> vector<28x28xf32>
    %c3_27 = arith.constant 3 : index
    %c0_28 = arith.constant 0 : index
    %c0_29 = arith.constant 0 : index
    %27 = vector.load %arg2[%c3_27, %c0_28, %c0_29] : memref<5x28x448xf32, #tpu.memory_space<vmem>>, vector<1x28x448xf32>
    %28 = vector.shape_cast %27 : vector<1x28x448xf32> to vector<28x448xf32>
    %cst_30 = arith.constant dense<0.000000e+00> : vector<28x448xf32>
    %29 = tpu.matmul %26, %28, %cst_30 {dimension_numbers = #tpu.dot_dimension_numbers<[1], [0], [0], [1], [0, 0, 1, 1], [], []>} : vector<28x28xf32>, vector<28x448xf32>, vector<28x448xf32> -> vector<28x448xf32>
    %30 = arith.addf %23, %29 : vector<28x448xf32>
    %c4 = arith.constant 4 : index
    %c0_31 = arith.constant 0 : index
    %c0_32 = arith.constant 0 : index
    %31 = vector.load %arg4[%c4, %c0_31, %c0_32] : memref<5x28x28xf32, #tpu.memory_space<vmem>>, vector<1x28x28xf32>
    %32 = vector.shape_cast %31 : vector<1x28x28xf32> to vector<28x28xf32>
    %cst_33 = arith.constant dense<0.000000e+00> : vector<28x28xf32>
    %33 = tpu.matmul %32, %1, %cst_33 {dimension_numbers = #tpu.dot_dimension_numbers<[1], [0], [0], [1], [0, 0, 1, 1], [], []>} : vector<28x28xf32>, vector<28x28xf32>, vector<28x28xf32> -> vector<28x28xf32>
    %c4_34 = arith.constant 4 : index
    %c0_35 = arith.constant 0 : index
    %c0_36 = arith.constant 0 : index
    %34 = vector.load %arg2[%c4_34, %c0_35, %c0_36] : memref<5x28x448xf32, #tpu.memory_space<vmem>>, vector<1x28x448xf32>
    %35 = vector.shape_cast %34 : vector<1x28x448xf32> to vector<28x448xf32>
    %cst_37 = arith.constant dense<0.000000e+00> : vector<28x448xf32>
    %36 = tpu.matmul %33, %35, %cst_37 {dimension_numbers = #tpu.dot_dimension_numbers<[1], [0], [0], [1], [0, 0, 1, 1], [], []>} : vector<28x28xf32>, vector<28x448xf32>, vector<28x448xf32> -> vector<28x448xf32>
    %37 = arith.addf %30, %36 : vector<28x448xf32>
    %c0_38 = arith.constant 0 : index
    %c0_39 = arith.constant 0 : index
    %38 = vector.load %arg3[%c0_38, %c0_39] : memref<1x448xf32, #tpu.memory_space<vmem>>, vector<1x448xf32>
    %39 = vector.broadcast %38 : vector<1x448xf32> to vector<28x448xf32>
    %40 = arith.addf %37, %39 : vector<28x448xf32>
    %cst_40 = arith.constant 0.000000e+00 : f32
    %41 = vector.broadcast %cst_40 : f32 to vector<28x448xf32>
    %42 = arith.maximumf %40, %41 : vector<28x448xf32>
    %c0_41 = arith.constant 0 : index
    %c0_42 = arith.constant 0 : index
    %43 = vector.load %arg5[%c0_41, %c0_42] : memref<14x28xf32, #tpu.memory_space<vmem>>, vector<14x28xf32>
    %cst_43 = arith.constant dense<0.000000e+00> : vector<14x448xf32>
    %44 = tpu.matmul %43, %42, %cst_43 {dimension_numbers = #tpu.dot_dimension_numbers<[1], [0], [0], [1], [0, 0, 1, 1], [], []>} : vector<14x28xf32>, vector<28x448xf32>, vector<14x448xf32> -> vector<14x448xf32>
    %c0_44 = arith.constant 0 : index
    %c0_45 = arith.constant 0 : index
    %45 = vector.load %arg6[%c0_44, %c0_45] : memref<14x28xf32, #tpu.memory_space<vmem>>, vector<14x28xf32>
    %cst_46 = arith.constant dense<0.000000e+00> : vector<14x448xf32>
    %46 = tpu.matmul %45, %42, %cst_46 {dimension_numbers = #tpu.dot_dimension_numbers<[1], [0], [0], [1], [0, 0, 1, 1], [], []>} : vector<14x28xf32>, vector<28x448xf32>, vector<14x448xf32> -> vector<14x448xf32>
    %47 = arith.maximumf %44, %46 : vector<14x448xf32>
    %c0_47 = arith.constant 0 : index
    %c0_48 = arith.constant 0 : index
    %48 = vector.load %arg7[%c0_47, %c0_48] : memref<448x224xf32, #tpu.memory_space<vmem>>, vector<448x224xf32>
    %cst_49 = arith.constant dense<0.000000e+00> : vector<14x224xf32>
    %49 = tpu.matmul %47, %48, %cst_49 {dimension_numbers = #tpu.dot_dimension_numbers<[1], [0], [0], [1], [0, 0, 1, 1], [], []>} : vector<14x448xf32>, vector<448x224xf32>, vector<14x224xf32> -> vector<14x224xf32>
    %c0_50 = arith.constant 0 : index
    %c0_51 = arith.constant 0 : index
    %50 = vector.load %arg8[%c0_50, %c0_51] : memref<448x224xf32, #tpu.memory_space<vmem>>, vector<448x224xf32>
    %cst_52 = arith.constant dense<0.000000e+00> : vector<14x224xf32>
    %51 = tpu.matmul %47, %50, %cst_52 {dimension_numbers = #tpu.dot_dimension_numbers<[1], [0], [0], [1], [0, 0, 1, 1], [], []>} : vector<14x448xf32>, vector<448x224xf32>, vector<14x224xf32> -> vector<14x224xf32>
    %52 = arith.maximumf %49, %51 : vector<14x224xf32>
    %cst_53 = arith.constant 0.000000e+00 : f32
    %53 = vector.broadcast %cst_53 : f32 to vector<14x448xf32>
    %c0_54 = arith.constant 0 : index
    %c0_55 = arith.constant 0 : index
    %c0_56 = arith.constant 0 : index
    %54 = vector.load %arg11[%c0_54, %c0_55, %c0_56] : memref<5x14x14xf32, #tpu.memory_space<vmem>>, vector<1x14x14xf32>
    %55 = vector.shape_cast %54 : vector<1x14x14xf32> to vector<14x14xf32>
    %cst_57 = arith.constant dense<0.000000e+00> : vector<14x224xf32>
    %56 = tpu.matmul %55, %52, %cst_57 {dimension_numbers = #tpu.dot_dimension_numbers<[1], [0], [0], [1], [0, 0, 1, 1], [], []>} : vector<14x14xf32>, vector<14x224xf32>, vector<14x224xf32> -> vector<14x224xf32>
    %c0_58 = arith.constant 0 : index
    %c0_59 = arith.constant 0 : index
    %c0_60 = arith.constant 0 : index
    %57 = vector.load %arg9[%c0_58, %c0_59, %c0_60] : memref<5x224x448xf32, #tpu.memory_space<vmem>>, vector<1x224x448xf32>
    %58 = vector.shape_cast %57 : vector<1x224x448xf32> to vector<224x448xf32>
    %cst_61 = arith.constant dense<0.000000e+00> : vector<14x448xf32>
    %59 = tpu.matmul %56, %58, %cst_61 {dimension_numbers = #tpu.dot_dimension_numbers<[1], [0], [0], [1], [0, 0, 1, 1], [], []>} : vector<14x224xf32>, vector<224x448xf32>, vector<14x448xf32> -> vector<14x448xf32>
    %60 = arith.addf %53, %59 : vector<14x448xf32>
    %c1_62 = arith.constant 1 : index
    %c0_63 = arith.constant 0 : index
    %c0_64 = arith.constant 0 : index
    %61 = vector.load %arg11[%c1_62, %c0_63, %c0_64] : memref<5x14x14xf32, #tpu.memory_space<vmem>>, vector<1x14x14xf32>
    %62 = vector.shape_cast %61 : vector<1x14x14xf32> to vector<14x14xf32>
    %cst_65 = arith.constant dense<0.000000e+00> : vector<14x224xf32>
    %63 = tpu.matmul %62, %52, %cst_65 {dimension_numbers = #tpu.dot_dimension_numbers<[1], [0], [0], [1], [0, 0, 1, 1], [], []>} : vector<14x14xf32>, vector<14x224xf32>, vector<14x224xf32> -> vector<14x224xf32>
    %c1_66 = arith.constant 1 : index
    %c0_67 = arith.constant 0 : index
    %c0_68 = arith.constant 0 : index
    %64 = vector.load %arg9[%c1_66, %c0_67, %c0_68] : memref<5x224x448xf32, #tpu.memory_space<vmem>>, vector<1x224x448xf32>
    %65 = vector.shape_cast %64 : vector<1x224x448xf32> to vector<224x448xf32>
    %cst_69 = arith.constant dense<0.000000e+00> : vector<14x448xf32>
    %66 = tpu.matmul %63, %65, %cst_69 {dimension_numbers = #tpu.dot_dimension_numbers<[1], [0], [0], [1], [0, 0, 1, 1], [], []>} : vector<14x224xf32>, vector<224x448xf32>, vector<14x448xf32> -> vector<14x448xf32>
    %67 = arith.addf %60, %66 : vector<14x448xf32>
    %c2_70 = arith.constant 2 : index
    %c0_71 = arith.constant 0 : index
    %c0_72 = arith.constant 0 : index
    %68 = vector.load %arg11[%c2_70, %c0_71, %c0_72] : memref<5x14x14xf32, #tpu.memory_space<vmem>>, vector<1x14x14xf32>
    %69 = vector.shape_cast %68 : vector<1x14x14xf32> to vector<14x14xf32>
    %cst_73 = arith.constant dense<0.000000e+00> : vector<14x224xf32>
    %70 = tpu.matmul %69, %52, %cst_73 {dimension_numbers = #tpu.dot_dimension_numbers<[1], [0], [0], [1], [0, 0, 1, 1], [], []>} : vector<14x14xf32>, vector<14x224xf32>, vector<14x224xf32> -> vector<14x224xf32>
    %c2_74 = arith.constant 2 : index
    %c0_75 = arith.constant 0 : index
    %c0_76 = arith.constant 0 : index
    %71 = vector.load %arg9[%c2_74, %c0_75, %c0_76] : memref<5x224x448xf32, #tpu.memory_space<vmem>>, vector<1x224x448xf32>
    %72 = vector.shape_cast %71 : vector<1x224x448xf32> to vector<224x448xf32>
    %cst_77 = arith.constant dense<0.000000e+00> : vector<14x448xf32>
    %73 = tpu.matmul %70, %72, %cst_77 {dimension_numbers = #tpu.dot_dimension_numbers<[1], [0], [0], [1], [0, 0, 1, 1], [], []>} : vector<14x224xf32>, vector<224x448xf32>, vector<14x448xf32> -> vector<14x448xf32>
    %74 = arith.addf %67, %73 : vector<14x448xf32>
    %c3_78 = arith.constant 3 : index
    %c0_79 = arith.constant 0 : index
    %c0_80 = arith.constant 0 : index
    %75 = vector.load %arg11[%c3_78, %c0_79, %c0_80] : memref<5x14x14xf32, #tpu.memory_space<vmem>>, vector<1x14x14xf32>
    %76 = vector.shape_cast %75 : vector<1x14x14xf32> to vector<14x14xf32>
    %cst_81 = arith.constant dense<0.000000e+00> : vector<14x224xf32>
    %77 = tpu.matmul %76, %52, %cst_81 {dimension_numbers = #tpu.dot_dimension_numbers<[1], [0], [0], [1], [0, 0, 1, 1], [], []>} : vector<14x14xf32>, vector<14x224xf32>, vector<14x224xf32> -> vector<14x224xf32>
    %c3_82 = arith.constant 3 : index
    %c0_83 = arith.constant 0 : index
    %c0_84 = arith.constant 0 : index
    %78 = vector.load %arg9[%c3_82, %c0_83, %c0_84] : memref<5x224x448xf32, #tpu.memory_space<vmem>>, vector<1x224x448xf32>
    %79 = vector.shape_cast %78 : vector<1x224x448xf32> to vector<224x448xf32>
    %cst_85 = arith.constant dense<0.000000e+00> : vector<14x448xf32>
    %80 = tpu.matmul %77, %79, %cst_85 {dimension_numbers = #tpu.dot_dimension_numbers<[1], [0], [0], [1], [0, 0, 1, 1], [], []>} : vector<14x224xf32>, vector<224x448xf32>, vector<14x448xf32> -> vector<14x448xf32>
    %81 = arith.addf %74, %80 : vector<14x448xf32>
    %c4_86 = arith.constant 4 : index
    %c0_87 = arith.constant 0 : index
    %c0_88 = arith.constant 0 : index
    %82 = vector.load %arg11[%c4_86, %c0_87, %c0_88] : memref<5x14x14xf32, #tpu.memory_space<vmem>>, vector<1x14x14xf32>
    %83 = vector.shape_cast %82 : vector<1x14x14xf32> to vector<14x14xf32>
    %cst_89 = arith.constant dense<0.000000e+00> : vector<14x224xf32>
    %84 = tpu.matmul %83, %52, %cst_89 {dimension_numbers = #tpu.dot_dimension_numbers<[1], [0], [0], [1], [0, 0, 1, 1], [], []>} : vector<14x14xf32>, vector<14x224xf32>, vector<14x224xf32> -> vector<14x224xf32>
    %c4_90 = arith.constant 4 : index
    %c0_91 = arith.constant 0 : index
    %c0_92 = arith.constant 0 : index
    %85 = vector.load %arg9[%c4_90, %c0_91, %c0_92] : memref<5x224x448xf32, #tpu.memory_space<vmem>>, vector<1x224x448xf32>
    %86 = vector.shape_cast %85 : vector<1x224x448xf32> to vector<224x448xf32>
    %cst_93 = arith.constant dense<0.000000e+00> : vector<14x448xf32>
    %87 = tpu.matmul %84, %86, %cst_93 {dimension_numbers = #tpu.dot_dimension_numbers<[1], [0], [0], [1], [0, 0, 1, 1], [], []>} : vector<14x224xf32>, vector<224x448xf32>, vector<14x448xf32> -> vector<14x448xf32>
    %88 = arith.addf %81, %87 : vector<14x448xf32>
    %c0_94 = arith.constant 0 : index
    %c0_95 = arith.constant 0 : index
    %89 = vector.load %arg10[%c0_94, %c0_95] : memref<1x448xf32, #tpu.memory_space<vmem>>, vector<1x448xf32>
    %90 = vector.broadcast %89 : vector<1x448xf32> to vector<14x448xf32>
    %91 = arith.addf %88, %90 : vector<14x448xf32>
    %cst_96 = arith.constant 0.000000e+00 : f32
    %92 = vector.broadcast %cst_96 : f32 to vector<14x448xf32>
    %93 = arith.maximumf %91, %92 : vector<14x448xf32>
    %c0_97 = arith.constant 0 : index
    %c0_98 = arith.constant 0 : index
    %94 = vector.load %arg12[%c0_97, %c0_98] : memref<7x14xf32, #tpu.memory_space<vmem>>, vector<7x14xf32>
    %cst_99 = arith.constant dense<0.000000e+00> : vector<7x448xf32>
    %95 = tpu.matmul %94, %93, %cst_99 {dimension_numbers = #tpu.dot_dimension_numbers<[1], [0], [0], [1], [0, 0, 1, 1], [], []>} : vector<7x14xf32>, vector<14x448xf32>, vector<7x448xf32> -> vector<7x448xf32>
    %c0_100 = arith.constant 0 : index
    %c0_101 = arith.constant 0 : index
    %96 = vector.load %arg13[%c0_100, %c0_101] : memref<7x14xf32, #tpu.memory_space<vmem>>, vector<7x14xf32>
    %cst_102 = arith.constant dense<0.000000e+00> : vector<7x448xf32>
    %97 = tpu.matmul %96, %93, %cst_102 {dimension_numbers = #tpu.dot_dimension_numbers<[1], [0], [0], [1], [0, 0, 1, 1], [], []>} : vector<7x14xf32>, vector<14x448xf32>, vector<7x448xf32> -> vector<7x448xf32>
    %98 = arith.maximumf %95, %97 : vector<7x448xf32>
    %c0_103 = arith.constant 0 : index
    %c0_104 = arith.constant 0 : index
    %99 = vector.load %arg14[%c0_103, %c0_104] : memref<448x224xf32, #tpu.memory_space<vmem>>, vector<448x224xf32>
    %cst_105 = arith.constant dense<0.000000e+00> : vector<7x224xf32>
    %100 = tpu.matmul %98, %99, %cst_105 {dimension_numbers = #tpu.dot_dimension_numbers<[1], [0], [0], [1], [0, 0, 1, 1], [], []>} : vector<7x448xf32>, vector<448x224xf32>, vector<7x224xf32> -> vector<7x224xf32>
    %c0_106 = arith.constant 0 : index
    %c0_107 = arith.constant 0 : index
    %101 = vector.load %arg15[%c0_106, %c0_107] : memref<448x224xf32, #tpu.memory_space<vmem>>, vector<448x224xf32>
    %cst_108 = arith.constant dense<0.000000e+00> : vector<7x224xf32>
    %102 = tpu.matmul %98, %101, %cst_108 {dimension_numbers = #tpu.dot_dimension_numbers<[1], [0], [0], [1], [0, 0, 1, 1], [], []>} : vector<7x448xf32>, vector<448x224xf32>, vector<7x224xf32> -> vector<7x224xf32>
    %103 = arith.maximumf %100, %102 : vector<7x224xf32>
    %c0_109 = arith.constant 0 : index
    %c0_110 = arith.constant 0 : index
    %104 = vector.load %arg17[%c0_109, %c0_110] : memref<1x10xf32, #tpu.memory_space<vmem>>, vector<1x10xf32>
    %105 = vector.extract_strided_slice %103 {offsets = [0, 0], sizes = [1, 224], strides = [1, 1]} : vector<7x224xf32> to vector<1x224xf32>
    %c0_111 = arith.constant 0 : index
    %c0_112 = arith.constant 0 : index
    %c0_113 = arith.constant 0 : index
    %106 = vector.load %arg16[%c0_111, %c0_112, %c0_113] : memref<7x224x10xf32, #tpu.memory_space<vmem>>, vector<1x224x10xf32>
    %107 = vector.shape_cast %106 : vector<1x224x10xf32> to vector<224x10xf32>
    %cst_114 = arith.constant dense<0.000000e+00> : vector<1x10xf32>
    %108 = tpu.matmul %105, %107, %cst_114 {dimension_numbers = #tpu.dot_dimension_numbers<[1], [0], [0], [1], [0, 0, 1, 1], [], []>} : vector<1x224xf32>, vector<224x10xf32>, vector<1x10xf32> -> vector<1x10xf32>
    %109 = arith.addf %104, %108 : vector<1x10xf32>
    %110 = vector.extract_strided_slice %103 {offsets = [1, 0], sizes = [1, 224], strides = [1, 1]} : vector<7x224xf32> to vector<1x224xf32>
    %c1_115 = arith.constant 1 : index
    %c0_116 = arith.constant 0 : index
    %c0_117 = arith.constant 0 : index
    %111 = vector.load %arg16[%c1_115, %c0_116, %c0_117] : memref<7x224x10xf32, #tpu.memory_space<vmem>>, vector<1x224x10xf32>
    %112 = vector.shape_cast %111 : vector<1x224x10xf32> to vector<224x10xf32>
    %cst_118 = arith.constant dense<0.000000e+00> : vector<1x10xf32>
    %113 = tpu.matmul %110, %112, %cst_118 {dimension_numbers = #tpu.dot_dimension_numbers<[1], [0], [0], [1], [0, 0, 1, 1], [], []>} : vector<1x224xf32>, vector<224x10xf32>, vector<1x10xf32> -> vector<1x10xf32>
    %114 = arith.addf %109, %113 : vector<1x10xf32>
    %115 = vector.extract_strided_slice %103 {offsets = [2, 0], sizes = [1, 224], strides = [1, 1]} : vector<7x224xf32> to vector<1x224xf32>
    %c2_119 = arith.constant 2 : index
    %c0_120 = arith.constant 0 : index
    %c0_121 = arith.constant 0 : index
    %116 = vector.load %arg16[%c2_119, %c0_120, %c0_121] : memref<7x224x10xf32, #tpu.memory_space<vmem>>, vector<1x224x10xf32>
    %117 = vector.shape_cast %116 : vector<1x224x10xf32> to vector<224x10xf32>
    %cst_122 = arith.constant dense<0.000000e+00> : vector<1x10xf32>
    %118 = tpu.matmul %115, %117, %cst_122 {dimension_numbers = #tpu.dot_dimension_numbers<[1], [0], [0], [1], [0, 0, 1, 1], [], []>} : vector<1x224xf32>, vector<224x10xf32>, vector<1x10xf32> -> vector<1x10xf32>
    %119 = arith.addf %114, %118 : vector<1x10xf32>
    %120 = vector.extract_strided_slice %103 {offsets = [3, 0], sizes = [1, 224], strides = [1, 1]} : vector<7x224xf32> to vector<1x224xf32>
    %c3_123 = arith.constant 3 : index
    %c0_124 = arith.constant 0 : index
    %c0_125 = arith.constant 0 : index
    %121 = vector.load %arg16[%c3_123, %c0_124, %c0_125] : memref<7x224x10xf32, #tpu.memory_space<vmem>>, vector<1x224x10xf32>
    %122 = vector.shape_cast %121 : vector<1x224x10xf32> to vector<224x10xf32>
    %cst_126 = arith.constant dense<0.000000e+00> : vector<1x10xf32>
    %123 = tpu.matmul %120, %122, %cst_126 {dimension_numbers = #tpu.dot_dimension_numbers<[1], [0], [0], [1], [0, 0, 1, 1], [], []>} : vector<1x224xf32>, vector<224x10xf32>, vector<1x10xf32> -> vector<1x10xf32>
    %124 = arith.addf %119, %123 : vector<1x10xf32>
    %125 = vector.extract_strided_slice %103 {offsets = [4, 0], sizes = [1, 224], strides = [1, 1]} : vector<7x224xf32> to vector<1x224xf32>
    %c4_127 = arith.constant 4 : index
    %c0_128 = arith.constant 0 : index
    %c0_129 = arith.constant 0 : index
    %126 = vector.load %arg16[%c4_127, %c0_128, %c0_129] : memref<7x224x10xf32, #tpu.memory_space<vmem>>, vector<1x224x10xf32>
    %127 = vector.shape_cast %126 : vector<1x224x10xf32> to vector<224x10xf32>
    %cst_130 = arith.constant dense<0.000000e+00> : vector<1x10xf32>
    %128 = tpu.matmul %125, %127, %cst_130 {dimension_numbers = #tpu.dot_dimension_numbers<[1], [0], [0], [1], [0, 0, 1, 1], [], []>} : vector<1x224xf32>, vector<224x10xf32>, vector<1x10xf32> -> vector<1x10xf32>
    %129 = arith.addf %124, %128 : vector<1x10xf32>
    %130 = vector.extract_strided_slice %103 {offsets = [5, 0], sizes = [1, 224], strides = [1, 1]} : vector<7x224xf32> to vector<1x224xf32>
    %c5 = arith.constant 5 : index
    %c0_131 = arith.constant 0 : index
    %c0_132 = arith.constant 0 : index
    %131 = vector.load %arg16[%c5, %c0_131, %c0_132] : memref<7x224x10xf32, #tpu.memory_space<vmem>>, vector<1x224x10xf32>
    %132 = vector.shape_cast %131 : vector<1x224x10xf32> to vector<224x10xf32>
    %cst_133 = arith.constant dense<0.000000e+00> : vector<1x10xf32>
    %133 = tpu.matmul %130, %132, %cst_133 {dimension_numbers = #tpu.dot_dimension_numbers<[1], [0], [0], [1], [0, 0, 1, 1], [], []>} : vector<1x224xf32>, vector<224x10xf32>, vector<1x10xf32> -> vector<1x10xf32>
    %134 = arith.addf %129, %133 : vector<1x10xf32>
    %135 = vector.extract_strided_slice %103 {offsets = [6, 0], sizes = [1, 224], strides = [1, 1]} : vector<7x224xf32> to vector<1x224xf32>
    %c6 = arith.constant 6 : index
    %c0_134 = arith.constant 0 : index
    %c0_135 = arith.constant 0 : index
    %136 = vector.load %arg16[%c6, %c0_134, %c0_135] : memref<7x224x10xf32, #tpu.memory_space<vmem>>, vector<1x224x10xf32>
    %137 = vector.shape_cast %136 : vector<1x224x10xf32> to vector<224x10xf32>
    %cst_136 = arith.constant dense<0.000000e+00> : vector<1x10xf32>
    %138 = tpu.matmul %135, %137, %cst_136 {dimension_numbers = #tpu.dot_dimension_numbers<[1], [0], [0], [1], [0, 0, 1, 1], [], []>} : vector<1x224xf32>, vector<224x10xf32>, vector<1x10xf32> -> vector<1x10xf32>
    %139 = arith.addf %134, %138 : vector<1x10xf32>
    %c0_137 = arith.constant 0 : index
    %c0_138 = arith.constant 0 : index
    %c0_139 = arith.constant 0 : index
    %140 = vector.load %arg18[%c0_137, %c0_138, %c0_139] : memref<1x1x10xf32, #tpu.memory_space<vmem>>, vector<1x1x10xf32>
    %141 = vector.shape_cast %140 : vector<1x1x10xf32> to vector<1x10xf32>
    %142 = vector.shape_cast %139 : vector<1x10xf32> to vector<1x1x10xf32>
    tpu.vector_store %arg18[%c0_137, %c0_138, %c0_139], %142 {strides = array<i32>} : memref<1x1x10xf32, #tpu.memory_space<vmem>>, vector<1x1x10xf32>,
    return
  }
  func.func @transform_0(%arg0: i32) -> (i32, i32, i32) {
    %c0_i32 = arith.constant 0 : i32
    %c0_i32_0 = arith.constant 0 : i32
    %c0_i32_1 = arith.constant 0 : i32
    return %arg0, %c0_i32, %c0_i32_0 : i32, i32, i32
  }
  func.func @transform_1(%arg0: i32) -> (i32, i32, i32) {
    %c0_i32 = arith.constant 0 : i32
    %c0_i32_0 = arith.constant 0 : i32
    %c0_i32_1 = arith.constant 0 : i32
    %c0_i32_2 = arith.constant 0 : i32
    return %c0_i32, %c0_i32_0, %c0_i32_1 : i32, i32, i32
  }
  func.func @transform_2(%arg0: i32) -> (i32, i32) {
    %c0_i32 = arith.constant 0 : i32
    %c0_i32_0 = arith.constant 0 : i32
    %c0_i32_1 = arith.constant 0 : i32
    return %c0_i32, %c0_i32_0 : i32, i32
  }
  func.func @transform_3(%arg0: i32) -> (i32, i32, i32) {
    %c0_i32 = arith.constant 0 : i32
    %c0_i32_0 = arith.constant 0 : i32
    %c0_i32_1 = arith.constant 0 : i32
    %c0_i32_2 = arith.constant 0 : i32
    return %c0_i32, %c0_i32_0, %c0_i32_1 : i32, i32, i32
  }
  func.func @transform_4(%arg0: i32) -> (i32, i32) {
    %c0_i32 = arith.constant 0 : i32
    %c0_i32_0 = arith.constant 0 : i32
    %c0_i32_1 = arith.constant 0 : i32
    return %c0_i32, %c0_i32_0 : i32, i32
  }
  func.func @transform_5(%arg0: i32) -> (i32, i32) {
    %c0_i32 = arith.constant 0 : i32
    %c0_i32_0 = arith.constant 0 : i32
    %c0_i32_1 = arith.constant 0 : i32
    return %c0_i32, %c0_i32_0 : i32, i32
  }
  func.func @transform_6(%arg0: i32) -> (i32, i32) {
    %c0_i32 = arith.constant 0 : i32
    %c0_i32_0 = arith.constant 0 : i32
    %c0_i32_1 = arith.constant 0 : i32
    return %c0_i32, %c0_i32_0 : i32, i32
  }
  func.func @transform_7(%arg0: i32) -> (i32, i32) {
    %c0_i32 = arith.constant 0 : i32
    %c0_i32_0 = arith.constant 0 : i32
    %c0_i32_1 = arith.constant 0 : i32
    return %c0_i32, %c0_i32_0 : i32, i32
  }
  func.func @transform_8(%arg0: i32) -> (i32, i32, i32) {
    %c0_i32 = arith.constant 0 : i32
    %c0_i32_0 = arith.constant 0 : i32
    %c0_i32_1 = arith.constant 0 : i32
    %c0_i32_2 = arith.constant 0 : i32
    return %c0_i32, %c0_i32_0, %c0_i32_1 : i32, i32, i32
  }
  func.func @transform_9(%arg0: i32) -> (i32, i32) {
    %c0_i32 = arith.constant 0 : i32
    %c0_i32_0 = arith.constant 0 : i32
    %c0_i32_1 = arith.constant 0 : i32
    return %c0_i32, %c0_i32_0 : i32, i32
  }
  func.func @transform_10(%arg0: i32) -> (i32, i32, i32) {
    %c0_i32 = arith.constant 0 : i32
    %c0_i32_0 = arith.constant 0 : i32
    %c0_i32_1 = arith.constant 0 : i32
    %c0_i32_2 = arith.constant 0 : i32
    return %c0_i32, %c0_i32_0, %c0_i32_1 : i32, i32, i32
  }
  func.func @transform_11(%arg0: i32) -> (i32, i32) {
    %c0_i32 = arith.constant 0 : i32
    %c0_i32_0 = arith.constant 0 : i32
    %c0_i32_1 = arith.constant 0 : i32
    return %c0_i32, %c0_i32_0 : i32, i32
  }
  func.func @transform_12(%arg0: i32) -> (i32, i32) {
    %c0_i32 = arith.constant 0 : i32
    %c0_i32_0 = arith.constant 0 : i32
    %c0_i32_1 = arith.constant 0 : i32
    return %c0_i32, %c0_i32_0 : i32, i32
  }
  func.func @transform_13(%arg0: i32) -> (i32, i32) {
    %c0_i32 = arith.constant 0 : i32
    %c0_i32_0 = arith.constant 0 : i32
    %c0_i32_1 = arith.constant 0 : i32
    return %c0_i32, %c0_i32_0 : i32, i32
  }
  func.func @transform_14(%arg0: i32) -> (i32, i32) {
    %c0_i32 = arith.constant 0 : i32
    %c0_i32_0 = arith.constant 0 : i32
    %c0_i32_1 = arith.constant 0 : i32
    return %c0_i32, %c0_i32_0 : i32, i32
  }
  func.func @transform_15(%arg0: i32) -> (i32, i32, i32) {
    %c0_i32 = arith.constant 0 : i32
    %c0_i32_0 = arith.constant 0 : i32
    %c0_i32_1 = arith.constant 0 : i32
    %c0_i32_2 = arith.constant 0 : i32
    return %c0_i32, %c0_i32_0, %c0_i32_1 : i32, i32, i32
  }
  func.func @transform_16(%arg0: i32) -> (i32, i32) {
    %c0_i32 = arith.constant 0 : i32
    %c0_i32_0 = arith.constant 0 : i32
    %c0_i32_1 = arith.constant 0 : i32
    return %c0_i32, %c0_i32_0 : i32, i32
  }
  func.func @transform_17(%arg0: i32) -> (i32, i32, i32) {
    %c0_i32 = arith.constant 0 : i32
    %c0_i32_0 = arith.constant 0 : i32
    %c0_i32_1 = arith.constant 0 : i32
    return %arg0, %c0_i32, %c0_i32_0 : i32, i32, i32
  }
}

</mosaic_0001>

<bundles_post_ra>
// kernel: cnn_forward.1
= control target key start
LH: loop header
LB: loop body
LE: loop exit
PB: predicated region body
PF: predicated region fallthrough
CT: control target
= control target key end

     0   :  { %s11588_s0 = inlined_call_operand.vmem [shape: f32[2,28,28], index: 0, kind: input, shape index: {}]   ;;  %s11589_s1 = inlined_call_operand.hbm [shape: f32[5,28,448], index: 1, kind: input, shape index: {}]   ;;  %s11590_s2 = inlined_call_operand.hbm [shape: f32[1,448], index: 2, kind: input, shape index: {}]   ;;  %s11591_s3 = inlined_call_operand.hbm [shape: f32[5,28,28], index: 3, kind: input, shape index: {}]   ;;  %s11592_s4 = inlined_call_operand.hbm [shape: f32[14,28], index: 4, kind: input, shape index: {}]   ;;  %s11593_s5 = inlined_call_operand.hbm [shape: f32[14,28], index: 5, kind: input, shape index: {}]   ;;  %s11594_s6 = inlined_call_operand.hbm [shape: f32[448,224], index: 6, kind: input, shape index: {}]   ;;  %s11595_s7 = inlined_call_operand.hbm [shape: f32[448,224], index: 7, kind: input, shape index: {}]   ;;  %s11596_s8 = inlined_call_operand.hbm [shape: f32[5,224,448], index: 8, kind: input, shape index: {}]   ;;  %s11597_s9 = inlined_call_operand.hbm [shape: f32[1,448], index: 9, kind: input, shape index: {}]   ;;  %s11598_s10 = inlined_call_operand.hbm [shape: f32[5,14,14], index: 10, kind: input, shape index: {}]   ;;  %s11599_s11 = inlined_call_operand.hbm [shape: f32[7,14], index: 11, kind: input, shape index: {}]   ;;  %s11600_s12 = inlined_call_operand.hbm [shape: f32[7,14], index: 12, kind: input, shape index: {}]   ;;  %s11601_s13 = inlined_call_operand.hbm [shape: f32[448,224], index: 13, kind: input, shape index: {}]   ;;  %s11602_s14 = inlined_call_operand.hbm [shape: f32[448,224], index: 14, kind: input, shape index: {}]   ;;  %s11603_s15 = inlined_call_operand.vmem [shape: f32[7,224,10], index: 15, kind: input, shape index: {}]   ;;  %s11604_s16 = inlined_call_operand.hbm [shape: f32[1,10], index: 16, kind: input, shape index: {}]   ;;  %s11605_s17 = inlined_call_operand.hbm [shape: f32[2,1,10], index: 17, kind: output, shape index: {}]  }
   0x1   :  { %11631 = sst [smem:[#allocation45_spill]] %s11588_s0 }
   0x2   :  { %11632 = sst [smem:[#allocation46_spill]] %s11589_s1 }
   0x3   :  { %11633 = sst [smem:[#allocation47_spill]] %s11590_s2 }
   0x4   :  { %11634 = sst [smem:[#allocation48_spill]] %s11592_s4 }
   0x5   :  { %11635 = sst [smem:[#allocation49_spill]] %s11594_s6 }
   0x6   :  { %11636 = sst [smem:[#allocation50_spill]] %s11596_s8 }
   0x7   :  { %11637 = sst [smem:[#allocation51_spill]] %s11598_s10 }
   0x8   :  { %11638 = sst [smem:[#allocation52_spill]] %s11603_s15 }
   0x9   :  { %11639 = sst [smem:[#allocation53_spill]] %s11605_s17 }
   0xa   :  { %22 = vsyncpa [#allocation3], 0 }
   0xb   :  { %23 = vsyncpa [#allocation6], 0 }
   0xc   :  { %24 = vsyncpa [#allocation9], 0 }
   0xd   :  { %25 = vsyncpa [#allocation12], 0 }
   0xe   :  { %26 = vsyncpa [#allocation15], 0 }
   0xf   :  { %27 = vsyncpa [#allocation18], 0 }
  0x10   :  { %28 = vsyncpa [#allocation21], 0 }
  0x11   :  { %29 = vsyncpa [#allocation24], 0 }
  0x12   :  { %30 = vsyncpa [#allocation4], 0 }
  0x13   :  { %32 = vsyncpa [#allocation4 + $0x1], 0  ;;  %s9970_s24 = smov 0   ;;  %s9972_s25 = smov 0  }
  0x14   :  { %s9974_s26 = smov 0   ;;  %s9976_s27 = smov 0  }
  0x15 LB: > { %11640 = sst [smem:[#allocation36_spill]] %s9841_s24  ;;  %s9991_s28 = sadd.s32 4294967295, %s9853_s27   ;;  %s9853_s27 = sphi %s9976_s27, %s11697_s27   ;;  %s9849_s26 = sphi %s9974_s26, %s11700_s26   ;;  %s9845_s25 = sphi %s9972_s25, %s11699_s25   ;;  %s9841_s24 = sphi %s9970_s24, %s11698_s24  }
  0x16   : > { %11641 = sst [smem:[#allocation37_spill]] %s9845_s25  ;;  %s6989_s29 = sadd.s32 4294967294, %s9853_s27  }
  0x17   : > { %11642 = sst [smem:[#allocation38_spill]] %s9849_s26  ;;  %s9995_s0 = sadd.s32 1, %s9853_s27  }
  0x18   : > { %11643 = sst [smem:[#allocation39_spill]] %s9853_s27  ;;  %s407_s30 = sadd.s32 1, %s9849_s26 }
  0x19   : > { %11644 = sst [smem:[#allocation40_spill]] %s9991_s28  ;;  %s404_s18 = ssub.s32 %s9853_s27, %s9995_s0 }
  0x1a   : > { %11645 = sst [smem:[#allocation41_spill]] %s9995_s0  ;;  %p417_p0 = scmp.ne.s32.totalorder %s9849_s26, %s9845_s25 }
  0x1b   : > { %p405_p1 = scmp.eq.s32.totalorder %s404_s18, 0  ;;  %p418_p2 = scmp.eq.s32.totalorder %s9991_s28, 1 }
  0x1c   : > { %p423_p3 = scmp.ne.s32.totalorder %s9845_s25, %s9841_s24  ;;  %p424_p4 = scmp.eq.s32.totalorder %s6989_s29, 1 }
  0x1d   : > { %s10006_s19 = scalar_select %p405_p1, %s9849_s26, %s407_s30  }
  0x1e   : > { %p10008_p5 = por %p418_p2, %p417_p0  ;;  %p10012_p6 = por %p424_p4, %p423_p3 }
  0x1f   : > { %11646 = sst [smem:[#allocation42_spill]] %s10006_s19  ;;  %p6990_p7 = scmp.ge.s32.totalorder %s9853_s27, 1 }
  0x20   : > { %s11647_s1 = scalar_select %p10008_p5, 1, 0 }
  0x21   : > { %s11649_s20 = scalar_select %p10012_p6, 1, 0 }
  0x22   : > { %11648 = sst [smem:[#allocation43_spill]] %s11647_s1  ;;  %p431_p8 = scmp.lt.s32.totalorder %s9853_s27, 3 }
  0x23   : > { %11650 = sst [smem:[#allocation44_spill]] %s11649_s20  ;;  %p11614_p9 = scmp.eq.s32.totalorder %s9991_s28, 0 }
  0x24   : > { %p10019_p10 = pnand %p6990_p7, %p431_p8  ;;  %s9855_s22 = smov [#allocation5]  }
  0x25   : > { %s457_s23 = sshll.u32 %s9855_s22, 4  ;;  %s9856_s30 = smov [#allocation8]   ;;  %s458_s23 = int_to_ptr.vmem [resolvable:$true] %s457_s23 }
  0x26   : > { %s11651_s21 = scalar_select %p10019_p10, 1, 0 }
  0x27   : > { %p9202_p11 = pneg %p10019_p10  ;;  %s480_s18 = sshll.u32 %s9856_s30, 4  ;;  %s10031_s18 = int_to_ptr.vmem [resolvable:$true] %s480_s18 }
  0x28   : > { %s9857_s19 = smov [#allocation11]   ;;  %s11653_s2 = sld [smem:[#allocation47_spill]] }
  0x29   : > { %p10027_p12 = pnand %p11614_p9, %p9202_p11  ;;  %s10033_s26 = sshll.u32 %s9857_s19, 4  ;;  %s507_s26 = int_to_ptr.vmem [resolvable:$true] %s10033_s26 }
  0x2b   : > { %p10043_p0 = pneg %p10027_p12 }
  0x2e   : > { %s9339_s22 = scalar_lea.hbm %s11653_s2, 64 }
  0x2f   : > { %p9340_p13 = scmp.ne.s32.totalorder %s11653_s2, %s9339_s22  ;;  %p9346_p3 = scmp.lt.u32.totalorder %s9339_s22, %s11653_s2 }
  0x31   : > { %p9342_p1 = pnand %p10043_p0, %p9340_p13 }
  0x33   : > { %p9343_p2 = pneg %p9342_p1 }
  0x35   : > { %p9348_p4 = pnand %p9346_p3, %p9343_p2 }
  0x37   : > { %9351 = shalt.err (!%p9348_p4)
}
  0x38   : > { %s9352_s0 = scalar_lea.vmem %s458_s23, 64  ;;  %p9360_p9 = scmp.lt.s32.totalorder %s458_s23, %s458_s23 }
  0x39   : > { %p9353_p7 = scmp.ne.s32.totalorder %s458_s23, %s9352_s0  ;;  %p9361_p6 = scmp.lt.s32.totalorder %s9352_s0, %s9352_s0 }
  0x3b   : > { %p9355_p8 = pnand %p9353_p7, %p10043_p0  ;;  %p9362_p5 = por %p9361_p6, %p9360_p9 }
  0x3d   : > { %p9356_p11 = pneg %p9355_p8 }
  0x3f   : > { %p9363_p10 = pnand %p9362_p5, %p9356_p11 }
  0x41   : > { %9366 = shalt.err (!%p9363_p10)
}
  0x42   : > { %9208 = dma.hbm_to_vmem [thread:$0]  (!%p10027_p12), %s11653_s2, 64, %s458_s23, [#allocation6]  }
  0x43   : > { %s11655_s4 = sld [smem:[#allocation48_spill]] }
  0x49   : > { %s9367_s30 = scalar_lea.hbm %s11655_s4, 256 }
  0x4a   : > { %p9368_p13 = scmp.ne.s32.totalorder %s11655_s4, %s9367_s30  ;;  %p9374_p5 = scmp.lt.u32.totalorder %s9367_s30, %s11655_s4 }
  0x4c   : > { %p9370_p1 = pnand %p9368_p13, %p10043_p0 }
  0x4e   : > { %p9371_p6 = pneg %p9370_p1 }
  0x50   : > { %p9376_p9 = pnand %p9374_p5, %p9371_p6 }
  0x52   : > { %9379 = shalt.err (!%p9376_p9)
}
  0x53   : > { %s9380_s23 = scalar_lea.vmem %s10031_s18, 256  ;;  %p9388_p4 = scmp.lt.s32.totalorder %s10031_s18, %s10031_s18 }
  0x54   : > { %p9381_p10 = scmp.ne.s32.totalorder %s10031_s18, %s9380_s23  ;;  %p9389_p7 = scmp.lt.s32.totalorder %s9380_s23, %s9380_s23 }
  0x56   : > { %p9383_p2 = pnand %p9381_p10, %p10043_p0  ;;  %p9390_p8 = por %p9389_p7, %p9388_p4 }
  0x58   : > { %p9384_p3 = pneg %p9383_p2 }
  0x5a   : > { %p9391_p11 = pnand %p9390_p8, %p9384_p3 }
  0x5c   : > { %9394 = shalt.err (!%p9391_p11)
}
  0x5d   : > { %s11620_s1 = smov 128   ;;  %s11622_s25 = smov 8  }
  0x5e   : > { %9214 = dma.hbm_to_vmem [thread:$0]  (!%p10027_p12), %s11655_s4, 256, %s10031_s18, [#allocation9], %s11620_s1, %s11620_s1, %s11622_s25  }
  0x5f   : > { %s11656_s6 = sld [smem:[#allocation49_spill]] }
  0x65   : > { %s9395_s30 = scalar_lea.hbm %s11656_s6, 14336 }
  0x66   : > { %p9396_p13 = scmp.ne.s32.totalorder %s11656_s6, %s9395_s30  ;;  %p9402_p5 = scmp.lt.u32.totalorder %s9395_s30, %s11656_s6 }
  0x68   : > { %p9398_p1 = pnand %p9396_p13, %p10043_p0 }
  0x6a   : > { %p9399_p6 = pneg %p9398_p1 }
  0x6c   : > { %p9404_p9 = pnand %p9402_p5, %p9399_p6 }
  0x6e   : > { %9407 = shalt.err (!%p9404_p9)
}
  0x6f   : > { %s9408_s24 = scalar_lea.vmem %s507_s26, 14336  ;;  %p9416_p4 = scmp.lt.s32.totalorder %s507_s26, %s507_s26 }
  0x70   : > { %p9409_p10 = scmp.ne.s32.totalorder %s507_s26, %s9408_s24  ;;  %p9417_p7 = scmp.lt.s32.totalorder %s9408_s24, %s9408_s24 }
  0x72   : > { %p9411_p2 = pnand %p9409_p10, %p10043_p0  ;;  %p9418_p8 = por %p9417_p7, %p9416_p4 }
  0x74   : > { %p9412_p3 = pneg %p9411_p2 }
  0x76   : > { %p9419_p11 = pnand %p9418_p8, %p9412_p3 }
  0x78   : > { %9422 = shalt.err (!%p9419_p11)
}
  0x79   : > { %s11629_s18 = smov 256   ;;  %s9861_s27 = smov 16  }
  0x7a   : > { %9220 = dma.hbm_to_vmem [thread:$0]  (!%p10027_p12), %s11656_s6, 14336, %s507_s26, [#allocation12], %s11629_s18, %s11629_s18, %s9861_s27  }
  0x7b   : > { %s9862_s22 = smov [#allocation14]   ;;  %s9863_s19 = smov [#allocation17]  }
  0x7c   : > { %s532_s30 = sshll.u32 %s9862_s22, 4  ;;  %s556_s0 = sshll.u32 %s9863_s19, 4  ;;  %s533_s30 = int_to_ptr.vmem [resolvable:$true] %s532_s30  ;;  %s557_s0 = int_to_ptr.vmem [resolvable:$true] %s556_s0 }
  0x7d   : > { %s11657_s8 = sld [smem:[#allocation50_spill]] }
  0x83   : > { %s9423_s1 = scalar_lea.hbm %s11657_s8, 71680 }
  0x84   : > { %p9424_p13 = scmp.ne.s32.totalorder %s11657_s8, %s9423_s1  ;;  %p9430_p5 = scmp.lt.u32.totalorder %s9423_s1, %s11657_s8 }
  0x86   : > { %p9426_p1 = pnand %p9424_p13, %p10043_p0 }
  0x88   : > { %p9427_p6 = pneg %p9426_p1 }
  0x8a   : > { %p9432_p9 = pnand %p9430_p5, %p9427_p6 }
  0x8c   : > { %9435 = shalt.err (!%p9432_p9)
}
  0x8d   : > { %s9436_s26 = scalar_lea.vmem %s533_s30, 71680  ;;  %p9444_p4 = scmp.lt.s32.totalorder %s533_s30, %s533_s30 }
  0x8e   : > { %p9437_p10 = scmp.ne.s32.totalorder %s533_s30, %s9436_s26  ;;  %p9445_p7 = scmp.lt.s32.totalorder %s9436_s26, %s9436_s26 }
  0x90   : > { %p9439_p2 = pnand %p9437_p10, %p10043_p0  ;;  %p9446_p8 = por %p9445_p7, %p9444_p4 }
  0x92   : > { %p9440_p3 = pneg %p9439_p2 }
  0x94   : > { %p9447_p11 = pnand %p9446_p8, %p9440_p3 }
  0x96   : > { %9450 = shalt.err (!%p9447_p11)
}
  0x97   : > { %s11627_s4 = smov 512   ;;  %s11628_s25 = smov 32  }
  0x98   : > { %9226 = dma.hbm_to_vmem [thread:$0]  (!%p10027_p12), %s11657_s8, 71680, %s533_s30, [#allocation15], %s11627_s4, %s11627_s4, %s11628_s25  }
  0x99   : > { %s11658_s10 = sld [smem:[#allocation51_spill]] }
  0x9f   : > { %s9451_s20 = scalar_lea.hbm %s11658_s10, 1280 }
  0xa0   : > { %p9452_p13 = scmp.ne.s32.totalorder %s11658_s10, %s9451_s20  ;;  %p9458_p5 = scmp.lt.u32.totalorder %s9451_s20, %s11658_s10 }
  0xa2   : > { %p9454_p1 = pnand %p9452_p13, %p10043_p0 }
  0xa4   : > { %p9455_p6 = pneg %p9454_p1 }
  0xa6   : > { %p9460_p9 = pnand %p9458_p5, %p9455_p6 }
  0xa8   : > { %9463 = shalt.err (!%p9460_p9)
}
  0xa9   : > { %s9464_s26 = scalar_lea.vmem %s557_s0, 1280  ;;  %p9472_p4 = scmp.lt.s32.totalorder %s557_s0, %s557_s0 }
  0xaa   : > { %p9465_p10 = scmp.ne.s32.totalorder %s557_s0, %s9464_s26  ;;  %p9473_p7 = scmp.lt.s32.totalorder %s9464_s26, %s9464_s26 }
  0xac   : > { %p9467_p2 = pnand %p9465_p10, %p10043_p0  ;;  %p9474_p8 = por %p9473_p7, %p9472_p4 }
  0xae   : > { %p9468_p3 = pneg %p9467_p2 }
  0xb0   : > { %p9475_p11 = pnand %p9474_p8, %p9468_p3 }
  0xb2   : > { %9478 = shalt.err (!%p9475_p11)
}
  0xb3   : > { %s11659_s30 = smov 8   ;;  %s11660_s15 = smov 128  }
  0xb4   : > { %9232 = dma.hbm_to_vmem [thread:$0]  (!%p10027_p12), %s11658_s10, 1280, %s557_s0, [#allocation18], %s11660_s15, %s11660_s15, %s11659_s30  }
  0xb5   : > { %s9866_s2 = smov [#allocation20]   ;;  %s9867_s22 = smov [#allocation23]  }
  0xb6   : > { %s581_s20 = sshll.u32 %s9866_s2, 4  ;;  %s604_s19 = sshll.u32 %s9867_s22, 4  ;;  %s582_s20 = int_to_ptr.vmem [resolvable:$true] %s581_s20  ;;  %s605_s19 = int_to_ptr.vmem [resolvable:$true] %s604_s19 }
  0xb7   : > { %s9479_s26 = scalar_lea.hbm %s11600_s12, 128 }
  0xb8   : > { %p9480_p13 = scmp.ne.s32.totalorder %s11600_s12, %s9479_s26  ;;  %p9486_p5 = scmp.lt.u32.totalorder %s9479_s26, %s11600_s12 }
  0xba   : > { %p9482_p1 = pnand %p9480_p13, %p10043_p0 }
  0xbc   : > { %p9483_p6 = pneg %p9482_p1 }
  0xbe   : > { %p9488_p9 = pnand %p9486_p5, %p9483_p6 }
  0xc0   : > { %9491 = shalt.err (!%p9488_p9)
}
  0xc1   : > { %s9492_s0 = scalar_lea.vmem %s582_s20, 128  ;;  %p9500_p4 = scmp.lt.s32.totalorder %s582_s20, %s582_s20 }
  0xc2   : > { %p9493_p10 = scmp.ne.s32.totalorder %s582_s20, %s9492_s0  ;;  %p9501_p7 = scmp.lt.s32.totalorder %s9492_s0, %s9492_s0 }
  0xc4   : > { %p9495_p2 = pnand %p9493_p10, %p10043_p0  ;;  %p9502_p8 = por %p9501_p7, %p9500_p4 }
  0xc6   : > { %p9496_p3 = pneg %p9495_p2 }
  0xc8   : > { %p9503_p11 = pnand %p9502_p8, %p9496_p3 }
  0xca   : > { %9506 = shalt.err (!%p9503_p11)
}
  0xcb   : > { %9238 = dma.hbm_to_vmem [thread:$0]  (!%p10027_p12), %s11600_s12, 128, %s582_s20, [#allocation21]  }
  0xcc   : > { %s9507_s2 = scalar_lea.hbm %s11602_s14, 14336 }
  0xcd   : > { %p9508_p13 = scmp.ne.s32.totalorder %s11602_s14, %s9507_s2  ;;  %p9514_p5 = scmp.lt.u32.totalorder %s9507_s2, %s11602_s14 }
  0xcf   : > { %p9510_p1 = pnand %p9508_p13, %p10043_p0 }
  0xd1   : > { %p9511_p6 = pneg %p9510_p1 }
  0xd3   : > { %p9516_p9 = pnand %p9514_p5, %p9511_p6 }
  0xd5   : > { %9519 = shalt.err (!%p9516_p9)
}
  0xd6   : > { %s9520_s28 = scalar_lea.vmem %s605_s19, 14336  ;;  %p9528_p4 = scmp.lt.s32.totalorder %s605_s19, %s605_s19 }
  0xd7   : > { %p9521_p10 = scmp.ne.s32.totalorder %s605_s19, %s9520_s28  ;;  %p9529_p7 = scmp.lt.s32.totalorder %s9520_s28, %s9520_s28 }
  0xd9   : > { %p9523_p2 = pnand %p9521_p10, %p10043_p0  ;;  %p9530_p8 = por %p9529_p7, %p9528_p4 }
  0xdb   : > { %p9524_p3 = pneg %p9523_p2 }
  0xdd   : > { %p9531_p11 = pnand %p9530_p8, %p9524_p3 }
  0xdf   : > { %9534 = shalt.err (!%p9531_p11)
}
  0xe0   : > { %s11661_s20 = smov 256   ;;  %s9868_s25 = smov [#allocation2]  }
  0xe1   : > { %9244 = dma.hbm_to_vmem [thread:$0]  (!%p10027_p12), %s11602_s14, 14336, %s605_s19, [#allocation24], %s11661_s20, %s11661_s20, %s9861_s27  }
  0xe2   : > { %s443_s18 = sshll.u32 %s9868_s25, 4  ;;  %s9869_s1 = smov [#allocation7]   ;;  %s444_s18 = int_to_ptr.vmem [resolvable:$true] %s443_s18 }
  0xe3   : > { %s467_s2 = sshll.u32 %s9869_s1, 4  ;;  %s11662_s24 = sld [smem:[#allocation46_spill]]  ;;  %s468_s2 = int_to_ptr.vmem [resolvable:$true] %s467_s2 }
  0xe9   : > { %s11663_s28 = smov %s11662_s24  ;;  %s9535_s26 = scalar_lea.hbm %s11662_s24, 10240 }
  0xea   : > { %p9536_p13 = scmp.ne.s32.totalorder %s11663_s28, %s9535_s26  ;;  %p9542_p5 = scmp.lt.u32.totalorder %s9535_s26, %s11663_s28 }
  0xec   : > { %p9538_p1 = pnand %p9536_p13, %p10043_p0 }
  0xee   : > { %p9539_p6 = pneg %p9538_p1 }
  0xf0   : > { %p9544_p9 = pnand %p9542_p5, %p9539_p6 }
  0xf2   : > { %9547 = shalt.err (!%p9544_p9)
}
  0xf3   : > { %s9548_s19 = scalar_lea.vmem %s444_s18, 10240  ;;  %p9556_p4 = scmp.lt.s32.totalorder %s444_s18, %s444_s18 }
  0xf4   : > { %p9549_p10 = scmp.ne.s32.totalorder %s444_s18, %s9548_s19  ;;  %p9557_p7 = scmp.lt.s32.totalorder %s9548_s19, %s9548_s19 }
  0xf6   : > { %p9551_p2 = pnand %p9549_p10, %p10043_p0  ;;  %p9558_p8 = por %p9557_p7, %p9556_p4 }
  0xf8   : > { %p9552_p3 = pneg %p9551_p2 }
  0xfa   : > { %p9559_p11 = pnand %p9558_p8, %p9552_p3 }
  0xfc   : > { %9562 = shalt.err (!%p9559_p11)
}
  0xfd   : > { %s11664_s6 = smov 32   ;;  %s11665_s8 = smov 512  }
  0xfe   : > { %9205 = dma.hbm_to_vmem [thread:$0]  (!%p10027_p12), %s11663_s28, 10240, %s444_s18, [#allocation3], %s11665_s8, %s11665_s8, %s11664_s6  }
  0xff   : > { %s9563_s22 = scalar_lea.hbm %s11591_s3, 2560 }
 0x100   : > { %p9564_p13 = scmp.ne.s32.totalorder %s11591_s3, %s9563_s22  ;;  %p9570_p5 = scmp.lt.u32.totalorder %s9563_s22, %s11591_s3 }
 0x102   : > { %p9566_p1 = pnand %p9564_p13, %p10043_p0 }
 0x104   : > { %p9567_p6 = pneg %p9566_p1 }
 0x106   : > { %p9572_p9 = pnand %p9570_p5, %p9567_p6 }
 0x108   : > { %9575 = shalt.err (!%p9572_p9)
}
 0x109   : > { %s9576_s19 = scalar_lea.vmem %s468_s2, 2560  ;;  %p9584_p4 = scmp.lt.s32.totalorder %s468_s2, %s468_s2 }
 0x10a   : > { %p9577_p10 = scmp.ne.s32.totalorder %s468_s2, %s9576_s19  ;;  %p9585_p7 = scmp.lt.s32.totalorder %s9576_s19, %s9576_s19 }
 0x10c   : > { %p9579_p2 = pnand %p9577_p10, %p10043_p0  ;;  %p9586_p8 = por %p9585_p7, %p9584_p4 }
 0x10e   : > { %p9580_p3 = pneg %p9579_p2 }
 0x110   : > { %p9587_p11 = pnand %p9586_p8, %p9580_p3 }
 0x112   : > { %9590 = shalt.err (!%p9587_p11)
}
 0x113   : > { %9211 = dma.hbm_to_vmem [thread:$0]  (!%p10027_p12), %s11591_s3, 2560, %s468_s2, [#allocation6], %s11660_s15, %s11660_s15, %s11659_s30  }
 0x114   : > { %s9870_s8 = smov [#allocation10]   ;;  %s9871_s4 = smov [#allocation13]  }
 0x115   : > { %s493_s10 = sshll.u32 %s9870_s8, 4  ;;  %s519_s25 = sshll.u32 %s9871_s4, 4  ;;  %s494_s10 = int_to_ptr.vmem [resolvable:$true] %s493_s10  ;;  %s520_s25 = int_to_ptr.vmem [resolvable:$true] %s519_s25 }
 0x116   : > { %s9591_s23 = scalar_lea.hbm %s11593_s5, 256 }
 0x117   : > { %p9592_p13 = scmp.ne.s32.totalorder %s11593_s5, %s9591_s23  ;;  %p9598_p5 = scmp.lt.u32.totalorder %s9591_s23, %s11593_s5 }
 0x119   : > { %p9594_p1 = pnand %p9592_p13, %p10043_p0 }
 0x11b   : > { %p9595_p6 = pneg %p9594_p1 }
 0x11d   : > { %p9600_p9 = pnand %p9598_p5, %p9595_p6 }
 0x11f   : > { %9603 = shalt.err (!%p9600_p9)
}
 0x120   : > { %s9604_s2 = scalar_lea.vmem %s494_s10, 256  ;;  %p9612_p4 = scmp.lt.s32.totalorder %s494_s10, %s494_s10 }
 0x121   : > { %p9605_p10 = scmp.ne.s32.totalorder %s494_s10, %s9604_s2  ;;  %p9613_p7 = scmp.lt.s32.totalorder %s9604_s2, %s9604_s2 }
 0x123   : > { %p9607_p2 = pnand %p9605_p10, %p10043_p0  ;;  %p9614_p8 = por %p9613_p7, %p9612_p4 }
 0x125   : > { %p9608_p3 = pneg %p9607_p2 }
 0x127   : > { %p9615_p11 = pnand %p9614_p8, %p9608_p3 }
 0x129   : > { %9618 = shalt.err (!%p9615_p11)
}
 0x12a   : > { %9217 = dma.hbm_to_vmem [thread:$0]  (!%p10027_p12), %s11593_s5, 256, %s494_s10, [#allocation9], %s11660_s15, %s11660_s15, %s11659_s30  }
 0x12b   : > { %s9619_s1 = scalar_lea.hbm %s11595_s7, 14336 }
 0x12c   : > { %p9620_p13 = scmp.ne.s32.totalorder %s11595_s7, %s9619_s1  ;;  %p9626_p5 = scmp.lt.u32.totalorder %s9619_s1, %s11595_s7 }
 0x12e   : > { %p9622_p1 = pnand %p9620_p13, %p10043_p0 }
 0x130   : > { %p9623_p6 = pneg %p9622_p1 }
 0x132   : > { %p9628_p9 = pnand %p9626_p5, %p9623_p6 }
 0x134   : > { %9631 = shalt.err (!%p9628_p9)
}
 0x135   : > { %s9632_s0 = scalar_lea.vmem %s520_s25, 14336  ;;  %p9640_p4 = scmp.lt.s32.totalorder %s520_s25, %s520_s25 }
 0x136   : > { %p9633_p10 = scmp.ne.s32.totalorder %s520_s25, %s9632_s0  ;;  %p9641_p7 = scmp.lt.s32.totalorder %s9632_s0, %s9632_s0 }
 0x138   : > { %p9635_p2 = pnand %p9633_p10, %p10043_p0  ;;  %p9642_p8 = por %p9641_p7, %p9640_p4 }
 0x13a   : > { %p9636_p3 = pneg %p9635_p2 }
 0x13c   : > { %p9643_p11 = pnand %p9642_p8, %p9636_p3 }
 0x13e   : > { %9646 = shalt.err (!%p9643_p11)
}
 0x13f   : > { %9223 = dma.hbm_to_vmem [thread:$0]  (!%p10027_p12), %s11595_s7, 14336, %s520_s25, [#allocation12], %s11661_s20, %s11661_s20, %s9861_s27  }
 0x140   : > { %s9872_s10 = smov [#allocation16]   ;;  %s9873_s2 = smov [#allocation19]  }
 0x141   : > { %s546_s19 = sshll.u32 %s9872_s10, 4  ;;  %s570_s18 = sshll.u32 %s9873_s2, 4  ;;  %s547_s19 = int_to_ptr.vmem [resolvable:$true] %s546_s19  ;;  %s571_s18 = int_to_ptr.vmem [resolvable:$true] %s570_s18 }
 0x142   : > { %s9647_s4 = scalar_lea.hbm %s11597_s9, 64 }
 0x143   : > { %p9648_p13 = scmp.ne.s32.totalorder %s11597_s9, %s9647_s4  ;;  %p9654_p5 = scmp.lt.u32.totalorder %s9647_s4, %s11597_s9 }
 0x145   : > { %p9650_p1 = pnand %p9648_p13, %p10043_p0 }
 0x147   : > { %p9651_p6 = pneg %p9650_p1 }
 0x149   : > { %p9656_p9 = pnand %p9654_p5, %p9651_p6 }
 0x14b   : > { %9659 = shalt.err (!%p9656_p9)
}
 0x14c   : > { %s9660_s25 = scalar_lea.vmem %s547_s19, 64  ;;  %p9668_p4 = scmp.lt.s32.totalorder %s547_s19, %s547_s19 }
 0x14d   : > { %p9661_p10 = scmp.ne.s32.totalorder %s547_s19, %s9660_s25  ;;  %p9669_p7 = scmp.lt.s32.totalorder %s9660_s25, %s9660_s25 }
 0x14f   : > { %p9663_p2 = pnand %p9661_p10, %p10043_p0  ;;  %p9670_p8 = por %p9669_p7, %p9668_p4 }
 0x151   : > { %p9664_p3 = pneg %p9663_p2 }
 0x153   : > { %p9671_p11 = pnand %p9670_p8, %p9664_p3 }
 0x155   : > { %9674 = shalt.err (!%p9671_p11)
}
 0x156   : > { %9229 = dma.hbm_to_vmem [thread:$0]  (!%p10027_p12), %s11597_s9, 64, %s547_s19, [#allocation15]  }
 0x157   : > { %s9675_s10 = scalar_lea.hbm %s11599_s11, 128 }
 0x158   : > { %p9676_p13 = scmp.ne.s32.totalorder %s11599_s11, %s9675_s10  ;;  %p9682_p5 = scmp.lt.u32.totalorder %s9675_s10, %s11599_s11 }
 0x15a   : > { %p9678_p1 = pnand %p9676_p13, %p10043_p0 }
 0x15c   : > { %p9679_p6 = pneg %p9678_p1 }
 0x15e   : > { %p9684_p9 = pnand %p9682_p5, %p9679_p6 }
 0x160   : > { %9687 = shalt.err (!%p9684_p9)
}
 0x161   : > { %s9688_s1 = scalar_lea.vmem %s571_s18, 128  ;;  %p9696_p4 = scmp.lt.s32.totalorder %s571_s18, %s571_s18 }
 0x162   : > { %p9689_p10 = scmp.ne.s32.totalorder %s571_s18, %s9688_s1  ;;  %p9697_p7 = scmp.lt.s32.totalorder %s9688_s1, %s9688_s1 }
 0x164   : > { %p9691_p2 = pnand %p9689_p10, %p10043_p0  ;;  %p9698_p8 = por %p9697_p7, %p9696_p4 }
 0x166   : > { %p9692_p3 = pneg %p9691_p2 }
 0x168   : > { %p9699_p11 = pnand %p9698_p8, %p9692_p3 }
 0x16a   : > { %9702 = shalt.err (!%p9699_p11)
}
 0x16b   : > { %9235 = dma.hbm_to_vmem [thread:$0]  (!%p10027_p12), %s11599_s11, 128, %s571_s18, [#allocation18]  }
 0x16c   : > { %s9874_s23 = smov [#allocation22]   ;;  %s9875_s25 = smov [#allocation25]  }
 0x16d   : > { %s591_s24 = sshll.u32 %s9874_s23, 4  ;;  %s621_s26 = sshll.u32 %s9875_s25, 4  ;;  %s592_s24 = int_to_ptr.vmem [resolvable:$true] %s591_s24  ;;  %s622_s26 = int_to_ptr.vmem [resolvable:$true] %s621_s26 }
 0x16e   : > { %s9703_s15 = scalar_lea.hbm %s11601_s13, 14336 }
 0x16f   : > { %p9704_p13 = scmp.ne.s32.totalorder %s11601_s13, %s9703_s15  ;;  %p9710_p5 = scmp.lt.u32.totalorder %s9703_s15, %s11601_s13 }
 0x171   : > { %p9706_p1 = pnand %p9704_p13, %p10043_p0 }
 0x173   : > { %p9707_p6 = pneg %p9706_p1 }
 0x175   : > { %p9712_p9 = pnand %p9710_p5, %p9707_p6 }
 0x177   : > { %9715 = shalt.err (!%p9712_p9)
}
 0x178   : > { %s9716_s18 = scalar_lea.vmem %s592_s24, 14336  ;;  %p9724_p4 = scmp.lt.s32.totalorder %s592_s24, %s592_s24 }
 0x179   : > { %p9717_p10 = scmp.ne.s32.totalorder %s592_s24, %s9716_s18  ;;  %p9725_p7 = scmp.lt.s32.totalorder %s9716_s18, %s9716_s18 }
 0x17b   : > { %p9719_p2 = pnand %p9717_p10, %p10043_p0  ;;  %p9726_p8 = por %p9725_p7, %p9724_p4 }
 0x17d   : > { %p9720_p3 = pneg %p9719_p2 }
 0x17f   : > { %p9727_p11 = pnand %p9726_p8, %p9720_p3 }
 0x181   : > { %9730 = shalt.err (!%p9727_p11)
}
 0x182   : > { %9241 = dma.hbm_to_vmem [thread:$0]  (!%p10027_p12), %s11601_s13, 14336, %s592_s24, [#allocation21], %s11661_s20, %s11661_s20, %s9861_s27  }
 0x183   : > { %s9731_s23 = scalar_lea.hbm %s11604_s16, 16 }
 0x184   : > { %p9732_p13 = scmp.ne.s32.totalorder %s11604_s16, %s9731_s23  ;;  %p9738_p5 = scmp.lt.u32.totalorder %s9731_s23, %s11604_s16 }
 0x186   : > { %p9734_p1 = pnand %p9732_p13, %p10043_p0 }
 0x188   : > { %p9735_p6 = pneg %p9734_p1 }
 0x18a   : > { %p9740_p9 = pnand %p9738_p5, %p9735_p6 }
 0x18c   : > { %9743 = shalt.err (!%p9740_p9)
}
 0x18d   : > { %s9744_s10 = scalar_lea.vmem %s622_s26, 16  ;;  %s9751_s27 = scalar_lea.vmem %s622_s26, 32 }
 0x18e   : > { %p9745_p10 = scmp.ne.s32.totalorder %s622_s26, %s9744_s10  ;;  %p9752_p4 = scmp.lt.s32.totalorder %s622_s26, %s622_s26 }
 0x18f   : > { %p9753_p7 = scmp.lt.s32.totalorder %s9751_s27, %s9744_s10 }
 0x190   : > { %p9747_p2 = pnand %p9745_p10, %p10043_p0 }
 0x191   : > { %p9754_p8 = por %p9753_p7, %p9752_p4 }
 0x192   : > { %p9748_p3 = pneg %p9747_p2 }
 0x194   : > { %p9755_p11 = pnand %p9754_p8, %p9748_p3 }
 0x196   : > { %9758 = shalt.err (!%p9755_p11)
}
 0x197   : > { %9247 = dma.hbm_to_vmem [thread:$0]  (!%p10027_p12), %s11604_s16, 16, %s622_s26, [#allocation24]  }
 0x198   : > { %p11666_p13 = scmp.ne.s32.totalorder %s11651_s21, 0 }
 0x199   : > { %s11667_s2 = sld [smem:[#allocation40_spill]] (!%p11666_p13) }
 0x19a   : > { %642 = sbr.rel (%p11666_p13) target bundleno = 4507 (0x119b), region = 88 }
 0x19f   : > { %p11668_p1 = scmp.eq.s32.totalorder (!%p11666_p13), %s11667_s2, 0 }
 0x1a1   : > { %9804 = dma.done.wait (%p11668_p1), [#allocation3], 10240   ;;  %p11669_p0 = pmov %p11668_p1 }
 0x1a3   : > { %9806 = vsyncadd (%p11669_p0), [#allocation3], 4294957056  ;;  %p11670_p6 = pmov %p11669_p0 }
 0x1a4   : > { %p11671_p5 = pmov %p11669_p0 }
 0x1a5   : > { %9808 = dma.done.wait (%p11670_p6), [#allocation6], 2624  }
 0x1a6   : > { %9810 = vsyncadd (%p11671_p5), [#allocation6], 4294964672  ;;  %p11672_p9 = pmov %p11669_p0 }
 0x1a7   : > { %p11673_p12 = pmov %p11669_p0 }
 0x1a8   : > { %9812 = dma.done.wait (%p11672_p9), [#allocation9], 512  }
 0x1a9   : > { %9814 = vsyncadd (%p11673_p12), [#allocation9], 4294966784  ;;  %p11674_p10 = pmov %p11669_p0 }
 0x1aa   : > { %p11675_p2 = pmov %p11669_p0 }
 0x1ab   : > { %9816 = dma.done.wait (%p11674_p10), [#allocation12], 28672  }
 0x1ac   : > { %9818 = vsyncadd (%p11675_p2), [#allocation12], 4294938624  ;;  %p11676_p3 = pmov %p11669_p0 }
 0x1ad   : > { %p11677_p4 = pmov %p11669_p0 }
 0x1ae   : > { %9820 = dma.done.wait (%p11676_p3), [#allocation15], 71744  }
 0x1af   : > { %9822 = vsyncadd (%p11677_p4), [#allocation15], 4294895552  ;;  %p11678_p7 = pmov %p11669_p0 }
 0x1b0   : > { %p11679_p8 = pmov %p11669_p0 }
 0x1b1   : > { %9824 = dma.done.wait (%p11678_p7), [#allocation18], 1408  }
 0x1b2   : > { %9826 = vsyncadd (%p11679_p8), [#allocation18], 4294965888  ;;  %p11680_p11 = pmov %p11669_p0 }
 0x1b3   : > { %p11681_p13 = pmov %p11669_p0 }
 0x1b4   : > { %9828 = dma.done.wait (%p11680_p11), [#allocation21], 14464  }
 0x1b5   : > { %9830 = vsyncadd (%p11681_p13), [#allocation21], 4294952832  ;;  %p11682_p1 = pmov %p11669_p0 }
 0x1b7   : > { %9832 = dma.done.wait (%p11682_p1), [#allocation24], 14352  }
 0x1b8   : > { %9834 = vsyncadd (%p11669_p0), [#allocation24], 4294952944  ;;  %p749_p6 = scmp.lt.s32.totalorder %s11667_s2, 1  ;;  %s11683_s6 = sld [smem:[#allocation45_spill]]  ;;  %vm775_vm0 = vcmask 1043456   ;;  %vm762_vm1 = vcmask 228352  }
 0x1b9   : > { %v758_v5 = vld [vmem:[#allocation7] sm:$0xff]  ;;  %vm9876_vm2 = vmmov 1   ;;  %v759_v8 = vld [vmem:[#allocation7 + $0x8] sm:$0xff]  ;;  %v760_v9 = vld [vmem:[#allocation7 + $0x10] sm:$0xff]  ;;  %v9877_v39 = vmov 0.0   ;;  %vm2924_vm4 = vcmask 523264  }
 0x1ba   : > { %s750_s17 = scalar_select %p749_p6, %s11667_s2, 1  ;;  %vm10391_vm3 = vmpackc.low %vm775_vm0, %vm9876_vm2  ;;  %7411 = vmatprep.mubr.msk.f32.mxu1 %vm762_vm1, %v758_v5  ;;  %v761_v10 = vld [vmem:[#allocation7 + $0x18] sm:$0xf]  ;;  %v881_v11 = vld [vmem:[#allocation7 + $0x20] sm:$0xff]  ;;  %1087 = vmatprep.mubr.f32.mxu0 %v9877_v39  ;;  %vm3364_vm5 = vcmask 1045504   ;;  %vm3357_vm7 = vcmask 113664  }
 0x1bb   : > { %v882_v12 = vld [vmem:[#allocation7 + $0x28] sm:$0xff]  ;;  %v883_v13 = vld [vmem:[#allocation7 + $0x30] sm:$0xff]  ;;  %v884_v14 = vld [vmem:[#allocation7 + $0x38] sm:$0xf]  ;;  %vm3759_vm8 = vcmask 785408   ;;  %s11688_s1 = sld [smem:[#allocation52_spill]] }
 0x1bc   : > { %s7362_s21 = sshll.u32 %s750_s17, 5  ;;  %v984_v15 = vld [vmem:[#allocation2 + $0x88] sm:$0xff]  ;;  %v986_v17 = vld [vmem:[#allocation2 + $0x98] sm:$0xff]  ;;  %v983_v20 = vld [vmem:[#allocation2 + $0x80] sm:$0xff]  ;;  %s11689_s23 = sld [smem:[#allocation37_spill]]  ;;  %vm6774_vm9 = vcmask 73728  }
 0x1bd   : > { %v988_v16 = vld [vmem:[#allocation2 + $0xa8] sm:$0xff]  ;;  %v990_v19 = vld [vmem:[#allocation2 + $0xb8] sm:$0xff]  ;;  %v987_v21 = vld [vmem:[#allocation2 + $0xa0] sm:$0xff]  ;;  %s11690_s17 = sld [smem:[#allocation43_spill]]  ;;  %s7359_s29 = sshll.u32 %s11667_s2, 4 }
 0x1be   : > { %s753_s8 = scalar_lea.vmem %s11683_s6, %s7362_s21  ;;  %v7493_v18 = vpack.c.bf16 %v988_v16, %v984_v15  ;;  %v7503_v22 = vpack.c.bf16 %v990_v19, %v986_v17  ;;  %v7495_v23 = vpack.c.bf16 %v987_v21, %v983_v20  ;;  %v985_v24 = vld [vmem:[#allocation2 + $0x90] sm:$0xff]  ;;  %v992_v27 = vld [vmem:[#allocation2 + $0xc8] sm:$0xff]  ;;  %v994_v29 = vld [vmem:[#allocation2 + $0xd8] sm:$0xff]  ;;  %s11691_s4 = sld [smem:[#allocation53_spill]] }
 0x1bf   : > { %v754_v0 = vld [vmem:[%s753_s8] sm:$0xff]  ;;  %v755_v1 = vld [vmem:[%s753_s8 + $0x8] sm:$0xff]  ;;  %v756_v2 = vld [vmem:[%s753_s8 + $0x10] sm:$0xff]  ;;  %s9879_s2 = smov [#allocation26]  }
 0x1c0   : > { %v10386_v3 = vpack.c.bf16 %v755_v1, %v754_v0  ;;  %v757_v4 = vld [vmem:[%s753_s8 + $0x18] sm:$0xf]  ;;  %v989_v25 = vld [vmem:[#allocation2 + $0xb0] sm:$0xff]  ;;  %7494 = vmatprep.subr.bf16.mxu0 %v7493_v18  ;;  %v996_v28 = vld [vmem:[#allocation2 + $0xe8] sm:$0xf]  ;;  %s9763_s25 = sshll.u32 %s9879_s2, 4  ;;  %s9764_s25 = int_to_ptr.vmem [resolvable:$false] %s9763_s25 }
 0x1c1   : > { %v10388_v6 = vpack.c.bf16 %v757_v4, %v756_v2  ;;  %v7505_v26 = vpack.c.bf16 %v989_v25, %v985_v24  ;;  %7496 = vmatpush1.bf16.msra.mxu0 %v7495_v23  ;;  %v7497_v30 = vpack.c.bf16 %v996_v28, %v992_v27  ;;  %v998_v31 = vld [vmem:[#allocation2 + $0xf8] sm:$0xf]  ;;  %v991_v32 = vld [vmem:[#allocation2 + $0xc0] sm:$0xff]  ;;  %v993_v36 = vld [vmem:[#allocation2 + $0xd0] sm:$0xff]  ;;  %s9765_s0 = scalar_lea.vmem %s9764_s25, 32 }
 0x1c2   : > { %7474 = vmatprep.subr.bf16.mxu1 %v10386_v3  ;;  %v995_v33 = vld [vmem:[#allocation2 + $0xe0] sm:$0xf]  ;;  %v7507_v34 = vpack.c.bf16 %v998_v31, %v994_v29  ;;  %v997_v37 = vld [vmem:[#allocation2 + $0xf0] sm:$0xf]  ;;  %v865_v40 = vld [vmem:[#allocation2 + $0x8] sm:$0xff]  ;;  %s747_s21 = sand.u32 1, %s11689_s23  }
 0x1c3   : > { %7476 = vmatpush3.bf16.msra.mxu1 %v10386_v3  ;;  %v7500_v35 = vpack.c.bf16 %v995_v33, %v991_v32  ;;  %7499 = vmatprep.subr.msk.bf16.mxu0 %vm10391_vm3, %v7497_v30  ;;  %v7510_v38 = vpack.c.bf16 %v997_v37, %v993_v36  ;;  %v869_v41 = vld [vmem:[#allocation2 + $0x28] sm:$0xff]  ;;  %v867_v43 = vld [vmem:[#allocation2 + $0x18] sm:$0xff]  ;;  %v864_v49 = vld [vmem:[#allocation2] sm:$0xff]  ;;  %s748_s26 = scalar_lea.vmem [#allocation26], %s747_s21  ;;  %s6777_s22 = scalar_lea.sflag [#allocation4], %s747_s21 }
 0x1c4   : > { %7479 = vmatprep.subr.msk.bf16.mxu1 %vm10391_vm3, %v10388_v6  ;;  %v7513_v42 = vpack.c.bf16 %v869_v41, %v865_v40  ;;  %v871_v44 = vld [vmem:[#allocation2 + $0x38] sm:$0xff]  ;;  %v868_v50 = vld [vmem:[#allocation2 + $0x20] sm:$0xff]  ;;  %v866_v52 = vld [vmem:[#allocation2 + $0x10] sm:$0xff]  ;;  %s6789_s6 = sshll.u32 %s748_s26, 4  ;;  %s11546_s19 = scalar_lea.hbm %s11691_s4, %s7359_s29  ;;  %s11548_s6 = int_to_ptr.vmem [resolvable:$true] %s6789_s6 }
 0x1c5   : > { %7502 = vmatpush1.bf16.msk.msra.mxu0 %vm10391_vm3, %v7500_v35  ;;  %v7523_v45 = vpack.c.bf16 %v871_v44, %v867_v43  ;;  %v870_v53 = vld [vmem:[#allocation2 + $0x30] sm:$0xff]  ;;  %v873_v54 = vld [vmem:[#allocation2 + $0x48] sm:$0xff]  ;;  %v875_v56 = vld [vmem:[#allocation2 + $0x58] sm:$0xff]  ;;  %v7515_v59 = vpack.c.bf16 %v868_v50, %v864_v49  ;;  %s9759_s23 = scalar_lea.vmem %s11548_s6, 16  ;;  %p11692_p9 = scmp.ne.s32.totalorder %s11690_s17, 0 }
 0x1c6   : > { %7514 = vmatprep.subr.bf16.mxu0 %v7513_v42  ;;  %v877_v55 = vld [vmem:[#allocation2 + $0x68] sm:$0xf]  ;;  %v879_v57 = vld [vmem:[#allocation2 + $0x78] sm:$0xf]  ;;  %v7525_v60 = vpack.c.bf16 %v870_v53, %v866_v52  ;;  %v872_v61 = vld [vmem:[#allocation2 + $0x40] sm:$0xff]  ;;  %p9760_p5 = scmp.ne.s32.totalorder %s11548_s6, %s9759_s23  ;;  %p9766_p2 = scmp.lt.s32.totalorder %s11548_s6, %s9764_s25 }
 0x1c7   : > { %7482 = vmatpush3.bf16.msk.msra.mxu1 %vm10391_vm3, %v10388_v6  ;;  %v7517_v63 = vpack.c.bf16 %v877_v55, %v873_v54  ;;  %v7527_v0 = vpack.c.bf16 %v879_v57, %v875_v56  ;;  %v876_v1 = vld [vmem:[#allocation2 + $0x60] sm:$0xf]  ;;  %v874_v2 = vld [vmem:[#allocation2 + $0x50] sm:$0xff]  ;;  %v1509_v5 = vld [vmem:[#allocation2 + $0x118] sm:$0xff]  ;;  %p9767_p3 = scmp.lt.s32.totalorder %s9765_s0, %s9759_s23 }
 0x1c8   : > { %7484 = vmatprep.subr.bf16.mxu1 %v10386_v3  ;;  %v878_v4 = vld [vmem:[#allocation2 + $0x70] sm:$0xf]  ;;  %v1517_v16 = vld [vmem:[#allocation2 + $0x158] sm:$0xff]  ;;  %v1511_v23 = vld [vmem:[#allocation2 + $0x128] sm:$0xff]  ;;  %p9761_p12 = pnand %p9760_p5, %p11692_p9 }
 0x1c9   : > { %v1512_v15 = vld [vmem:[#allocation2 + $0x130] sm:$0xff]  ;;  %v1521_v17 = vld [vmem:[#allocation2 + $0x178] sm:$0xf]  ;;  %v1506_v27 = vld [vmem:[#allocation2 + $0x100] sm:$0xff]  ;;  %p9768_p4 = por %p9767_p3, %p9766_p2 }
 0x1ca   : > { %7412 = vmatmul.mubr.msk.f32.vlgmr.msra.gmra.mrb[0].mxu1 %vm762_vm1, %v759_v8  ;;  %v1513_v8 = vld [vmem:[#allocation2 + $0x138] sm:$0xff]  ;;  %v7557_v19 = vpack.c.bf16 %v1521_v17, %v1517_v16  ;;  %v1516_v20 = vld [vmem:[#allocation2 + $0x150] sm:$0xff]  ;;  %v1510_v28 = vld [vmem:[#allocation2 + $0x120] sm:$0xff]  ;;  %p9762_p10 = pneg %p9761_p12 }
 0x1cb   : > { %7486 = vmatpush3.bf16.msra.mxu1 %v10386_v3  ;;  %7414 = vmatprep.mubr.msk.f32.mxu1 %vm762_vm1, %v760_v9  ;;  %v1520_v21 = vld [vmem:[#allocation2 + $0x170] sm:$0xf]  ;;  %v1515_v29 = vld [vmem:[#allocation2 + $0x148] sm:$0xff]  ;;  %v7545_v32 = vpack.c.bf16 %v1510_v28, %v1506_v27  ;;  %v1406_v33 = vld [vmem:[#allocation7 + $0x50] sm:$0xff] }
 0x1cc   : > { %7489 = vmatprep.subr.msk.bf16.mxu1 %vm10391_vm3, %v10388_v6  ;;  %v7560_v24 = vpack.c.bf16 %v1520_v21, %v1516_v20  ;;  %v1519_v30 = vld [vmem:[#allocation2 + $0x168] sm:$0xf]  ;;  %v1405_v31 = vld [vmem:[#allocation7 + $0x48] sm:$0xff]  ;;  %v1514_v35 = vld [vmem:[#allocation2 + $0x140] sm:$0xff]  ;;  %p9769_p7 = pnand %p9768_p4, %p9762_p10 }
 0x1cd   : > { %v1518_v36 = vld [vmem:[#allocation2 + $0x160] sm:$0xf]  ;;  %v1407_v37 = vld [vmem:[#allocation7 + $0x58] sm:$0xf]  ;;  %v1844_v40 = vld [vmem:[#allocation2 + $0x188] sm:$0xff] }
 0x1ce   : > { %7415 = vmatmul.mubr.msk.f32.gmra.mrb[2].mxu1 %vm762_vm1, %v761_v10  ;;  %v7520_v10 = vpack.c.bf16 %v876_v1, %v872_v61  ;;  %v1848_v41 = vld [vmem:[#allocation2 + $0x1a8] sm:$0xff]  ;;  %v1843_v43 = vld [vmem:[#allocation2 + $0x180] sm:$0xff]  ;;  %v1846_v53 = vld [vmem:[#allocation2 + $0x198] sm:$0xff] }
 0x1cf   : > { %7492 = vmatpush3.bf16.msk.msra.mxu1 %vm10391_vm3, %v10388_v6  ;;  %7425 = vmatprep.mubr.msk.f32.mxu1 %vm762_vm1, %v881_v11  ;;  %v7530_v11 = vpack.c.bf16 %v878_v4, %v874_v2  ;;  %v7573_v42 = vpack.c.bf16 %v1848_v41, %v1844_v40  ;;  %v1847_v44 = vld [vmem:[#allocation2 + $0x1a0] sm:$0xff]  ;;  %v1850_v54 = vld [vmem:[#allocation2 + $0x1b8] sm:$0xff]  ;;  %v1849_v61 = vld [vmem:[#allocation2 + $0x1b0] sm:$0xff] }
 0x1d0   : > { %7504 = vmatprep.subr.bf16.mxu1 %v7503_v22  ;;  %v1507_v22 = vld [vmem:[#allocation2 + $0x108] sm:$0xff]  ;;  %v1855_v52 = vld [vmem:[#allocation2 + $0x1e0] sm:$0xf]  ;;  %v1743_v2 = vld [vmem:[#allocation7 + $0x70] sm:$0xff] }
 0x1d1   : > { %v7543_v25 = vpack.c.bf16 %v1511_v23, %v1507_v22  ;;  %v2191_v16 = vld [vmem:[#allocation2 + $0x258] sm:$0xff]  ;;  %v2190_v22 = vld [vmem:[#allocation2 + $0x250] sm:$0xff]  ;;  %vm10670_vm6 = vmpackc.low %vm3364_vm5, %vm9876_vm2 }
 0x1d2   : > { %7426 = vmatmul.mubr.msk.f32.vlgmr.msra.gmra.mrb[4].mxu1 %vm762_vm1, %v882_v12  ;;  %v2195_v17 = vld [vmem:[#allocation2 + $0x278] sm:$0xf]  ;;  %v2194_v23 = vld [vmem:[#allocation2 + $0x270] sm:$0xf]  ;;  %v2081_v40 = vld [vmem:[#allocation7 + $0x98] sm:$0xf] }
 0x1d3   : > { %7428 = vmatprep.mubr.msk.f32.mxu1 %vm762_vm1, %v883_v13  ;;  %7506 = vmatpush1.bf16.msra.mxu1 %v7505_v26  ;;  %v7553_v13 = vpack.c.bf16 %v1513_v8, %v1509_v5  ;;  %v1404_v26 = vld [vmem:[#allocation7 + $0x40] sm:$0xff]  ;;  %v1853_v5 = vld [vmem:[#allocation2 + $0x1d0] sm:$0xff]  ;;  %v7617_v21 = vpack.c.bf16 %v2195_v17, %v2191_v16  ;;  %v7620_v27 = vpack.c.bf16 %v2194_v23, %v2190_v22  ;;  %v2643_v7 = vld [vmem:[#allocation10 + $0x8] sm:$0x3f] }
 0x1d4   : > { %7509 = vmatprep.subr.msk.bf16.mxu1 %vm10391_vm3, %v7507_v34  ;;  %v7547_v34 = vpack.c.bf16 %v1519_v30, %v1515_v29  ;;  %v1857_v8 = vld [vmem:[#allocation2 + $0x1f0] sm:$0xf]  ;;  %v2180_v30 = vld [vmem:[#allocation2 + $0x200] sm:$0xff] }
 0x1d6   : > { %7429 = vmatmul.mubr.msk.f32.gmra.mrb[6].mxu1 %vm762_vm1, %v884_v14  ;;  %v1508_v14 = vld [vmem:[#allocation2 + $0x110] sm:$0xff] }
 0x1d7   : > { %7512 = vmatpush1.bf16.msk.msra.mxu1 %vm10391_vm3, %v7510_v38  ;;  %1176 = vmatprep.mubr.f32.mxu1 %v9877_v39  ;;  %v7555_v18 = vpack.c.bf16 %v1512_v15, %v1508_v14  ;;  %v7550_v38 = vpack.c.bf16 %v1518_v36, %v1514_v35  ;;  %v2182_v14 = vld [vmem:[#allocation2 + $0x210] sm:$0xff] }
 0x1d8   : > { %7524 = vmatprep.subr.bf16.mxu1 %v7523_v45  ;;  %v1852_v45 = vld [vmem:[#allocation2 + $0x1c8] sm:$0xff]  ;;  %v2186_v15 = vld [vmem:[#allocation2 + $0x230] sm:$0xff] }
 0x1d9   : > { %v2080_v35 = vld [vmem:[#allocation7 + $0x90] sm:$0xff] }
 0x29d   : > { %v10429_v46 = vpop.f32.mrb[0].mxu1 }
 0x29e   : > { %v845_v47 = vpop.f32.mrb[1].mxu1 }
 0x2a1   : > { %v10431_v48 = vpop.f32.mrb[2].mxu1 }
 0x2a2   : > { %v10433_v51 = vpop.f32.mrb[3].mxu1 }
 0x2a5   : > { %v7427_v58 = vpop.f32.mrb[4].mxu1 }
 0x2a6   : > { %v963_v62 = vpop.f32.mrb[5].mxu1 }
 0x2a7   : > { %7037 = vmatmul.mubr.msk.f32.vlgmr.msra.gmra.mrb[0].mxu0 %vm762_vm1, %v963_v62  ;;  %7043 = vmatmul.mubr.msk.f32.vlgmr.msra.gmra.mrb[8].mxu1 %vm762_vm1, %v963_v62  ;;  %v1854_v62 = vld [vmem:[#allocation2 + $0x1d8] sm:$0xff] }
 0x2a8   : > { %1093 = vmatprep.mubr.f32.mxu0 %v9877_v39  ;;  %1182 = vmatprep.mubr.f32.mxu1 %v9877_v39 }
 0x2a9   : > { %v7430_v9 = vpop.f32.mrb[6].mxu1  ;;  %7516 = vmatpush1.bf16.msra.mxu0 %v7515_v59  ;;  %7526 = vmatpush1.bf16.msra.mxu1 %v7525_v60  ;;  %v1741_v59 = vld [vmem:[#allocation7 + $0x60] sm:$0xff]  ;;  %v1845_v60 = vld [vmem:[#allocation2 + $0x190] sm:$0xff] }
 0x2aa   : > { %v973_v12 = vpop.f32.mrb[7].mxu1  ;;  %7519 = vmatprep.subr.msk.bf16.mxu0 %vm10391_vm3, %v7517_v63  ;;  %7529 = vmatprep.subr.msk.bf16.mxu1 %vm10391_vm3, %v7527_v0  ;;  %v1858_v63 = vld [vmem:[#allocation2 + $0x1f8] sm:$0xf]  ;;  %v1742_v0 = vld [vmem:[#allocation7 + $0x68] sm:$0xff]  ;;  %v7585_v1 = vpack.c.bf16 %v1849_v61, %v1845_v60 }
 0x2ab   : > { %7038 = vmatmul.mubr.msk.f32.gmra.mrb[2].mxu0 %vm762_vm1, %v7427_v58  ;;  %7044 = vmatmul.mubr.msk.f32.gmra.mrb[10].mxu1 %vm762_vm1, %v7427_v58  ;;  %v7583_v58 = vpack.c.bf16 %v1850_v54, %v1846_v53  ;;  %v7587_v4 = vpack.c.bf16 %v1858_v63, %v1854_v62 }
 0x2ac   : > { %1099 = vmatprep.mubr.f32.mxu0 %v9877_v39  ;;  %1188 = vmatprep.mubr.f32.mxu1 %v9877_v39 }
 0x2ad   : > { %7522 = vmatpush1.bf16.msk.msra.mxu0 %vm10391_vm3, %v7520_v10  ;;  %7532 = vmatpush1.bf16.msk.msra.mxu1 %vm10391_vm3, %v7530_v11  ;;  %v7590_v10 = vpack.c.bf16 %v1857_v8, %v1853_v5  ;;  %v2183_v11 = vld [vmem:[#allocation2 + $0x218] sm:$0xff] }
 0x2ae   : > { %7534 = vmatprep.subr.bf16.mxu0 %v10386_v3  ;;  %7554 = vmatprep.subr.bf16.mxu1 %v7553_v13 }
 0x2af   : > { %7039 = vmatmul.mubr.msk.f32.gmra.mrb[4].mxu0 %vm762_vm1, %v973_v12  ;;  %7045 = vmatmul.mubr.msk.f32.gmra.mrb[12].mxu1 %vm762_vm1, %v973_v12  ;;  %v2187_v12 = vld [vmem:[#allocation2 + $0x238] sm:$0xff] }
 0x2b0   : > { %1105 = vmatprep.mubr.f32.mxu0 %v9877_v39  ;;  %1194 = vmatprep.mubr.f32.mxu1 %v9877_v39  ;;  %v7613_v13 = vpack.c.bf16 %v2187_v12, %v2183_v11 }
 0x2b3   : > { %7040 = vmatmul.mubr.msk.f32.gmra.mrb[6].mxu0 %vm762_vm1, %v7430_v9  ;;  %7046 = vmatmul.mubr.msk.f32.gmra.mrb[14].mxu1 %vm762_vm1, %v7430_v9  ;;  %v1744_v9 = vld [vmem:[#allocation7 + $0x78] sm:$0xf] }
 0x2b4   : > { %1289 = vmatprep.mubr.f32.mxu0 %v9877_v39  ;;  %1378 = vmatprep.mubr.f32.mxu1 %v9877_v39 }
 0x2b7   : > { %7049 = vmatmul.mubr.msk.f32.vlgmr.msra.gmra.mrb[0].mxu0 %vm762_vm1, %v845_v47  ;;  %7055 = vmatmul.mubr.msk.f32.vlgmr.msra.gmra.mrb[8].mxu1 %vm762_vm1, %v845_v47 }
 0x2b8   : > { %1295 = vmatprep.mubr.f32.mxu0 %v9877_v39  ;;  %1384 = vmatprep.mubr.f32.mxu1 %v9877_v39 }
 0x2b9   : > { %7536 = vmatpush3.bf16.msra.mxu0 %v10386_v3  ;;  %7556 = vmatpush1.bf16.msra.mxu1 %v7555_v18 }
 0x2ba   : > { %7539 = vmatprep.subr.msk.bf16.mxu0 %vm10391_vm3, %v10388_v6  ;;  %7559 = vmatprep.subr.msk.bf16.mxu1 %vm10391_vm3, %v7557_v19  ;;  %v7615_v19 = vpack.c.bf16 %v2186_v15, %v2182_v14 }
 0x2bb   : > { %7050 = vmatmul.mubr.msk.f32.gmra.mrb[2].mxu0 %vm762_vm1, %v10429_v46  ;;  %7056 = vmatmul.mubr.msk.f32.gmra.mrb[10].mxu1 %vm762_vm1, %v10429_v46  ;;  %v1856_v46 = vld [vmem:[#allocation2 + $0x1e8] sm:$0xf] }
 0x2bc   : > { %1301 = vmatprep.mubr.f32.mxu0 %v9877_v39  ;;  %1390 = vmatprep.mubr.f32.mxu1 %v9877_v39  ;;  %v7577_v50 = vpack.c.bf16 %v1856_v46, %v1852_v45  ;;  %v2416_v46 = vlaneseq }
 0x2bd   : > { %7542 = vmatpush3.bf16.msk.msra.mxu0 %vm10391_vm3, %v10388_v6  ;;  %7562 = vmatpush1.bf16.msk.msra.mxu1 %vm10391_vm3, %v7560_v24  ;;  %v2181_v24 = vld [vmem:[#allocation2 + $0x208] sm:$0xff] }
 0x2be   : > { %7544 = vmatprep.subr.bf16.mxu0 %v7543_v25  ;;  %7564 = vmatprep.subr.bf16.mxu1 %v10386_v3  ;;  %v2185_v25 = vld [vmem:[#allocation2 + $0x228] sm:$0xff] }
 0x2bf   : > { %7051 = vmatmul.mubr.msk.f32.gmra.mrb[4].mxu0 %vm762_vm1, %v10433_v51  ;;  %7057 = vmatmul.mubr.msk.f32.gmra.mrb[12].mxu1 %vm762_vm1, %v10433_v51  ;;  %v1851_v51 = vld [vmem:[#allocation2 + $0x1c0] sm:$0xff]  ;;  %v7603_v29 = vpack.c.bf16 %v2185_v25, %v2181_v24 }
 0x2c0   : > { %1307 = vmatprep.mubr.f32.mxu0 %v9877_v39  ;;  %1396 = vmatprep.mubr.f32.mxu1 %v9877_v39  ;;  %v7580_v56 = vpack.c.bf16 %v1855_v52, %v1851_v51 }
 0x2c3   : > { %7052 = vmatmul.mubr.msk.f32.gmra.mrb[6].mxu0 %vm762_vm1, %v10431_v48  ;;  %7058 = vmatmul.mubr.msk.f32.gmra.mrb[14].mxu1 %vm762_vm1, %v10431_v48  ;;  %v7575_v48 = vpack.c.bf16 %v1847_v44, %v1843_v43 }
 0x2c4   : > { %7439 = vmatprep.mubr.msk.f32.mxu0 %vm762_vm1, %v1404_v26  ;;  %1699 = vmatprep.mubr.f32.mxu1 %v9877_v39 }
 0x2c7   : > { %7440 = vmatmul.mubr.msk.f32.vlgmr.msra.gmra.mrb[8].mxu0 %vm762_vm1, %v1405_v31  ;;  %v2184_v31 = vld [vmem:[#allocation2 + $0x220] sm:$0xff] }
 0x2c8   : > { %7442 = vmatprep.mubr.msk.f32.mxu0 %vm762_vm1, %v1406_v33  ;;  %7546 = vmatpush1.bf16.msra.mxu0 %v7545_v32  ;;  %v2189_v32 = vld [vmem:[#allocation2 + $0x248] sm:$0xff] }
 0x2c9   : > { %7549 = vmatprep.subr.msk.bf16.mxu0 %vm10391_vm3, %v7547_v34  ;;  %v2193_v33 = vld [vmem:[#allocation2 + $0x268] sm:$0xf]  ;;  %v7605_v34 = vpack.c.bf16 %v2184_v31, %v2180_v30 }
 0x2ca   : > { %v7607_v36 = vpack.c.bf16 %v2193_v33, %v2189_v32 }
 0x2cb   : > { %7443 = vmatmul.mubr.msk.f32.gmra.mrb[10].mxu0 %vm762_vm1, %v1407_v37  ;;  %v2188_v37 = vld [vmem:[#allocation2 + $0x240] sm:$0xff] }
 0x2cc   : > { %7552 = vmatpush1.bf16.msk.msra.mxu0 %vm10391_vm3, %v7550_v38  ;;  %1610 = vmatprep.mubr.f32.mxu0 %v9877_v39  ;;  %v2192_v38 = vld [vmem:[#allocation2 + $0x260] sm:$0xf] }
 0x2cd   : > { %7574 = vmatprep.subr.bf16.mxu0 %v7573_v42  ;;  %v7610_v41 = vpack.c.bf16 %v2192_v38, %v2188_v37 }
 0x39a   : > { %v7441_v47 = vpop.f32.mrb[8].mxu0 }
 0x39b   : > { %v1486_v49 = vpop.f32.mrb[9].mxu0 }
 0x39c   : > { %7066 = vmatmul.mubr.msk.f32.vlgmr.msra.gmra.mrb[0].mxu0 %vm762_vm1, %v1486_v49  ;;  %7072 = vmatmul.mubr.msk.f32.vlgmr.msra.gmra.mrb[8].mxu1 %vm762_vm1, %v1486_v49 }
 0x39d   : > { %1616 = vmatprep.mubr.f32.mxu0 %v9877_v39  ;;  %1705 = vmatprep.mubr.f32.mxu1 %v9877_v39 }
 0x39e   : > { %v7444_v55 = vpop.f32.mrb[10].mxu0  ;;  %7566 = vmatpush3.bf16.msra.mxu1 %v10386_v3  ;;  %7576 = vmatpush1.bf16.msra.mxu0 %v7575_v48 }
 0x39f   : > { %v1496_v57 = vpop.f32.mrb[11].mxu0  ;;  %7569 = vmatprep.subr.msk.bf16.mxu1 %vm10391_vm3, %v10388_v6  ;;  %7579 = vmatprep.subr.msk.bf16.mxu0 %vm10391_vm3, %v7577_v50  ;;  %v2414_v50 = vld [vmem:[#allocation5] sm:$0xf] }
 0x3a0   : > { %7067 = vmatmul.mubr.msk.f32.gmra.mrb[2].mxu0 %vm762_vm1, %v7441_v47  ;;  %7073 = vmatmul.mubr.msk.f32.gmra.mrb[10].mxu1 %vm762_vm1, %v7441_v47  ;;  %v10589_v47 = vshrl.u32 %v2416_v46, 7 }
 0x3a1   : > { %1622 = vmatprep.mubr.f32.mxu0 %v9877_v39  ;;  %1711 = vmatprep.mubr.f32.mxu1 %v9877_v39 }
 0x3a2   : > { %7572 = vmatpush3.bf16.msk.msra.mxu1 %vm10391_vm3, %v10388_v6  ;;  %7582 = vmatpush1.bf16.msk.msra.mxu0 %vm10391_vm3, %v7580_v56  ;;  %v2418_v48 = vsub.s32 0, %v10589_v47  ;;  %v2426_v49 = vsub.s32 2, %v10589_v47  ;;  %v2422_v51 = vsub.s32 1, %v10589_v47  ;;  %v2430_v52 = vsub.s32 3, %v10589_v47  ;;  %v5594_v47 = vld [vmem:[#allocation22 + $0x218] sm:$0xff] }
 0x3a3   : > { %7584 = vmatprep.subr.bf16.mxu1 %v7583_v58  ;;  %7594 = vmatprep.subr.bf16.mxu0 %v10386_v3 }
 0x3a4   : > { %7068 = vmatmul.mubr.msk.f32.gmra.mrb[4].mxu0 %vm762_vm1, %v1496_v57  ;;  %7074 = vmatmul.mubr.msk.f32.gmra.mrb[12].mxu1 %vm762_vm1, %v1496_v57  ;;  %v2419_v53 = vrot.slane %v2414_v50, %v2418_v48  ;;  %v2427_v54 = vrot.slane %v2414_v50, %v2426_v49  ;;  %v2423_v57 = vrot.slane %v2414_v50, %v2422_v51 }
 0x3a5   : > { %1628 = vmatprep.mubr.f32.mxu0 %v9877_v39  ;;  %1717 = vmatprep.mubr.f32.mxu1 %v9877_v39  ;;  %v2431_v58 = vrot.slane %v2414_v50, %v2430_v52 }
 0x3a8   : > { %7069 = vmatmul.mubr.msk.f32.gmra.mrb[6].mxu0 %vm762_vm1, %v7444_v55  ;;  %7075 = vmatmul.mubr.msk.f32.gmra.mrb[14].mxu1 %vm762_vm1, %v7444_v55 }
 0x3a9   : > { %7453 = vmatprep.mubr.msk.f32.mxu1 %vm762_vm1, %v1741_v59  ;;  %1947 = vmatprep.mubr.f32.mxu0 %v9877_v39 }
 0x3ac   : > { %7454 = vmatmul.mubr.msk.f32.vlgmr.msra.gmra.mrb[16].mxu1 %vm762_vm1, %v1742_v0 }
 0x3ad   : > { %7456 = vmatprep.mubr.msk.f32.mxu1 %vm762_vm1, %v1743_v2  ;;  %7586 = vmatpush1.bf16.msra.mxu1 %v7585_v1 }
 0x3ae   : > { %7589 = vmatprep.subr.msk.bf16.mxu1 %vm10391_vm3, %v7587_v4 }
 0x3b0   : > { %7457 = vmatmul.mubr.msk.f32.gmra.mrb[18].mxu1 %vm762_vm1, %v1744_v9 }
 0x3b1   : > { %7592 = vmatpush1.bf16.msk.msra.mxu1 %vm10391_vm3, %v7590_v10  ;;  %2036 = vmatprep.mubr.f32.mxu1 %v9877_v39 }
 0x3b2   : > { %7614 = vmatprep.subr.bf16.mxu1 %v7613_v13 }
 0x47f   : > { %v7455_v18 = vpop.f32.mrb[16].mxu1 }
 0x480   : > { %v1823_v20 = vpop.f32.mrb[17].mxu1 }
 0x481   : > { %7083 = vmatmul.mubr.msk.f32.vlgmr.msra.gmra.mrb[0].mxu0 %vm762_vm1, %v1823_v20  ;;  %7089 = vmatmul.mubr.msk.f32.vlgmr.msra.gmra.mrb[8].mxu1 %vm762_vm1, %v1823_v20 }
 0x482   : > { %1953 = vmatprep.mubr.f32.mxu0 %v9877_v39  ;;  %2042 = vmatprep.mubr.f32.mxu1 %v9877_v39 }
 0x483   : > { %v7458_v26 = vpop.f32.mrb[18].mxu1  ;;  %7596 = vmatpush3.bf16.msra.mxu0 %v10386_v3  ;;  %7616 = vmatpush1.bf16.msra.mxu1 %v7615_v19  ;;  %v2078_v3 = vld [vmem:[#allocation7 + $0x80] sm:$0xff] }
 0x484   : > { %v1833_v28 = vpop.f32.mrb[19].mxu1  ;;  %7599 = vmatprep.subr.msk.bf16.mxu0 %vm10391_vm3, %v10388_v6  ;;  %7619 = vmatprep.subr.msk.bf16.mxu1 %vm10391_vm3, %v7617_v21 }
 0x485   : > { %7084 = vmatmul.mubr.msk.f32.gmra.mrb[2].mxu0 %vm762_vm1, %v7455_v18  ;;  %7090 = vmatmul.mubr.msk.f32.gmra.mrb[10].mxu1 %vm762_vm1, %v7455_v18 }
 0x486   : > { %1959 = vmatprep.mubr.f32.mxu0 %v9877_v39  ;;  %2048 = vmatprep.mubr.f32.mxu1 %v9877_v39 }
 0x487   : > { %7602 = vmatpush3.bf16.msk.msra.mxu0 %vm10391_vm3, %v10388_v6  ;;  %7622 = vmatpush1.bf16.msk.msra.mxu1 %vm10391_vm3, %v7620_v27  ;;  %v2079_v6 = vld [vmem:[#allocation7 + $0x88] sm:$0xff] }
 0x488   : > { %7604 = vmatprep.subr.bf16.mxu0 %v7603_v29 }
 0x489   : > { %7085 = vmatmul.mubr.msk.f32.gmra.mrb[4].mxu0 %vm762_vm1, %v1833_v28  ;;  %7091 = vmatmul.mubr.msk.f32.gmra.mrb[12].mxu1 %vm762_vm1, %v1833_v28 }
 0x48a   : > { %1965 = vmatprep.mubr.f32.mxu0 %v9877_v39  ;;  %2054 = vmatprep.mubr.f32.mxu1 %v9877_v39 }
 0x48d   : > { %7086 = vmatmul.mubr.msk.f32.gmra.mrb[6].mxu0 %vm762_vm1, %v7458_v26  ;;  %7092 = vmatmul.mubr.msk.f32.gmra.mrb[14].mxu1 %vm762_vm1, %v7458_v26 }
 0x48e   : > { %7467 = vmatprep.mubr.msk.f32.mxu0 %vm762_vm1, %v2078_v3  ;;  %2373 = vmatprep.mubr.f32.mxu1 %v9877_v39 }
 0x491   : > { %7468 = vmatmul.mubr.msk.f32.vlgmr.msra.gmra.mrb[12].mxu0 %vm762_vm1, %v2079_v6 }
 0x492   : > { %7470 = vmatprep.mubr.msk.f32.mxu0 %vm762_vm1, %v2080_v35  ;;  %7606 = vmatpush1.bf16.msra.mxu0 %v7605_v34 }
 0x493   : > { %7609 = vmatprep.subr.msk.bf16.mxu0 %vm10391_vm3, %v7607_v36 }
 0x495   : > { %7471 = vmatmul.mubr.msk.f32.gmra.mrb[14].mxu0 %vm762_vm1, %v2081_v40 }
 0x496   : > { %7612 = vmatpush1.bf16.msk.msra.mxu0 %vm10391_vm3, %v7610_v41  ;;  %2284 = vmatprep.mubr.f32.mxu0 %v9877_v39 }
 0x564   : > { %v7469_v42 = vpop.f32.mrb[12].mxu0 }
 0x565   : > { %v2160_v43 = vpop.f32.mrb[13].mxu0 }
 0x566   : > { %7100 = vmatmul.mubr.msk.f32.vlgmr.msra.gmra.mrb[0].mxu0 %vm762_vm1, %v2160_v43  ;;  %7106 = vmatmul.mubr.msk.f32.vlgmr.msra.gmra.mrb[8].mxu1 %vm762_vm1, %v2160_v43 }
 0x567   : > { %2290 = vmatprep.mubr.f32.mxu0 %v9877_v39  ;;  %2379 = vmatprep.mubr.f32.mxu1 %v9877_v39 }
 0x568   : > { %v7472_v44 = vpop.f32.mrb[14].mxu0 }
 0x569   : > { %v2170_v45 = vpop.f32.mrb[15].mxu0 }
 0x56a   : > { %7101 = vmatmul.mubr.msk.f32.gmra.mrb[2].mxu0 %vm762_vm1, %v7469_v42  ;;  %7107 = vmatmul.mubr.msk.f32.gmra.mrb[10].mxu1 %vm762_vm1, %v7469_v42 }
 0x56b   : > { %2296 = vmatprep.mubr.f32.mxu0 %v9877_v39  ;;  %2385 = vmatprep.mubr.f32.mxu1 %v9877_v39 }
 0x56e   : > { %7102 = vmatmul.mubr.msk.f32.gmra.mrb[4].mxu0 %vm762_vm1, %v2170_v45  ;;  %7108 = vmatmul.mubr.msk.f32.gmra.mrb[12].mxu1 %vm762_vm1, %v2170_v45 }
 0x56f   : > { %2302 = vmatprep.mubr.f32.mxu0 %v9877_v39  ;;  %2391 = vmatprep.mubr.f32.mxu1 %v9877_v39 }
 0x572   : > { %7103 = vmatmul.mubr.msk.f32.gmra.mrb[6].mxu0 %vm762_vm1, %v7472_v44  ;;  %7109 = vmatmul.mubr.msk.f32.gmra.mrb[14].mxu1 %vm762_vm1, %v7472_v44 }
 0x573   : > { %2552 = vmatprep.mubr.f32.mxu1 %v9877_v39  ;;  %2629 = vmatprep.mubr.f32.mxu0 %v9877_v39 }
 0x639   : > { %v2286_v55 = vpop.f32.mrb[0].mxu0  ;;  %v2375_v56 = vpop.f32.mrb[8].mxu1 }
 0x63a   : > { %v2288_v59 = vpop.f32.mrb[1].mxu0  ;;  %v2377_v60 = vpop.f32.mrb[9].mxu1  ;;  %v2436_v61 = vadd.f32 %v2419_v53, %v2286_v55  ;;  %v2438_v62 = vadd.f32 %v2427_v54, %v2375_v56 }
 0x63b   : > { %v2437_v63 = vadd.f32 %v2423_v57, %v2288_v59  ;;  %v2439_v0 = vadd.f32 %v2431_v58, %v2377_v60 }
 0x63c   : > { %v2452_v12 = vmax.f32 %v2436_v61, 0.0  ;;  %v2454_v13 = vmax.f32 %v2438_v62, 0.0  ;;  %v2812_v61 = vld [vmem:[#allocation11] sm:$0xff]  ;;  %v2814_v62 = vld [vmem:[#allocation11 + $0x10] sm:$0xff] }
 0x63d   : > { %v2292_v1 = vpop.f32.mrb[2].mxu0  ;;  %v2381_v2 = vpop.f32.mrb[10].mxu1  ;;  %v2453_v16 = vmax.f32 %v2437_v63, 0.0  ;;  %v2455_v17 = vmax.f32 %v2439_v0, 0.0  ;;  %v2817_v63 = vld [vmem:[#allocation11 + $0x28] sm:$0xff]  ;;  %v2819_v0 = vld [vmem:[#allocation11 + $0x38] sm:$0xff] }
 0x63e   : > { %v2440_v4 = vadd.f32 %v2419_v53, %v2292_v1  ;;  %v2442_v5 = vadd.f32 %v2427_v54, %v2381_v2  ;;  %v2294_v8 = vpop.f32.mrb[3].mxu0  ;;  %v2383_v9 = vpop.f32.mrb[11].mxu1  ;;  %v2642_v1 = vld [vmem:[#allocation10] sm:$0xff]  ;;  %v7665_v2 = vpack.c.bf16 %v2814_v62, %v2812_v61  ;;  %v2853_v61 = vld [vmem:[#allocation11 + $0x148] sm:$0xff]  ;;  %v2855_v62 = vld [vmem:[#allocation11 + $0x158] sm:$0xff] }
 0x63f   : > { %v2441_v10 = vadd.f32 %v2423_v57, %v2294_v8  ;;  %v2443_v11 = vadd.f32 %v2431_v58, %v2383_v9  ;;  %v2818_v8 = vld [vmem:[#allocation11 + $0x30] sm:$0xff]  ;;  %v2821_v9 = vld [vmem:[#allocation11 + $0x48] sm:$0xff] }
 0x640   : > { %v2456_v14 = vmax.f32 %v2440_v4, 0.0  ;;  %v2458_v15 = vmax.f32 %v2442_v5, 0.0  ;;  %v7667_v4 = vpack.c.bf16 %v2819_v0, %v2817_v63  ;;  %v2816_v5 = vld [vmem:[#allocation11 + $0x20] sm:$0xff]  ;;  %v7703_v0 = vpack.c.bf16 %v2855_v62, %v2853_v61  ;;  %v3162_v61 = vld [vmem:[#allocation13 + $0x268] sm:$0xff]  ;;  %v3164_v62 = vld [vmem:[#allocation13 + $0x278] sm:$0xff] }
 0x641   : > { %v2457_v18 = vmax.f32 %v2441_v10, 0.0  ;;  %v2459_v19 = vmax.f32 %v2443_v11, 0.0  ;;  %v2298_v20 = vpop.f32.mrb[4].mxu0  ;;  %v2387_v21 = vpop.f32.mrb[12].mxu1  ;;  %v2823_v10 = vld [vmem:[#allocation11 + $0x58] sm:$0xff]  ;;  %v7669_v11 = vpack.c.bf16 %v2818_v8, %v2816_v5 }
 0x642   : > { %v7625_v22 = vpack.c.bf16 %v2456_v14, %v2452_v12  ;;  %v7635_v23 = vpack.c.bf16 %v2458_v15, %v2454_v13  ;;  %v2300_v24 = vpop.f32.mrb[5].mxu0  ;;  %v2389_v25 = vpop.f32.mrb[13].mxu1  ;;  %v2444_v28 = vadd.f32 %v2419_v53, %v2298_v20  ;;  %v2446_v29 = vadd.f32 %v2427_v54, %v2387_v21  ;;  %v2820_v13 = vld [vmem:[#allocation11 + $0x40] sm:$0xff]  ;;  %v2822_v14 = vld [vmem:[#allocation11 + $0x50] sm:$0xff]  ;;  %v2825_v15 = vld [vmem:[#allocation11 + $0x68] sm:$0xff] }
 0x643   : > { %v7623_v26 = vpack.c.bf16 %v2457_v18, %v2453_v16  ;;  %v7633_v27 = vpack.c.bf16 %v2459_v19, %v2455_v17  ;;  %v2445_v3 = vadd.f32 %v2423_v57, %v2300_v24  ;;  %v2447_v30 = vadd.f32 %v2431_v58, %v2389_v25  ;;  %v2827_v16 = vld [vmem:[#allocation11 + $0x78] sm:$0xff]  ;;  %v2824_v19 = vld [vmem:[#allocation11 + $0x60] sm:$0xff]  ;;  %v2826_v20 = vld [vmem:[#allocation11 + $0x70] sm:$0xff] }
 0x644   : > { %v2460_v38 = vmax.f32 %v2444_v28, 0.0  ;;  %v2462_v40 = vmax.f32 %v2446_v29, 0.0  ;;  %v7671_v12 = vpack.c.bf16 %v2823_v10, %v2821_v9  ;;  %v7673_v17 = vpack.c.bf16 %v2822_v14, %v2820_v13  ;;  %v2829_v21 = vld [vmem:[#allocation11 + $0x88] sm:$0xff]  ;;  %v2828_v25 = vld [vmem:[#allocation11 + $0x80] sm:$0xff]  ;;  %v2835_v28 = vld [vmem:[#allocation11 + $0xb8] sm:$0xff] }
 0x645   : > { %v2304_v31 = vpop.f32.mrb[6].mxu0  ;;  %v2393_v32 = vpop.f32.mrb[14].mxu1  ;;  %7624 = vmatprep.subr.bf16.mxu1 %v7623_v26  ;;  %7634 = vmatprep.subr.bf16.mxu0 %v7633_v27  ;;  %v2461_v43 = vmax.f32 %v2445_v3, 0.0  ;;  %v2463_v44 = vmax.f32 %v2447_v30, 0.0  ;;  %v7675_v18 = vpack.c.bf16 %v2827_v16, %v2825_v15  ;;  %v2832_v30 = vld [vmem:[#allocation11 + $0xa0] sm:$0xff]  ;;  %v2859_v5 = vld [vmem:[#allocation11 + $0x178] sm:$0xff] }
 0x646   : > { %v2448_v33 = vadd.f32 %v2419_v53, %v2304_v31  ;;  %v2450_v6 = vadd.f32 %v2427_v54, %v2393_v32  ;;  %v2306_v34 = vpop.f32.mrb[7].mxu0  ;;  %v2395_v35 = vpop.f32.mrb[15].mxu1  ;;  %7626 = vmatpush1.bf16.msra.mxu1 %v7625_v22  ;;  %7636 = vmatpush1.bf16.msra.mxu0 %v7635_v23  ;;  %v2468_v53 = vld [vmem:[#allocation8] sm:$0xff]  ;;  %v2813_v54 = vld [vmem:[#allocation11 + $0x8] sm:$0xff]  ;;  %v2834_v31 = vld [vmem:[#allocation11 + $0xb0] sm:$0xff] }
 0x647   : > { %v2449_v36 = vadd.f32 %v2423_v57, %v2306_v34  ;;  %v2451_v37 = vadd.f32 %v2431_v58, %v2395_v35  ;;  %v2815_v57 = vld [vmem:[#allocation11 + $0x18] sm:$0xff]  ;;  %v2469_v58 = vld [vmem:[#allocation8 + $0x8] sm:$0x3f]  ;;  %v2836_v35 = vld [vmem:[#allocation11 + $0xc0] sm:$0xff] }
 0x648   : > { %v2464_v41 = vmax.f32 %v2448_v33, 0.0  ;;  %v2466_v42 = vmax.f32 %v2450_v6, 0.0  ;;  %v7663_v60 = vpack.c.bf16 %v2815_v57, %v2813_v54  ;;  %v2837_v32 = vld [vmem:[#allocation11 + $0xc8] sm:$0xff]  ;;  %v2839_v33 = vld [vmem:[#allocation11 + $0xd8] sm:$0xff]  ;;  %v7685_v6 = vpack.c.bf16 %v2834_v31, %v2832_v30  ;;  %v2856_v10 = vld [vmem:[#allocation11 + $0x160] sm:$0xff] }
 0x649   : > { %v2465_v45 = vmax.f32 %v2449_v36, 0.0  ;;  %v2467_v46 = vmax.f32 %v2451_v37, 0.0  ;;  %v7687_v34 = vpack.c.bf16 %v2839_v33, %v2837_v32  ;;  %v2838_v36 = vld [vmem:[#allocation11 + $0xd0] sm:$0xff]  ;;  %v2841_v37 = vld [vmem:[#allocation11 + $0xe8] sm:$0xff]  ;;  %v2860_v15 = vld [vmem:[#allocation11 + $0x180] sm:$0xff] }
 0x64a   : > { %v7630_v50 = vpack.c.bf16 %v2464_v41, %v2460_v38  ;;  %v7640_v55 = vpack.c.bf16 %v2466_v42, %v2462_v40  ;;  %v2843_v38 = vld [vmem:[#allocation11 + $0xf8] sm:$0xff]  ;;  %v7689_v40 = vpack.c.bf16 %v2838_v36, %v2836_v35  ;;  %v2840_v42 = vld [vmem:[#allocation11 + $0xe0] sm:$0xff]  ;;  %v2862_v16 = vld [vmem:[#allocation11 + $0x190] sm:$0xff] }
 0x64b   : > { %v7627_v56 = vpack.c.bf16 %v2465_v45, %v2461_v43  ;;  %v7637_v59 = vpack.c.bf16 %v2467_v46, %v2463_v44  ;;  %v7691_v41 = vpack.c.bf16 %v2843_v38, %v2841_v37  ;;  %v2842_v43 = vld [vmem:[#allocation11 + $0xf0] sm:$0xff]  ;;  %v2845_v44 = vld [vmem:[#allocation11 + $0x108] sm:$0xff]  ;;  %v2847_v45 = vld [vmem:[#allocation11 + $0x118] sm:$0xff] }
 0x64c   : > { %v7693_v46 = vpack.c.bf16 %v2842_v43, %v2840_v42  ;;  %v2871_v30 = vld [vmem:[#allocation11 + $0x1d8] sm:$0xff]  ;;  %v2868_v32 = vld [vmem:[#allocation11 + $0x1c0] sm:$0xff]  ;;  %v2870_v33 = vld [vmem:[#allocation11 + $0x1d0] sm:$0xff] }
 0x64d   : > { %7629 = vmatprep.subr.msk.bf16.mxu1 %vm10391_vm3, %v7627_v56  ;;  %7639 = vmatprep.subr.msk.bf16.mxu0 %vm10391_vm3, %v7637_v59  ;;  %v3156_v35 = vld [vmem:[#allocation13 + $0x238] sm:$0xff]  ;;  %v3153_v37 = vld [vmem:[#allocation13 + $0x220] sm:$0xff]  ;;  %v3155_v38 = vld [vmem:[#allocation13 + $0x230] sm:$0xff] }
 0x64e   : > { %7632 = vmatpush1.bf16.msk.msra.mxu1 %vm10391_vm3, %v7630_v50  ;;  %7642 = vmatpush1.bf16.msk.msra.mxu0 %vm10391_vm3, %v7640_v55  ;;  %v2875_v42 = vld [vmem:[#allocation11 + $0x1f8] sm:$0xff] }
 0x64f   : > { %7644 = vmatprep.subr.bf16.mxu1 %v7623_v26  ;;  %7654 = vmatprep.subr.bf16.mxu0 %v7633_v27  ;;  %v2830_v26 = vld [vmem:[#allocation11 + $0x90] sm:$0xff]  ;;  %v2833_v27 = vld [vmem:[#allocation11 + $0xa8] sm:$0xff] }
 0x650   : > { %v7681_v29 = vpack.c.bf16 %v2830_v26, %v2828_v25  ;;  %v7683_v3 = vpack.c.bf16 %v2835_v28, %v2833_v27  ;;  %v3152_v25 = vld [vmem:[#allocation13 + $0x218] sm:$0xff]  ;;  %v3149_v27 = vld [vmem:[#allocation13 + $0x200] sm:$0xff]  ;;  %v3151_v28 = vld [vmem:[#allocation13 + $0x210] sm:$0xff] }
 0x651   : > { %7112 = vmatmul.mubr.msk.f32.vlgmr.msra.gmra.mrb[20].mxu1 %vm762_vm1, %v2468_v53  ;;  %7116 = vmatmul.mubr.msk.f32.vlgmr.msra.gmra.mrb[16].mxu0 %vm762_vm1, %v2468_v53  ;;  %v2851_v53 = vld [vmem:[#allocation11 + $0x138] sm:$0xff] }
 0x652   : > { %7646 = vmatpush1.bf16.msra.mxu1 %v7625_v22  ;;  %7656 = vmatpush1.bf16.msra.mxu0 %v7635_v23  ;;  %v2831_v22 = vld [vmem:[#allocation11 + $0x98] sm:$0xff]  ;;  %v7677_v23 = vpack.c.bf16 %v2826_v20, %v2824_v19 }
 0x653   : > { %7649 = vmatprep.subr.msk.bf16.mxu1 %vm10391_vm3, %v7627_v56  ;;  %7659 = vmatprep.subr.msk.bf16.mxu0 %vm10391_vm3, %v7637_v59  ;;  %v7679_v24 = vpack.c.bf16 %v2831_v22, %v2829_v21  ;;  %v2846_v56 = vld [vmem:[#allocation11 + $0x110] sm:$0xff]  ;;  %v2849_v59 = vld [vmem:[#allocation11 + $0x128] sm:$0xff]  ;;  %v2867_v19 = vld [vmem:[#allocation11 + $0x1b8] sm:$0xff] }
 0x654   : > { %2558 = vmatprep.mubr.f32.mxu1 %v9877_v39  ;;  %2635 = vmatprep.mubr.f32.mxu0 %v9877_v39  ;;  %v7699_v57 = vpack.c.bf16 %v2851_v53, %v2849_v59  ;;  %v2864_v21 = vld [vmem:[#allocation11 + $0x1a0] sm:$0xff]  ;;  %v2866_v22 = vld [vmem:[#allocation11 + $0x1b0] sm:$0xff] }
 0x655   : > { %7113 = vmatmul.mubr.msk.f32.gmra.mrb[22].mxu1 %vm762_vm1, %v2469_v58  ;;  %7117 = vmatmul.mubr.msk.f32.gmra.mrb[18].mxu0 %vm762_vm1, %v2469_v58  ;;  %v2848_v58 = vld [vmem:[#allocation11 + $0x120] sm:$0xff]  ;;  %v3159_v53 = vld [vmem:[#allocation13 + $0x250] sm:$0xff] }
 0x656   : > { %7652 = vmatpush1.bf16.msk.msra.mxu1 %vm10391_vm3, %v7630_v50  ;;  %7662 = vmatpush1.bf16.msk.msra.mxu0 %vm10391_vm3, %v7640_v55  ;;  %v7695_v50 = vpack.c.bf16 %v2847_v45, %v2845_v44  ;;  %v2844_v55 = vld [vmem:[#allocation11 + $0x100] sm:$0xff]  ;;  %v2874_v45 = vld [vmem:[#allocation11 + $0x1f0] sm:$0xff] }
 0x657   : > { %2714 = vmatprep.mubr.f32.mxu1 %v9877_v39  ;;  %2791 = vmatprep.mubr.f32.mxu0 %v9877_v39  ;;  %v7697_v54 = vpack.c.bf16 %v2846_v56, %v2844_v55  ;;  %v2872_v44 = vld [vmem:[#allocation11 + $0x1e0] sm:$0xff]  ;;  %v3160_v55 = vld [vmem:[#allocation13 + $0x258] sm:$0xff] }
 0x658   : > { %7664 = vmatprep.subr.bf16.mxu1 %v7663_v60  ;;  %v2850_v60 = vld [vmem:[#allocation11 + $0x130] sm:$0xff]  ;;  %v3157_v59 = vld [vmem:[#allocation13 + $0x240] sm:$0xff] }
 0x659   : > { %7120 = vmatmul.mubr.msk.f32.vlgmr.msra.gmra.mrb[24].mxu1 %vm762_vm1, %v2642_v1  ;;  %7124 = vmatmul.mubr.msk.f32.vlgmr.msra.gmra.mrb[20].mxu0 %vm762_vm1, %v2642_v1  ;;  %v7701_v63 = vpack.c.bf16 %v2850_v60, %v2848_v58  ;;  %v2852_v1 = vld [vmem:[#allocation11 + $0x140] sm:$0xff]  ;;  %v2879_v58 = vld [vmem:[#allocation11 + $0x218] sm:$0xff] }
 0x65a   : > { %2720 = vmatprep.mubr.f32.mxu1 %v9877_v39  ;;  %2797 = vmatprep.mubr.f32.mxu0 %v9877_v39 }
 0x65b   : > { %7666 = vmatpush1.bf16.msra.mxu1 %v7665_v2  ;;  %v2854_v2 = vld [vmem:[#allocation11 + $0x150] sm:$0xff] }
 0x65c   : > { %7668 = vmatprep.subr.bf16.mxu1 %v7667_v4  ;;  %v2857_v4 = vld [vmem:[#allocation11 + $0x168] sm:$0xff]  ;;  %v7705_v8 = vpack.c.bf16 %v2854_v2, %v2852_v1  ;;  %v3163_v1 = vld [vmem:[#allocation13 + $0x270] sm:$0xff] }
 0x65d   : > { %7121 = vmatmul.mubr.msk.f32.gmra.mrb[26].mxu1 %vm762_vm1, %v2643_v7  ;;  %7125 = vmatmul.mubr.msk.f32.gmra.mrb[22].mxu0 %vm762_vm1, %v2643_v7  ;;  %v7707_v9 = vpack.c.bf16 %v2859_v5, %v2857_v4  ;;  %v2858_v7 = vld [vmem:[#allocation11 + $0x170] sm:$0xff]  ;;  %v3166_v4 = vld [vmem:[#allocation13 + $0x288] sm:$0xff]  ;;  %v3168_v5 = vld [vmem:[#allocation13 + $0x298] sm:$0xff] }
 0x65e   : > { %v7709_v13 = vpack.c.bf16 %v2858_v7, %v2856_v10  ;;  %v3167_v10 = vld [vmem:[#allocation13 + $0x290] sm:$0xff] }
 0x65f   : > { %7670 = vmatpush1.bf16.msra.mxu1 %v7669_v11  ;;  %v2861_v11 = vld [vmem:[#allocation11 + $0x188] sm:$0xff] }
 0x660   : > { %7672 = vmatprep.subr.bf16.mxu1 %v7671_v12  ;;  %v2863_v12 = vld [vmem:[#allocation11 + $0x198] sm:$0xff] }
 0x661   : > { %v7711_v14 = vpack.c.bf16 %v2863_v12, %v2861_v11  ;;  %v3170_v11 = vld [vmem:[#allocation13 + $0x2a8] sm:$0xff]  ;;  %v3172_v12 = vld [vmem:[#allocation13 + $0x2b8] sm:$0xff] }
 0x663   : > { %7674 = vmatpush1.bf16.msra.mxu1 %v7673_v17  ;;  %v7713_v17 = vpack.c.bf16 %v2862_v16, %v2860_v15  ;;  %v3171_v15 = vld [vmem:[#allocation13 + $0x2b0] sm:$0xff] }
 0x664   : > { %7676 = vmatprep.subr.bf16.mxu1 %v7675_v18  ;;  %v2865_v18 = vld [vmem:[#allocation11 + $0x1a8] sm:$0xff] }
 0x665   : > { %v7715_v20 = vpack.c.bf16 %v2867_v19, %v2865_v18  ;;  %v3176_v18 = vld [vmem:[#allocation13 + $0x2d8] sm:$0xff] }
 0x667   : > { %7678 = vmatpush1.bf16.msra.mxu1 %v7677_v23  ;;  %v7717_v23 = vpack.c.bf16 %v2866_v22, %v2864_v21  ;;  %v3175_v21 = vld [vmem:[#allocation13 + $0x2d0] sm:$0xff] }
 0x668   : > { %7680 = vmatprep.subr.bf16.mxu1 %v7679_v24  ;;  %v3150_v24 = vld [vmem:[#allocation13 + $0x208] sm:$0xff] }
 0x669   : > { %v7839_v26 = vpack.c.bf16 %v3152_v25, %v3150_v24  ;;  %v3180_v24 = vld [vmem:[#allocation13 + $0x2f8] sm:$0xff] }
 0x66b   : > { %7682 = vmatpush1.bf16.msra.mxu1 %v7681_v29  ;;  %v7841_v29 = vpack.c.bf16 %v3151_v28, %v3149_v27  ;;  %7840 = vmatprep.subr.bf16.mxu0 %v7839_v26  ;;  %v3177_v26 = vld [vmem:[#allocation13 + $0x2e0] sm:$0xff]  ;;  %v3179_v27 = vld [vmem:[#allocation13 + $0x2f0] sm:$0xff] }
 0x66c   : > { %7684 = vmatprep.subr.bf16.mxu1 %v7683_v3  ;;  %v2869_v3 = vld [vmem:[#allocation11 + $0x1c8] sm:$0xff]  ;;  %v7869_v28 = vpack.c.bf16 %v3179_v27, %v3177_v26 }
 0x66d   : > { %v7719_v31 = vpack.c.bf16 %v2871_v30, %v2869_v3  ;;  %7842 = vmatpush1.bf16.msra.mxu0 %v7841_v29  ;;  %v3182_v29 = vld [vmem:[#allocation13 + $0x308] sm:$0xff]  ;;  %v3184_v3 = vld [vmem:[#allocation13 + $0x318] sm:$0xff] }
 0x66e   : > { %v7871_v30 = vpack.c.bf16 %v3184_v3, %v3182_v29 }
 0x66f   : > { %7686 = vmatpush1.bf16.msra.mxu1 %v7685_v6  ;;  %v7721_v6 = vpack.c.bf16 %v2870_v33, %v2868_v32  ;;  %v3183_v32 = vld [vmem:[#allocation13 + $0x310] sm:$0xff] }
 0x670   : > { %7688 = vmatprep.subr.bf16.mxu1 %v7687_v34  ;;  %v3154_v34 = vld [vmem:[#allocation13 + $0x228] sm:$0xff] }
 0x671   : > { %v7843_v36 = vpack.c.bf16 %v3156_v35, %v3154_v34  ;;  %v3188_v34 = vld [vmem:[#allocation13 + $0x338] sm:$0xff] }
 0x673   : > { %7690 = vmatpush1.bf16.msra.mxu1 %v7689_v40  ;;  %v7845_v40 = vpack.c.bf16 %v3155_v38, %v3153_v37  ;;  %7844 = vmatprep.subr.bf16.mxu0 %v7843_v36  ;;  %v3185_v36 = vld [vmem:[#allocation13 + $0x320] sm:$0xff]  ;;  %v3187_v37 = vld [vmem:[#allocation13 + $0x330] sm:$0xff] }
 0x674   : > { %7692 = vmatprep.subr.bf16.mxu1 %v7691_v41  ;;  %v2873_v41 = vld [vmem:[#allocation11 + $0x1e8] sm:$0xff]  ;;  %v7877_v38 = vpack.c.bf16 %v3187_v37, %v3185_v36  ;;  %v2890_v36 = vld [vmem:[#allocation11 + $0x270] sm:$0xff] }
 0x675   : > { %v7723_v43 = vpack.c.bf16 %v2875_v42, %v2873_v41  ;;  %7846 = vmatpush1.bf16.msra.mxu0 %v7845_v40  ;;  %v3190_v40 = vld [vmem:[#allocation13 + $0x348] sm:$0xff]  ;;  %v3192_v41 = vld [vmem:[#allocation13 + $0x358] sm:$0xff] }
 0x676   : > { %v7879_v42 = vpack.c.bf16 %v3192_v41, %v3190_v40  ;;  %v2893_v37 = vld [vmem:[#allocation11 + $0x288] sm:$0xff] }
 0x677   : > { %7694 = vmatpush1.bf16.msra.mxu1 %v7693_v46  ;;  %v7725_v46 = vpack.c.bf16 %v2874_v45, %v2872_v44  ;;  %v3191_v44 = vld [vmem:[#allocation13 + $0x350] sm:$0xff] }
 0x678   : > { %7696 = vmatprep.subr.bf16.mxu1 %v7695_v50  ;;  %v3158_v50 = vld [vmem:[#allocation13 + $0x248] sm:$0xff] }
 0x679   : > { %v7847_v56 = vpack.c.bf16 %v3160_v55, %v3158_v50  ;;  %v3196_v50 = vld [vmem:[#allocation13 + $0x378] sm:$0xff] }
 0x67b   : > { %7698 = vmatpush1.bf16.msra.mxu1 %v7697_v54  ;;  %v7849_v54 = vpack.c.bf16 %v3159_v53, %v3157_v59  ;;  %7848 = vmatprep.subr.bf16.mxu0 %v7847_v56  ;;  %v3193_v56 = vld [vmem:[#allocation13 + $0x360] sm:$0xff]  ;;  %v3195_v59 = vld [vmem:[#allocation13 + $0x370] sm:$0xff] }
 0x67c   : > { %7700 = vmatprep.subr.bf16.mxu1 %v7699_v57  ;;  %v2877_v57 = vld [vmem:[#allocation11 + $0x208] sm:$0xff]  ;;  %v7885_v53 = vpack.c.bf16 %v3195_v59, %v3193_v56  ;;  %v2898_v56 = vld [vmem:[#allocation11 + $0x2b0] sm:$0xff] }
 0x67d   : > { %v7727_v60 = vpack.c.bf16 %v2879_v58, %v2877_v57  ;;  %7850 = vmatpush1.bf16.msra.mxu0 %v7849_v54  ;;  %v2901_v59 = vld [vmem:[#allocation11 + $0x2c8] sm:$0xff] }
 0x67f   : > { %7702 = vmatpush1.bf16.msra.mxu1 %v7701_v63  ;;  %v7851_v63 = vpack.c.bf16 %v3164_v62, %v3162_v61 }
 0x680   : > { %7704 = vmatprep.subr.bf16.mxu1 %v7703_v0  ;;  %v3161_v0 = vld [vmem:[#allocation13 + $0x260] sm:$0xff] }
 0x681   : > { %v7853_v2 = vpack.c.bf16 %v3163_v1, %v3161_v0  ;;  %7852 = vmatprep.subr.bf16.mxu0 %v7851_v63  ;;  %v2876_v1 = vld [vmem:[#allocation11 + $0x200] sm:$0xff] }
 0x683   : > { %7706 = vmatpush1.bf16.msra.mxu1 %v7705_v8  ;;  %7854 = vmatpush1.bf16.msra.mxu0 %v7853_v2  ;;  %v7855_v8 = vpack.c.bf16 %v3168_v5, %v3166_v4  ;;  %v2878_v2 = vld [vmem:[#allocation11 + $0x210] sm:$0xff]  ;;  %v2881_v5 = vld [vmem:[#allocation11 + $0x228] sm:$0xff] }
 0x684   : > { %7708 = vmatprep.subr.bf16.mxu1 %v7707_v9  ;;  %v3165_v9 = vld [vmem:[#allocation13 + $0x280] sm:$0xff] }
 0x685   : > { %v7857_v7 = vpack.c.bf16 %v3167_v10, %v3165_v9  ;;  %7856 = vmatprep.subr.bf16.mxu0 %v7855_v8  ;;  %v2883_v8 = vld [vmem:[#allocation11 + $0x238] sm:$0xff] }
 0x687   : > { %7710 = vmatpush1.bf16.msra.mxu1 %v7709_v13  ;;  %7858 = vmatpush1.bf16.msra.mxu0 %v7857_v7  ;;  %v7859_v13 = vpack.c.bf16 %v3172_v12, %v3170_v11 }
 0x688   : > { %7712 = vmatprep.subr.bf16.mxu1 %v7711_v14  ;;  %v3169_v14 = vld [vmem:[#allocation13 + $0x2a0] sm:$0xff] }
 0x689   : > { %v7861_v16 = vpack.c.bf16 %v3171_v15, %v3169_v14  ;;  %7860 = vmatprep.subr.bf16.mxu0 %v7859_v13  ;;  %v7729_v14 = vpack.c.bf16 %v2878_v2, %v2876_v1  ;;  %v2904_v1 = vld [vmem:[#allocation11 + $0x2e0] sm:$0xff]  ;;  %v2906_v2 = vld [vmem:[#allocation11 + $0x2f0] sm:$0xff] }
 0x68b   : > { %7714 = vmatpush1.bf16.msra.mxu1 %v7713_v17  ;;  %7862 = vmatpush1.bf16.msra.mxu0 %v7861_v16  ;;  %v3174_v17 = vld [vmem:[#allocation13 + $0x2c8] sm:$0xff]  ;;  %v7731_v16 = vpack.c.bf16 %v2883_v8, %v2881_v5  ;;  %v2911_v5 = vld [vmem:[#allocation11 + $0x318] sm:$0xff]  ;;  %v7757_v8 = vpack.c.bf16 %v2906_v2, %v2904_v1  ;;  %v3101_v2 = vld [vmem:[#allocation13 + $0x80] sm:$0xff] }
 0x68c   : > { %7716 = vmatprep.subr.bf16.mxu1 %v7715_v20  ;;  %v7863_v19 = vpack.c.bf16 %v3176_v18, %v3174_v17  ;;  %v3173_v20 = vld [vmem:[#allocation13 + $0x2c0] sm:$0xff]  ;;  %v2882_v18 = vld [vmem:[#allocation11 + $0x230] sm:$0xff] }
 0x68d   : > { %v7865_v22 = vpack.c.bf16 %v3175_v21, %v3173_v20  ;;  %v2880_v17 = vld [vmem:[#allocation11 + $0x220] sm:$0xff]  ;;  %v2885_v20 = vld [vmem:[#allocation11 + $0x248] sm:$0xff]  ;;  %v2887_v21 = vld [vmem:[#allocation11 + $0x258] sm:$0xff] }
 0x68e   : > { %7864 = vmatprep.subr.bf16.mxu0 %v7863_v19  ;;  %v7735_v3 = vpack.c.bf16 %v2887_v21, %v2885_v20  ;;  %v2917_v20 = vld [vmem:[#allocation11 + $0x348] sm:$0xff]  ;;  %v2919_v21 = vld [vmem:[#allocation11 + $0x358] sm:$0xff] }
 0x68f   : > { %7718 = vmatpush1.bf16.msra.mxu1 %v7717_v23  ;;  %7866 = vmatpush1.bf16.msra.mxu0 %v7865_v22  ;;  %v3178_v23 = vld [vmem:[#allocation13 + $0x2e8] sm:$0xff] }
 0x690   : > { %7720 = vmatprep.subr.bf16.mxu1 %v7719_v31  ;;  %v7867_v25 = vpack.c.bf16 %v3180_v24, %v3178_v23  ;;  %v3181_v31 = vld [vmem:[#allocation13 + $0x300] sm:$0xff] }
 0x691   : > { %v7873_v33 = vpack.c.bf16 %v3183_v32, %v3181_v31  ;;  %v2886_v31 = vld [vmem:[#allocation11 + $0x250] sm:$0xff]  ;;  %v2889_v32 = vld [vmem:[#allocation11 + $0x268] sm:$0xff] }
 0x692   : > { %7868 = vmatprep.subr.bf16.mxu0 %v7867_v25 }
 0x693   : > { %7722 = vmatpush1.bf16.msra.mxu1 %v7721_v6  ;;  %7870 = vmatpush1.bf16.msra.mxu0 %v7869_v28  ;;  %v3186_v6 = vld [vmem:[#allocation13 + $0x328] sm:$0xff]  ;;  %v7733_v28 = vpack.c.bf16 %v2882_v18, %v2880_v17  ;;  %v2912_v18 = vld [vmem:[#allocation11 + $0x320] sm:$0xff] }
 0x694   : > { %7724 = vmatprep.subr.bf16.mxu1 %v7723_v43  ;;  %7872 = vmatprep.subr.bf16.mxu0 %v7871_v30  ;;  %v7875_v35 = vpack.c.bf16 %v3188_v34, %v3186_v6  ;;  %v3189_v43 = vld [vmem:[#allocation13 + $0x340] sm:$0xff] }
 0x695   : > { %v7881_v45 = vpack.c.bf16 %v3191_v44, %v3189_v43  ;;  %v2884_v30 = vld [vmem:[#allocation11 + $0x240] sm:$0xff]  ;;  %v2894_v43 = vld [vmem:[#allocation11 + $0x290] sm:$0xff]  ;;  %v2897_v44 = vld [vmem:[#allocation11 + $0x2a8] sm:$0xff] }
 0x696   : > { %v7737_v6 = vpack.c.bf16 %v2886_v31, %v2884_v30  ;;  %v2923_v30 = vld [vmem:[#allocation11 + $0x378] sm:$0xff] }
 0x697   : > { %7726 = vmatpush1.bf16.msra.mxu1 %v7725_v46  ;;  %7874 = vmatpush1.bf16.msra.mxu0 %v7873_v33  ;;  %v3194_v46 = vld [vmem:[#allocation13 + $0x368] sm:$0xff]  ;;  %v2891_v33 = vld [vmem:[#allocation11 + $0x278] sm:$0xff] }
 0x698   : > { %7728 = vmatprep.subr.bf16.mxu1 %v7727_v60  ;;  %7876 = vmatprep.subr.bf16.mxu0 %v7875_v35  ;;  %v7883_v55 = vpack.c.bf16 %v3196_v50, %v3194_v46  ;;  %v7739_v34 = vpack.c.bf16 %v2891_v33, %v2889_v32  ;;  %v2888_v35 = vld [vmem:[#allocation11 + $0x260] sm:$0xff] }
 0x699   : > { %v7741_v40 = vpack.c.bf16 %v2890_v36, %v2888_v35  ;;  %v2920_v33 = vld [vmem:[#allocation11 + $0x360] sm:$0xff]  ;;  %v3088_v35 = vld [vmem:[#allocation13 + $0x18] sm:$0xff] }
 0x69b   : > { %7878 = vmatpush1.bf16.msra.mxu0 %v7877_v38  ;;  %v2895_v38 = vld [vmem:[#allocation11 + $0x298] sm:$0xff] }
 0x69c   : > { %7880 = vmatprep.subr.bf16.mxu0 %v7879_v42  ;;  %v7743_v41 = vpack.c.bf16 %v2895_v38, %v2893_v37  ;;  %v2892_v42 = vld [vmem:[#allocation11 + $0x280] sm:$0xff] }
 0x69d   : > { %v7745_v46 = vpack.c.bf16 %v2894_v43, %v2892_v42  ;;  %v3085_v38 = vld [vmem:[#allocation13] sm:$0xff]  ;;  %v3092_v42 = vld [vmem:[#allocation13 + $0x38] sm:$0xff] }
 0x69f   : > { %7882 = vmatpush1.bf16.msra.mxu0 %v7881_v45  ;;  %v2899_v45 = vld [vmem:[#allocation11 + $0x2b8] sm:$0xff] }
 0x6a0   : > { %7884 = vmatprep.subr.bf16.mxu0 %v7883_v55  ;;  %v7747_v50 = vpack.c.bf16 %v2899_v45, %v2897_v44  ;;  %v2896_v55 = vld [vmem:[#allocation11 + $0x2a0] sm:$0xff] }
 0x6a1   : > { %v3089_v45 = vld [vmem:[#allocation13 + $0x20] sm:$0xff] }
 0x6a3   : > { %7886 = vmatpush1.bf16.msra.mxu0 %v7885_v53  ;;  %v2903_v53 = vld [vmem:[#allocation11 + $0x2d8] sm:$0xff] }
 0x724   : > { %v2554_v54 = vpop.f32.mrb[20].mxu1  ;;  %v2631_v57 = vpop.f32.mrb[16].mxu0 }
 0x725   : > { %v2556_v58 = vpop.f32.mrb[21].mxu1  ;;  %v2633_v60 = vpop.f32.mrb[17].mxu0 }
 0x728   : > { %v2560_v61 = vpop.f32.mrb[22].mxu1  ;;  %v2637_v62 = vpop.f32.mrb[18].mxu0 }
 0x729   : > { %v2562_v63 = vpop.f32.mrb[23].mxu1  ;;  %v2639_v0 = vpop.f32.mrb[19].mxu0 }
 0x72c   : > { %v2716_v4 = vpop.f32.mrb[24].mxu1  ;;  %v2793_v9 = vpop.f32.mrb[20].mxu0 }
 0x72d   : > { %v10633_v10 = vmax.f32 %v2554_v54, %v2716_v4  ;;  %v2718_v7 = vpop.f32.mrb[25].mxu1  ;;  %v10635_v11 = vmax.f32 %v2631_v57, %v2793_v9  ;;  %v2795_v12 = vpop.f32.mrb[21].mxu0  ;;  %v7749_v54 = vpack.c.bf16 %v2898_v56, %v2896_v55  ;;  %v7751_v57 = vpack.c.bf16 %v2903_v53, %v2901_v59  ;;  %v2909_v4 = vld [vmem:[#allocation11 + $0x308] sm:$0xff]  ;;  %v3096_v55 = vld [vmem:[#allocation13 + $0x58] sm:$0xff]  ;;  %v3093_v53 = vld [vmem:[#allocation13 + $0x40] sm:$0xff] }
 0x72e   : > { %v10637_v13 = vmax.f32 %v2556_v58, %v2718_v7  ;;  %v2807_v15 = vmax.f32 %v2633_v60, %v2795_v12  ;;  %v2900_v58 = vld [vmem:[#allocation11 + $0x2c0] sm:$0xff]  ;;  %v2902_v60 = vld [vmem:[#allocation11 + $0x2d0] sm:$0xff]  ;;  %v7759_v9 = vpack.c.bf16 %v2911_v5, %v2909_v4  ;;  %v3106_v5 = vld [vmem:[#allocation13 + $0xa8] sm:$0xff] }
 0x72f   : > { %v2908_v7 = vld [vmem:[#allocation11 + $0x300] sm:$0xff]  ;;  %v2910_v12 = vld [vmem:[#allocation11 + $0x310] sm:$0xff] }
 0x730   : > { %v2722_v19 = vpop.f32.mrb[26].mxu1  ;;  %2995 = vmatprep.mubr.f32.mxu1 %v10637_v13  ;;  %v2799_v22 = vpop.f32.mrb[22].mxu0  ;;  %7128 = vmatprep.mubr.msk.f32.mxu0 %vm2924_vm4, %v2807_v15  ;;  %v3103_v4 = vld [vmem:[#allocation13 + $0x90] sm:$0xff] }
 0x731   : > { %v10641_v23 = vmax.f32 %v2560_v61, %v2722_v19  ;;  %v2724_v24 = vpop.f32.mrb[27].mxu1  ;;  %2996 = vmatmul.mubr.f32.vlgmr.msra.gmra.mrb[28].mxu1 %v10633_v10  ;;  %v10644_v25 = vmax.f32 %v2637_v62, %v2799_v22  ;;  %v2801_v26 = vpop.f32.mrb[23].mxu0  ;;  %3339 = vmatmul.mubr.f32.vlgmr.msra.gmra.mrb[24].mxu0 %v10635_v11  ;;  %v2905_v61 = vld [vmem:[#allocation11 + $0x2e8] sm:$0xff]  ;;  %v2907_v62 = vld [vmem:[#allocation11 + $0x2f8] sm:$0xff]  ;;  %v2914_v19 = vld [vmem:[#allocation11 + $0x330] sm:$0xff] }
 0x732   : > { %v10647_v27 = vmax.f32 %v2562_v63, %v2724_v24  ;;  %7730 = vmatpush1.bf16.msra.mxu1 %v7729_v14  ;;  %v10649_v29 = vmax.f32 %v2639_v0, %v2801_v26  ;;  %v7753_v63 = vpack.c.bf16 %v2902_v60, %v2900_v58  ;;  %v7755_v0 = vpack.c.bf16 %v2907_v62, %v2905_v61  ;;  %v2913_v14 = vld [vmem:[#allocation11 + $0x328] sm:$0xff]  ;;  %v2916_v26 = vld [vmem:[#allocation11 + $0x340] sm:$0xff]  ;;  %v3100_v58 = vld [vmem:[#allocation13 + $0x78] sm:$0xff] }
 0x733   : > { %7732 = vmatprep.subr.bf16.mxu1 %v7731_v16  ;;  %v7761_v16 = vpack.c.bf16 %v2910_v12, %v2908_v7  ;;  %v7765_v22 = vpack.c.bf16 %v2914_v19, %v2912_v18  ;;  %v7767_v24 = vpack.c.bf16 %v2919_v21, %v2917_v20  ;;  %v3099_v62 = vld [vmem:[#allocation13 + $0x70] sm:$0xff]  ;;  %v3110_v12 = vld [vmem:[#allocation13 + $0xc8] sm:$0xff]  ;;  %v3116_v20 = vld [vmem:[#allocation13 + $0xf8] sm:$0xff] }
 0x734   : > { %3001 = vmatprep.mubr.f32.mxu1 %v10647_v27  ;;  %7129 = vmatprep.mubr.msk.f32.mxu0 %vm2924_vm4, %v10649_v29  ;;  %v3107_v7 = vld [vmem:[#allocation13 + $0xb0] sm:$0xff]  ;;  %v3114_v19 = vld [vmem:[#allocation13 + $0xe8] sm:$0xff] }
 0x735   : > { %3002 = vmatmul.mubr.f32.gmra.mrb[30].mxu1 %v10641_v23  ;;  %3345 = vmatmul.mubr.f32.gmra.mrb[26].mxu0 %v10644_v25  ;;  %v3111_v18 = vld [vmem:[#allocation13 + $0xd0] sm:$0xff] }
 0x736   : > { %7734 = vmatpush1.bf16.msra.mxu1 %v7733_v28  ;;  %7126 = vmatprep.mubr.msk.f32.mxu1 %vm2924_vm4, %v2807_v15  ;;  %v2915_v15 = vld [vmem:[#allocation11 + $0x338] sm:$0xff]  ;;  %v2918_v28 = vld [vmem:[#allocation11 + $0x350] sm:$0xff] }
 0x737   : > { %7736 = vmatprep.subr.bf16.mxu1 %v7735_v3  ;;  %3633 = vmatprep.mubr.f32.mxu0 %v9877_v39  ;;  %v7763_v17 = vpack.c.bf16 %v2915_v15, %v2913_v14  ;;  %v2921_v3 = vld [vmem:[#allocation11 + $0x368] sm:$0xff]  ;;  %v7769_v31 = vpack.c.bf16 %v2918_v28, %v2916_v26  ;;  %v3112_v14 = vld [vmem:[#allocation13 + $0xd8] sm:$0xff]  ;;  %v3115_v26 = vld [vmem:[#allocation13 + $0xf0] sm:$0xff] }
 0x738   : > { %v7771_v32 = vpack.c.bf16 %v2923_v30, %v2921_v3  ;;  %v3118_v28 = vld [vmem:[#allocation13 + $0x108] sm:$0xff]  ;;  %v3120_v3 = vld [vmem:[#allocation13 + $0x118] sm:$0xff] }
 0x73a   : > { %7738 = vmatpush1.bf16.msra.mxu1 %v7737_v6  ;;  %v2922_v6 = vld [vmem:[#allocation11 + $0x370] sm:$0xff] }
 0x73b   : > { %7740 = vmatprep.subr.bf16.mxu1 %v7739_v34  ;;  %v3086_v34 = vld [vmem:[#allocation13 + $0x8] sm:$0xff]  ;;  %v7773_v36 = vpack.c.bf16 %v2922_v6, %v2920_v33  ;;  %v3119_v33 = vld [vmem:[#allocation13 + $0x110] sm:$0xff] }
 0x73c   : > { %v7775_v37 = vpack.c.bf16 %v3088_v35, %v3086_v34  ;;  %v3122_v6 = vld [vmem:[#allocation13 + $0x128] sm:$0xff]  ;;  %v3124_v34 = vld [vmem:[#allocation13 + $0x138] sm:$0xff] }
 0x73e   : > { %7742 = vmatpush1.bf16.msra.mxu1 %v7741_v40  ;;  %v3087_v40 = vld [vmem:[#allocation13 + $0x10] sm:$0xff] }
 0x73f   : > { %7744 = vmatprep.subr.bf16.mxu1 %v7743_v41  ;;  %v3090_v41 = vld [vmem:[#allocation13 + $0x28] sm:$0xff]  ;;  %v7777_v43 = vpack.c.bf16 %v3087_v40, %v3085_v38  ;;  %v3123_v38 = vld [vmem:[#allocation13 + $0x130] sm:$0xff] }
 0x740   : > { %v7779_v44 = vpack.c.bf16 %v3092_v42, %v3090_v41  ;;  %v3126_v40 = vld [vmem:[#allocation13 + $0x148] sm:$0xff]  ;;  %v3128_v41 = vld [vmem:[#allocation13 + $0x158] sm:$0xff] }
 0x742   : > { %7746 = vmatpush1.bf16.msra.mxu1 %v7745_v46  ;;  %v3091_v46 = vld [vmem:[#allocation13 + $0x30] sm:$0xff] }
 0x743   : > { %7748 = vmatprep.subr.bf16.mxu1 %v7747_v50  ;;  %v3094_v50 = vld [vmem:[#allocation13 + $0x48] sm:$0xff]  ;;  %v7781_v56 = vpack.c.bf16 %v3091_v46, %v3089_v45  ;;  %v3127_v45 = vld [vmem:[#allocation13 + $0x150] sm:$0xff] }
 0x744   : > { %v7783_v59 = vpack.c.bf16 %v3096_v55, %v3094_v50  ;;  %v3130_v46 = vld [vmem:[#allocation13 + $0x168] sm:$0xff]  ;;  %v3132_v50 = vld [vmem:[#allocation13 + $0x178] sm:$0xff] }
 0x746   : > { %7750 = vmatpush1.bf16.msra.mxu1 %v7749_v54  ;;  %v3095_v54 = vld [vmem:[#allocation13 + $0x50] sm:$0xff] }
 0x747   : > { %7752 = vmatprep.subr.bf16.mxu1 %v7751_v57  ;;  %v3098_v57 = vld [vmem:[#allocation13 + $0x68] sm:$0xff]  ;;  %v7785_v60 = vpack.c.bf16 %v3095_v54, %v3093_v53  ;;  %v3131_v53 = vld [vmem:[#allocation13 + $0x170] sm:$0xff] }
 0x748   : > { %v7787_v61 = vpack.c.bf16 %v3100_v58, %v3098_v57  ;;  %v3134_v54 = vld [vmem:[#allocation13 + $0x188] sm:$0xff]  ;;  %v3136_v57 = vld [vmem:[#allocation13 + $0x198] sm:$0xff] }
 0x74a   : > { %7754 = vmatpush1.bf16.msra.mxu1 %v7753_v63  ;;  %v3102_v63 = vld [vmem:[#allocation13 + $0x88] sm:$0xff] }
 0x74b   : > { %7756 = vmatprep.subr.bf16.mxu1 %v7755_v0 }
 0x74e   : > { %7758 = vmatpush1.bf16.msra.mxu1 %v7757_v8  ;;  %v3108_v8 = vld [vmem:[#allocation13 + $0xb8] sm:$0xff] }
 0x74f   : > { %7760 = vmatprep.subr.bf16.mxu1 %v7759_v9  ;;  %v7795_v9 = vpack.c.bf16 %v3108_v8, %v3106_v5  ;;  %v3144_v5 = vld [vmem:[#allocation13 + $0x1d8] sm:$0xff] }
 0x752   : > { %7762 = vmatpush1.bf16.msra.mxu1 %v7761_v16  ;;  %v7799_v16 = vpack.c.bf16 %v3112_v14, %v3110_v12  ;;  %v3148_v12 = vld [vmem:[#allocation13 + $0x1f8] sm:$0xff] }
 0x753   : > { %7764 = vmatprep.subr.bf16.mxu1 %v7763_v17  ;;  %v3109_v17 = vld [vmem:[#allocation13 + $0xc0] sm:$0xff] }
 0x754   : > { %v7801_v21 = vpack.c.bf16 %v3111_v18, %v3109_v17  ;;  %v3147_v17 = vld [vmem:[#allocation13 + $0x1f0] sm:$0xff] }
 0x756   : > { %7766 = vmatpush1.bf16.msra.mxu1 %v7765_v22  ;;  %v7803_v22 = vpack.c.bf16 %v3116_v20, %v3114_v19 }
 0x757   : > { %7768 = vmatprep.subr.bf16.mxu1 %v7767_v24  ;;  %v3113_v24 = vld [vmem:[#allocation13 + $0xe0] sm:$0xff] }
 0x758   : > { %v7805_v30 = vpack.c.bf16 %v3115_v26, %v3113_v24 }
 0x75a   : > { %7770 = vmatpush1.bf16.msra.mxu1 %v7769_v31  ;;  %v7807_v31 = vpack.c.bf16 %v3120_v3, %v3118_v28 }
 0x75b   : > { %7772 = vmatprep.subr.bf16.mxu1 %v7771_v32  ;;  %v3117_v32 = vld [vmem:[#allocation13 + $0x100] sm:$0xff] }
 0x75c   : > { %v7809_v35 = vpack.c.bf16 %v3119_v33, %v3117_v32 }
 0x75e   : > { %7774 = vmatpush1.bf16.msra.mxu1 %v7773_v36  ;;  %v7811_v36 = vpack.c.bf16 %v3124_v34, %v3122_v6 }
 0x75f   : > { %7776 = vmatprep.subr.bf16.mxu1 %v7775_v37  ;;  %v3121_v37 = vld [vmem:[#allocation13 + $0x120] sm:$0xff] }
 0x760   : > { %v7813_v42 = vpack.c.bf16 %v3123_v38, %v3121_v37  ;;  %v3652_v38 = vld [vmem:[#allocation14 + $0x3a8] sm:$0xff] }
 0x761   : > { %3073 = vmatmul.mubr.f32.vlgmr.msra.gmra.mrb[28].mxu1 %v10635_v11  ;;  %v3097_v11 = vld [vmem:[#allocation13 + $0x60] sm:$0xff] }
 0x762   : > { %7127 = vmatprep.mubr.msk.f32.mxu1 %vm2924_vm4, %v10649_v29  ;;  %7778 = vmatpush1.bf16.msra.mxu1 %v7777_v43  ;;  %v3104_v29 = vld [vmem:[#allocation13 + $0x98] sm:$0xff]  ;;  %v7789_v0 = vpack.c.bf16 %v3099_v62, %v3097_v11  ;;  %v7815_v43 = vpack.c.bf16 %v3128_v41, %v3126_v40  ;;  %v3135_v11 = vld [vmem:[#allocation13 + $0x190] sm:$0xff]  ;;  %v3138_v62 = vld [vmem:[#allocation13 + $0x1a8] sm:$0xff] }
 0x763   : > { %7780 = vmatprep.subr.bf16.mxu1 %v7779_v44  ;;  %v7791_v1 = vpack.c.bf16 %v3104_v29, %v3102_v63  ;;  %v3125_v44 = vld [vmem:[#allocation13 + $0x140] sm:$0xff]  ;;  %v3140_v63 = vld [vmem:[#allocation13 + $0x1b8] sm:$0xff] }
 0x764   : > { %v7817_v55 = vpack.c.bf16 %v3127_v45, %v3125_v44  ;;  %v3451_v40 = vld [vmem:[#allocation14 + $0x18] sm:$0xff] }
 0x765   : > { %3079 = vmatmul.mubr.f32.gmra.mrb[30].mxu1 %v10644_v25  ;;  %v7793_v25 = vpack.c.bf16 %v3103_v4, %v3101_v2  ;;  %v3139_v2 = vld [vmem:[#allocation13 + $0x1b0] sm:$0xff]  ;;  %v3142_v4 = vld [vmem:[#allocation13 + $0x1c8] sm:$0xff]  ;;  %v3455_v41 = vld [vmem:[#allocation14 + $0x38] sm:$0xff] }
 0x766   : > { %7782 = vmatpush1.bf16.msra.mxu1 %v7781_v56  ;;  %3261 = vmatprep.mubr.f32.mxu1 %v10637_v13  ;;  %v3105_v13 = vld [vmem:[#allocation13 + $0xa0] sm:$0xff]  ;;  %v7819_v56 = vpack.c.bf16 %v3132_v50, %v3130_v46  ;;  %v8067_v50 = vpack.c.bf16 %v3455_v41, %v3451_v40 }
 0x767   : > { %7784 = vmatprep.subr.bf16.mxu1 %v7783_v59  ;;  %v7797_v15 = vpack.c.bf16 %v3107_v7, %v3105_v13  ;;  %v3129_v59 = vld [vmem:[#allocation13 + $0x160] sm:$0xff]  ;;  %v3143_v13 = vld [vmem:[#allocation13 + $0x1d0] sm:$0xff]  ;;  %v3146_v7 = vld [vmem:[#allocation13 + $0x1e8] sm:$0xff] }
 0x768   : > { %v7821_v58 = vpack.c.bf16 %v3131_v53, %v3129_v59  ;;  %v3450_v59 = vld [vmem:[#allocation14 + $0x10] sm:$0xff]  ;;  %v3679_v40 = vld [vmem:[#allocation14 + $0x480] sm:$0xff] }
 0x769   : > { %v3454_v53 = vld [vmem:[#allocation14 + $0x30] sm:$0xff]  ;;  %v3683_v41 = vld [vmem:[#allocation14 + $0x4a0] sm:$0xff] }
 0x76a   : > { %7786 = vmatpush1.bf16.msra.mxu1 %v7785_v60  ;;  %v7823_v60 = vpack.c.bf16 %v3136_v57, %v3134_v54  ;;  %v3656_v54 = vld [vmem:[#allocation14 + $0x3c8] sm:$0xff]  ;;  %v5610_v44 = vld [vmem:[#allocation22 + $0x298] sm:$0xff] }
 0x76b   : > { %7788 = vmatprep.subr.bf16.mxu1 %v7787_v61  ;;  %v3133_v61 = vld [vmem:[#allocation13 + $0x180] sm:$0xff]  ;;  %v3660_v57 = vld [vmem:[#allocation14 + $0x3e8] sm:$0xff] }
 0x76c   : > { %v7825_v29 = vpack.c.bf16 %v3135_v11, %v3133_v61  ;;  %v3355_v61 = vld [vmem:[#allocation17] sm:$0xff]  ;;  %v3561_v11 = vld [vmem:[#allocation17 + $0x10] sm:$0xff] }
 0x76e   : > { %7790 = vmatpush1.bf16.msra.mxu1 %v7789_v0  ;;  %v7827_v0 = vpack.c.bf16 %v3140_v63, %v3138_v62  ;;  %v8069_v63 = vpack.c.bf16 %v3454_v53, %v3450_v59  ;;  %v3692_v59 = vld [vmem:[#allocation14 + $0x4e8] sm:$0xff]  ;;  %v3491_v53 = vld [vmem:[#allocation14 + $0x158] sm:$0xff] }
 0x76f   : > { %7792 = vmatprep.subr.bf16.mxu1 %v7791_v1  ;;  %v3137_v1 = vld [vmem:[#allocation13 + $0x1a0] sm:$0xff] }
 0x770   : > { %v7829_v8 = vpack.c.bf16 %v3139_v2, %v3137_v1  ;;  %v7903_v1 = vpack.c.bf16 %v3660_v57, %v3656_v54  ;;  %v3495_v54 = vld [vmem:[#allocation14 + $0x178] sm:$0xff]  ;;  %v7917_v57 = vpack.c.bf16 %v3683_v41, %v3679_v40  ;;  %v3724_v40 = vld [vmem:[#allocation14 + $0x5e8] sm:$0xff] }
 0x771   : > { %v3523_v41 = vld [vmem:[#allocation14 + $0x258] sm:$0xff] }
 0x772   : > { %7794 = vmatpush1.bf16.msra.mxu1 %v7793_v25  ;;  %v7831_v25 = vpack.c.bf16 %v3144_v5, %v3142_v4  ;;  %v3458_v4 = vld [vmem:[#allocation14 + $0x50] sm:$0xff] }
 0x773   : > { %7796 = vmatprep.subr.bf16.mxu1 %v7795_v9  ;;  %v3141_v9 = vld [vmem:[#allocation13 + $0x1c0] sm:$0xff]  ;;  %v3462_v5 = vld [vmem:[#allocation14 + $0x70] sm:$0xff] }
 0x774   : > { %v7833_v14 = vpack.c.bf16 %v3143_v13, %v3141_v9  ;;  %v3467_v9 = vld [vmem:[#allocation14 + $0x98] sm:$0xff] }
 0x775   : > { %v3471_v13 = vld [vmem:[#allocation14 + $0xb8] sm:$0xff] }
 0x776   : > { %7798 = vmatpush1.bf16.msra.mxu1 %v7797_v15  ;;  %v7835_v15 = vpack.c.bf16 %v3148_v12, %v3146_v7  ;;  %v3562_v7 = vld [vmem:[#allocation17 + $0x18] sm:$0x3f]  ;;  %v3356_v12 = vld [vmem:[#allocation17 + $0x8] sm:$0x3f] }
 0x777   : > { %7800 = vmatprep.subr.bf16.mxu1 %v7799_v16  ;;  %v3145_v16 = vld [vmem:[#allocation13 + $0x1e0] sm:$0xff] }
 0x778   : > { %v7837_v18 = vpack.c.bf16 %v3147_v17, %v3145_v16  ;;  %v3663_v16 = vld [vmem:[#allocation14 + $0x400] sm:$0xff] }
 0x779   : > { %v3667_v17 = vld [vmem:[#allocation14 + $0x420] sm:$0xff] }
 0x77a   : > { %7802 = vmatpush1.bf16.msra.mxu1 %v7801_v21 }
 0x77b   : > { %7804 = vmatprep.subr.bf16.mxu1 %v7803_v22 }
 0x77e   : > { %7806 = vmatpush1.bf16.msra.mxu1 %v7805_v30 }
 0x77f   : > { %7808 = vmatprep.subr.bf16.mxu1 %v7807_v31 }
 0x782   : > { %7810 = vmatpush1.bf16.msra.mxu1 %v7809_v35 }
 0x783   : > { %7812 = vmatprep.subr.bf16.mxu1 %v7811_v36  ;;  %v3648_v36 = vld [vmem:[#allocation14 + $0x388] sm:$0xff] }
 0x784   : > { %v7899_v46 = vpack.c.bf16 %v3652_v38, %v3648_v36  ;;  %v3487_v36 = vld [vmem:[#allocation14 + $0x138] sm:$0xff] }
 0x786   : > { %7814 = vmatpush1.bf16.msra.mxu1 %v7813_v42 }
 0x787   : > { %7816 = vmatprep.subr.bf16.mxu1 %v7815_v43 }
 0x78a   : > { %7818 = vmatpush1.bf16.msra.mxu1 %v7817_v55  ;;  %v3647_v55 = vld [vmem:[#allocation14 + $0x380] sm:$0xff] }
 0x78b   : > { %7820 = vmatprep.subr.bf16.mxu1 %v7819_v56  ;;  %v3651_v56 = vld [vmem:[#allocation14 + $0x3a0] sm:$0xff] }
 0x78c   : > { %v7901_v62 = vpack.c.bf16 %v3651_v56, %v3647_v55  ;;  %v3486_v55 = vld [vmem:[#allocation14 + $0x130] sm:$0xff]  ;;  %v3688_v56 = vld [vmem:[#allocation14 + $0x4c8] sm:$0xff] }
 0x78e   : > { %7822 = vmatpush1.bf16.msra.mxu1 %v7821_v58  ;;  %v3459_v58 = vld [vmem:[#allocation14 + $0x58] sm:$0xff] }
 0x78f   : > { %7824 = vmatprep.subr.bf16.mxu1 %v7823_v60  ;;  %v3463_v60 = vld [vmem:[#allocation14 + $0x78] sm:$0xff] }
 0x790   : > { %v8071_v2 = vpack.c.bf16 %v3463_v60, %v3459_v58  ;;  %v3687_v60 = vld [vmem:[#allocation14 + $0x4c0] sm:$0xff] }
 0x792   : > { %7826 = vmatpush1.bf16.msra.mxu1 %v7825_v29  ;;  %v3655_v29 = vld [vmem:[#allocation14 + $0x3c0] sm:$0xff] }
 0x793   : > { %7828 = vmatprep.subr.bf16.mxu1 %v7827_v0  ;;  %v3659_v0 = vld [vmem:[#allocation14 + $0x3e0] sm:$0xff] }
 0x796   : > { %7830 = vmatpush1.bf16.msra.mxu1 %v7829_v8  ;;  %v3664_v8 = vld [vmem:[#allocation14 + $0x408] sm:$0xff] }
 0x797   : > { %7832 = vmatprep.subr.bf16.mxu1 %v7831_v25  ;;  %v3668_v25 = vld [vmem:[#allocation14 + $0x428] sm:$0xff] }
 0x79a   : > { %7834 = vmatpush1.bf16.msra.mxu1 %v7833_v14  ;;  %v7905_v14 = vpack.c.bf16 %v3659_v0, %v3655_v29  ;;  %v3494_v29 = vld [vmem:[#allocation14 + $0x170] sm:$0xff]  ;;  %v3696_v0 = vld [vmem:[#allocation14 + $0x508] sm:$0xff] }
 0x79b   : > { %7836 = vmatprep.subr.bf16.mxu1 %v7835_v15  ;;  %v8073_v15 = vpack.c.bf16 %v3462_v5, %v3458_v4  ;;  %v3503_v4 = vld [vmem:[#allocation14 + $0x1b8] sm:$0xff] }
 0x79e   : > { %7838 = vmatpush1.bf16.msra.mxu1 %v7837_v18  ;;  %v7907_v18 = vpack.c.bf16 %v3668_v25, %v3664_v8  ;;  %v3695_v25 = vld [vmem:[#allocation14 + $0x500] sm:$0xff] }
 0x7a1   : > { %3262 = vmatmul.mubr.f32.vlgmr.msra.gmra.mrb[32].mxu1 %v10633_v10 }
 0x7a2   : > { %3267 = vmatprep.mubr.f32.mxu1 %v10647_v27 }
 0x7a5   : > { %3268 = vmatmul.mubr.f32.gmra.mrb[34].mxu1 %v10641_v23 }
 0x7a6   : > { %3435 = vmatprep.mubr.f32.mxu1 %v9877_v39 }
 0x804   : > { %v3340_v19 = vpop.f32.mrb[24].mxu0 }
 0x805   : > { %v3342_v20 = vpop.f32.mrb[25].mxu0 }
 0x808   : > { %v3346_v21 = vpop.f32.mrb[26].mxu0 }
 0x809   : > { %v3348_v22 = vpop.f32.mrb[27].mxu0 }
 0x834   : > { %v3074_v24 = vpop.f32.mrb[28].mxu1 }
 0x835   : > { %v3076_v26 = vpop.f32.mrb[29].mxu1 }
 0x838   : > { %v3080_v28 = vpop.f32.mrb[30].mxu1 }
 0x839   : > { %v3082_v3 = vpop.f32.mrb[31].mxu1 }
 0x874   : > { %v3263_v30 = vpop.f32.mrb[32].mxu1 }
 0x875   : > { %v3341_v31 = vadd.f32 %v3340_v19, %v3263_v30  ;;  %v3265_v32 = vpop.f32.mrb[33].mxu1  ;;  %v8075_v19 = vpack.c.bf16 %v3471_v13, %v3467_v9  ;;  %v3699_v9 = vld [vmem:[#allocation14 + $0x520] sm:$0xff] }
 0x876   : > { %v3343_v33 = vadd.f32 %v3342_v20, %v3265_v32  ;;  %v3466_v20 = vld [vmem:[#allocation14 + $0x90] sm:$0xff]  ;;  %v3675_v32 = vld [vmem:[#allocation14 + $0x460] sm:$0xff] }
 0x877   : > { %v3351_v6 = vmax.f32 %v3074_v24, %v3341_v31  ;;  %v3676_v24 = vld [vmem:[#allocation14 + $0x468] sm:$0xff]  ;;  %v3671_v31 = vld [vmem:[#allocation14 + $0x440] sm:$0xff] }
 0x878   : > { %v3352_v10 = vmax.f32 %v3076_v26, %v3343_v33  ;;  %v3269_v34 = vpop.f32.mrb[34].mxu1  ;;  %v3475_v26 = vld [vmem:[#allocation14 + $0xd8] sm:$0xff] }
 0x879   : > { %v3347_v27 = vadd.f32 %v3346_v21, %v3269_v34  ;;  %v3271_v35 = vpop.f32.mrb[35].mxu1  ;;  %v3470_v21 = vld [vmem:[#allocation14 + $0xb0] sm:$0xff] }
 0x87a   : > { %v3349_v23 = vadd.f32 %v3348_v22, %v3271_v35  ;;  %v3672_v22 = vld [vmem:[#allocation14 + $0x448] sm:$0xff]  ;;  %v8077_v30 = vpack.c.bf16 %v3470_v21, %v3466_v20  ;;  %v3478_v34 = vld [vmem:[#allocation14 + $0xf0] sm:$0xff]  ;;  %v3703_v21 = vld [vmem:[#allocation14 + $0x540] sm:$0xff] }
 0x87b   : > { %v3353_v37 = vmax.f32 %v3080_v28, %v3347_v27  ;;  %v3479_v28 = vld [vmem:[#allocation14 + $0xf8] sm:$0xff]  ;;  %v7911_v33 = vpack.c.bf16 %v3676_v24, %v3672_v22  ;;  %v3680_v27 = vld [vmem:[#allocation14 + $0x488] sm:$0xff]  ;;  %v3707_v22 = vld [vmem:[#allocation14 + $0x560] sm:$0xff] }
 0x87c   : > { %v3354_v42 = vmax.f32 %v3082_v3, %v3349_v23  ;;  %v7909_v3 = vpack.c.bf16 %v3667_v17, %v3663_v16  ;;  %v3684_v35 = vld [vmem:[#allocation14 + $0x4a8] sm:$0xff]  ;;  %v3483_v23 = vld [vmem:[#allocation14 + $0x118] sm:$0xff] }
 0x87d   : > { %v10667_v43 = vpack.c.bf16 %v3353_v37, %v3351_v6  ;;  %v8079_v6 = vpack.c.bf16 %v3479_v28, %v3475_v26  ;;  %v7913_v37 = vpack.c.bf16 %v3675_v32, %v3671_v31  ;;  %v3708_v16 = vld [vmem:[#allocation14 + $0x568] sm:$0xff]  ;;  %v3507_v17 = vld [vmem:[#allocation14 + $0x1d8] sm:$0xff]  ;;  %v3506_v28 = vld [vmem:[#allocation14 + $0x1d0] sm:$0xff] }
 0x87e   : > { %v10674_v45 = vpack.c.bf16 %v3354_v42, %v3352_v10  ;;  %v3474_v10 = vld [vmem:[#allocation14 + $0xd0] sm:$0xff]  ;;  %v7915_v42 = vpack.c.bf16 %v3684_v35, %v3680_v27  ;;  %v3716_v31 = vld [vmem:[#allocation14 + $0x5a8] sm:$0xff]  ;;  %v3515_v32 = vld [vmem:[#allocation14 + $0x218] sm:$0xff] }
 0x87f   : > { %v8081_v38 = vpack.c.bf16 %v3478_v34, %v3474_v10  ;;  %v3711_v34 = vld [vmem:[#allocation14 + $0x580] sm:$0xff] }
 0x880   : > { %7889 = vmatprep.subr.msk.bf16.mxu1 %vm10670_vm6, %v10674_v45  ;;  %7895 = vmatprep.subr.msk.bf16.mxu0 %vm10670_vm6, %v10674_v45  ;;  %v3715_v27 = vld [vmem:[#allocation14 + $0x5a0] sm:$0xff] }
 0x881   : > { %7892 = vmatpush1.bf16.msk.msra.mxu1 %vm10670_vm6, %v10667_v43  ;;  %7898 = vmatpush1.bf16.msk.msra.mxu0 %vm10670_vm6, %v10667_v43 }
 0x882   : > { %7900 = vmatprep.subr.bf16.mxu1 %v7899_v46  ;;  %8068 = vmatprep.subr.bf16.mxu0 %v8067_v50  ;;  %v8083_v46 = vpack.c.bf16 %v3487_v36, %v3483_v23  ;;  %v3482_v50 = vld [vmem:[#allocation14 + $0x110] sm:$0xff] }
 0x883   : > { %v8085_v58 = vpack.c.bf16 %v3486_v55, %v3482_v50  ;;  %v3514_v36 = vld [vmem:[#allocation14 + $0x210] sm:$0xff]  ;;  %v3719_v55 = vld [vmem:[#allocation14 + $0x5c0] sm:$0xff] }
 0x884   : > { %7132 = vmatmul.mubr.msk.f32.vlgmr.msra.gmra.mrb[36].mxu1 %vm3357_vm7, %v3355_v61  ;;  %7136 = vmatmul.mubr.msk.f32.vlgmr.msra.gmra.mrb[28].mxu0 %vm3357_vm7, %v3561_v11  ;;  %v3691_v61 = vld [vmem:[#allocation14 + $0x4e0] sm:$0xff]  ;;  %v7919_v11 = vpack.c.bf16 %v3692_v59, %v3688_v56 }
 0x885   : > { %3639 = vmatprep.mubr.f32.mxu0 %v9877_v39  ;;  %3441 = vmatprep.mubr.f32.mxu1 %v9877_v39  ;;  %v7921_v5 = vpack.c.bf16 %v3691_v61, %v3687_v60  ;;  %v3723_v56 = vld [vmem:[#allocation14 + $0x5e0] sm:$0xff]  ;;  %v3732_v60 = vld [vmem:[#allocation14 + $0x628] sm:$0xff]  ;;  %v3531_v61 = vld [vmem:[#allocation14 + $0x298] sm:$0xff] }
 0x886   : > { %7902 = vmatpush1.bf16.msra.mxu1 %v7901_v62  ;;  %8070 = vmatpush1.bf16.msra.mxu0 %v8069_v63  ;;  %v8087_v62 = vpack.c.bf16 %v3495_v54, %v3491_v53  ;;  %v3490_v63 = vld [vmem:[#allocation14 + $0x150] sm:$0xff] }
 0x887   : > { %7904 = vmatprep.subr.bf16.mxu1 %v7903_v1  ;;  %8072 = vmatprep.subr.bf16.mxu0 %v8071_v2  ;;  %v3700_v1 = vld [vmem:[#allocation14 + $0x528] sm:$0xff]  ;;  %v3499_v2 = vld [vmem:[#allocation14 + $0x198] sm:$0xff]  ;;  %v8089_v8 = vpack.c.bf16 %v3494_v29, %v3490_v63  ;;  %v3522_v54 = vld [vmem:[#allocation14 + $0x250] sm:$0xff] }
 0x888   : > { %7137 = vmatmul.mubr.msk.f32.gmra.mrb[30].mxu0 %vm3357_vm7, %v3562_v7  ;;  %7133 = vmatmul.mubr.msk.f32.gmra.mrb[38].mxu1 %vm3357_vm7, %v3356_v12  ;;  %v7923_v13 = vpack.c.bf16 %v3700_v1, %v3696_v0  ;;  %v8091_v7 = vpack.c.bf16 %v3503_v4, %v3499_v2  ;;  %v3498_v12 = vld [vmem:[#allocation14 + $0x190] sm:$0xff]  ;;  %v3727_v29 = vld [vmem:[#allocation14 + $0x600] sm:$0xff] }
 0x889   : > { %v3731_v0 = vld [vmem:[#allocation14 + $0x620] sm:$0xff]  ;;  %v3530_v4 = vld [vmem:[#allocation14 + $0x290] sm:$0xff] }
 0x88a   : > { %7906 = vmatpush1.bf16.msra.mxu1 %v7905_v14  ;;  %8074 = vmatpush1.bf16.msra.mxu0 %v8073_v15  ;;  %v3502_v14 = vld [vmem:[#allocation14 + $0x1b0] sm:$0xff]  ;;  %v3704_v15 = vld [vmem:[#allocation14 + $0x548] sm:$0xff] }
 0x88b   : > { %7908 = vmatprep.subr.bf16.mxu1 %v7907_v18  ;;  %8076 = vmatprep.subr.bf16.mxu0 %v8075_v19  ;;  %v3511_v18 = vld [vmem:[#allocation14 + $0x1f8] sm:$0xff]  ;;  %v7925_v19 = vpack.c.bf16 %v3699_v9, %v3695_v25  ;;  %v8093_v20 = vpack.c.bf16 %v3502_v14, %v3498_v12  ;;  %v7927_v24 = vpack.c.bf16 %v3708_v16, %v3704_v15  ;;  %v3740_v25 = vld [vmem:[#allocation14 + $0x668] sm:$0xff]  ;;  %v3735_v14 = vld [vmem:[#allocation14 + $0x640] sm:$0xff] }
 0x88c   : > { %v8095_v26 = vpack.c.bf16 %v3511_v18, %v3507_v17  ;;  %v3539_v9 = vld [vmem:[#allocation14 + $0x2d8] sm:$0xff]  ;;  %v3739_v15 = vld [vmem:[#allocation14 + $0x660] sm:$0xff]  ;;  %v3538_v18 = vld [vmem:[#allocation14 + $0x2d0] sm:$0xff] }
 0x88e   : > { %7910 = vmatpush1.bf16.msra.mxu1 %v7909_v3  ;;  %8078 = vmatpush1.bf16.msra.mxu0 %v8077_v30  ;;  %v3510_v3 = vld [vmem:[#allocation14 + $0x1f0] sm:$0xff]  ;;  %v3712_v30 = vld [vmem:[#allocation14 + $0x588] sm:$0xff] }
 0x88f   : > { %7912 = vmatprep.subr.bf16.mxu1 %v7911_v33  ;;  %8080 = vmatprep.subr.bf16.mxu0 %v8079_v6  ;;  %v3519_v33 = vld [vmem:[#allocation14 + $0x238] sm:$0xff]  ;;  %v7929_v6 = vpack.c.bf16 %v3707_v22, %v3703_v21  ;;  %v8097_v10 = vpack.c.bf16 %v3510_v3, %v3506_v28  ;;  %v7931_v35 = vpack.c.bf16 %v3716_v31, %v3712_v30  ;;  %v3748_v21 = vld [vmem:[#allocation14 + $0x6a8] sm:$0xff]  ;;  %v3743_v3 = vld [vmem:[#allocation14 + $0x680] sm:$0xff] }
 0x890   : > { %v8099_v23 = vpack.c.bf16 %v3519_v33, %v3515_v32  ;;  %v3547_v22 = vld [vmem:[#allocation14 + $0x318] sm:$0xff]  ;;  %v3747_v30 = vld [vmem:[#allocation14 + $0x6a0] sm:$0xff]  ;;  %v3546_v33 = vld [vmem:[#allocation14 + $0x310] sm:$0xff] }
 0x892   : > { %7914 = vmatpush1.bf16.msra.mxu1 %v7913_v37  ;;  %8082 = vmatpush1.bf16.msra.mxu0 %v8081_v38  ;;  %v3518_v37 = vld [vmem:[#allocation14 + $0x230] sm:$0xff]  ;;  %v3720_v38 = vld [vmem:[#allocation14 + $0x5c8] sm:$0xff] }
 0x893   : > { %7916 = vmatprep.subr.bf16.mxu1 %v7915_v42  ;;  %8084 = vmatprep.subr.bf16.mxu0 %v8083_v46  ;;  %v3527_v42 = vld [vmem:[#allocation14 + $0x278] sm:$0xff]  ;;  %v7933_v46 = vpack.c.bf16 %v3715_v27, %v3711_v34  ;;  %v8101_v50 = vpack.c.bf16 %v3518_v37, %v3514_v36  ;;  %v7935_v59 = vpack.c.bf16 %v3724_v40, %v3720_v38  ;;  %v3756_v34 = vld [vmem:[#allocation14 + $0x6e8] sm:$0xff]  ;;  %v3751_v37 = vld [vmem:[#allocation14 + $0x6c0] sm:$0xff] }
 0x894   : > { %v8103_v53 = vpack.c.bf16 %v3527_v42, %v3523_v41  ;;  %v3555_v27 = vld [vmem:[#allocation14 + $0x358] sm:$0xff]  ;;  %v3755_v41 = vld [vmem:[#allocation14 + $0x6e0] sm:$0xff]  ;;  %v3554_v42 = vld [vmem:[#allocation14 + $0x350] sm:$0xff] }
 0x896   : > { %7918 = vmatpush1.bf16.msra.mxu1 %v7917_v57  ;;  %8086 = vmatpush1.bf16.msra.mxu0 %v8085_v58  ;;  %v3526_v57 = vld [vmem:[#allocation14 + $0x270] sm:$0xff]  ;;  %v3728_v58 = vld [vmem:[#allocation14 + $0x608] sm:$0xff] }
 0x897   : > { %7920 = vmatprep.subr.bf16.mxu1 %v7919_v11  ;;  %8088 = vmatprep.subr.bf16.mxu0 %v8087_v62  ;;  %v3535_v11 = vld [vmem:[#allocation14 + $0x2b8] sm:$0xff]  ;;  %v7937_v62 = vpack.c.bf16 %v3723_v56, %v3719_v55  ;;  %v8105_v63 = vpack.c.bf16 %v3526_v57, %v3522_v54  ;;  %v7939_v1 = vpack.c.bf16 %v3732_v60, %v3728_v58  ;;  %v3649_v60 = vld [vmem:[#allocation14 + $0x390] sm:$0xff] }
 0x898   : > { %v8107_v2 = vpack.c.bf16 %v3535_v11, %v3531_v61  ;;  %v3650_v56 = vld [vmem:[#allocation14 + $0x398] sm:$0xff]  ;;  %v3653_v61 = vld [vmem:[#allocation14 + $0x3b0] sm:$0xff] }
 0x899   : > { %v4174_v57 = vld [vmem:[#allocation14 + $0x738] sm:$0xff]  ;;  %v4169_v11 = vld [vmem:[#allocation14 + $0x710] sm:$0xff] }
 0x89a   : > { %7922 = vmatpush1.bf16.msra.mxu1 %v7921_v5  ;;  %8090 = vmatpush1.bf16.msra.mxu0 %v8089_v8  ;;  %v3534_v5 = vld [vmem:[#allocation14 + $0x2b0] sm:$0xff]  ;;  %v3736_v8 = vld [vmem:[#allocation14 + $0x648] sm:$0xff] }
 0x89b   : > { %7924 = vmatprep.subr.bf16.mxu1 %v7923_v13  ;;  %8092 = vmatprep.subr.bf16.mxu0 %v8091_v7  ;;  %v3543_v13 = vld [vmem:[#allocation14 + $0x2f8] sm:$0xff]  ;;  %v7941_v7 = vpack.c.bf16 %v3731_v0, %v3727_v29  ;;  %v8109_v12 = vpack.c.bf16 %v3534_v5, %v3530_v4  ;;  %v7943_v16 = vpack.c.bf16 %v3740_v25, %v3736_v8  ;;  %v3657_v25 = vld [vmem:[#allocation14 + $0x3d0] sm:$0xff] }
 0x89c   : > { %v8111_v17 = vpack.c.bf16 %v3543_v13, %v3539_v9  ;;  %v3662_v29 = vld [vmem:[#allocation14 + $0x3f8] sm:$0xff]  ;;  %v7957_v5 = vpack.c.bf16 %v3653_v61, %v3649_v60  ;;  %v3685_v60 = vld [vmem:[#allocation14 + $0x4b0] sm:$0xff] }
 0x89d   : > { %v4178_v0 = vld [vmem:[#allocation14 + $0x758] sm:$0xff] }
 0x89e   : > { %7926 = vmatpush1.bf16.msra.mxu1 %v7925_v19  ;;  %8094 = vmatpush1.bf16.msra.mxu0 %v8093_v20  ;;  %v3542_v19 = vld [vmem:[#allocation14 + $0x2f0] sm:$0xff]  ;;  %v3744_v20 = vld [vmem:[#allocation14 + $0x688] sm:$0xff] }
 0x89f   : > { %7928 = vmatprep.subr.bf16.mxu1 %v7927_v24  ;;  %8096 = vmatprep.subr.bf16.mxu0 %v8095_v26  ;;  %v3551_v24 = vld [vmem:[#allocation14 + $0x338] sm:$0xff]  ;;  %v7945_v26 = vpack.c.bf16 %v3739_v15, %v3735_v14  ;;  %v8113_v28 = vpack.c.bf16 %v3542_v19, %v3538_v18  ;;  %v7947_v31 = vpack.c.bf16 %v3748_v21, %v3744_v20  ;;  %v3661_v14 = vld [vmem:[#allocation14 + $0x3f0] sm:$0xff] }
 0x8a0   : > { %v8115_v32 = vpack.c.bf16 %v3551_v24, %v3547_v22  ;;  %v4177_v15 = vld [vmem:[#allocation14 + $0x750] sm:$0xff]  ;;  %v3670_v18 = vld [vmem:[#allocation14 + $0x438] sm:$0xff]  ;;  %v7961_v22 = vpack.c.bf16 %v3661_v14, %v3657_v25 }
 0x8a1   : > { %v4186_v19 = vld [vmem:[#allocation14 + $0x798] sm:$0xff] }
 0x8a2   : > { %7930 = vmatpush1.bf16.msra.mxu1 %v7929_v6  ;;  %8098 = vmatpush1.bf16.msra.mxu0 %v8097_v10  ;;  %v3550_v6 = vld [vmem:[#allocation14 + $0x330] sm:$0xff]  ;;  %v3752_v10 = vld [vmem:[#allocation14 + $0x6c8] sm:$0xff]  ;;  %v4190_v20 = vld [vmem:[#allocation14 + $0x7b8] sm:$0xff] }
 0x8a3   : > { %7932 = vmatprep.subr.bf16.mxu1 %v7931_v35  ;;  %8100 = vmatprep.subr.bf16.mxu0 %v8099_v23  ;;  %v3559_v35 = vld [vmem:[#allocation14 + $0x378] sm:$0xff]  ;;  %v7949_v23 = vpack.c.bf16 %v3747_v30, %v3743_v3  ;;  %v8117_v36 = vpack.c.bf16 %v3550_v6, %v3546_v33  ;;  %v7951_v38 = vpack.c.bf16 %v3756_v34, %v3752_v10  ;;  %v4189_v33 = vld [vmem:[#allocation14 + $0x7b0] sm:$0xff] }
 0x8a4   : > { %v8119_v40 = vpack.c.bf16 %v3559_v35, %v3555_v27  ;;  %v3674_v6 = vld [vmem:[#allocation14 + $0x458] sm:$0xff]  ;;  %v8193_v34 = vpack.c.bf16 %v4190_v20, %v4186_v19 }
 0x8a5   : > { %v3678_v27 = vld [vmem:[#allocation14 + $0x478] sm:$0xff] }
 0x8a6   : > { %7934 = vmatpush1.bf16.msra.mxu1 %v7933_v46  ;;  %8102 = vmatpush1.bf16.msra.mxu0 %v8101_v50  ;;  %v3558_v46 = vld [vmem:[#allocation14 + $0x370] sm:$0xff]  ;;  %v7953_v50 = vpack.c.bf16 %v3755_v41, %v3751_v37  ;;  %v4194_v35 = vld [vmem:[#allocation14 + $0x7d8] sm:$0xff]  ;;  %v7967_v41 = vpack.c.bf16 %v3678_v27, %v3674_v6 }
 0x8a7   : > { %7936 = vmatprep.subr.bf16.mxu1 %v7935_v59  ;;  %8104 = vmatprep.subr.bf16.mxu0 %v8103_v53  ;;  %v8121_v55 = vpack.c.bf16 %v3558_v46, %v3554_v42  ;;  %v3654_v59 = vld [vmem:[#allocation14 + $0x3b8] sm:$0xff]  ;;  %v4193_v46 = vld [vmem:[#allocation14 + $0x7d0] sm:$0xff] }
 0x8a8   : > { %v4170_v53 = vld [vmem:[#allocation14 + $0x718] sm:$0xff]  ;;  %v7955_v54 = vpack.c.bf16 %v3654_v59, %v3650_v56  ;;  %v4221_v6 = vld [vmem:[#allocation14 + $0x8b0] sm:$0xff] }
 0x8a9   : > { %v8185_v58 = vpack.c.bf16 %v4174_v57, %v4170_v53  ;;  %v3686_v56 = vld [vmem:[#allocation14 + $0x4b8] sm:$0xff] }
 0x8aa   : > { %7938 = vmatpush1.bf16.msra.mxu1 %v7937_v62  ;;  %8106 = vmatpush1.bf16.msra.mxu0 %v8105_v63  ;;  %v4173_v62 = vld [vmem:[#allocation14 + $0x730] sm:$0xff]  ;;  %v3658_v63 = vld [vmem:[#allocation14 + $0x3d8] sm:$0xff] }
 0x8ab   : > { %7940 = vmatprep.subr.bf16.mxu1 %v7939_v1  ;;  %8108 = vmatprep.subr.bf16.mxu0 %v8107_v2  ;;  %v4182_v1 = vld [vmem:[#allocation14 + $0x778] sm:$0xff]  ;;  %v8187_v8 = vpack.c.bf16 %v4173_v62, %v4169_v11  ;;  %v4201_v62 = vld [vmem:[#allocation14 + $0x810] sm:$0xff] }
 0x8ac   : > { %v4202_v59 = vld [vmem:[#allocation14 + $0x818] sm:$0xff] }
 0x8ad   : > { %v4206_v53 = vld [vmem:[#allocation14 + $0x838] sm:$0xff] }
 0x8ae   : > { %7942 = vmatpush1.bf16.msra.mxu1 %v7941_v7  ;;  %8110 = vmatpush1.bf16.msra.mxu0 %v8109_v12  ;;  %v7959_v7 = vpack.c.bf16 %v3662_v29, %v3658_v63  ;;  %v8189_v12 = vpack.c.bf16 %v4182_v1, %v4178_v0  ;;  %v8201_v11 = vpack.c.bf16 %v4206_v53, %v4202_v59  ;;  %v4205_v63 = vld [vmem:[#allocation14 + $0x830] sm:$0xff]  ;;  %v3690_v29 = vld [vmem:[#allocation14 + $0x4d8] sm:$0xff] }
 0x8af   : > { %7944 = vmatprep.subr.bf16.mxu1 %v7943_v16  ;;  %8112 = vmatprep.subr.bf16.mxu0 %v8111_v17  ;;  %v4181_v16 = vld [vmem:[#allocation14 + $0x770] sm:$0xff]  ;;  %v3666_v17 = vld [vmem:[#allocation14 + $0x418] sm:$0xff]  ;;  %v8203_v25 = vpack.c.bf16 %v4205_v63, %v4201_v62 }
 0x8b0   : > { %v8191_v24 = vpack.c.bf16 %v4181_v16, %v4177_v15  ;;  %v3694_v0 = vld [vmem:[#allocation14 + $0x4f8] sm:$0xff]  ;;  %v4209_v15 = vld [vmem:[#allocation14 + $0x850] sm:$0xff] }
 0x8b1   : > { %v4210_v1 = vld [vmem:[#allocation14 + $0x858] sm:$0xff]  ;;  %v4213_v16 = vld [vmem:[#allocation14 + $0x870] sm:$0xff] }
 0x8b2   : > { %7946 = vmatpush1.bf16.msra.mxu1 %v7945_v26  ;;  %8114 = vmatpush1.bf16.msra.mxu0 %v8113_v28  ;;  %v3665_v26 = vld [vmem:[#allocation14 + $0x410] sm:$0xff]  ;;  %v4218_v19 = vld [vmem:[#allocation14 + $0x898] sm:$0xff] }
 0x8b3   : > { %7948 = vmatprep.subr.bf16.mxu1 %v7947_v31  ;;  %8116 = vmatprep.subr.bf16.mxu0 %v8115_v32  ;;  %v3669_v28 = vld [vmem:[#allocation14 + $0x430] sm:$0xff]  ;;  %v7963_v31 = vpack.c.bf16 %v3670_v18, %v3666_v17  ;;  %v3698_v17 = vld [vmem:[#allocation14 + $0x518] sm:$0xff] }
 0x8b4   : > { %v4185_v32 = vld [vmem:[#allocation14 + $0x790] sm:$0xff]  ;;  %v3702_v18 = vld [vmem:[#allocation14 + $0x538] sm:$0xff] }
 0x8b5   : > { %v8195_v37 = vpack.c.bf16 %v4189_v33, %v4185_v32  ;;  %v4222_v20 = vld [vmem:[#allocation14 + $0x8b8] sm:$0xff]  ;;  %v4217_v33 = vld [vmem:[#allocation14 + $0x890] sm:$0xff] }
 0x8b6   : > { %7950 = vmatpush1.bf16.msra.mxu1 %v7949_v23  ;;  %8118 = vmatpush1.bf16.msra.mxu0 %v8117_v36  ;;  %v4198_v23 = vld [vmem:[#allocation14 + $0x7f8] sm:$0xff]  ;;  %v7965_v36 = vpack.c.bf16 %v3669_v28, %v3665_v26  ;;  %v3697_v26 = vld [vmem:[#allocation14 + $0x510] sm:$0xff]  ;;  %v8209_v32 = vpack.c.bf16 %v4222_v20, %v4218_v19 }
 0x8b7   : > { %7952 = vmatprep.subr.bf16.mxu1 %v7951_v38  ;;  %8120 = vmatprep.subr.bf16.mxu0 %v8119_v40  ;;  %v3673_v38 = vld [vmem:[#allocation14 + $0x450] sm:$0xff]  ;;  %v8197_v42 = vpack.c.bf16 %v4198_v23, %v4194_v35  ;;  %v3710_v27 = vld [vmem:[#allocation14 + $0x578] sm:$0xff] }
 0x8b8   : > { %v3677_v40 = vld [vmem:[#allocation14 + $0x470] sm:$0xff]  ;;  %v4226_v35 = vld [vmem:[#allocation14 + $0x8d8] sm:$0xff] }
 0x8b9   : > { %v3701_v28 = vld [vmem:[#allocation14 + $0x530] sm:$0xff]  ;;  %v4230_v23 = vld [vmem:[#allocation14 + $0x8f8] sm:$0xff] }
 0x8ba   : > { %7954 = vmatpush1.bf16.msra.mxu1 %v7953_v50  ;;  %8122 = vmatpush1.bf16.msra.mxu0 %v8121_v55  ;;  %v4197_v50 = vld [vmem:[#allocation14 + $0x7f0] sm:$0xff]  ;;  %v3682_v55 = vld [vmem:[#allocation14 + $0x498] sm:$0xff] }
 0x8bb   : > { %7956 = vmatprep.subr.bf16.mxu1 %v7955_v54  ;;  %8186 = vmatprep.subr.bf16.mxu0 %v8185_v58  ;;  %v7969_v54 = vpack.c.bf16 %v3677_v40, %v3673_v38  ;;  %v8199_v57 = vpack.c.bf16 %v4197_v50, %v4193_v46  ;;  %v3681_v58 = vld [vmem:[#allocation14 + $0x490] sm:$0xff]  ;;  %v7971_v61 = vpack.c.bf16 %v3686_v56, %v3682_v55  ;;  %v3714_v55 = vld [vmem:[#allocation14 + $0x598] sm:$0xff] }
 0x8bc   : > { %v3705_v38 = vld [vmem:[#allocation14 + $0x550] sm:$0xff]  ;;  %v3718_v56 = vld [vmem:[#allocation14 + $0x5b8] sm:$0xff] }
 0x8bd   : > { %v3709_v40 = vld [vmem:[#allocation14 + $0x570] sm:$0xff]  ;;  %v4234_v59 = vld [vmem:[#allocation14 + $0x918] sm:$0xff] }
 0x8be   : > { %v4225_v46 = vld [vmem:[#allocation14 + $0x8d0] sm:$0xff]  ;;  %v4238_v53 = vld [vmem:[#allocation14 + $0x938] sm:$0xff] }
 0x8bf   : > { %v4229_v50 = vld [vmem:[#allocation14 + $0x8f0] sm:$0xff]  ;;  %v4250_v19 = vld [vmem:[#allocation14 + $0x998] sm:$0xff] }
 0x8c0   : > { %v4233_v62 = vld [vmem:[#allocation14 + $0x910] sm:$0xff]  ;;  %v4254_v20 = vld [vmem:[#allocation14 + $0x9b8] sm:$0xff] }
 0x8c1   : > { %v4237_v63 = vld [vmem:[#allocation14 + $0x930] sm:$0xff] }
 0x957   : > { %v10694_v2 = vpop.f32.mrb[36].mxu1  ;;  %v10696_v4 = vpop.f32.mrb[28].mxu0 }
 0x958   : > { %v10698_v9 = vpop.f32.mrb[37].mxu1  ;;  %v3637_v13 = vpop.f32.mrb[29].mxu0 }
 0x959   : > { %7138 = vmatprep.mubr.msk.f32.mxu1 %vm3759_vm8, %v3637_v13  ;;  %7144 = vmatprep.mubr.msk.f32.mxu0 %vm3759_vm8, %v10698_v9 }
 0x95a   : > { %3831 = vmatmul.mubr.f32.vlgmr.msra.gmra.mrb[40].mxu1 %v10696_v4  ;;  %4068 = vmatmul.mubr.f32.vlgmr.msra.gmra.mrb[32].mxu0 %v10694_v2 }
 0x95b   : > { %7958 = vmatpush1.bf16.msra.mxu1 %v7957_v5  ;;  %8188 = vmatpush1.bf16.msra.mxu0 %v8187_v8  ;;  %v10705_v21 = vpop.f32.mrb[30].mxu0  ;;  %v10707_v3 = vpop.f32.mrb[38].mxu1  ;;  %v4214_v5 = vld [vmem:[#allocation14 + $0x878] sm:$0xff]  ;;  %v7973_v8 = vpack.c.bf16 %v3685_v60, %v3681_v58  ;;  %v3713_v58 = vld [vmem:[#allocation14 + $0x590] sm:$0xff] }
 0x95c   : > { %v10709_v30 = vpop.f32.mrb[31].mxu0  ;;  %7960 = vmatprep.subr.bf16.mxu1 %v7959_v7  ;;  %8190 = vmatprep.subr.bf16.mxu0 %v8189_v12  ;;  %v10711_v10 = vpop.f32.mrb[39].mxu1  ;;  %v3693_v7 = vld [vmem:[#allocation14 + $0x4f0] sm:$0xff]  ;;  %v7975_v12 = vpack.c.bf16 %v3694_v0, %v3690_v29  ;;  %v8205_v14 = vpack.c.bf16 %v4214_v5, %v4210_v1  ;;  %v3722_v29 = vld [vmem:[#allocation14 + $0x5d8] sm:$0xff] }
 0x95d   : > { %7139 = vmatprep.mubr.msk.f32.mxu1 %vm3759_vm8, %v10709_v30  ;;  %7145 = vmatprep.mubr.msk.f32.mxu0 %vm3759_vm8, %v10711_v10  ;;  %v3717_v60 = vld [vmem:[#allocation14 + $0x5b0] sm:$0xff]  ;;  %v3726_v0 = vld [vmem:[#allocation14 + $0x5f8] sm:$0xff] }
 0x95e   : > { %3837 = vmatmul.mubr.f32.gmra.mrb[42].mxu1 %v10705_v21  ;;  %4074 = vmatmul.mubr.f32.gmra.mrb[34].mxu0 %v10707_v3  ;;  %v4242_v1 = vld [vmem:[#allocation14 + $0x958] sm:$0xff] }
 0x95f   : > { %7962 = vmatpush1.bf16.msra.mxu1 %v7961_v22  ;;  %8192 = vmatpush1.bf16.msra.mxu0 %v8191_v24  ;;  %v8207_v24 = vpack.c.bf16 %v4213_v16, %v4209_v15  ;;  %v4246_v5 = vld [vmem:[#allocation14 + $0x978] sm:$0xff]  ;;  %v4241_v15 = vld [vmem:[#allocation14 + $0x950] sm:$0xff] }
 0x960   : > { %7140 = vmatprep.mubr.msk.f32.mxu1 %vm3759_vm8, %v3637_v13  ;;  %7964 = vmatprep.subr.bf16.mxu1 %v7963_v31  ;;  %v3689_v13 = vld [vmem:[#allocation14 + $0x4d0] sm:$0xff]  ;;  %v7979_v31 = vpack.c.bf16 %v3702_v18, %v3698_v17  ;;  %v3730_v17 = vld [vmem:[#allocation14 + $0x618] sm:$0xff] }
 0x961   : > { %8194 = vmatprep.subr.bf16.mxu0 %v8193_v34  ;;  %v7977_v22 = vpack.c.bf16 %v3693_v7, %v3689_v13  ;;  %v3706_v34 = vld [vmem:[#allocation14 + $0x558] sm:$0xff]  ;;  %v3721_v13 = vld [vmem:[#allocation14 + $0x5d0] sm:$0xff] }
 0x962   : > { %v3725_v7 = vld [vmem:[#allocation14 + $0x5f0] sm:$0xff]  ;;  %v3734_v18 = vld [vmem:[#allocation14 + $0x638] sm:$0xff] }
 0x963   : > { %7966 = vmatpush1.bf16.msra.mxu1 %v7965_v36  ;;  %8196 = vmatpush1.bf16.msra.mxu0 %v8195_v37  ;;  %v7981_v36 = vpack.c.bf16 %v3701_v28, %v3697_v26  ;;  %v8211_v37 = vpack.c.bf16 %v4221_v6, %v4217_v33  ;;  %v4245_v16 = vld [vmem:[#allocation14 + $0x970] sm:$0xff] }
 0x964   : > { %7968 = vmatprep.subr.bf16.mxu1 %v7967_v41  ;;  %8198 = vmatprep.subr.bf16.mxu0 %v8197_v42  ;;  %v7983_v41 = vpack.c.bf16 %v3710_v27, %v3706_v34  ;;  %v8213_v42 = vpack.c.bf16 %v4230_v23, %v4226_v35  ;;  %v3729_v26 = vld [vmem:[#allocation14 + $0x610] sm:$0xff]  ;;  %v3738_v34 = vld [vmem:[#allocation14 + $0x658] sm:$0xff] }
 0x965   : > { %v3733_v28 = vld [vmem:[#allocation14 + $0x630] sm:$0xff]  ;;  %v3742_v27 = vld [vmem:[#allocation14 + $0x678] sm:$0xff] }
 0x966   : > { %v4249_v33 = vld [vmem:[#allocation14 + $0x990] sm:$0xff]  ;;  %v4258_v35 = vld [vmem:[#allocation14 + $0x9d8] sm:$0xff] }
 0x967   : > { %7970 = vmatpush1.bf16.msra.mxu1 %v7969_v54  ;;  %8200 = vmatpush1.bf16.msra.mxu0 %v8199_v57  ;;  %v7985_v54 = vpack.c.bf16 %v3709_v40, %v3705_v38  ;;  %v8215_v57 = vpack.c.bf16 %v4229_v50, %v4225_v46  ;;  %v4253_v6 = vld [vmem:[#allocation14 + $0x9b0] sm:$0xff]  ;;  %v4262_v23 = vld [vmem:[#allocation14 + $0x9f8] sm:$0xff] }
 0x968   : > { %7972 = vmatprep.subr.bf16.mxu1 %v7971_v61  ;;  %8202 = vmatprep.subr.bf16.mxu0 %v8201_v11  ;;  %v7987_v61 = vpack.c.bf16 %v3718_v56, %v3714_v55  ;;  %v8217_v11 = vpack.c.bf16 %v4238_v53, %v4234_v59  ;;  %v3737_v38 = vld [vmem:[#allocation14 + $0x650] sm:$0xff]  ;;  %v3746_v55 = vld [vmem:[#allocation14 + $0x698] sm:$0xff] }
 0x969   : > { %v3741_v40 = vld [vmem:[#allocation14 + $0x670] sm:$0xff]  ;;  %v3750_v56 = vld [vmem:[#allocation14 + $0x6b8] sm:$0xff] }
 0x96a   : > { %v4257_v46 = vld [vmem:[#allocation14 + $0x9d0] sm:$0xff]  ;;  %v4266_v59 = vld [vmem:[#allocation14 + $0xa18] sm:$0xff] }
 0x96b   : > { %7974 = vmatpush1.bf16.msra.mxu1 %v7973_v8  ;;  %8204 = vmatpush1.bf16.msra.mxu0 %v8203_v25  ;;  %v7989_v8 = vpack.c.bf16 %v3717_v60, %v3713_v58  ;;  %v8219_v25 = vpack.c.bf16 %v4237_v63, %v4233_v62  ;;  %v4261_v50 = vld [vmem:[#allocation14 + $0x9f0] sm:$0xff]  ;;  %v4270_v53 = vld [vmem:[#allocation14 + $0xa38] sm:$0xff] }
 0x96c   : > { %7976 = vmatprep.subr.bf16.mxu1 %v7975_v12  ;;  %8206 = vmatprep.subr.bf16.mxu0 %v8205_v14  ;;  %v7991_v12 = vpack.c.bf16 %v3726_v0, %v3722_v29  ;;  %v8221_v14 = vpack.c.bf16 %v4246_v5, %v4242_v1  ;;  %v3745_v58 = vld [vmem:[#allocation14 + $0x690] sm:$0xff]  ;;  %v3754_v29 = vld [vmem:[#allocation14 + $0x6d8] sm:$0xff] }
 0x96d   : > { %v3749_v60 = vld [vmem:[#allocation14 + $0x6b0] sm:$0xff]  ;;  %v3758_v0 = vld [vmem:[#allocation14 + $0x6f8] sm:$0xff] }
 0x96e   : > { %v4265_v62 = vld [vmem:[#allocation14 + $0xa10] sm:$0xff]  ;;  %v4274_v1 = vld [vmem:[#allocation14 + $0xa58] sm:$0xff] }
 0x96f   : > { %7978 = vmatpush1.bf16.msra.mxu1 %v7977_v22  ;;  %8208 = vmatpush1.bf16.msra.mxu0 %v8207_v24  ;;  %v7993_v22 = vpack.c.bf16 %v3725_v7, %v3721_v13  ;;  %v8223_v24 = vpack.c.bf16 %v4245_v16, %v4241_v15  ;;  %v4269_v63 = vld [vmem:[#allocation14 + $0xa30] sm:$0xff]  ;;  %v4278_v5 = vld [vmem:[#allocation14 + $0xa78] sm:$0xff]  ;;  %v8007_v7 = vpack.c.bf16 %v3758_v0, %v3754_v29  ;;  %v3496_v0 = vld [vmem:[#allocation14 + $0x180] sm:$0xff] }
 0x970   : > { %7980 = vmatprep.subr.bf16.mxu1 %v7979_v31  ;;  %8210 = vmatprep.subr.bf16.mxu0 %v8209_v32  ;;  %v7995_v31 = vpack.c.bf16 %v3734_v18, %v3730_v17  ;;  %v8225_v32 = vpack.c.bf16 %v4254_v20, %v4250_v19  ;;  %v3753_v13 = vld [vmem:[#allocation14 + $0x6d0] sm:$0xff]  ;;  %v3449_v17 = vld [vmem:[#allocation14 + $0x8] sm:$0xff] }
 0x971   : > { %v4273_v15 = vld [vmem:[#allocation14 + $0xa50] sm:$0xff]  ;;  %v3453_v18 = vld [vmem:[#allocation14 + $0x28] sm:$0xff] }
 0x972   : > { %v4277_v16 = vld [vmem:[#allocation14 + $0xa70] sm:$0xff] }
 0x973   : > { %7982 = vmatpush1.bf16.msra.mxu1 %v7981_v36  ;;  %8212 = vmatpush1.bf16.msra.mxu0 %v8211_v37  ;;  %v7997_v36 = vpack.c.bf16 %v3733_v28, %v3729_v26  ;;  %v8227_v37 = vpack.c.bf16 %v4253_v6, %v4249_v33  ;;  %v8239_v20 = vpack.c.bf16 %v4277_v16, %v4273_v15  ;;  %v3452_v26 = vld [vmem:[#allocation14 + $0x20] sm:$0xff]  ;;  %v3457_v28 = vld [vmem:[#allocation14 + $0x48] sm:$0xff] }
 0x974   : > { %7984 = vmatprep.subr.bf16.mxu1 %v7983_v41  ;;  %8214 = vmatprep.subr.bf16.mxu0 %v8213_v42  ;;  %v7999_v41 = vpack.c.bf16 %v3742_v27, %v3738_v34  ;;  %v8229_v42 = vpack.c.bf16 %v4262_v23, %v4258_v35  ;;  %v3456_v6 = vld [vmem:[#allocation14 + $0x40] sm:$0xff]  ;;  %v3465_v27 = vld [vmem:[#allocation14 + $0x88] sm:$0xff] }
 0x975   : > { %v3460_v34 = vld [vmem:[#allocation14 + $0x60] sm:$0xff]  ;;  %v3469_v35 = vld [vmem:[#allocation14 + $0xa8] sm:$0xff] }
 0x976   : > { %v8017_v23 = vpack.c.bf16 %v3460_v34, %v3456_v6  ;;  %v3517_v15 = vld [vmem:[#allocation14 + $0x228] sm:$0xff] }
 0x977   : > { %7986 = vmatpush1.bf16.msra.mxu1 %v7985_v54  ;;  %8216 = vmatpush1.bf16.msra.mxu0 %v8215_v57  ;;  %v8001_v54 = vpack.c.bf16 %v3741_v40, %v3737_v38  ;;  %v8231_v57 = vpack.c.bf16 %v4261_v50, %v4257_v46  ;;  %v3468_v38 = vld [vmem:[#allocation14 + $0xa0] sm:$0xff]  ;;  %v3473_v40 = vld [vmem:[#allocation14 + $0xc8] sm:$0xff] }
 0x978   : > { %7988 = vmatprep.subr.bf16.mxu1 %v7987_v61  ;;  %8218 = vmatprep.subr.bf16.mxu0 %v8217_v11  ;;  %v8003_v61 = vpack.c.bf16 %v3750_v56, %v3746_v55  ;;  %v8233_v11 = vpack.c.bf16 %v4270_v53, %v4266_v59  ;;  %v3472_v46 = vld [vmem:[#allocation14 + $0xc0] sm:$0xff]  ;;  %v3485_v55 = vld [vmem:[#allocation14 + $0x128] sm:$0xff] }
 0x979   : > { %v3476_v50 = vld [vmem:[#allocation14 + $0xe0] sm:$0xff] }
 0x97a   : > { %v8025_v56 = vpack.c.bf16 %v3476_v50, %v3472_v46  ;;  %v3480_v53 = vld [vmem:[#allocation14 + $0x100] sm:$0xff] }
 0x97b   : > { %7990 = vmatpush1.bf16.msra.mxu1 %v7989_v8  ;;  %8220 = vmatpush1.bf16.msra.mxu0 %v8219_v25  ;;  %v8005_v8 = vpack.c.bf16 %v3749_v60, %v3745_v58  ;;  %v8235_v25 = vpack.c.bf16 %v4269_v63, %v4265_v62  ;;  %v3493_v58 = vld [vmem:[#allocation14 + $0x168] sm:$0xff] }
 0x97c   : > { %7992 = vmatprep.subr.bf16.mxu1 %v7991_v12  ;;  %8222 = vmatprep.subr.bf16.mxu0 %v8221_v14  ;;  %v8237_v12 = vpack.c.bf16 %v4278_v5, %v4274_v1  ;;  %v3757_v14 = vld [vmem:[#allocation14 + $0x6f0] sm:$0xff]  ;;  %v3501_v62 = vld [vmem:[#allocation14 + $0x1a8] sm:$0xff]  ;;  %v3500_v1 = vld [vmem:[#allocation14 + $0x1a0] sm:$0xff] }
 0x97d   : > { %v8009_v19 = vpack.c.bf16 %v3757_v14, %v3753_v13  ;;  %v3505_v5 = vld [vmem:[#allocation14 + $0x1c8] sm:$0xff] }
 0x97e   : > { %v3513_v14 = vld [vmem:[#allocation14 + $0x208] sm:$0xff] }
 0x97f   : > { %7994 = vmatpush1.bf16.msra.mxu1 %v7993_v22  ;;  %8224 = vmatpush1.bf16.msra.mxu0 %v8223_v24  ;;  %v8011_v22 = vpack.c.bf16 %v3453_v18, %v3449_v17  ;;  %v3448_v24 = vld [vmem:[#allocation14] sm:$0xff]  ;;  %v8043_v17 = vpack.c.bf16 %v3517_v15, %v3513_v14  ;;  %v4192_v15 = vld [vmem:[#allocation14 + $0x7c8] sm:$0xff] }
 0x980   : > { %7996 = vmatprep.subr.bf16.mxu1 %v7995_v31  ;;  %8226 = vmatprep.subr.bf16.mxu0 %v8225_v32  ;;  %v3461_v31 = vld [vmem:[#allocation14 + $0x68] sm:$0xff]  ;;  %v8013_v32 = vpack.c.bf16 %v3452_v26, %v3448_v24  ;;  %v3512_v18 = vld [vmem:[#allocation14 + $0x200] sm:$0xff] }
 0x981   : > { %v8015_v33 = vpack.c.bf16 %v3461_v31, %v3457_v28  ;;  %v3520_v28 = vld [vmem:[#allocation14 + $0x240] sm:$0xff] }
 0x982   : > { %v3524_v31 = vld [vmem:[#allocation14 + $0x260] sm:$0xff] }
 0x983   : > { %7998 = vmatpush1.bf16.msra.mxu1 %v7997_v36  ;;  %8228 = vmatpush1.bf16.msra.mxu0 %v8227_v37  ;;  %v8019_v36 = vpack.c.bf16 %v3469_v35, %v3465_v27  ;;  %v3464_v37 = vld [vmem:[#allocation14 + $0x80] sm:$0xff]  ;;  %v8049_v6 = vpack.c.bf16 %v3524_v31, %v3520_v28 }
 0x984   : > { %8000 = vmatprep.subr.bf16.mxu1 %v7999_v41  ;;  %8230 = vmatprep.subr.bf16.mxu0 %v8229_v42  ;;  %v3477_v41 = vld [vmem:[#allocation14 + $0xe8] sm:$0xff]  ;;  %v8021_v42 = vpack.c.bf16 %v3468_v38, %v3464_v37  ;;  %v3528_v27 = vld [vmem:[#allocation14 + $0x280] sm:$0xff] }
 0x985   : > { %v3532_v35 = vld [vmem:[#allocation14 + $0x2a0] sm:$0xff] }
 0x986   : > { %v8053_v37 = vpack.c.bf16 %v3532_v35, %v3528_v27  ;;  %v4187_v14 = vld [vmem:[#allocation14 + $0x7a0] sm:$0xff] }
 0x987   : > { %8002 = vmatpush1.bf16.msra.mxu1 %v8001_v54  ;;  %8232 = vmatpush1.bf16.msra.mxu0 %v8231_v57  ;;  %v3484_v54 = vld [vmem:[#allocation14 + $0x120] sm:$0xff]  ;;  %v3489_v57 = vld [vmem:[#allocation14 + $0x148] sm:$0xff] }
 0x988   : > { %8004 = vmatprep.subr.bf16.mxu1 %v8003_v61  ;;  %8234 = vmatprep.subr.bf16.mxu0 %v8233_v11  ;;  %v8031_v60 = vpack.c.bf16 %v3493_v58, %v3489_v57  ;;  %v3488_v61 = vld [vmem:[#allocation14 + $0x140] sm:$0xff]  ;;  %v3497_v11 = vld [vmem:[#allocation14 + $0x188] sm:$0xff] }
 0x989   : > { %v8035_v29 = vpack.c.bf16 %v3501_v62, %v3497_v11  ;;  %v3552_v57 = vld [vmem:[#allocation14 + $0x340] sm:$0xff] }
 0x98a   : > { %v3556_v58 = vld [vmem:[#allocation14 + $0x360] sm:$0xff] }
 0x98b   : > { %8006 = vmatpush1.bf16.msra.mxu1 %v8005_v8  ;;  %8236 = vmatpush1.bf16.msra.mxu0 %v8235_v25  ;;  %v3509_v8 = vld [vmem:[#allocation14 + $0x1e8] sm:$0xff]  ;;  %v8037_v25 = vpack.c.bf16 %v3500_v1, %v3496_v0  ;;  %v4167_v11 = vld [vmem:[#allocation14 + $0x700] sm:$0xff] }
 0x98c   : > { %8008 = vmatprep.subr.bf16.mxu1 %v8007_v7  ;;  %8238 = vmatprep.subr.bf16.mxu0 %v8237_v12  ;;  %v8039_v13 = vpack.c.bf16 %v3509_v8, %v3505_v5  ;;  %v3504_v7 = vld [vmem:[#allocation14 + $0x1c0] sm:$0xff]  ;;  %v4180_v0 = vld [vmem:[#allocation14 + $0x768] sm:$0xff] }
 0x98d   : > { %v3508_v12 = vld [vmem:[#allocation14 + $0x1e0] sm:$0xff]  ;;  %v4184_v8 = vld [vmem:[#allocation14 + $0x788] sm:$0xff] }
 0x98e   : > { %v8041_v16 = vpack.c.bf16 %v3508_v12, %v3504_v7  ;;  %v4179_v5 = vld [vmem:[#allocation14 + $0x760] sm:$0xff] }
 0x98f   : > { %8010 = vmatpush1.bf16.msra.mxu1 %v8009_v19  ;;  %8240 = vmatpush1.bf16.msra.mxu0 %v8239_v20  ;;  %v3516_v19 = vld [vmem:[#allocation14 + $0x220] sm:$0xff]  ;;  %v3521_v20 = vld [vmem:[#allocation14 + $0x248] sm:$0xff] }
 0x990   : > { %8243 = vmatprep.subr.msk.bf16.mxu0 %vm10670_vm6, %v10674_v45  ;;  %8012 = vmatprep.subr.bf16.mxu1 %v8011_v22  ;;  %v3525_v22 = vld [vmem:[#allocation14 + $0x268] sm:$0xff]  ;;  %v8045_v24 = vpack.c.bf16 %v3516_v19, %v3512_v18  ;;  %v4183_v12 = vld [vmem:[#allocation14 + $0x780] sm:$0xff] }
 0x991   : > { %v8047_v26 = vpack.c.bf16 %v3525_v22, %v3521_v20  ;;  %v4191_v19 = vld [vmem:[#allocation14 + $0x7c0] sm:$0xff]  ;;  %v4200_v22 = vld [vmem:[#allocation14 + $0x808] sm:$0xff] }
 0x992   : > { %3908 = vmatmul.mubr.f32.vlgmr.msra.gmra.mrb[44].mxu1 %v10696_v4  ;;  %v8023_v4 = vpack.c.bf16 %v3477_v41, %v3473_v40  ;;  %v3536_v40 = vld [vmem:[#allocation14 + $0x2c0] sm:$0xff] }
 0x993   : > { %7141 = vmatprep.mubr.msk.f32.mxu1 %vm3759_vm8, %v10709_v30  ;;  %8014 = vmatpush1.bf16.msra.mxu1 %v8013_v32  ;;  %v3481_v30 = vld [vmem:[#allocation14 + $0x108] sm:$0xff]  ;;  %v3540_v41 = vld [vmem:[#allocation14 + $0x2e0] sm:$0xff] }
 0x994   : > { %8016 = vmatprep.subr.bf16.mxu1 %v8015_v33  ;;  %v8027_v59 = vpack.c.bf16 %v3485_v55, %v3481_v30  ;;  %v3529_v32 = vld [vmem:[#allocation14 + $0x288] sm:$0xff]  ;;  %v8057_v46 = vpack.c.bf16 %v3540_v41, %v3536_v40  ;;  %v3544_v30 = vld [vmem:[#allocation14 + $0x300] sm:$0xff] }
 0x995   : > { %v3533_v33 = vld [vmem:[#allocation14 + $0x2a8] sm:$0xff]  ;;  %v3548_v55 = vld [vmem:[#allocation14 + $0x320] sm:$0xff] }
 0x996   : > { %3914 = vmatmul.mubr.f32.gmra.mrb[46].mxu1 %v10705_v21  ;;  %v8029_v21 = vpack.c.bf16 %v3484_v54, %v3480_v53  ;;  %v8051_v34 = vpack.c.bf16 %v3533_v33, %v3529_v32  ;;  %v8061_v53 = vpack.c.bf16 %v3548_v55, %v3544_v30  ;;  %v4195_v20 = vld [vmem:[#allocation14 + $0x7e0] sm:$0xff]  ;;  %v4208_v33 = vld [vmem:[#allocation14 + $0x848] sm:$0xff] }
 0x997   : > { %8018 = vmatpush1.bf16.msra.mxu1 %v8017_v23  ;;  %7142 = vmatprep.mubr.msk.f32.mxu1 %vm3759_vm8, %v10698_v9  ;;  %v3492_v9 = vld [vmem:[#allocation14 + $0x160] sm:$0xff]  ;;  %v3537_v23 = vld [vmem:[#allocation14 + $0x2c8] sm:$0xff] }
 0x998   : > { %8020 = vmatprep.subr.bf16.mxu1 %v8019_v36  ;;  %v8033_v63 = vpack.c.bf16 %v3492_v9, %v3488_v61  ;;  %v3541_v36 = vld [vmem:[#allocation14 + $0x2e8] sm:$0xff]  ;;  %v4199_v31 = vld [vmem:[#allocation14 + $0x800] sm:$0xff] }
 0x999   : > { %v8055_v38 = vpack.c.bf16 %v3541_v36, %v3537_v23  ;;  %v4082_v61 = vld [vmem:[#allocation17 + $0x28] sm:$0x3f]  ;;  %v4203_v32 = vld [vmem:[#allocation14 + $0x820] sm:$0xff] }
 0x99a   : > { %v4172_v9 = vld [vmem:[#allocation14 + $0x728] sm:$0xff]  ;;  %v4207_v35 = vld [vmem:[#allocation14 + $0x840] sm:$0xff] }
 0x99b   : > { %8022 = vmatpush1.bf16.msra.mxu1 %v8021_v42  ;;  %v3545_v42 = vld [vmem:[#allocation14 + $0x308] sm:$0xff]  ;;  %v4211_v23 = vld [vmem:[#allocation14 + $0x860] sm:$0xff] }
 0x99c   : > { %8024 = vmatprep.subr.bf16.mxu1 %v8023_v4  ;;  %v3549_v4 = vld [vmem:[#allocation14 + $0x328] sm:$0xff]  ;;  %v4215_v41 = vld [vmem:[#allocation14 + $0x880] sm:$0xff] }
 0x99d   : > { %v8059_v50 = vpack.c.bf16 %v3549_v4, %v3545_v42  ;;  %v4216_v36 = vld [vmem:[#allocation14 + $0x888] sm:$0xff]  ;;  %v4219_v42 = vld [vmem:[#allocation14 + $0x8a0] sm:$0xff] }
 0x99e   : > { %v4224_v4 = vld [vmem:[#allocation14 + $0x8c8] sm:$0xff]  ;;  %v4223_v55 = vld [vmem:[#allocation14 + $0x8c0] sm:$0xff] }
 0x99f   : > { %8026 = vmatpush1.bf16.msra.mxu1 %v8025_v56  ;;  %v3553_v56 = vld [vmem:[#allocation14 + $0x348] sm:$0xff] }
 0x9a0   : > { %8028 = vmatprep.subr.bf16.mxu1 %v8027_v59  ;;  %v3557_v59 = vld [vmem:[#allocation14 + $0x368] sm:$0xff] }
 0x9a1   : > { %v8063_v54 = vpack.c.bf16 %v3557_v59, %v3553_v56  ;;  %v4227_v56 = vld [vmem:[#allocation14 + $0x8e0] sm:$0xff]  ;;  %v4232_v59 = vld [vmem:[#allocation14 + $0x908] sm:$0xff] }
 0x9a3   : > { %8030 = vmatpush1.bf16.msra.mxu1 %v8029_v21  ;;  %v8065_v21 = vpack.c.bf16 %v3556_v58, %v3552_v57  ;;  %v4231_v58 = vld [vmem:[#allocation14 + $0x900] sm:$0xff] }
 0x9a4   : > { %8032 = vmatprep.subr.bf16.mxu1 %v8031_v60  ;;  %v4081_v60 = vld [vmem:[#allocation17 + $0x20] sm:$0xff] }
 0x9a7   : > { %8034 = vmatpush1.bf16.msra.mxu1 %v8033_v63  ;;  %v4171_v63 = vld [vmem:[#allocation14 + $0x720] sm:$0xff] }
 0x9a8   : > { %8036 = vmatprep.subr.bf16.mxu1 %v8035_v29  ;;  %v4176_v29 = vld [vmem:[#allocation14 + $0x748] sm:$0xff] }
 0x9a9   : > { %v8133_v1 = vpack.c.bf16 %v4180_v0, %v4176_v29  ;;  %v4252_v29 = vld [vmem:[#allocation14 + $0x9a8] sm:$0xff] }
 0x9ab   : > { %8038 = vmatpush1.bf16.msra.mxu1 %v8037_v25  ;;  %v4188_v25 = vld [vmem:[#allocation14 + $0x7a8] sm:$0xff] }
 0x9ac   : > { %8040 = vmatprep.subr.bf16.mxu1 %v8039_v13  ;;  %v8137_v7 = vpack.c.bf16 %v4188_v25, %v4184_v8  ;;  %v4260_v8 = vld [vmem:[#allocation14 + $0x9e8] sm:$0xff] }
 0x9af   : > { %8042 = vmatpush1.bf16.msra.mxu1 %v8041_v16  ;;  %v4196_v16 = vld [vmem:[#allocation14 + $0x7e8] sm:$0xff] }
 0x9b0   : > { %8044 = vmatprep.subr.bf16.mxu1 %v8043_v17  ;;  %v8139_v17 = vpack.c.bf16 %v4187_v14, %v4183_v12  ;;  %v8141_v18 = vpack.c.bf16 %v4196_v16, %v4192_v15  ;;  %v4259_v12 = vld [vmem:[#allocation14 + $0x9e0] sm:$0xff]  ;;  %v4264_v14 = vld [vmem:[#allocation14 + $0xa08] sm:$0xff] }
 0x9b1   : > { %v4268_v15 = vld [vmem:[#allocation14 + $0xa28] sm:$0xff] }
 0x9b3   : > { %8046 = vmatpush1.bf16.msra.mxu1 %v8045_v24  ;;  %v4204_v24 = vld [vmem:[#allocation14 + $0x828] sm:$0xff] }
 0x9b4   : > { %8048 = vmatprep.subr.bf16.mxu1 %v8047_v26  ;;  %v8143_v26 = vpack.c.bf16 %v4195_v20, %v4191_v19  ;;  %v8145_v28 = vpack.c.bf16 %v4204_v24, %v4200_v22  ;;  %v4267_v19 = vld [vmem:[#allocation14 + $0xa20] sm:$0xff]  ;;  %v4272_v20 = vld [vmem:[#allocation14 + $0xa48] sm:$0xff] }
 0x9b5   : > { %v4276_v22 = vld [vmem:[#allocation14 + $0xa68] sm:$0xff] }
 0x9b7   : > { %8050 = vmatpush1.bf16.msra.mxu1 %v8049_v6  ;;  %v4212_v6 = vld [vmem:[#allocation14 + $0x868] sm:$0xff] }
 0x9b8   : > { %8052 = vmatprep.subr.bf16.mxu1 %v8051_v34  ;;  %v8147_v34 = vpack.c.bf16 %v4203_v32, %v4199_v31  ;;  %v8149_v27 = vpack.c.bf16 %v4212_v6, %v4208_v33  ;;  %v4275_v31 = vld [vmem:[#allocation14 + $0xa60] sm:$0xff]  ;;  %v4535_v33 = vld [vmem:[#allocation14 + $0xa88] sm:$0xff] }
 0x9b9   : > { %v4539_v6 = vld [vmem:[#allocation14 + $0xaa8] sm:$0xff] }
 0x9bb   : > { %8054 = vmatpush1.bf16.msra.mxu1 %v8053_v37  ;;  %v4220_v37 = vld [vmem:[#allocation14 + $0x8a8] sm:$0xff] }
 0x9bc   : > { %8056 = vmatprep.subr.bf16.mxu1 %v8055_v38  ;;  %v8151_v38 = vpack.c.bf16 %v4211_v23, %v4207_v35  ;;  %v8153_v40 = vpack.c.bf16 %v4220_v37, %v4216_v36  ;;  %v4534_v37 = vld [vmem:[#allocation14 + $0xa80] sm:$0xff] }
 0x9bf   : > { %8058 = vmatpush1.bf16.msra.mxu1 %v8057_v46  ;;  %v4228_v46 = vld [vmem:[#allocation14 + $0x8e8] sm:$0xff] }
 0x9c0   : > { %8060 = vmatprep.subr.bf16.mxu1 %v8059_v50  ;;  %v8155_v50 = vpack.c.bf16 %v4219_v42, %v4215_v41  ;;  %v8157_v30 = vpack.c.bf16 %v4228_v46, %v4224_v4  ;;  %v4547_v41 = vld [vmem:[#allocation14 + $0xae8] sm:$0xff]  ;;  %v4537_v42 = vld [vmem:[#allocation14 + $0xa98] sm:$0xff] }
 0x9c1   : > { %v4541_v4 = vld [vmem:[#allocation14 + $0xab8] sm:$0xff] }
 0x9c3   : > { %8062 = vmatpush1.bf16.msra.mxu1 %v8061_v53  ;;  %v4236_v53 = vld [vmem:[#allocation14 + $0x928] sm:$0xff] }
 0x9c4   : > { %8064 = vmatprep.subr.bf16.mxu1 %v8063_v54  ;;  %v8159_v54 = vpack.c.bf16 %v4227_v56, %v4223_v55  ;;  %v8161_v57 = vpack.c.bf16 %v4236_v53, %v4232_v59  ;;  %v4542_v56 = vld [vmem:[#allocation14 + $0xac0] sm:$0xff]  ;;  %v8303_v53 = vpack.c.bf16 %v4541_v4, %v4537_v42 }
 0x9c5   : > { %v4546_v59 = vld [vmem:[#allocation14 + $0xae0] sm:$0xff] }
 0x9c6   : > { %v4574_v42 = vld [vmem:[#allocation14 + $0xbc0] sm:$0xff] }
 0x9c7   : > { %8066 = vmatpush1.bf16.msra.mxu1 %v8065_v21  ;;  %v4235_v21 = vld [vmem:[#allocation14 + $0x920] sm:$0xff] }
 0x9c8   : > { %8125 = vmatprep.subr.msk.bf16.mxu1 %vm10670_vm6, %v10674_v45  ;;  %v4578_v4 = vld [vmem:[#allocation14 + $0xbe0] sm:$0xff] }
 0x9ca   : > { %3991 = vmatmul.mubr.f32.vlgmr.msra.gmra.mrb[40].mxu1 %v10694_v2  ;;  %v4168_v2 = vld [vmem:[#allocation14 + $0x708] sm:$0xff] }
 0x9cb   : > { %8128 = vmatpush1.bf16.msk.msra.mxu1 %vm10670_vm6, %v10667_v43  ;;  %7143 = vmatprep.mubr.msk.f32.mxu1 %vm3759_vm8, %v10711_v10  ;;  %v8129_v62 = vpack.c.bf16 %v4172_v9, %v4168_v2  ;;  %v8131_v10 = vpack.c.bf16 %v4171_v63, %v4167_v11  ;;  %v8163_v2 = vpack.c.bf16 %v4235_v21, %v4231_v58  ;;  %v4239_v11 = vld [vmem:[#allocation14 + $0x940] sm:$0xff]  ;;  %v4248_v63 = vld [vmem:[#allocation14 + $0x988] sm:$0xff] }
 0x9cc   : > { %v8253_v21 = vpack.c.bf16 %v4546_v59, %v4542_v56  ;;  %v4560_v56 = vld [vmem:[#allocation14 + $0xb50] sm:$0xff] }
 0x9cd   : > { %8130 = vmatprep.subr.bf16.mxu1 %v8129_v62  ;;  %v4243_v62 = vld [vmem:[#allocation14 + $0x960] sm:$0xff]  ;;  %v4564_v59 = vld [vmem:[#allocation14 + $0xb70] sm:$0xff] }
 0x9ce   : > { %3997 = vmatmul.mubr.f32.gmra.mrb[42].mxu1 %v10707_v3  ;;  %v4175_v3 = vld [vmem:[#allocation14 + $0x740] sm:$0xff]  ;;  %v8167_v0 = vpack.c.bf16 %v4243_v62, %v4239_v11  ;;  %v4559_v11 = vld [vmem:[#allocation14 + $0xb48] sm:$0xff] }
 0x9cf   : > { %4153 = vmatprep.mubr.f32.mxu1 %v9877_v39  ;;  %v8135_v13 = vpack.c.bf16 %v4179_v5, %v4175_v3  ;;  %v4251_v3 = vld [vmem:[#allocation14 + $0x9a0] sm:$0xff]  ;;  %v4256_v5 = vld [vmem:[#allocation14 + $0x9c8] sm:$0xff] }
 0x9d0   : > { %v4563_v62 = vld [vmem:[#allocation14 + $0xb68] sm:$0xff] }
 0x9d2   : > { %7148 = vmatmul.mubr.msk.f32.vlgmr.msra.gmra.mrb[48].mxu1 %vm3357_vm7, %v4081_v60  ;;  %v4240_v60 = vld [vmem:[#allocation14 + $0x948] sm:$0xff] }
 0x9d3   : > { %4159 = vmatprep.mubr.f32.mxu1 %v9877_v39  ;;  %8132 = vmatpush1.bf16.msra.mxu1 %v8131_v10  ;;  %v8169_v10 = vpack.c.bf16 %v4252_v29, %v4248_v63  ;;  %v4536_v63 = vld [vmem:[#allocation14 + $0xa90] sm:$0xff] }
 0x9d4   : > { %8134 = vmatprep.subr.bf16.mxu1 %v8133_v1  ;;  %v4247_v1 = vld [vmem:[#allocation14 + $0x980] sm:$0xff]  ;;  %v4540_v29 = vld [vmem:[#allocation14 + $0xab0] sm:$0xff] }
 0x9d5   : > { %v8171_v25 = vpack.c.bf16 %v4251_v3, %v4247_v1  ;;  %v4448_v1 = vld [vmem:[#allocation17 + $0x30] sm:$0xff] }
 0x9d6   : > { %7149 = vmatmul.mubr.msk.f32.gmra.mrb[50].mxu1 %vm3357_vm7, %v4082_v61  ;;  %v4244_v61 = vld [vmem:[#allocation14 + $0x968] sm:$0xff] }
 0x9d7   : > { %8136 = vmatpush1.bf16.msra.mxu1 %v8135_v13  ;;  %v8165_v9 = vpack.c.bf16 %v4244_v61, %v4240_v60  ;;  %v8173_v13 = vpack.c.bf16 %v4260_v8, %v4256_v5  ;;  %v8259_v5 = vpack.c.bf16 %v4563_v62, %v4559_v11  ;;  %v4558_v8 = vld [vmem:[#allocation14 + $0xb40] sm:$0xff]  ;;  %v4568_v62 = vld [vmem:[#allocation14 + $0xb90] sm:$0xff] }
 0x9d8   : > { %8138 = vmatprep.subr.bf16.mxu1 %v8137_v7  ;;  %v4255_v7 = vld [vmem:[#allocation14 + $0x9c0] sm:$0xff] }
 0x9d9   : > { %v8175_v16 = vpack.c.bf16 %v4259_v12, %v4255_v7  ;;  %v8305_v7 = vpack.c.bf16 %v4540_v29, %v4536_v63  ;;  %v4571_v12 = vld [vmem:[#allocation14 + $0xba8] sm:$0xff]  ;;  %v4572_v63 = vld [vmem:[#allocation14 + $0xbb0] sm:$0xff]  ;;  %v4577_v29 = vld [vmem:[#allocation14 + $0xbd8] sm:$0xff] }
 0x9db   : > { %8140 = vmatpush1.bf16.msra.mxu1 %v8139_v17  ;;  %v8177_v17 = vpack.c.bf16 %v4268_v15, %v4264_v14  ;;  %v4544_v15 = vld [vmem:[#allocation14 + $0xad0] sm:$0xff] }
 0x9dc   : > { %8142 = vmatprep.subr.bf16.mxu1 %v8141_v18  ;;  %v4263_v18 = vld [vmem:[#allocation14 + $0xa00] sm:$0xff] }
 0x9dd   : > { %v8179_v24 = vpack.c.bf16 %v4267_v19, %v4263_v18  ;;  %v4557_v18 = vld [vmem:[#allocation14 + $0xb38] sm:$0xff] }
 0x9de   : > { %v4449_v19 = vld [vmem:[#allocation17 + $0x38] sm:$0x3f] }
 0x9df   : > { %8144 = vmatpush1.bf16.msra.mxu1 %v8143_v26  ;;  %v8181_v26 = vpack.c.bf16 %v4276_v22, %v4272_v20 }
 0x9e0   : > { %8146 = vmatprep.subr.bf16.mxu1 %v8145_v28  ;;  %v4271_v28 = vld [vmem:[#allocation14 + $0xa40] sm:$0xff] }
 0x9e1   : > { %v8183_v32 = vpack.c.bf16 %v4275_v31, %v4271_v28  ;;  %v4575_v28 = vld [vmem:[#allocation14 + $0xbc8] sm:$0xff] }
 0x9e3   : > { %8148 = vmatpush1.bf16.msra.mxu1 %v8147_v34  ;;  %v8247_v34 = vpack.c.bf16 %v4539_v6, %v4535_v33  ;;  %v4552_v6 = vld [vmem:[#allocation14 + $0xb10] sm:$0xff] }
 0x9e4   : > { %8150 = vmatprep.subr.bf16.mxu1 %v8149_v27 }
 0x9e7   : > { %8152 = vmatpush1.bf16.msra.mxu1 %v8151_v38  ;;  %v4538_v38 = vld [vmem:[#allocation14 + $0xaa0] sm:$0xff] }
 0x9e8   : > { %8154 = vmatprep.subr.bf16.mxu1 %v8153_v40  ;;  %v4543_v40 = vld [vmem:[#allocation14 + $0xac8] sm:$0xff] }
 0x9e9   : > { %v8251_v55 = vpack.c.bf16 %v4547_v41, %v4543_v40 }
 0x9eb   : > { %8156 = vmatpush1.bf16.msra.mxu1 %v8155_v50  ;;  %v8249_v50 = vpack.c.bf16 %v4538_v38, %v4534_v37  ;;  %v4561_v37 = vld [vmem:[#allocation14 + $0xb58] sm:$0xff] }
 0x9ec   : > { %8158 = vmatprep.subr.bf16.mxu1 %v8157_v30  ;;  %v4565_v38 = vld [vmem:[#allocation14 + $0xb78] sm:$0xff] }
 0x9ef   : > { %8160 = vmatpush1.bf16.msra.mxu1 %v8159_v54  ;;  %v4551_v54 = vld [vmem:[#allocation14 + $0xb08] sm:$0xff] }
 0x9f0   : > { %8162 = vmatprep.subr.bf16.mxu1 %v8161_v57  ;;  %v4555_v57 = vld [vmem:[#allocation14 + $0xb28] sm:$0xff] }
 0x9f1   : > { %v8255_v61 = vpack.c.bf16 %v4555_v57, %v4551_v54  ;;  %v4573_v54 = vld [vmem:[#allocation14 + $0xbb8] sm:$0xff]  ;;  %v8269_v57 = vpack.c.bf16 %v4578_v4, %v4574_v42  ;;  %v4619_v4 = vld [vmem:[#allocation14 + $0xd28] sm:$0xff] }
 0x9f3   : > { %8164 = vmatpush1.bf16.msra.mxu1 %v8163_v2  ;;  %v4550_v2 = vld [vmem:[#allocation14 + $0xb00] sm:$0xff] }
 0x9f4   : > { %8166 = vmatprep.subr.bf16.mxu1 %v8165_v9  ;;  %v4554_v9 = vld [vmem:[#allocation14 + $0xb20] sm:$0xff] }
 0x9f5   : > { %v8257_v3 = vpack.c.bf16 %v4554_v9, %v4550_v2  ;;  %v8317_v2 = vpack.c.bf16 %v4564_v59, %v4560_v56  ;;  %v4595_v9 = vld [vmem:[#allocation14 + $0xc68] sm:$0xff]  ;;  %v4605_v56 = vld [vmem:[#allocation14 + $0xcb8] sm:$0xff] }
 0x9f7   : > { %8168 = vmatpush1.bf16.msra.mxu1 %v8167_v0  ;;  %v4545_v0 = vld [vmem:[#allocation14 + $0xad8] sm:$0xff] }
 0x9f8   : > { %8170 = vmatprep.subr.bf16.mxu1 %v8169_v10  ;;  %v4549_v10 = vld [vmem:[#allocation14 + $0xaf8] sm:$0xff] }
 0x9f9   : > { %v8307_v14 = vpack.c.bf16 %v4549_v10, %v4545_v0  ;;  %v4581_v0 = vld [vmem:[#allocation14 + $0xbf8] sm:$0xff] }
 0x9fb   : > { %8172 = vmatpush1.bf16.msra.mxu1 %v8171_v25  ;;  %v4562_v25 = vld [vmem:[#allocation14 + $0xb60] sm:$0xff] }
 0x9fc   : > { %8174 = vmatprep.subr.bf16.mxu1 %v8173_v13  ;;  %v4567_v13 = vld [vmem:[#allocation14 + $0xb88] sm:$0xff]  ;;  %v8261_v20 = vpack.c.bf16 %v4562_v25, %v4558_v8  ;;  %v8321_v25 = vpack.c.bf16 %v4572_v63, %v4568_v62  ;;  %v4613_v62 = vld [vmem:[#allocation14 + $0xcf8] sm:$0xff] }
 0x9fd   : > { %v8263_v22 = vpack.c.bf16 %v4571_v12, %v4567_v13  ;;  %v4599_v8 = vld [vmem:[#allocation14 + $0xc88] sm:$0xff]  ;;  %v4576_v12 = vld [vmem:[#allocation14 + $0xbd0] sm:$0xff] }
 0x9fe   : > { %v4603_v13 = vld [vmem:[#allocation14 + $0xca8] sm:$0xff] }
 0x9ff   : > { %8176 = vmatpush1.bf16.msra.mxu1 %v8175_v16  ;;  %v4548_v16 = vld [vmem:[#allocation14 + $0xaf0] sm:$0xff] }
 0xa00   : > { %8178 = vmatprep.subr.bf16.mxu1 %v8177_v17  ;;  %v4553_v17 = vld [vmem:[#allocation14 + $0xb18] sm:$0xff]  ;;  %v8309_v31 = vpack.c.bf16 %v4548_v16, %v4544_v15 }
 0xa01   : > { %v8311_v33 = vpack.c.bf16 %v4557_v18, %v4553_v17  ;;  %v4585_v15 = vld [vmem:[#allocation14 + $0xc18] sm:$0xff]  ;;  %v8279_v18 = vpack.c.bf16 %v4603_v13, %v4599_v8  ;;  %v4612_v13 = vld [vmem:[#allocation14 + $0xcf0] sm:$0xff] }
 0xa02   : > { %v4589_v16 = vld [vmem:[#allocation14 + $0xc38] sm:$0xff] }
 0xa03   : > { %8180 = vmatpush1.bf16.msra.mxu1 %v8179_v24  ;;  %v4566_v24 = vld [vmem:[#allocation14 + $0xb80] sm:$0xff] }
 0xa04   : > { %8182 = vmatprep.subr.bf16.mxu1 %v8181_v26  ;;  %v4570_v26 = vld [vmem:[#allocation14 + $0xba0] sm:$0xff] }
 0xa05   : > { %v8265_v40 = vpack.c.bf16 %v4570_v26, %v4566_v24  ;;  %v4611_v26 = vld [vmem:[#allocation14 + $0xce8] sm:$0xff] }
 0xa07   : > { %8184 = vmatpush1.bf16.msra.mxu1 %v8183_v32  ;;  %v4579_v32 = vld [vmem:[#allocation14 + $0xbe8] sm:$0xff] }
 0xa08   : > { %8248 = vmatprep.subr.bf16.mxu1 %v8247_v34  ;;  %v4556_v34 = vld [vmem:[#allocation14 + $0xb30] sm:$0xff]  ;;  %v8267_v41 = vpack.c.bf16 %v4579_v32, %v4575_v28  ;;  %v8327_v28 = vpack.c.bf16 %v4589_v16, %v4585_v15  ;;  %v4630_v16 = vld [vmem:[#allocation14 + $0xd80] sm:$0xff] }
 0xa09   : > { %v4588_v32 = vld [vmem:[#allocation14 + $0xc30] sm:$0xff] }
 0xa65   : > { %v10743_v27 = vpop.f32.mrb[44].mxu1 }
 0xa66   : > { %v10745_v35 = vpop.f32.mrb[45].mxu1 }
 0xa69   : > { %v10747_v23 = vpop.f32.mrb[46].mxu1 }
 0xa6a   : > { %v10749_v36 = vpop.f32.mrb[47].mxu1 }
 0xaa5   : > { %v4155_v46 = vpop.f32.mrb[48].mxu1 }
 0xaa6   : > { %v4157_v30 = vpop.f32.mrb[49].mxu1 }
 0xaa7   : > { %7150 = vmatprep.mubr.msk.f32.mxu1 %vm3759_vm8, %v4157_v30  ;;  %7152 = vmatprep.mubr.msk.f32.mxu0 %vm3759_vm8, %v4157_v30  ;;  %v4587_v30 = vld [vmem:[#allocation14 + $0xc28] sm:$0xff] }
 0xaa8   : > { %4350 = vmatmul.mubr.f32.vlgmr.msra.gmra.mrb[40].mxu1 %v4155_v46  ;;  %4427 = vmatmul.mubr.f32.vlgmr.msra.gmra.mrb[32].mxu0 %v4155_v46  ;;  %v4583_v46 = vld [vmem:[#allocation14 + $0xc08] sm:$0xff] }
 0xaa9   : > { %8246 = vmatpush1.bf16.msk.msra.mxu0 %vm10670_vm6, %v10667_v43  ;;  %8250 = vmatpush1.bf16.msra.mxu1 %v8249_v50  ;;  %v4161_v58 = vpop.f32.mrb[50].mxu1  ;;  %v8313_v50 = vpack.c.bf16 %v4556_v34, %v4552_v6  ;;  %v4597_v6 = vld [vmem:[#allocation14 + $0xc78] sm:$0xff] }
 0xaaa   : > { %v4163_v60 = vpop.f32.mrb[51].mxu1  ;;  %8252 = vmatprep.subr.bf16.mxu1 %v8251_v55  ;;  %8304 = vmatprep.subr.bf16.mxu0 %v8303_v53  ;;  %v8315_v55 = vpack.c.bf16 %v4565_v38, %v4561_v37  ;;  %v4569_v53 = vld [vmem:[#allocation14 + $0xb98] sm:$0xff]  ;;  %v4606_v38 = vld [vmem:[#allocation14 + $0xcc0] sm:$0xff] }
 0xaab   : > { %7151 = vmatprep.mubr.msk.f32.mxu1 %vm3759_vm8, %v4163_v60  ;;  %7153 = vmatprep.mubr.msk.f32.mxu0 %vm3759_vm8, %v4163_v60  ;;  %v4586_v60 = vld [vmem:[#allocation14 + $0xc20] sm:$0xff]  ;;  %v8319_v11 = vpack.c.bf16 %v4573_v54, %v4569_v53 }
 0xaac   : > { %4356 = vmatmul.mubr.f32.gmra.mrb[42].mxu1 %v4161_v58  ;;  %4433 = vmatmul.mubr.f32.gmra.mrb[34].mxu0 %v4161_v58  ;;  %v8271_v58 = vpack.c.bf16 %v4587_v30, %v4583_v46  ;;  %v4596_v30 = vld [vmem:[#allocation14 + $0xc70] sm:$0xff]  ;;  %v4614_v54 = vld [vmem:[#allocation14 + $0xd00] sm:$0xff] }
 0xaad   : > { %8254 = vmatpush1.bf16.msra.mxu1 %v8253_v21  ;;  %4520 = vmatprep.mubr.f32.mxu0 %v9877_v39  ;;  %v4582_v21 = vld [vmem:[#allocation14 + $0xc00] sm:$0xff] }
 0xaae   : > { %8256 = vmatprep.subr.bf16.mxu1 %v8255_v61  ;;  %v4591_v61 = vld [vmem:[#allocation14 + $0xc48] sm:$0xff]  ;;  %v8273_v10 = vpack.c.bf16 %v4586_v60, %v4582_v21 }
 0xaaf   : > { %v4627_v60 = vld [vmem:[#allocation14 + $0xd68] sm:$0xff] }
 0xab0   : > { %7156 = vmatmul.mubr.msk.f32.vlgmr.msra.gmra.mrb[36].mxu0 %vm3357_vm7, %v4448_v1  ;;  %v8275_v1 = vpack.c.bf16 %v4595_v9, %v4591_v61  ;;  %v4604_v9 = vld [vmem:[#allocation14 + $0xcb0] sm:$0xff] }
 0xab1   : > { %8258 = vmatpush1.bf16.msra.mxu1 %v8257_v3  ;;  %4526 = vmatprep.mubr.f32.mxu0 %v9877_v39  ;;  %v4590_v3 = vld [vmem:[#allocation14 + $0xc40] sm:$0xff] }
 0xab2   : > { %8260 = vmatprep.subr.bf16.mxu1 %v8259_v5  ;;  %8306 = vmatpush1.bf16.msra.mxu0 %v8305_v7  ;;  %v4594_v5 = vld [vmem:[#allocation14 + $0xc60] sm:$0xff]  ;;  %v8323_v7 = vpack.c.bf16 %v4581_v0, %v4577_v29 }
 0xab3   : > { %8308 = vmatprep.subr.bf16.mxu0 %v8307_v14  ;;  %v4580_v14 = vld [vmem:[#allocation14 + $0xbf0] sm:$0xff]  ;;  %v8277_v17 = vpack.c.bf16 %v4594_v5, %v4590_v3  ;;  %v4622_v0 = vld [vmem:[#allocation14 + $0xd40] sm:$0xff]  ;;  %v4635_v5 = vld [vmem:[#allocation14 + $0xda8] sm:$0xff] }
 0xab4   : > { %7157 = vmatmul.mubr.msk.f32.gmra.mrb[38].mxu0 %vm3357_vm7, %v4449_v19  ;;  %v4598_v19 = vld [vmem:[#allocation14 + $0xc80] sm:$0xff]  ;;  %v8325_v24 = vpack.c.bf16 %v4580_v14, %v4576_v12  ;;  %v4621_v12 = vld [vmem:[#allocation14 + $0xd38] sm:$0xff] }
 0xab5   : > { %8262 = vmatpush1.bf16.msra.mxu1 %v8261_v20  ;;  %v4602_v20 = vld [vmem:[#allocation14 + $0xca0] sm:$0xff] }
 0xab6   : > { %8264 = vmatprep.subr.bf16.mxu1 %v8263_v22  ;;  %8310 = vmatpush1.bf16.msra.mxu0 %v8309_v31  ;;  %v4607_v22 = vld [vmem:[#allocation14 + $0xcc8] sm:$0xff]  ;;  %v4584_v31 = vld [vmem:[#allocation14 + $0xc10] sm:$0xff]  ;;  %v8281_v34 = vpack.c.bf16 %v4602_v20, %v4598_v19 }
 0xab7   : > { %8312 = vmatprep.subr.bf16.mxu0 %v8311_v33  ;;  %v4593_v33 = vld [vmem:[#allocation14 + $0xc58] sm:$0xff]  ;;  %v8283_v37 = vpack.c.bf16 %v4611_v26, %v4607_v22  ;;  %v8329_v42 = vpack.c.bf16 %v4588_v32, %v4584_v31  ;;  %v4643_v20 = vld [vmem:[#allocation14 + $0xde8] sm:$0xff]  ;;  %v4620_v26 = vld [vmem:[#allocation14 + $0xd30] sm:$0xff] }
 0xab8   : > { %v8331_v46 = vpack.c.bf16 %v4597_v6, %v4593_v33  ;;  %v4629_v31 = vld [vmem:[#allocation14 + $0xd78] sm:$0xff]  ;;  %v4638_v6 = vld [vmem:[#allocation14 + $0xdc0] sm:$0xff] }
 0xab9   : > { %8266 = vmatpush1.bf16.msra.mxu1 %v8265_v40  ;;  %v4610_v40 = vld [vmem:[#allocation14 + $0xce0] sm:$0xff] }
 0xaba   : > { %8268 = vmatprep.subr.bf16.mxu1 %v8267_v41  ;;  %8314 = vmatpush1.bf16.msra.mxu0 %v8313_v50  ;;  %v4615_v41 = vld [vmem:[#allocation14 + $0xd08] sm:$0xff]  ;;  %v4592_v50 = vld [vmem:[#allocation14 + $0xc50] sm:$0xff]  ;;  %v8285_v59 = vpack.c.bf16 %v4610_v40, %v4606_v38 }
 0xabb   : > { %8316 = vmatprep.subr.bf16.mxu0 %v8315_v55  ;;  %v4601_v55 = vld [vmem:[#allocation14 + $0xc98] sm:$0xff]  ;;  %v8287_v53 = vpack.c.bf16 %v4619_v4, %v4615_v41  ;;  %v8333_v21 = vpack.c.bf16 %v4596_v30, %v4592_v50  ;;  %v4624_v40 = vld [vmem:[#allocation14 + $0xd50] sm:$0xff] }
 0xabc   : > { %v8335_v61 = vpack.c.bf16 %v4605_v56, %v4601_v55  ;;  %v4628_v41 = vld [vmem:[#allocation14 + $0xd70] sm:$0xff]  ;;  %v4637_v4 = vld [vmem:[#allocation14 + $0xdb8] sm:$0xff] }
 0xabd   : > { %8270 = vmatpush1.bf16.msra.mxu1 %v8269_v57  ;;  %v4618_v57 = vld [vmem:[#allocation14 + $0xd20] sm:$0xff]  ;;  %v8349_v50 = vpack.c.bf16 %v4628_v41, %v4624_v40  ;;  %v4632_v55 = vld [vmem:[#allocation14 + $0xd90] sm:$0xff]  ;;  %v4922_v40 = vld [vmem:[#allocation14 + $0xea8] sm:$0xff] }
 0xabe   : > { %8272 = vmatprep.subr.bf16.mxu1 %v8271_v58  ;;  %8318 = vmatpush1.bf16.msra.mxu0 %v8317_v2  ;;  %v4623_v58 = vld [vmem:[#allocation14 + $0xd48] sm:$0xff]  ;;  %v4600_v2 = vld [vmem:[#allocation14 + $0xc90] sm:$0xff]  ;;  %v8289_v63 = vpack.c.bf16 %v4618_v57, %v4614_v54 }
 0xabf   : > { %8320 = vmatprep.subr.bf16.mxu0 %v8319_v11  ;;  %v4609_v11 = vld [vmem:[#allocation14 + $0xcd8] sm:$0xff]  ;;  %v8291_v29 = vpack.c.bf16 %v4627_v60, %v4623_v58  ;;  %v8337_v3 = vpack.c.bf16 %v4604_v9, %v4600_v2  ;;  %v4636_v56 = vld [vmem:[#allocation14 + $0xdb0] sm:$0xff] }
 0xac0   : > { %v8339_v8 = vpack.c.bf16 %v4613_v62, %v4609_v11  ;;  %v8353_v54 = vpack.c.bf16 %v4636_v56, %v4632_v55  ;;  %v4640_v58 = vld [vmem:[#allocation14 + $0xdd0] sm:$0xff]  ;;  %v4908_v2 = vld [vmem:[#allocation14 + $0xe38] sm:$0xff]  ;;  %v4902_v11 = vld [vmem:[#allocation14 + $0xe08] sm:$0xff] }
 0xac1   : > { %8274 = vmatpush1.bf16.msra.mxu1 %v8273_v10  ;;  %v4626_v10 = vld [vmem:[#allocation14 + $0xd60] sm:$0xff]  ;;  %v4903_v62 = vld [vmem:[#allocation14 + $0xe10] sm:$0xff] }
 0xac2   : > { %8276 = vmatprep.subr.bf16.mxu1 %v8275_v1  ;;  %8322 = vmatpush1.bf16.msra.mxu0 %v8321_v25  ;;  %v4631_v1 = vld [vmem:[#allocation14 + $0xd88] sm:$0xff]  ;;  %v4608_v25 = vld [vmem:[#allocation14 + $0xcd0] sm:$0xff]  ;;  %v8293_v14 = vpack.c.bf16 %v4626_v10, %v4622_v0  ;;  %v4912_v0 = vld [vmem:[#allocation14 + $0xe58] sm:$0xff] }
 0xac3   : > { %8324 = vmatprep.subr.bf16.mxu0 %v8323_v7  ;;  %v4617_v7 = vld [vmem:[#allocation14 + $0xd18] sm:$0xff]  ;;  %v8295_v15 = vpack.c.bf16 %v4635_v5, %v4631_v1  ;;  %v8341_v19 = vpack.c.bf16 %v4612_v13, %v4608_v25  ;;  %v4911_v25 = vld [vmem:[#allocation14 + $0xe50] sm:$0xff] }
 0xac4   : > { %v8343_v22 = vpack.c.bf16 %v4621_v12, %v4617_v7  ;;  %v4915_v13 = vld [vmem:[#allocation14 + $0xe70] sm:$0xff]  ;;  %v4920_v7 = vld [vmem:[#allocation14 + $0xe98] sm:$0xff] }
 0xac5   : > { %8278 = vmatpush1.bf16.msra.mxu1 %v8277_v17  ;;  %v4634_v17 = vld [vmem:[#allocation14 + $0xda0] sm:$0xff]  ;;  %v4924_v12 = vld [vmem:[#allocation14 + $0xeb8] sm:$0xff] }
 0xac6   : > { %8280 = vmatprep.subr.bf16.mxu1 %v8279_v18  ;;  %8326 = vmatpush1.bf16.msra.mxu0 %v8325_v24  ;;  %v4639_v18 = vld [vmem:[#allocation14 + $0xdc8] sm:$0xff]  ;;  %v4616_v24 = vld [vmem:[#allocation14 + $0xd10] sm:$0xff]  ;;  %v8297_v32 = vpack.c.bf16 %v4634_v17, %v4630_v16  ;;  %v4901_v17 = vld [vmem:[#allocation14 + $0xe00] sm:$0xff] }
 0xac7   : > { %8328 = vmatprep.subr.bf16.mxu0 %v8327_v28  ;;  %v4625_v28 = vld [vmem:[#allocation14 + $0xd58] sm:$0xff]  ;;  %v8299_v33 = vpack.c.bf16 %v4643_v20, %v4639_v18  ;;  %v4905_v18 = vld [vmem:[#allocation14 + $0xe20] sm:$0xff]  ;;  %v8429_v20 = vpack.c.bf16 %v4924_v12, %v4920_v7 }
 0xac8   : > { %v8347_v38 = vpack.c.bf16 %v4629_v31, %v4625_v28  ;;  %v4932_v28 = vld [vmem:[#allocation14 + $0xef8] sm:$0xff]  ;;  %v4815_v31 = vld [vmem:[#allocation17 + $0x40] sm:$0xff] }
 0xac9   : > { %8282 = vmatpush1.bf16.msra.mxu1 %v8281_v34  ;;  %v4642_v34 = vld [vmem:[#allocation14 + $0xde0] sm:$0xff] }
 0xaca   : > { %8284 = vmatprep.subr.bf16.mxu1 %v8283_v37  ;;  %8330 = vmatpush1.bf16.msra.mxu0 %v8329_v42  ;;  %v8345_v37 = vpack.c.bf16 %v4620_v26, %v4616_v24  ;;  %v4633_v42 = vld [vmem:[#allocation14 + $0xd98] sm:$0xff]  ;;  %v4919_v24 = vld [vmem:[#allocation14 + $0xe90] sm:$0xff]  ;;  %v4933_v12 = vld [vmem:[#allocation14 + $0xf00] sm:$0xff] }
 0xacb   : > { %8332 = vmatprep.subr.bf16.mxu0 %v8331_v46  ;;  %v8301_v46 = vpack.c.bf16 %v4642_v34, %v4638_v6  ;;  %v8351_v30 = vpack.c.bf16 %v4637_v4, %v4633_v42  ;;  %v4923_v26 = vld [vmem:[#allocation14 + $0xeb0] sm:$0xff]  ;;  %v4909_v6 = vld [vmem:[#allocation14 + $0xe40] sm:$0xff] }
 0xacc   : > { %v4913_v34 = vld [vmem:[#allocation14 + $0xe60] sm:$0xff]  ;;  %v4927_v42 = vld [vmem:[#allocation14 + $0xed0] sm:$0xff] }
 0xacd   : > { %8286 = vmatpush1.bf16.msra.mxu1 %v8285_v59  ;;  %v4641_v59 = vld [vmem:[#allocation14 + $0xdd8] sm:$0xff]  ;;  %v4931_v4 = vld [vmem:[#allocation14 + $0xef0] sm:$0xff]  ;;  %v8371_v55 = vpack.c.bf16 %v4913_v34, %v4909_v6  ;;  %v4954_v6 = vld [vmem:[#allocation14 + $0xfa8] sm:$0xff] }
 0xace   : > { %8288 = vmatprep.subr.bf16.mxu1 %v8287_v53  ;;  %8334 = vmatpush1.bf16.msra.mxu0 %v8333_v21  ;;  %v4645_v53 = vld [vmem:[#allocation14 + $0xdf8] sm:$0xff]  ;;  %v4644_v21 = vld [vmem:[#allocation14 + $0xdf0] sm:$0xff] }
 0xacf   : > { %8336 = vmatprep.subr.bf16.mxu0 %v8335_v61  ;;  %v8355_v57 = vpack.c.bf16 %v4645_v53, %v4641_v59  ;;  %v8357_v60 = vpack.c.bf16 %v4644_v21, %v4640_v58  ;;  %v4904_v61 = vld [vmem:[#allocation14 + $0xe18] sm:$0xff]  ;;  %v4917_v59 = vld [vmem:[#allocation14 + $0xe80] sm:$0xff]  ;;  %v4930_v58 = vld [vmem:[#allocation14 + $0xee8] sm:$0xff] }
 0xad0   : > { %v8421_v9 = vpack.c.bf16 %v4908_v2, %v4904_v61  ;;  %v4921_v53 = vld [vmem:[#allocation14 + $0xea0] sm:$0xff]  ;;  %v4939_v61 = vld [vmem:[#allocation14 + $0xf30] sm:$0xff]  ;;  %v4944_v2 = vld [vmem:[#allocation14 + $0xf58] sm:$0xff] }
 0xad1   : > { %8290 = vmatpush1.bf16.msra.mxu1 %v8289_v63  ;;  %v4907_v63 = vld [vmem:[#allocation14 + $0xe30] sm:$0xff] }
 0xad2   : > { %8292 = vmatprep.subr.bf16.mxu1 %v8291_v29  ;;  %8338 = vmatpush1.bf16.msra.mxu0 %v8337_v3  ;;  %v4906_v29 = vld [vmem:[#allocation14 + $0xe28] sm:$0xff]  ;;  %v8423_v1 = vpack.c.bf16 %v4907_v63, %v4903_v62  ;;  %v4925_v63 = vld [vmem:[#allocation14 + $0xec0] sm:$0xff] }
 0xad3   : > { %8340 = vmatprep.subr.bf16.mxu0 %v8339_v8  ;;  %v8365_v5 = vpack.c.bf16 %v4906_v29, %v4902_v11  ;;  %v8375_v11 = vpack.c.bf16 %v4921_v53, %v4917_v59  ;;  %v4929_v29 = vld [vmem:[#allocation14 + $0xee0] sm:$0xff]  ;;  %v4967_v53 = vld [vmem:[#allocation14 + $0x1010] sm:$0xff] }
 0xad5   : > { %8294 = vmatpush1.bf16.msra.mxu1 %v8293_v14 }
 0xad6   : > { %8296 = vmatprep.subr.bf16.mxu1 %v8295_v15  ;;  %8342 = vmatpush1.bf16.msra.mxu0 %v8341_v19  ;;  %v8427_v15 = vpack.c.bf16 %v4915_v13, %v4911_v25  ;;  %v4910_v19 = vld [vmem:[#allocation14 + $0xe48] sm:$0xff]  ;;  %v4956_v25 = vld [vmem:[#allocation14 + $0xfb8] sm:$0xff]  ;;  %v8379_v13 = vpack.c.bf16 %v4929_v29, %v4925_v63  ;;  %v4975_v29 = vld [vmem:[#allocation14 + $0x1050] sm:$0xff] }
 0xad7   : > { %8344 = vmatprep.subr.bf16.mxu0 %v8343_v22  ;;  %v4914_v22 = vld [vmem:[#allocation14 + $0xe68] sm:$0xff] }
 0xad9   : > { %8298 = vmatpush1.bf16.msra.mxu1 %v8297_v32  ;;  %v8367_v32 = vpack.c.bf16 %v4905_v18, %v4901_v17  ;;  %v4946_v17 = vld [vmem:[#allocation14 + $0xf68] sm:$0xff] }
 0xada   : > { %8300 = vmatprep.subr.bf16.mxu1 %v8299_v33  ;;  %8346 = vmatpush1.bf16.msra.mxu0 %v8345_v37  ;;  %v8369_v33 = vpack.c.bf16 %v4914_v22, %v4910_v19  ;;  %v4918_v37 = vld [vmem:[#allocation14 + $0xe88] sm:$0xff]  ;;  %v4951_v19 = vld [vmem:[#allocation14 + $0xf90] sm:$0xff]  ;;  %v4960_v22 = vld [vmem:[#allocation14 + $0xfd8] sm:$0xff] }
 0xadb   : > { %8348 = vmatprep.subr.bf16.mxu0 %v8347_v38  ;;  %v8431_v38 = vpack.c.bf16 %v4923_v26, %v4919_v24  ;;  %v8373_v56 = vpack.c.bf16 %v4922_v40, %v4918_v37  ;;  %v4964_v24 = vld [vmem:[#allocation14 + $0xff8] sm:$0xff]  ;;  %v4959_v37 = vld [vmem:[#allocation14 + $0xfd0] sm:$0xff] }
 0xadc   : > { %v8449_v34 = vpack.c.bf16 %v4964_v24, %v4960_v22  ;;  %v4968_v40 = vld [vmem:[#allocation14 + $0x1018] sm:$0xff]  ;;  %v4977_v22 = vld [vmem:[#allocation14 + $0x1060] sm:$0xff]  ;;  %v4982_v24 = vld [vmem:[#allocation14 + $0x1088] sm:$0xff] }
 0xadd   : > { %8302 = vmatpush1.bf16.msra.mxu1 %v8301_v46  ;;  %v4936_v46 = vld [vmem:[#allocation14 + $0xf18] sm:$0xff] }
 0xade   : > { %8361 = vmatprep.subr.msk.bf16.mxu1 %vm10670_vm6, %v10674_v45  ;;  %8350 = vmatpush1.bf16.msra.mxu0 %v8349_v50  ;;  %v4916_v45 = vld [vmem:[#allocation14 + $0xe78] sm:$0xff] }
 0xadf   : > { %8352 = vmatprep.subr.bf16.mxu0 %v8351_v30  ;;  %v8425_v8 = vpack.c.bf16 %v4916_v45, %v4912_v0  ;;  %v4940_v50 = vld [vmem:[#allocation14 + $0xf38] sm:$0xff]  ;;  %v4816_v30 = vld [vmem:[#allocation17 + $0x48] sm:$0x3f] }
 0xae0   : > { %v8437_v21 = vpack.c.bf16 %v4940_v50, %v4936_v46  ;;  %v4934_v0 = vld [vmem:[#allocation14 + $0xf08] sm:$0xff]  ;;  %v4949_v46 = vld [vmem:[#allocation14 + $0xf80] sm:$0xff] }
 0xae1   : > { %v4953_v50 = vld [vmem:[#allocation14 + $0xfa0] sm:$0xff] }
 0xae2   : > { %8354 = vmatpush1.bf16.msra.mxu0 %v8353_v54  ;;  %v4926_v54 = vld [vmem:[#allocation14 + $0xec8] sm:$0xff] }
 0xae3   : > { %8356 = vmatprep.subr.bf16.mxu0 %v8355_v57  ;;  %v8435_v57 = vpack.c.bf16 %v4931_v4, %v4927_v42  ;;  %v8377_v62 = vpack.c.bf16 %v4930_v58, %v4926_v54  ;;  %v4971_v54 = vld [vmem:[#allocation14 + $0x1030] sm:$0xff]  ;;  %v4980_v58 = vld [vmem:[#allocation14 + $0x1078] sm:$0xff] }
 0xae6   : > { %8358 = vmatpush1.bf16.msra.mxu0 %v8357_v60  ;;  %v4935_v60 = vld [vmem:[#allocation14 + $0xf10] sm:$0xff] }
 0xae7   : > { %8422 = vmatprep.subr.bf16.mxu0 %v8421_v9  ;;  %v4948_v9 = vld [vmem:[#allocation14 + $0xf78] sm:$0xff]  ;;  %v8439_v45 = vpack.c.bf16 %v4939_v61, %v4935_v60  ;;  %v4957_v61 = vld [vmem:[#allocation14 + $0xfc0] sm:$0xff] }
 0xb83   : > { %v4522_v10 = vpop.f32.mrb[36].mxu0 }
 0xb84   : > { %v4524_v3 = vpop.f32.mrb[37].mxu0 }
 0xb85   : > { %7158 = vmatprep.mubr.msk.f32.mxu1 %vm3759_vm8, %v4524_v3  ;;  %7160 = vmatprep.mubr.msk.f32.mxu0 %vm3759_vm8, %v4524_v3  ;;  %v4943_v3 = vld [vmem:[#allocation14 + $0xf50] sm:$0xff] }
 0xb86   : > { %4717 = vmatmul.mubr.f32.vlgmr.msra.gmra.mrb[40].mxu1 %v4522_v10  ;;  %4794 = vmatmul.mubr.f32.vlgmr.msra.gmra.mrb[32].mxu0 %v4522_v10  ;;  %v4938_v10 = vld [vmem:[#allocation14 + $0xf28] sm:$0xff] }
 0xb87   : > { %8364 = vmatpush1.bf16.msk.msra.mxu1 %vm10670_vm6, %v10667_v43  ;;  %v4528_v14 = vpop.f32.mrb[38].mxu0  ;;  %8424 = vmatpush1.bf16.msra.mxu0 %v8423_v1  ;;  %v4928_v43 = vld [vmem:[#allocation14 + $0xed8] sm:$0xff]  ;;  %v8441_v1 = vpack.c.bf16 %v4948_v9, %v4944_v2  ;;  %v8381_v7 = vpack.c.bf16 %v4938_v10, %v4934_v0  ;;  %v4961_v2 = vld [vmem:[#allocation14 + $0xfe0] sm:$0xff]  ;;  %v4966_v9 = vld [vmem:[#allocation14 + $0x1008] sm:$0xff] }
 0xb88   : > { %v4530_v16 = vpop.f32.mrb[39].mxu0  ;;  %8366 = vmatprep.subr.bf16.mxu1 %v8365_v5  ;;  %8426 = vmatprep.subr.bf16.mxu0 %v8425_v8  ;;  %v8433_v41 = vpack.c.bf16 %v4932_v28, %v4928_v43  ;;  %v4947_v5 = vld [vmem:[#allocation14 + $0xf70] sm:$0xff]  ;;  %v4952_v8 = vld [vmem:[#allocation14 + $0xf98] sm:$0xff]  ;;  %v4941_v28 = vld [vmem:[#allocation14 + $0xf40] sm:$0xff] }
 0xb89   : > { %7159 = vmatprep.mubr.msk.f32.mxu1 %vm3759_vm8, %v4530_v16  ;;  %7161 = vmatprep.mubr.msk.f32.mxu0 %vm3759_vm8, %v4530_v16  ;;  %v8443_v16 = vpack.c.bf16 %v4947_v5, %v4943_v3  ;;  %v8445_v18 = vpack.c.bf16 %v4956_v25, %v4952_v8  ;;  %v4979_v0 = vld [vmem:[#allocation14 + $0x1070] sm:$0xff]  ;;  %v4988_v10 = vld [vmem:[#allocation14 + $0x10b8] sm:$0xff]  ;;  %v4965_v5 = vld [vmem:[#allocation14 + $0x1000] sm:$0xff] }
 0xb8a   : > { %4723 = vmatmul.mubr.f32.gmra.mrb[42].mxu1 %v4528_v14  ;;  %4800 = vmatmul.mubr.f32.gmra.mrb[34].mxu0 %v4528_v14  ;;  %v4937_v14 = vld [vmem:[#allocation14 + $0xf20] sm:$0xff]  ;;  %v4974_v25 = vld [vmem:[#allocation14 + $0x1048] sm:$0xff] }
 0xb8b   : > { %4887 = vmatprep.mubr.f32.mxu1 %v9877_v39  ;;  %8428 = vmatpush1.bf16.msra.mxu0 %v8427_v15  ;;  %v4942_v15 = vld [vmem:[#allocation14 + $0xf48] sm:$0xff]  ;;  %v8383_v26 = vpack.c.bf16 %v4937_v14, %v4933_v12  ;;  %v4969_v8 = vld [vmem:[#allocation14 + $0x1020] sm:$0xff]  ;;  %v4983_v14 = vld [vmem:[#allocation14 + $0x1090] sm:$0xff] }
 0xb8c   : > { %8430 = vmatprep.subr.bf16.mxu0 %v8429_v20  ;;  %v4955_v20 = vld [vmem:[#allocation14 + $0xfb0] sm:$0xff]  ;;  %v8385_v43 = vpack.c.bf16 %v4946_v17, %v4942_v15  ;;  %v4996_v17 = vld [vmem:[#allocation14 + $0x10f8] sm:$0xff] }
 0xb8d   : > { %v4987_v15 = vld [vmem:[#allocation14 + $0x10b0] sm:$0xff] }
 0xb8e   : > { %7164 = vmatmul.mubr.msk.f32.vlgmr.msra.gmra.mrb[52].mxu1 %vm3357_vm7, %v4815_v31  ;;  %v4945_v31 = vld [vmem:[#allocation14 + $0xf60] sm:$0xff] }
 0xb8f   : > { %4893 = vmatprep.mubr.f32.mxu1 %v9877_v39  ;;  %8368 = vmatpush1.bf16.msra.mxu1 %v8367_v32  ;;  %v4950_v32 = vld [vmem:[#allocation14 + $0xf88] sm:$0xff]  ;;  %v8387_v42 = vpack.c.bf16 %v4945_v31, %v4941_v28  ;;  %v4991_v31 = vld [vmem:[#allocation14 + $0x10d0] sm:$0xff] }
 0xb90   : > { %8370 = vmatprep.subr.bf16.mxu1 %v8369_v33  ;;  %8432 = vmatpush1.bf16.msra.mxu0 %v8431_v38  ;;  %v8447_v33 = vpack.c.bf16 %v4955_v20, %v4951_v19  ;;  %v4963_v38 = vld [vmem:[#allocation14 + $0xff0] sm:$0xff]  ;;  %v8389_v4 = vpack.c.bf16 %v4954_v6, %v4950_v32  ;;  %v4973_v20 = vld [vmem:[#allocation14 + $0x1040] sm:$0xff]  ;;  %v5004_v6 = vld [vmem:[#allocation14 + $0x1138] sm:$0xff] }
 0xb91   : > { %8434 = vmatprep.subr.bf16.mxu0 %v8433_v41  ;;  %v4972_v41 = vld [vmem:[#allocation14 + $0x1038] sm:$0xff]  ;;  %v4995_v32 = vld [vmem:[#allocation14 + $0x10f0] sm:$0xff] }
 0xb92   : > { %7165 = vmatmul.mubr.msk.f32.gmra.mrb[54].mxu1 %vm3357_vm7, %v4816_v30  ;;  %v4958_v30 = vld [vmem:[#allocation14 + $0xfc8] sm:$0xff]  ;;  %v8453_v59 = vpack.c.bf16 %v4972_v41, %v4968_v40  ;;  %v4985_v40 = vld [vmem:[#allocation14 + $0x10a0] sm:$0xff] }
 0xb93   : > { %8372 = vmatpush1.bf16.msra.mxu1 %v8371_v55  ;;  %v8451_v55 = vpack.c.bf16 %v4963_v38, %v4959_v37  ;;  %v4981_v38 = vld [vmem:[#allocation14 + $0x1080] sm:$0xff]  ;;  %v4990_v41 = vld [vmem:[#allocation14 + $0x10c8] sm:$0xff] }
 0xb94   : > { %8374 = vmatprep.subr.bf16.mxu1 %v8373_v56  ;;  %8436 = vmatpush1.bf16.msra.mxu0 %v8435_v57  ;;  %v4962_v56 = vld [vmem:[#allocation14 + $0xfe8] sm:$0xff]  ;;  %v4976_v57 = vld [vmem:[#allocation14 + $0x1058] sm:$0xff] }
 0xb95   : > { %8438 = vmatprep.subr.bf16.mxu0 %v8437_v21  ;;  %v8391_v21 = vpack.c.bf16 %v4953_v50, %v4949_v46  ;;  %v8393_v60 = vpack.c.bf16 %v4962_v56, %v4958_v30  ;;  %v8457_v63 = vpack.c.bf16 %v4980_v58, %v4976_v57  ;;  %v4999_v50 = vld [vmem:[#allocation14 + $0x1110] sm:$0xff]  ;;  %v5012_v56 = vld [vmem:[#allocation14 + $0x1178] sm:$0xff]  ;;  %v4993_v57 = vld [vmem:[#allocation14 + $0x10e0] sm:$0xff] }
 0xb96   : > { %v5003_v30 = vld [vmem:[#allocation14 + $0x1130] sm:$0xff] }
 0xb97   : > { %8376 = vmatpush1.bf16.msra.mxu1 %v8375_v11  ;;  %v8455_v11 = vpack.c.bf16 %v4971_v54, %v4967_v53  ;;  %v4989_v54 = vld [vmem:[#allocation14 + $0x10c0] sm:$0xff]  ;;  %v8471_v58 = vpack.c.bf16 %v5003_v30, %v4999_v50 }
 0xb98   : > { %8378 = vmatprep.subr.bf16.mxu1 %v8377_v62  ;;  %8440 = vmatpush1.bf16.msra.mxu0 %v8439_v45  ;;  %v4970_v62 = vld [vmem:[#allocation14 + $0x1028] sm:$0xff]  ;;  %v4984_v45 = vld [vmem:[#allocation14 + $0x1098] sm:$0xff] }
 0xb99   : > { %8442 = vmatprep.subr.bf16.mxu0 %v8441_v1  ;;  %v8395_v1 = vpack.c.bf16 %v4961_v2, %v4957_v61  ;;  %v8397_v3 = vpack.c.bf16 %v4970_v62, %v4966_v9  ;;  %v8461_v12 = vpack.c.bf16 %v4988_v10, %v4984_v45  ;;  %v8411_v2 = vpack.c.bf16 %v4993_v57, %v4989_v54  ;;  %v5001_v62 = vld [vmem:[#allocation14 + $0x1120] sm:$0xff] }
 0xb9a   : > { %v5005_v10 = vld [vmem:[#allocation14 + $0x1140] sm:$0xff] }
 0xb9b   : > { %8380 = vmatpush1.bf16.msra.mxu1 %v8379_v13  ;;  %v8459_v13 = vpack.c.bf16 %v4979_v0, %v4975_v29  ;;  %v5010_v29 = vld [vmem:[#allocation14 + $0x1168] sm:$0xff] }
 0xb9c   : > { %8382 = vmatprep.subr.bf16.mxu1 %v8381_v7  ;;  %8444 = vmatpush1.bf16.msra.mxu0 %v8443_v16  ;;  %v4978_v7 = vld [vmem:[#allocation14 + $0x1068] sm:$0xff]  ;;  %v4992_v16 = vld [vmem:[#allocation14 + $0x10d8] sm:$0xff] }
 0xb9d   : > { %8446 = vmatprep.subr.bf16.mxu0 %v8445_v18  ;;  %v8399_v18 = vpack.c.bf16 %v4969_v8, %v4965_v5  ;;  %v8401_v19 = vpack.c.bf16 %v4978_v7, %v4974_v25  ;;  %v8465_v28 = vpack.c.bf16 %v4996_v17, %v4992_v16  ;;  %v5011_v8 = vld [vmem:[#allocation14 + $0x1170] sm:$0xff] }
 0xb9f   : > { %8384 = vmatpush1.bf16.msra.mxu1 %v8383_v26  ;;  %v8463_v26 = vpack.c.bf16 %v4987_v15, %v4983_v14  ;;  %v5181_v15 = vld [vmem:[#allocation16] sm:$0xf] }
 0xba0   : > { %8386 = vmatprep.subr.bf16.mxu1 %v8385_v43  ;;  %8448 = vmatpush1.bf16.msra.mxu0 %v8447_v33  ;;  %v4986_v43 = vld [vmem:[#allocation14 + $0x10a8] sm:$0xff]  ;;  %v5000_v33 = vld [vmem:[#allocation14 + $0x1118] sm:$0xff]  ;;  %v5186_v16 = vrot.slane %v5181_v15, %v2418_v48 }
 0xba1   : > { %8450 = vmatprep.subr.bf16.mxu0 %v8449_v34  ;;  %v8403_v34 = vpack.c.bf16 %v4977_v22, %v4973_v20  ;;  %v8405_v37 = vpack.c.bf16 %v4986_v43, %v4982_v24  ;;  %v8469_v46 = vpack.c.bf16 %v5004_v6, %v5000_v33  ;;  %v5194_v22 = vrot.slane %v5181_v15, %v2426_v49 }
 0xba3   : > { %8388 = vmatpush1.bf16.msra.mxu1 %v8387_v42  ;;  %v8467_v42 = vpack.c.bf16 %v4995_v32, %v4991_v31 }
 0xba4   : > { %8390 = vmatprep.subr.bf16.mxu1 %v8389_v4  ;;  %8452 = vmatpush1.bf16.msra.mxu0 %v8451_v55  ;;  %v4994_v4 = vld [vmem:[#allocation14 + $0x10e8] sm:$0xff]  ;;  %v5008_v55 = vld [vmem:[#allocation14 + $0x1158] sm:$0xff] }
 0xba5   : > { %8454 = vmatprep.subr.bf16.mxu0 %v8453_v59  ;;  %v8407_v59 = vpack.c.bf16 %v4985_v40, %v4981_v38  ;;  %v8409_v53 = vpack.c.bf16 %v4994_v4, %v4990_v41  ;;  %v8473_v61 = vpack.c.bf16 %v5012_v56, %v5008_v55  ;;  %v5592_v4 = vld [vmem:[#allocation22 + $0x208] sm:$0xff] }
 0xba6   : > { %v8565_v54 = vpack.c.bf16 %v5594_v47, %v5592_v4  ;;  %v5539_v47 = vld [vmem:[#allocation22 + $0x60] sm:$0xff] }
 0xba7   : > { %8392 = vmatpush1.bf16.msra.mxu1 %v8391_v21  ;;  %v4998_v21 = vld [vmem:[#allocation14 + $0x1108] sm:$0xff] }
 0xba8   : > { %8394 = vmatprep.subr.bf16.mxu1 %v8393_v60  ;;  %8456 = vmatpush1.bf16.msra.mxu0 %v8455_v11  ;;  %v5002_v60 = vld [vmem:[#allocation14 + $0x1128] sm:$0xff]  ;;  %v4997_v11 = vld [vmem:[#allocation14 + $0x1100] sm:$0xff] }
 0xba9   : > { %8458 = vmatprep.subr.bf16.mxu0 %v8457_v63  ;;  %v8413_v9 = vpack.c.bf16 %v5002_v60, %v4998_v21  ;;  %v5006_v63 = vld [vmem:[#allocation14 + $0x1148] sm:$0xff]  ;;  %v8415_v0 = vpack.c.bf16 %v5001_v62, %v4997_v11  ;;  %v5593_v21 = vld [vmem:[#allocation22 + $0x210] sm:$0xff] }
 0xbaa   : > { %v8417_v45 = vpack.c.bf16 %v5010_v29, %v5006_v63  ;;  %v5528_v11 = vld [vmem:[#allocation22 + $0x8] sm:$0xff]  ;;  %v5530_v63 = vld [vmem:[#allocation22 + $0x18] sm:$0xff] }
 0xbab   : > { %8396 = vmatpush1.bf16.msra.mxu1 %v8395_v1  ;;  %v5009_v1 = vld [vmem:[#allocation14 + $0x1160] sm:$0xff] }
 0xbac   : > { %8398 = vmatprep.subr.bf16.mxu1 %v8397_v3  ;;  %8460 = vmatpush1.bf16.msra.mxu0 %v8459_v13  ;;  %v5007_v3 = vld [vmem:[#allocation14 + $0x1150] sm:$0xff]  ;;  %v8419_v5 = vpack.c.bf16 %v5009_v1, %v5005_v10  ;;  %v5602_v1 = vld [vmem:[#allocation22 + $0x258] sm:$0xff] }
 0xbad   : > { %8462 = vmatprep.subr.bf16.mxu0 %v8461_v12  ;;  %v8475_v25 = vpack.c.bf16 %v5011_v8, %v5007_v3  ;;  %v5600_v10 = vld [vmem:[#allocation22 + $0x248] sm:$0xff]  ;;  %v8501_v3 = vpack.c.bf16 %v5530_v63, %v5528_v11  ;;  %v5529_v8 = vld [vmem:[#allocation22 + $0x10] sm:$0xff]  ;;  %v5622_v63 = vld [vmem:[#allocation22 + $0x2f8] sm:$0xff] }
 0xbae   : > { %v5617_v11 = vld [vmem:[#allocation22 + $0x2d0] sm:$0xff] }
 0xbaf   : > { %8400 = vmatpush1.bf16.msra.mxu1 %v8399_v18 }
 0xbb0   : > { %8402 = vmatprep.subr.bf16.mxu1 %v8401_v19  ;;  %8464 = vmatpush1.bf16.msra.mxu0 %v8463_v26  ;;  %v5190_v19 = vrot.slane %v5181_v15, %v2422_v51 }
 0xbb1   : > { %8466 = vmatprep.subr.bf16.mxu0 %v8465_v28  ;;  %v5198_v28 = vrot.slane %v5181_v15, %v2430_v52  ;;  %v5601_v15 = vld [vmem:[#allocation22 + $0x250] sm:$0xff] }
 0xbb3   : > { %8404 = vmatpush1.bf16.msra.mxu1 %v8403_v34 }
 0xbb4   : > { %8406 = vmatprep.subr.bf16.mxu1 %v8405_v37  ;;  %8468 = vmatpush1.bf16.msra.mxu0 %v8467_v42 }
 0xbb5   : > { %8470 = vmatprep.subr.bf16.mxu0 %v8469_v46 }
 0xbb7   : > { %8408 = vmatpush1.bf16.msra.mxu1 %v8407_v59 }
 0xbb8   : > { %8410 = vmatprep.subr.bf16.mxu1 %v8409_v53  ;;  %8472 = vmatpush1.bf16.msra.mxu0 %v8471_v58  ;;  %v5591_v58 = vld [vmem:[#allocation22 + $0x200] sm:$0xff] }
 0xbb9   : > { %8474 = vmatprep.subr.bf16.mxu0 %v8473_v61  ;;  %v5598_v61 = vld [vmem:[#allocation22 + $0x238] sm:$0xff]  ;;  %v8567_v62 = vpack.c.bf16 %v5593_v21, %v5591_v58  ;;  %v5543_v58 = vld [vmem:[#allocation22 + $0x80] sm:$0xff]  ;;  %v5545_v21 = vld [vmem:[#allocation22 + $0x90] sm:$0xff] }
 0xbbb   : > { %8412 = vmatpush1.bf16.msra.mxu1 %v8411_v2  ;;  %v5219_v2 = vld [vmem:[#allocation19] sm:$0x7f] }
 0xbbc   : > { %8414 = vmatprep.subr.bf16.mxu1 %v8413_v9  ;;  %8476 = vmatpush1.bf16.msra.mxu0 %v8475_v25  ;;  %v5377_v9 = vld [vmem:[#allocation20] sm:$0x7f]  ;;  %v5532_v25 = vld [vmem:[#allocation22 + $0x28] sm:$0xff] }
 0xbbf   : > { %8416 = vmatpush1.bf16.msra.mxu1 %v8415_v0  ;;  %v5595_v0 = vld [vmem:[#allocation22 + $0x220] sm:$0xff] }
 0xbc0   : > { %8418 = vmatprep.subr.bf16.mxu1 %v8417_v45  ;;  %v5597_v45 = vld [vmem:[#allocation22 + $0x230] sm:$0xff] }
 0xbc3   : > { %8420 = vmatpush1.bf16.msra.mxu1 %v8419_v5  ;;  %v5527_v5 = vld [vmem:[#allocation22] sm:$0xff] }
 0xc61   : > { %v4889_v13 = vpop.f32.mrb[52].mxu1 }
 0xc62   : > { %v4891_v7 = vpop.f32.mrb[53].mxu1 }
 0xc63   : > { %7166 = vmatprep.mubr.msk.f32.mxu1 %vm3759_vm8, %v4891_v7  ;;  %7168 = vmatprep.mubr.msk.f32.mxu0 %vm3759_vm8, %v4891_v7  ;;  %v5534_v7 = vld [vmem:[#allocation22 + $0x38] sm:$0xff] }
 0xc64   : > { %5084 = vmatmul.mubr.f32.vlgmr.msra.gmra.mrb[40].mxu1 %v4889_v13  ;;  %5161 = vmatmul.mubr.f32.vlgmr.msra.gmra.mrb[32].mxu0 %v4889_v13  ;;  %v8571_v13 = vpack.c.bf16 %v5597_v45, %v5595_v0  ;;  %v5547_v45 = vld [vmem:[#allocation22 + $0xa0] sm:$0xff] }
 0xc65   : > { %v4895_v12 = vpop.f32.mrb[54].mxu1 }
 0xc66   : > { %v4897_v14 = vpop.f32.mrb[55].mxu1 }
 0xc67   : > { %7167 = vmatprep.mubr.msk.f32.mxu1 %vm3759_vm8, %v4897_v14  ;;  %7169 = vmatprep.mubr.msk.f32.mxu0 %vm3759_vm8, %v4897_v14  ;;  %v5599_v14 = vld [vmem:[#allocation22 + $0x240] sm:$0xff] }
 0xc68   : > { %5090 = vmatmul.mubr.f32.gmra.mrb[42].mxu1 %v4895_v12  ;;  %5167 = vmatmul.mubr.f32.gmra.mrb[34].mxu0 %v4895_v12  ;;  %v8573_v12 = vpack.c.bf16 %v5602_v1, %v5600_v10  ;;  %v5549_v10 = vld [vmem:[#allocation22 + $0xb0] sm:$0xff]  ;;  %v5552_v1 = vld [vmem:[#allocation22 + $0xc8] sm:$0xff] }
 0xc69   : > { %5299 = vmatprep.mubr.f32.mxu1 %v9877_v39  ;;  %5445 = vmatprep.mubr.f32.mxu0 %v9877_v39 }
 0xd37   : > { %v5085_v17 = vpop.f32.mrb[40].mxu1  ;;  %v5162_v18 = vpop.f32.mrb[32].mxu0 }
 0xd38   : > { %v9023_v20 = vadd.f32 %v5162_v18, %v10743_v27  ;;  %v5087_v24 = vpop.f32.mrb[41].mxu1  ;;  %v5164_v26 = vpop.f32.mrb[33].mxu0  ;;  %v5203_v31 = vadd.f32 %v5186_v16, %v5085_v17  ;;  %v5606_v17 = vld [vmem:[#allocation22 + $0x278] sm:$0xff]  ;;  %v8503_v18 = vpack.c.bf16 %v5529_v8, %v5527_v5 }
 0xd39   : > { %v9024_v43 = vadd.f32 %v5164_v26, %v10745_v35  ;;  %v5204_v32 = vadd.f32 %v5190_v19, %v5087_v24  ;;  %v5536_v24 = vld [vmem:[#allocation22 + $0x48] sm:$0xff]  ;;  %v8575_v26 = vpack.c.bf16 %v5601_v15, %v5599_v14  ;;  %v5554_v5 = vld [vmem:[#allocation22 + $0xd8] sm:$0xff]  ;;  %v8523_v14 = vpack.c.bf16 %v5549_v10, %v5547_v45  ;;  %v5583_v10 = vld [vmem:[#allocation22 + $0x1c0] sm:$0xff] }
 0xd3a   : > { %v5205_v6 = vadd.f32 %v9023_v20, %v5194_v22  ;;  %v5211_v41 = vmax.f32 %v5203_v31, 0.0  ;;  %v5531_v20 = vld [vmem:[#allocation22 + $0x20] sm:$0xff]  ;;  %v8525_v15 = vpack.c.bf16 %v5554_v5, %v5552_v1  ;;  %v5585_v1 = vld [vmem:[#allocation22 + $0x1d0] sm:$0xff]  ;;  %v5588_v5 = vld [vmem:[#allocation22 + $0x1e8] sm:$0xff] }
 0xd3b   : > { %v5091_v48 = vpop.f32.mrb[42].mxu1  ;;  %v5168_v33 = vpop.f32.mrb[34].mxu0  ;;  %v5206_v38 = vadd.f32 %v9024_v43, %v5198_v28  ;;  %v5212_v52 = vmax.f32 %v5204_v32, 0.0  ;;  %v5538_v43 = vld [vmem:[#allocation22 + $0x58] sm:$0xff]  ;;  %v5603_v31 = vld [vmem:[#allocation22 + $0x260] sm:$0xff]  ;;  %v5605_v32 = vld [vmem:[#allocation22 + $0x270] sm:$0xff] }
 0xd3c   : > { %v5207_v34 = vadd.f32 %v5186_v16, %v5091_v48  ;;  %v9025_v51 = vadd.f32 %v5168_v33, %v10747_v23  ;;  %v5093_v37 = vpop.f32.mrb[43].mxu1  ;;  %v5170_v27 = vpop.f32.mrb[35].mxu0  ;;  %v5213_v30 = vmax.f32 %v5205_v6, 0.0  ;;  %v5604_v16 = vld [vmem:[#allocation22 + $0x268] sm:$0xff]  ;;  %v5535_v6 = vld [vmem:[#allocation22 + $0x40] sm:$0xff] }
 0xd3d   : > { %v5208_v40 = vadd.f32 %v5190_v19, %v5093_v37  ;;  %v9026_v49 = vadd.f32 %v5170_v27, %v10749_v36  ;;  %v5214_v59 = vmax.f32 %v5206_v38, 0.0  ;;  %v5596_v36 = vld [vmem:[#allocation22 + $0x228] sm:$0xff]  ;;  %v8505_v19 = vpack.c.bf16 %v5534_v7, %v5532_v25  ;;  %v5542_v27 = vld [vmem:[#allocation22 + $0x78] sm:$0xff]  ;;  %v5619_v25 = vld [vmem:[#allocation22 + $0x2e0] sm:$0xff] }
 0xd3e   : > { %v5215_v42 = vmax.f32 %v5207_v34, 0.0  ;;  %v5209_v35 = vadd.f32 %v9025_v51, %v5194_v22  ;;  %v8569_v29 = vpack.c.bf16 %v5598_v61, %v5596_v36  ;;  %v5533_v22 = vld [vmem:[#allocation22 + $0x30] sm:$0xff]  ;;  %v5608_v48 = vld [vmem:[#allocation22 + $0x288] sm:$0xff]  ;;  %v8579_v37 = vpack.c.bf16 %v5605_v32, %v5603_v31  ;;  %v5550_v61 = vld [vmem:[#allocation22 + $0xb8] sm:$0xff] }
 0xd3f   : > { %v5216_v46 = vmax.f32 %v5208_v40, 0.0  ;;  %v5210_v50 = vadd.f32 %v9026_v49, %v5198_v28  ;;  %v8577_v28 = vpack.c.bf16 %v5606_v17, %v5604_v16  ;;  %v8507_v33 = vpack.c.bf16 %v5533_v22, %v5531_v20  ;;  %v5537_v34 = vld [vmem:[#allocation22 + $0x50] sm:$0xff]  ;;  %v5540_v51 = vld [vmem:[#allocation22 + $0x68] sm:$0xff]  ;;  %v5607_v40 = vld [vmem:[#allocation22 + $0x280] sm:$0xff] }
 0xd40   : > { %v8480_v55 = vpack.c.bf16 %v5215_v42, %v5211_v41  ;;  %v5217_v56 = vmax.f32 %v5209_v35, 0.0  ;;  %v8581_v38 = vpack.c.bf16 %v5610_v44, %v5608_v48  ;;  %v5609_v49 = vld [vmem:[#allocation22 + $0x290] sm:$0xff]  ;;  %v5612_v41 = vld [vmem:[#allocation22 + $0x2a8] sm:$0xff]  ;;  %v5614_v42 = vld [vmem:[#allocation22 + $0x2b8] sm:$0xff]  ;;  %v8511_v35 = vpack.c.bf16 %v5537_v34, %v5535_v6 }
 0xd41   : > { %v8477_v53 = vpack.c.bf16 %v5216_v46, %v5212_v52  ;;  %v5218_v23 = vmax.f32 %v5210_v50, 0.0  ;;  %v8513_v4 = vpack.c.bf16 %v5542_v27, %v5540_v51  ;;  %v5541_v52 = vld [vmem:[#allocation22 + $0x70] sm:$0xff]  ;;  %v5544_v46 = vld [vmem:[#allocation22 + $0x88] sm:$0xff]  ;;  %v8583_v50 = vpack.c.bf16 %v5609_v49, %v5607_v40  ;;  %v5551_v16 = vld [vmem:[#allocation22 + $0xc0] sm:$0xff] }
 0xd42   : > { %v8486_v57 = vpack.c.bf16 %v5217_v56, %v5213_v30  ;;  %v5546_v30 = vld [vmem:[#allocation22 + $0x98] sm:$0xff]  ;;  %v5611_v56 = vld [vmem:[#allocation22 + $0x2a0] sm:$0xff]  ;;  %v5624_v7 = vld [vmem:[#allocation22 + $0x308] sm:$0xff] }
 0xd43   : > { %v8483_v60 = vpack.c.bf16 %v5218_v23, %v5214_v59  ;;  %8479 = vmatprep.subr.msk.bf16.mxu1 %vm10670_vm6, %v8477_v53  ;;  %8491 = vmatprep.subr.msk.bf16.mxu0 %vm10670_vm6, %v8477_v53  ;;  %v5613_v59 = vld [vmem:[#allocation22 + $0x2b0] sm:$0xff]  ;;  %v5616_v53 = vld [vmem:[#allocation22 + $0x2c8] sm:$0xff]  ;;  %v5618_v23 = vld [vmem:[#allocation22 + $0x2d8] sm:$0xff] }
 0xd44   : > { %8482 = vmatpush1.bf16.msk.msra.mxu1 %vm10670_vm6, %v8480_v55  ;;  %8494 = vmatpush1.bf16.msk.msra.mxu0 %vm10670_vm6, %v8480_v55  ;;  %v8585_v55 = vpack.c.bf16 %v5614_v42, %v5612_v41  ;;  %v8587_v36 = vpack.c.bf16 %v5613_v59, %v5611_v56  ;;  %v5553_v17 = vld [vmem:[#allocation22 + $0xd0] sm:$0xff]  ;;  %v5558_v20 = vld [vmem:[#allocation22 + $0xf8] sm:$0xff]  ;;  %v5555_v31 = vld [vmem:[#allocation22 + $0xe0] sm:$0xff] }
 0xd45   : > { %8485 = vmatprep.subr.msk.bf16.mxu1 %vm10670_vm6, %v8483_v60  ;;  %8566 = vmatprep.subr.bf16.mxu0 %v8565_v54  ;;  %v8515_v54 = vpack.c.bf16 %v5541_v52, %v5539_v47  ;;  %v5557_v32 = vld [vmem:[#allocation22 + $0xf0] sm:$0xff]  ;;  %v5560_v44 = vld [vmem:[#allocation22 + $0x108] sm:$0xff]  ;;  %v5559_v34 = vld [vmem:[#allocation22 + $0x100] sm:$0xff] }
 0xd46   : > { %v5561_v51 = vld [vmem:[#allocation22 + $0x110] sm:$0xff]  ;;  %v5566_v27 = vld [vmem:[#allocation22 + $0x138] sm:$0xff]  ;;  %v5563_v49 = vld [vmem:[#allocation22 + $0x120] sm:$0xff] }
 0xd47   : > { %7172 = vmatmul.mubr.msk.f32.vlgmr.msra.gmra.mrb[56].mxu1 %vm3357_vm7, %v5219_v2  ;;  %7178 = vmatmul.mubr.msk.f32.vlgmr.msra.gmra.mrb[40].mxu0 %vm3357_vm7, %v5377_v9  ;;  %v5565_v41 = vld [vmem:[#allocation22 + $0x130] sm:$0xff]  ;;  %v5568_v42 = vld [vmem:[#allocation22 + $0x148] sm:$0xff]  ;;  %v5567_v52 = vld [vmem:[#allocation22 + $0x140] sm:$0xff] }
 0xd48   : > { %8488 = vmatpush1.bf16.msk.msra.mxu1 %vm10670_vm6, %v8486_v57  ;;  %5370 = vmatprep.mubr.f32.mxu1 %v9877_v39  ;;  %v5571_v59 = vld [vmem:[#allocation22 + $0x160] sm:$0xff] }
 0xd49   : > { %8497 = vmatprep.subr.msk.bf16.mxu1 %vm10670_vm6, %v8483_v60  ;;  %8568 = vmatpush1.bf16.msra.mxu0 %v8567_v62  ;;  %v5548_v60 = vld [vmem:[#allocation22 + $0xa8] sm:$0xff] }
 0xd4a   : > { %8570 = vmatprep.subr.bf16.mxu0 %v8569_v29  ;;  %v5620_v62 = vld [vmem:[#allocation22 + $0x2e8] sm:$0xff]  ;;  %v8519_v29 = vpack.c.bf16 %v5545_v21, %v5543_v58  ;;  %v8521_v0 = vpack.c.bf16 %v5550_v61, %v5548_v60  ;;  %v5575_v21 = vld [vmem:[#allocation22 + $0x180] sm:$0xff]  ;;  %v5577_v60 = vld [vmem:[#allocation22 + $0x190] sm:$0xff] }
 0xd4b   : > { %7175 = vmatmul.mubr.msk.f32.vlgmr.msra.gmra.mrb[58].mxu1 %vm3357_vm7, %v5219_v2  ;;  %v8589_v2 = vpack.c.bf16 %v5618_v23, %v5616_v53  ;;  %v8593_v8 = vpack.c.bf16 %v5622_v63, %v5620_v62  ;;  %v5573_v53 = vld [vmem:[#allocation22 + $0x170] sm:$0xff]  ;;  %v5576_v23 = vld [vmem:[#allocation22 + $0x188] sm:$0xff]  ;;  %v5582_v61 = vld [vmem:[#allocation22 + $0x1b8] sm:$0xff] }
 0xd4c   : > { %8500 = vmatpush1.bf16.msk.msra.mxu1 %vm10670_vm6, %v8486_v57  ;;  %5516 = vmatprep.mubr.f32.mxu1 %v9877_v39  ;;  %v8509_v39 = vpack.c.bf16 %v5538_v43, %v5536_v24  ;;  %v8517_v57 = vpack.c.bf16 %v5546_v30, %v5544_v46  ;;  %v5623_v24 = vld [vmem:[#allocation22 + $0x300] sm:$0xff]  ;;  %v8527_v43 = vpack.c.bf16 %v5553_v17, %v5551_v16  ;;  %v5569_v46 = vld [vmem:[#allocation22 + $0x150] sm:$0xff]  ;;  %v5574_v30 = vld [vmem:[#allocation22 + $0x178] sm:$0xff] }
 0xd4d   : > { %8502 = vmatprep.subr.bf16.mxu1 %v8501_v3  ;;  %8572 = vmatpush1.bf16.msra.mxu0 %v8571_v13  ;;  %v5621_v13 = vld [vmem:[#allocation22 + $0x2f0] sm:$0xff]  ;;  %v5584_v63 = vld [vmem:[#allocation22 + $0x1c8] sm:$0xff]  ;;  %v5627_v16 = vld [vmem:[#allocation22 + $0x320] sm:$0xff] }
 0xd4e   : > { %8574 = vmatprep.subr.bf16.mxu0 %v8573_v12  ;;  %v5626_v12 = vld [vmem:[#allocation22 + $0x318] sm:$0xff]  ;;  %v5581_v62 = vld [vmem:[#allocation22 + $0x1b0] sm:$0xff] }
 0xd4f   : > { %7181 = vmatmul.mubr.msk.f32.vlgmr.msra.gmra.mrb[60].mxu1 %vm3357_vm7, %v5377_v9  ;;  %v5615_v9 = vld [vmem:[#allocation22 + $0x2c0] sm:$0xff]  ;;  %v8597_v22 = vpack.c.bf16 %v5626_v12, %v5624_v7  ;;  %v5589_v7 = vld [vmem:[#allocation22 + $0x1f0] sm:$0xff]  ;;  %v5628_v12 = vld [vmem:[#allocation22 + $0x328] sm:$0xff] }
 0xd50   : > { %8504 = vmatpush1.bf16.msra.mxu1 %v8503_v18  ;;  %v8591_v3 = vpack.c.bf16 %v5617_v11, %v5615_v9  ;;  %v5556_v18 = vld [vmem:[#allocation22 + $0xe8] sm:$0xff]  ;;  %v5579_v11 = vld [vmem:[#allocation22 + $0x1a0] sm:$0xff]  ;;  %v5629_v17 = vld [vmem:[#allocation22 + $0x330] sm:$0xff] }
 0xd51   : > { %8506 = vmatprep.subr.bf16.mxu1 %v8505_v19  ;;  %8576 = vmatpush1.bf16.msra.mxu0 %v8575_v26  ;;  %v8595_v19 = vpack.c.bf16 %v5621_v13, %v5619_v25  ;;  %v5625_v26 = vld [vmem:[#allocation22 + $0x310] sm:$0xff]  ;;  %v5587_v13 = vld [vmem:[#allocation22 + $0x1e0] sm:$0xff] }
 0xd52   : > { %8578 = vmatprep.subr.bf16.mxu0 %v8577_v28  ;;  %v8529_v28 = vpack.c.bf16 %v5558_v20, %v5556_v18  ;;  %v8599_v48 = vpack.c.bf16 %v5625_v26, %v5623_v24  ;;  %v5785_v20 = vld [vmem:[#allocation23 + $0x8] sm:$0xff] }
 0xd53   : > { %v5632_v26 = vld [vmem:[#allocation22 + $0x348] sm:$0xff] }
 0xd54   : > { %8508 = vmatpush1.bf16.msra.mxu1 %v8507_v33  ;;  %v5562_v33 = vld [vmem:[#allocation22 + $0x118] sm:$0xff] }
 0xd55   : > { %8510 = vmatprep.subr.bf16.mxu1 %v8509_v39  ;;  %8580 = vmatpush1.bf16.msra.mxu0 %v8579_v37  ;;  %v8531_v39 = vpack.c.bf16 %v5557_v32, %v5555_v31  ;;  %v8533_v6 = vpack.c.bf16 %v5562_v33, %v5560_v44  ;;  %v5564_v37 = vld [vmem:[#allocation22 + $0x128] sm:$0xff]  ;;  %v5631_v31 = vld [vmem:[#allocation22 + $0x340] sm:$0xff]  ;;  %v5633_v32 = vld [vmem:[#allocation22 + $0x350] sm:$0xff] }
 0xd56   : > { %8582 = vmatprep.subr.bf16.mxu0 %v8581_v38  ;;  %v8535_v38 = vpack.c.bf16 %v5561_v51, %v5559_v34  ;;  %v8537_v40 = vpack.c.bf16 %v5566_v27, %v5564_v37  ;;  %v5636_v44 = vld [vmem:[#allocation22 + $0x368] sm:$0xff]  ;;  %v5638_v33 = vld [vmem:[#allocation22 + $0x378] sm:$0xff]  ;;  %v5637_v34 = vld [vmem:[#allocation22 + $0x370] sm:$0xff] }
 0xd57   : > { %v5784_v37 = vld [vmem:[#allocation23] sm:$0xff]  ;;  %v5786_v27 = vld [vmem:[#allocation23 + $0x10] sm:$0xff] }
 0xd58   : > { %8512 = vmatpush1.bf16.msra.mxu1 %v8511_v35  ;;  %v5570_v35 = vld [vmem:[#allocation22 + $0x158] sm:$0xff] }
 0xd59   : > { %8514 = vmatprep.subr.bf16.mxu1 %v8513_v4  ;;  %8584 = vmatpush1.bf16.msra.mxu0 %v8583_v50  ;;  %v8539_v4 = vpack.c.bf16 %v5565_v41, %v5563_v49  ;;  %v8541_v47 = vpack.c.bf16 %v5570_v35, %v5568_v42  ;;  %v5572_v50 = vld [vmem:[#allocation22 + $0x168] sm:$0xff]  ;;  %v5791_v41 = vld [vmem:[#allocation23 + $0x38] sm:$0xff] }
 0xd5a   : > { %8586 = vmatprep.subr.bf16.mxu0 %v8585_v55  ;;  %v8543_v55 = vpack.c.bf16 %v5569_v46, %v5567_v52  ;;  %v8545_v56 = vpack.c.bf16 %v5574_v30, %v5572_v50  ;;  %v5789_v49 = vld [vmem:[#allocation23 + $0x28] sm:$0xff]  ;;  %v8615_v52 = vpack.c.bf16 %v5786_v27, %v5784_v37  ;;  %v5788_v50 = vld [vmem:[#allocation23 + $0x20] sm:$0xff]  ;;  %v5790_v30 = vld [vmem:[#allocation23 + $0x30] sm:$0xff] }
 0xd5b   : > { %v8617_v46 = vpack.c.bf16 %v5791_v41, %v5789_v49  ;;  %v5825_v49 = vld [vmem:[#allocation23 + $0x148] sm:$0xff]  ;;  %v5827_v41 = vld [vmem:[#allocation23 + $0x158] sm:$0xff] }
 0xd5c   : > { %8516 = vmatpush1.bf16.msra.mxu1 %v8515_v54  ;;  %v5578_v54 = vld [vmem:[#allocation22 + $0x198] sm:$0xff] }
 0xd5d   : > { %8518 = vmatprep.subr.bf16.mxu1 %v8517_v57  ;;  %8588 = vmatpush1.bf16.msra.mxu0 %v8587_v36  ;;  %v8547_v57 = vpack.c.bf16 %v5573_v53, %v5571_v59  ;;  %v8549_v58 = vpack.c.bf16 %v5578_v54, %v5576_v23  ;;  %v5580_v36 = vld [vmem:[#allocation22 + $0x1a8] sm:$0xff]  ;;  %v5795_v59 = vld [vmem:[#allocation23 + $0x58] sm:$0xff]  ;;  %v8619_v23 = vpack.c.bf16 %v5790_v30, %v5788_v50 }
 0xd5e   : > { %8590 = vmatprep.subr.bf16.mxu0 %v8589_v2  ;;  %v8551_v2 = vpack.c.bf16 %v5577_v60, %v5575_v21  ;;  %v8553_v9 = vpack.c.bf16 %v5582_v61, %v5580_v36  ;;  %v5797_v60 = vld [vmem:[#allocation23 + $0x68] sm:$0xff]  ;;  %v5799_v36 = vld [vmem:[#allocation23 + $0x78] sm:$0xff] }
 0xd5f   : > { %v5831_v50 = vld [vmem:[#allocation23 + $0x178] sm:$0xff] }
 0xd60   : > { %8520 = vmatpush1.bf16.msra.mxu1 %v8519_v29  ;;  %v5586_v29 = vld [vmem:[#allocation22 + $0x1d8] sm:$0xff] }
 0xd61   : > { %8522 = vmatprep.subr.bf16.mxu1 %v8521_v0  ;;  %8592 = vmatpush1.bf16.msra.mxu0 %v8591_v3  ;;  %v8555_v0 = vpack.c.bf16 %v5581_v62, %v5579_v11  ;;  %v8557_v45 = vpack.c.bf16 %v5586_v29, %v5584_v63  ;;  %v8559_v3 = vpack.c.bf16 %v5585_v1, %v5583_v10  ;;  %v5796_v63 = vld [vmem:[#allocation23 + $0x60] sm:$0xff]  ;;  %v5798_v29 = vld [vmem:[#allocation23 + $0x70] sm:$0xff] }
 0xd62   : > { %8594 = vmatprep.subr.bf16.mxu0 %v8593_v8  ;;  %v5590_v8 = vld [vmem:[#allocation22 + $0x1f8] sm:$0xff]  ;;  %v8625_v62 = vpack.c.bf16 %v5799_v36, %v5797_v60  ;;  %v8627_v10 = vpack.c.bf16 %v5798_v29, %v5796_v63  ;;  %v5837_v60 = vld [vmem:[#allocation23 + $0x1a8] sm:$0xff]  ;;  %v5838_v63 = vld [vmem:[#allocation23 + $0x1b0] sm:$0xff] }
 0xd63   : > { %v8561_v25 = vpack.c.bf16 %v5590_v8, %v5588_v5  ;;  %v5802_v5 = vld [vmem:[#allocation23 + $0x90] sm:$0xff]  ;;  %v5805_v8 = vld [vmem:[#allocation23 + $0xa8] sm:$0xff]  ;;  %v5839_v36 = vld [vmem:[#allocation23 + $0x1b8] sm:$0xff] }
 0xd64   : > { %8524 = vmatpush1.bf16.msra.mxu1 %v8523_v14  ;;  %v8563_v14 = vpack.c.bf16 %v5589_v7, %v5587_v13  ;;  %v5841_v29 = vld [vmem:[#allocation23 + $0x1c8] sm:$0xff] }
 0xd65   : > { %8526 = vmatprep.subr.bf16.mxu1 %v8525_v15  ;;  %8596 = vmatpush1.bf16.msra.mxu0 %v8595_v19  ;;  %v5630_v15 = vld [vmem:[#allocation22 + $0x338] sm:$0xff]  ;;  %v8603_v19 = vpack.c.bf16 %v5629_v17, %v5627_v16 }
 0xd66   : > { %8598 = vmatprep.subr.bf16.mxu0 %v8597_v22  ;;  %v8601_v18 = vpack.c.bf16 %v5630_v15, %v5628_v12  ;;  %v5787_v22 = vld [vmem:[#allocation23 + $0x18] sm:$0xff]  ;;  %v5804_v12 = vld [vmem:[#allocation23 + $0xa0] sm:$0xff]  ;;  %v5809_v15 = vld [vmem:[#allocation23 + $0xc8] sm:$0xff] }
 0xd67   : > { %v8613_v24 = vpack.c.bf16 %v5787_v22, %v5785_v20  ;;  %v5811_v16 = vld [vmem:[#allocation23 + $0xd8] sm:$0xff]  ;;  %v5810_v20 = vld [vmem:[#allocation23 + $0xd0] sm:$0xff]  ;;  %v5813_v22 = vld [vmem:[#allocation23 + $0xe8] sm:$0xff] }
 0xd68   : > { %8528 = vmatpush1.bf16.msra.mxu1 %v8527_v43  ;;  %v5634_v43 = vld [vmem:[#allocation22 + $0x358] sm:$0xff] }
 0xd69   : > { %8530 = vmatprep.subr.bf16.mxu1 %v8529_v28  ;;  %8600 = vmatpush1.bf16.msra.mxu0 %v8599_v48  ;;  %v8605_v28 = vpack.c.bf16 %v5634_v43, %v5632_v26  ;;  %v8607_v48 = vpack.c.bf16 %v5633_v32, %v5631_v31  ;;  %v5814_v31 = vld [vmem:[#allocation23 + $0xf0] sm:$0xff]  ;;  %v5817_v32 = vld [vmem:[#allocation23 + $0x108] sm:$0xff] }
 0xd6a   : > { %8602 = vmatprep.subr.bf16.mxu0 %v8601_v18  ;;  %v8637_v18 = vpack.c.bf16 %v5811_v16, %v5809_v15  ;;  %v5851_v15 = vld [vmem:[#allocation23 + $0x218] sm:$0xff] }
 0xd6c   : > { %8532 = vmatpush1.bf16.msra.mxu1 %v8531_v39  ;;  %v8609_v39 = vpack.c.bf16 %v5638_v33, %v5636_v44 }
 0xd6d   : > { %8534 = vmatprep.subr.bf16.mxu1 %v8533_v6  ;;  %8604 = vmatpush1.bf16.msra.mxu0 %v8603_v19  ;;  %v5635_v6 = vld [vmem:[#allocation22 + $0x360] sm:$0xff] }
 0xd6e   : > { %8606 = vmatprep.subr.bf16.mxu0 %v8605_v28  ;;  %v8611_v51 = vpack.c.bf16 %v5637_v34, %v5635_v6  ;;  %v5808_v19 = vld [vmem:[#allocation23 + $0xc0] sm:$0xff]  ;;  %v5818_v6 = vld [vmem:[#allocation23 + $0x110] sm:$0xff]  ;;  %v5821_v34 = vld [vmem:[#allocation23 + $0x128] sm:$0xff] }
 0xd6f   : > { %v8639_v26 = vpack.c.bf16 %v5810_v20, %v5808_v19  ;;  %v5812_v28 = vld [vmem:[#allocation23 + $0xe0] sm:$0xff]  ;;  %v5850_v19 = vld [vmem:[#allocation23 + $0x210] sm:$0xff]  ;;  %v5853_v20 = vld [vmem:[#allocation23 + $0x228] sm:$0xff] }
 0xd70   : > { %8536 = vmatpush1.bf16.msra.mxu1 %v8535_v38  ;;  %v8643_v44 = vpack.c.bf16 %v5814_v31, %v5812_v28  ;;  %v5854_v28 = vld [vmem:[#allocation23 + $0x230] sm:$0xff]  ;;  %v5857_v31 = vld [vmem:[#allocation23 + $0x248] sm:$0xff] }
 0xd71   : > { %8538 = vmatprep.subr.bf16.mxu1 %v8537_v40  ;;  %8608 = vmatpush1.bf16.msra.mxu0 %v8607_v48  ;;  %v5819_v48 = vld [vmem:[#allocation23 + $0x118] sm:$0xff] }
 0xd72   : > { %8610 = vmatprep.subr.bf16.mxu0 %v8609_v39  ;;  %v8645_v33 = vpack.c.bf16 %v5819_v48, %v5817_v32  ;;  %v5816_v39 = vld [vmem:[#allocation23 + $0x100] sm:$0xff]  ;;  %v5859_v32 = vld [vmem:[#allocation23 + $0x258] sm:$0xff] }
 0xd73   : > { %v8647_v37 = vpack.c.bf16 %v5818_v6, %v5816_v39  ;;  %v5858_v39 = vld [vmem:[#allocation23 + $0x250] sm:$0xff]  ;;  %v5861_v6 = vld [vmem:[#allocation23 + $0x268] sm:$0xff] }
 0xd74   : > { %8540 = vmatpush1.bf16.msra.mxu1 %v8539_v4 }
 0xd75   : > { %8542 = vmatprep.subr.bf16.mxu1 %v8541_v47  ;;  %8612 = vmatpush1.bf16.msra.mxu0 %v8611_v51  ;;  %v5823_v51 = vld [vmem:[#allocation23 + $0x138] sm:$0xff] }
 0xd76   : > { %v8649_v27 = vpack.c.bf16 %v5823_v51, %v5821_v34  ;;  %v5863_v34 = vld [vmem:[#allocation23 + $0x278] sm:$0xff] }
 0xd78   : > { %8544 = vmatpush1.bf16.msra.mxu1 %v8543_v55 }
 0xd79   : > { %8546 = vmatprep.subr.bf16.mxu1 %v8545_v56  ;;  %v5793_v56 = vld [vmem:[#allocation23 + $0x48] sm:$0xff] }
 0xd7a   : > { %v8621_v54 = vpack.c.bf16 %v5795_v59, %v5793_v56  ;;  %v5828_v56 = vld [vmem:[#allocation23 + $0x160] sm:$0xff]  ;;  %v5830_v59 = vld [vmem:[#allocation23 + $0x170] sm:$0xff] }
 0xd7c   : > { %8548 = vmatpush1.bf16.msra.mxu1 %v8547_v57  ;;  %v5792_v57 = vld [vmem:[#allocation23 + $0x40] sm:$0xff] }
 0xd7d   : > { %8550 = vmatprep.subr.bf16.mxu1 %v8549_v58  ;;  %v5794_v58 = vld [vmem:[#allocation23 + $0x50] sm:$0xff] }
 0xd7e   : > { %v8623_v11 = vpack.c.bf16 %v5794_v58, %v5792_v57  ;;  %v5832_v58 = vld [vmem:[#allocation23 + $0x180] sm:$0xff] }
 0xd80   : > { %8552 = vmatpush1.bf16.msra.mxu1 %v8551_v2 }
 0xd81   : > { %8554 = vmatprep.subr.bf16.mxu1 %v8553_v9 }
 0xd84   : > { %8556 = vmatpush1.bf16.msra.mxu1 %v8555_v0  ;;  %v5801_v0 = vld [vmem:[#allocation23 + $0x88] sm:$0xff] }
 0xd85   : > { %8558 = vmatprep.subr.bf16.mxu1 %v8557_v45  ;;  %v5803_v45 = vld [vmem:[#allocation23 + $0x98] sm:$0xff] }
 0xd86   : > { %v8629_v1 = vpack.c.bf16 %v5803_v45, %v5801_v0  ;;  %v5843_v0 = vld [vmem:[#allocation23 + $0x1d8] sm:$0xff] }
 0xd88   : > { %8560 = vmatpush1.bf16.msra.mxu1 %v8559_v3  ;;  %v5800_v3 = vld [vmem:[#allocation23 + $0x80] sm:$0xff] }
 0xd89   : > { %8562 = vmatprep.subr.bf16.mxu1 %v8561_v25  ;;  %v5807_v25 = vld [vmem:[#allocation23 + $0xb8] sm:$0xff]  ;;  %v8631_v13 = vpack.c.bf16 %v5802_v5, %v5800_v3  ;;  %v5842_v3 = vld [vmem:[#allocation23 + $0x1d0] sm:$0xff]  ;;  %v5845_v5 = vld [vmem:[#allocation23 + $0x1e8] sm:$0xff] }
 0xd8a   : > { %v8633_v7 = vpack.c.bf16 %v5807_v25, %v5805_v8  ;;  %v5847_v8 = vld [vmem:[#allocation23 + $0x1f8] sm:$0xff] }
 0xd8c   : > { %8564 = vmatpush1.bf16.msra.mxu1 %v8563_v14  ;;  %v5806_v14 = vld [vmem:[#allocation23 + $0xb0] sm:$0xff] }
 0xd8d   : > { %8614 = vmatprep.subr.bf16.mxu1 %v8613_v24  ;;  %v8635_v17 = vpack.c.bf16 %v5806_v14, %v5804_v12  ;;  %v5815_v24 = vld [vmem:[#allocation23 + $0xf8] sm:$0xff]  ;;  %v5846_v12 = vld [vmem:[#allocation23 + $0x1f0] sm:$0xff]  ;;  %v5849_v14 = vld [vmem:[#allocation23 + $0x208] sm:$0xff] }
 0xd8e   : > { %v8641_v43 = vpack.c.bf16 %v5815_v24, %v5813_v22  ;;  %v5855_v22 = vld [vmem:[#allocation23 + $0x238] sm:$0xff] }
 0xe1a   : > { %v5301_v38 = vpop.f32.mrb[56].mxu1  ;;  %v5447_v40 = vpop.f32.mrb[40].mxu0 }
 0xe1b   : > { %v10816_v42 = vmax.f32 %v5301_v38, %v5447_v40  ;;  %v5303_v35 = vpop.f32.mrb[57].mxu1  ;;  %v5449_v4 = vpop.f32.mrb[41].mxu0  ;;  %v5820_v38 = vld [vmem:[#allocation23 + $0x120] sm:$0xff]  ;;  %v5822_v40 = vld [vmem:[#allocation23 + $0x130] sm:$0xff] }
 0xe1c   : > { %v5524_v47 = vmax.f32 %v5303_v35, %v5449_v4  ;;  %v8651_v35 = vpack.c.bf16 %v5822_v40, %v5820_v38  ;;  %v8653_v4 = vpack.c.bf16 %v5827_v41, %v5825_v49  ;;  %v5862_v38 = vld [vmem:[#allocation23 + $0x270] sm:$0xff]  ;;  %v5865_v40 = vld [vmem:[#allocation23 + $0x288] sm:$0xff]  ;;  %v5867_v49 = vld [vmem:[#allocation23 + $0x298] sm:$0xff] }
 0xe1d   : > { %v8693_v41 = vpack.c.bf16 %v5867_v49, %v5865_v40  ;;  %v6050_v40 = vld [vmem:[%s11688_s1 + $0x48] sm:$0xff] }
 0xe1e   : > { %5706 = vmatprep.mubr.f32.mxu1 %v5524_v47  ;;  %v5372_v55 = vpop.f32.mrb[58].mxu1 }
 0xe1f   : > { %5707 = vmatmul.mubr.f32.vlgmr.msra.gmra.mrb[62].mxu1 %v10816_v42  ;;  %v5374_v53 = vpop.f32.mrb[59].mxu1 }
 0xe20   : > { %8616 = vmatpush1.bf16.msra.mxu1 %v8615_v52  ;;  %5960 = vmatprep.mubr.f32.mxu1 %v5524_v47  ;;  %v5824_v47 = vld [vmem:[#allocation23 + $0x140] sm:$0xff]  ;;  %v5826_v52 = vld [vmem:[#allocation23 + $0x150] sm:$0xff] }
 0xe21   : > { %8618 = vmatprep.subr.bf16.mxu1 %v8617_v46  ;;  %v5829_v46 = vld [vmem:[#allocation23 + $0x168] sm:$0xff]  ;;  %v8655_v30 = vpack.c.bf16 %v5826_v52, %v5824_v47  ;;  %v5871_v47 = vld [vmem:[#allocation23 + $0x2b8] sm:$0xff] }
 0xe22   : > { %v5518_v21 = vpop.f32.mrb[60].mxu1 }
 0xe23   : > { %v10819_v61 = vmax.f32 %v5372_v55, %v5518_v21  ;;  %v5520_v2 = vpop.f32.mrb[61].mxu1  ;;  %v8657_v55 = vpack.c.bf16 %v5831_v50, %v5829_v46  ;;  %v5834_v21 = vld [vmem:[#allocation23 + $0x190] sm:$0xff]  ;;  %v5868_v50 = vld [vmem:[#allocation23 + $0x2a0] sm:$0xff] }
 0xe24   : > { %v10821_v9 = vmax.f32 %v5374_v53, %v5520_v2  ;;  %8620 = vmatpush1.bf16.msra.mxu1 %v8619_v23  ;;  %v5833_v53 = vld [vmem:[#allocation23 + $0x188] sm:$0xff]  ;;  %v5835_v23 = vld [vmem:[#allocation23 + $0x198] sm:$0xff]  ;;  %v8663_v2 = vpack.c.bf16 %v5834_v21, %v5832_v58 }
 0xe25   : > { %8622 = vmatprep.subr.bf16.mxu1 %v8621_v54  ;;  %v8659_v54 = vpack.c.bf16 %v5830_v59, %v5828_v56  ;;  %v8661_v57 = vpack.c.bf16 %v5835_v23, %v5833_v53  ;;  %v5875_v56 = vld [vmem:[#allocation23 + $0x2d8] sm:$0xff]  ;;  %v5872_v23 = vld [vmem:[#allocation23 + $0x2c0] sm:$0xff] }
 0xe26   : > { %7182 = vmatprep.mubr.msk.f32.mxu0 %vm2924_vm4, %v10821_v9  ;;  %v5879_v58 = vld [vmem:[#allocation23 + $0x2f8] sm:$0xff] }
 0xe27   : > { %5778 = vmatmul.mubr.f32.vlgmr.msra.gmra.mrb[42].mxu0 %v10819_v61 }
 0xe28   : > { %8624 = vmatpush1.bf16.msra.mxu1 %v8623_v11  ;;  %v8665_v11 = vpack.c.bf16 %v5839_v36, %v5837_v60  ;;  %v5876_v36 = vld [vmem:[#allocation23 + $0x2e0] sm:$0xff] }
 0xe29   : > { %8626 = vmatprep.subr.bf16.mxu1 %v8625_v62  ;;  %v5836_v62 = vld [vmem:[#allocation23 + $0x1a0] sm:$0xff] }
 0xe2a   : > { %v8667_v45 = vpack.c.bf16 %v5838_v63, %v5836_v62  ;;  %v5883_v62 = vld [vmem:[#allocation23 + $0x318] sm:$0xff] }
 0xe2c   : > { %8628 = vmatpush1.bf16.msra.mxu1 %v8627_v10  ;;  %v8669_v10 = vpack.c.bf16 %v5843_v0, %v5841_v29  ;;  %v5880_v0 = vld [vmem:[#allocation23 + $0x300] sm:$0xff] }
 0xe2d   : > { %8630 = vmatprep.subr.bf16.mxu1 %v8629_v1  ;;  %v5840_v1 = vld [vmem:[#allocation23 + $0x1c0] sm:$0xff] }
 0xe2e   : > { %v8671_v25 = vpack.c.bf16 %v5842_v3, %v5840_v1  ;;  %v5887_v1 = vld [vmem:[#allocation23 + $0x338] sm:$0xff] }
 0xe30   : > { %8632 = vmatpush1.bf16.msra.mxu1 %v8631_v13  ;;  %v8673_v13 = vpack.c.bf16 %v5847_v8, %v5845_v5  ;;  %v6041_v5 = vld [vmem:[%s11688_s1] sm:$0xff]  ;;  %v6042_v8 = vld [vmem:[%s11688_s1 + $0x8] sm:$0xff] }
 0xe31   : > { %8634 = vmatprep.subr.bf16.mxu1 %v8633_v7  ;;  %v5844_v7 = vld [vmem:[#allocation23 + $0x1e0] sm:$0xff] }
 0xe32   : > { %v8675_v16 = vpack.c.bf16 %v5846_v12, %v5844_v7  ;;  %v5884_v7 = vld [vmem:[#allocation23 + $0x320] sm:$0xff]  ;;  %v5886_v12 = vld [vmem:[#allocation23 + $0x330] sm:$0xff] }
 0xe34   : > { %8636 = vmatpush1.bf16.msra.mxu1 %v8635_v17  ;;  %v8677_v17 = vpack.c.bf16 %v5851_v15, %v5849_v14  ;;  %v9878_v14 = vmov 0.0|0.0   ;;  %v8726_v15 = vpack.c.bf16 %v6042_v8, %v6041_v5  ;;  %v7185_v8 = vld [vmem:[%s11688_s1 + $0xe0] sm:$0xff] }
 0xe35   : > { %8638 = vmatprep.subr.bf16.mxu1 %v8637_v18  ;;  %v5848_v18 = vld [vmem:[#allocation23 + $0x200] sm:$0xff]  ;;  %8725 = vmatprep.subr.bf16.mxu0 %v9878_v14 }
 0xe36   : > { %v8679_v24 = vpack.c.bf16 %v5850_v19, %v5848_v18  ;;  %v5891_v18 = vld [vmem:[#allocation23 + $0x358] sm:$0xff]  ;;  %8727 = vmatpush1.bf16.msra.mxu0 %v8726_v15 }
 0xe37   : > { %8728 = vmatprep.subr.bf16.mxu0 %v9878_v14 }
 0xe38   : > { %8640 = vmatpush1.bf16.msra.mxu1 %v8639_v26  ;;  %v8681_v26 = vpack.c.bf16 %v5855_v22, %v5853_v20  ;;  %v8715_v20 = vpack.c.bf16 %v5886_v12, %v5884_v7  ;;  %v6045_v22 = vld [vmem:[%s11688_s1 + $0x20] sm:$0xff] }
 0xe39   : > { %8642 = vmatprep.subr.bf16.mxu1 %v8641_v43  ;;  %v5852_v43 = vld [vmem:[#allocation23 + $0x220] sm:$0xff] }
 0xe3a   : > { %v8683_v48 = vpack.c.bf16 %v5854_v28, %v5852_v43  ;;  %v5888_v43 = vld [vmem:[#allocation23 + $0x340] sm:$0xff]  ;;  %v5890_v28 = vld [vmem:[#allocation23 + $0x350] sm:$0xff] }
 0xe3c   : > { %8644 = vmatpush1.bf16.msra.mxu1 %v8643_v44  ;;  %v8685_v44 = vpack.c.bf16 %v5859_v32, %v5857_v31  ;;  %v5893_v31 = vld [vmem:[#allocation23 + $0x368] sm:$0xff]  ;;  %v5895_v32 = vld [vmem:[#allocation23 + $0x378] sm:$0xff] }
 0xe3d   : > { %8646 = vmatprep.subr.bf16.mxu1 %v8645_v33  ;;  %v5856_v33 = vld [vmem:[#allocation23 + $0x240] sm:$0xff] }
 0xe3e   : > { %v8687_v51 = vpack.c.bf16 %v5858_v39, %v5856_v33  ;;  %v6047_v33 = vld [vmem:[%s11688_s1 + $0x30] sm:$0xff]  ;;  %v6048_v39 = vld [vmem:[%s11688_s1 + $0x38] sm:$0xff] }
 0xe40   : > { %8648 = vmatpush1.bf16.msra.mxu1 %v8647_v37  ;;  %v8689_v37 = vpack.c.bf16 %v5863_v34, %v5861_v6  ;;  %v8721_v6 = vpack.c.bf16 %v5895_v32, %v5893_v31  ;;  %v5892_v34 = vld [vmem:[#allocation23 + $0x360] sm:$0xff]  ;;  %v7193_v32 = vld [vmem:[%s11688_s1 + $0x120] sm:$0xff] }
 0xe41   : > { %8650 = vmatprep.subr.bf16.mxu1 %v8649_v27  ;;  %v5860_v27 = vld [vmem:[#allocation23 + $0x260] sm:$0xff] }
 0xe44   : > { %8652 = vmatpush1.bf16.msra.mxu1 %v8651_v35  ;;  %v5864_v35 = vld [vmem:[#allocation23 + $0x280] sm:$0xff] }
 0xe45   : > { %8654 = vmatprep.subr.bf16.mxu1 %v8653_v4  ;;  %v5869_v4 = vld [vmem:[#allocation23 + $0x2a8] sm:$0xff] }
 0xe46   : > { %v8697_v46 = vpack.c.bf16 %v5871_v47, %v5869_v4  ;;  %v6054_v4 = vld [vmem:[%s11688_s1 + $0x68] sm:$0xff] }
 0xe48   : > { %8656 = vmatpush1.bf16.msra.mxu1 %v8655_v30  ;;  %v5870_v30 = vld [vmem:[#allocation23 + $0x2b0] sm:$0xff] }
 0xe49   : > { %8658 = vmatprep.subr.bf16.mxu1 %v8657_v55  ;;  %v5873_v55 = vld [vmem:[#allocation23 + $0x2c8] sm:$0xff]  ;;  %v8699_v59 = vpack.c.bf16 %v5870_v30, %v5868_v50  ;;  %v6057_v50 = vld [vmem:[%s11688_s1 + $0x80] sm:$0xff]  ;;  %v6058_v30 = vld [vmem:[%s11688_s1 + $0x88] sm:$0xff] }
 0xe4a   : > { %v8701_v53 = vpack.c.bf16 %v5875_v56, %v5873_v55  ;;  %v8750_v55 = vpack.c.bf16 %v6058_v30, %v6057_v50  ;;  %v6059_v56 = vld [vmem:[%s11688_s1 + $0x90] sm:$0xff]  ;;  %v7208_v50 = vld [vmem:[%s11688_s1 + $0x198] sm:$0xff] }
 0xe4c   : > { %8660 = vmatpush1.bf16.msra.mxu1 %v8659_v54  ;;  %v5874_v54 = vld [vmem:[#allocation23 + $0x2d0] sm:$0xff] }
 0xe4d   : > { %8662 = vmatprep.subr.bf16.mxu1 %v8661_v57  ;;  %v5877_v57 = vld [vmem:[#allocation23 + $0x2e8] sm:$0xff]  ;;  %v8703_v21 = vpack.c.bf16 %v5874_v54, %v5872_v23  ;;  %v6061_v23 = vld [vmem:[%s11688_s1 + $0xa0] sm:$0xff]  ;;  %v6062_v54 = vld [vmem:[%s11688_s1 + $0xa8] sm:$0xff] }
 0xe4e   : > { %v8705_v60 = vpack.c.bf16 %v5879_v58, %v5877_v57  ;;  %v8756_v57 = vpack.c.bf16 %v6062_v54, %v6061_v23  ;;  %v6063_v58 = vld [vmem:[%s11688_s1 + $0xb0] sm:$0xff]  ;;  %v7212_v23 = vld [vmem:[%s11688_s1 + $0x1b8] sm:$0xff] }
 0xe50   : > { %8664 = vmatpush1.bf16.msra.mxu1 %v8663_v2  ;;  %v5878_v2 = vld [vmem:[#allocation23 + $0x2f0] sm:$0xff] }
 0xe51   : > { %8666 = vmatprep.subr.bf16.mxu1 %v8665_v11  ;;  %v5881_v11 = vld [vmem:[#allocation23 + $0x308] sm:$0xff]  ;;  %v8707_v63 = vpack.c.bf16 %v5878_v2, %v5876_v36  ;;  %v6065_v36 = vld [vmem:[%s11688_s1 + $0xc0] sm:$0xff]  ;;  %v6066_v2 = vld [vmem:[%s11688_s1 + $0xc8] sm:$0xff] }
 0xe52   : > { %v8709_v29 = vpack.c.bf16 %v5883_v62, %v5881_v11  ;;  %v8762_v11 = vpack.c.bf16 %v6066_v2, %v6065_v36  ;;  %v6067_v62 = vld [vmem:[%s11688_s1 + $0xd0] sm:$0xff]  ;;  %v7217_v2 = vld [vmem:[%s11688_s1 + $0x1d8] sm:$0xff] }
 0xe53   : > { %v7216_v36 = vld [vmem:[%s11688_s1 + $0x1d0] sm:$0xff] }
 0xe54   : > { %8668 = vmatpush1.bf16.msra.mxu1 %v8667_v45  ;;  %v5882_v45 = vld [vmem:[#allocation23 + $0x310] sm:$0xff] }
 0xe55   : > { %8670 = vmatprep.subr.bf16.mxu1 %v8669_v10  ;;  %v5885_v10 = vld [vmem:[#allocation23 + $0x328] sm:$0xff]  ;;  %v8711_v3 = vpack.c.bf16 %v5882_v45, %v5880_v0 }
 0xe58   : > { %8672 = vmatpush1.bf16.msra.mxu1 %v8671_v25  ;;  %v6043_v25 = vld [vmem:[%s11688_s1 + $0x10] sm:$0xff] }
 0xe59   : > { %8674 = vmatprep.subr.bf16.mxu1 %v8673_v13  ;;  %v8713_v13 = vpack.c.bf16 %v5887_v1, %v5885_v10 }
 0xe5c   : > { %8676 = vmatpush1.bf16.msra.mxu1 %v8675_v16  ;;  %v6044_v16 = vld [vmem:[%s11688_s1 + $0x18] sm:$0xff] }
 0xe5d   : > { %8678 = vmatprep.subr.bf16.mxu1 %v8677_v17  ;;  %v5889_v17 = vld [vmem:[#allocation23 + $0x348] sm:$0xff]  ;;  %v8729_v19 = vpack.c.bf16 %v6044_v16, %v6043_v25  ;;  %v7186_v25 = vld [vmem:[%s11688_s1 + $0xe8] sm:$0xff] }
 0xe5e   : > { %v8768_v16 = vpack.c.bf16 %v7186_v25, %v7185_v8  ;;  %v7224_v25 = vld [vmem:[%s11688_s1 + $0x210] sm:$0xff] }
 0xe5f   : > { %5961 = vmatmul.mubr.f32.vlgmr.msra.gmra.mrb[64].mxu1 %v10816_v42  ;;  %v8691_v42 = vpack.c.bf16 %v5862_v38, %v5860_v27  ;;  %8730 = vmatpush1.bf16.msra.mxu0 %v8729_v19  ;;  %v6049_v38 = vld [vmem:[%s11688_s1 + $0x40] sm:$0xff] }
 0xe60   : > { %8680 = vmatpush1.bf16.msra.mxu1 %v8679_v24  ;;  %7183 = vmatprep.mubr.msk.f32.mxu1 %vm2924_vm4, %v10821_v9  ;;  %v5866_v9 = vld [vmem:[#allocation23 + $0x290] sm:$0xff]  ;;  %v6046_v24 = vld [vmem:[%s11688_s1 + $0x28] sm:$0xff]  ;;  %v8738_v49 = vpack.c.bf16 %v6050_v40, %v6049_v38 }
 0xe61   : > { %8682 = vmatprep.subr.bf16.mxu1 %v8681_v26  ;;  %v8695_v52 = vpack.c.bf16 %v5866_v9, %v5864_v35  ;;  %v8717_v26 = vpack.c.bf16 %v5891_v18, %v5889_v17  ;;  %8731 = vmatprep.subr.bf16.mxu0 %v9878_v14  ;;  %v6053_v9 = vld [vmem:[%s11688_s1 + $0x60] sm:$0xff]  ;;  %v7187_v17 = vld [vmem:[%s11688_s1 + $0xf0] sm:$0xff]  ;;  %v7188_v18 = vld [vmem:[%s11688_s1 + $0xf8] sm:$0xff] }
 0xe62   : > { %v8744_v47 = vpack.c.bf16 %v6054_v4, %v6053_v9  ;;  %v7200_v38 = vld [vmem:[%s11688_s1 + $0x158] sm:$0xff] }
 0xe63   : > { %v7204_v9 = vld [vmem:[%s11688_s1 + $0x178] sm:$0xff] }
 0xe64   : > { %8684 = vmatpush1.bf16.msra.mxu1 %v8683_v48  ;;  %v8732_v48 = vpack.c.bf16 %v6046_v24, %v6045_v22  ;;  %v7189_v22 = vld [vmem:[%s11688_s1 + $0x100] sm:$0xff]  ;;  %v7190_v24 = vld [vmem:[%s11688_s1 + $0x108] sm:$0xff] }
 0xe65   : > { %8686 = vmatprep.subr.bf16.mxu1 %v8685_v44  ;;  %v8719_v44 = vpack.c.bf16 %v5890_v28, %v5888_v43  ;;  %v7191_v43 = vld [vmem:[%s11688_s1 + $0x110] sm:$0xff]  ;;  %v7192_v28 = vld [vmem:[%s11688_s1 + $0x118] sm:$0xff] }
 0xe66   : > { %8733 = vmatpush1.bf16.msra.mxu0 %v8732_v48  ;;  %v8777_v31 = vpack.c.bf16 %v7192_v28, %v7191_v43  ;;  %v7194_v48 = vld [vmem:[%s11688_s1 + $0x128] sm:$0xff]  ;;  %v7232_v28 = vld [vmem:[%s11688_s1 + $0x250] sm:$0xff] }
 0xe67   : > { %8734 = vmatprep.subr.bf16.mxu0 %v9878_v14 }
 0xe68   : > { %8688 = vmatpush1.bf16.msra.mxu1 %v8687_v51  ;;  %v5894_v51 = vld [vmem:[#allocation23 + $0x370] sm:$0xff] }
 0xe69   : > { %8690 = vmatprep.subr.bf16.mxu1 %v8689_v37  ;;  %v8735_v37 = vpack.c.bf16 %v6048_v39, %v6047_v33  ;;  %v8723_v27 = vpack.c.bf16 %v5894_v51, %v5892_v34  ;;  %v7195_v33 = vld [vmem:[%s11688_s1 + $0x130] sm:$0xff]  ;;  %v7196_v39 = vld [vmem:[%s11688_s1 + $0x138] sm:$0xff]  ;;  %v7197_v34 = vld [vmem:[%s11688_s1 + $0x140] sm:$0xff] }
 0xe6a   : > { %v7198_v51 = vld [vmem:[%s11688_s1 + $0x148] sm:$0xff] }
 0xe6b   : > { %8736 = vmatpush1.bf16.msra.mxu0 %v8735_v37  ;;  %v8786_v37 = vpack.c.bf16 %v7198_v51, %v7197_v34  ;;  %v7238_v51 = vld [vmem:[%s11688_s1 + $0x280] sm:$0xff] }
 0xe6c   : > { %8692 = vmatpush1.bf16.msra.mxu1 %v8691_v42  ;;  %8737 = vmatprep.subr.bf16.mxu0 %v9878_v14  ;;  %v6051_v42 = vld [vmem:[%s11688_s1 + $0x50] sm:$0xff] }
 0xe6d   : > { %8694 = vmatprep.subr.bf16.mxu1 %v8693_v41  ;;  %v6052_v41 = vld [vmem:[%s11688_s1 + $0x58] sm:$0xff] }
 0xe6e   : > { %v8741_v35 = vpack.c.bf16 %v6052_v41, %v6051_v42  ;;  %v7202_v42 = vld [vmem:[%s11688_s1 + $0x168] sm:$0xff] }
 0xe6f   : > { %8739 = vmatpush1.bf16.msra.mxu0 %v8738_v49  ;;  %v7201_v49 = vld [vmem:[%s11688_s1 + $0x160] sm:$0xff] }
 0xe70   : > { %8696 = vmatpush1.bf16.msra.mxu1 %v8695_v52  ;;  %8740 = vmatprep.subr.bf16.mxu0 %v9878_v14  ;;  %v6056_v52 = vld [vmem:[%s11688_s1 + $0x78] sm:$0xff]  ;;  %v8792_v41 = vpack.c.bf16 %v7202_v42, %v7201_v49  ;;  %v7243_v42 = vld [vmem:[%s11688_s1 + $0x2a0] sm:$0xff] }
 0xe71   : > { %8698 = vmatprep.subr.bf16.mxu1 %v8697_v46 }
 0xe73   : > { %8742 = vmatpush1.bf16.msra.mxu0 %v8741_v35  ;;  %v7203_v35 = vld [vmem:[%s11688_s1 + $0x170] sm:$0xff] }
 0xe74   : > { %8700 = vmatpush1.bf16.msra.mxu1 %v8699_v59  ;;  %8743 = vmatprep.subr.bf16.mxu0 %v9878_v14  ;;  %v6060_v59 = vld [vmem:[%s11688_s1 + $0x98] sm:$0xff]  ;;  %v8795_v4 = vpack.c.bf16 %v7204_v9, %v7203_v35 }
 0xe75   : > { %8702 = vmatprep.subr.bf16.mxu1 %v8701_v53  ;;  %v8753_v53 = vpack.c.bf16 %v6060_v59, %v6059_v56  ;;  %v7210_v56 = vld [vmem:[%s11688_s1 + $0x1a8] sm:$0xff] }
 0xe77   : > { %8745 = vmatpush1.bf16.msra.mxu0 %v8744_v47  ;;  %v7205_v47 = vld [vmem:[%s11688_s1 + $0x180] sm:$0xff] }
 0xe78   : > { %8704 = vmatpush1.bf16.msra.mxu1 %v8703_v21  ;;  %8746 = vmatprep.subr.bf16.mxu0 %v9878_v14  ;;  %v6064_v21 = vld [vmem:[%s11688_s1 + $0xb8] sm:$0xff] }
 0xe79   : > { %8706 = vmatprep.subr.bf16.mxu1 %v8705_v60  ;;  %v8759_v60 = vpack.c.bf16 %v6064_v21, %v6063_v58  ;;  %v7215_v58 = vld [vmem:[%s11688_s1 + $0x1c8] sm:$0xff] }
 0xe7c   : > { %8708 = vmatpush1.bf16.msra.mxu1 %v8707_v63  ;;  %v6068_v63 = vld [vmem:[%s11688_s1 + $0xd8] sm:$0xff] }
 0xe7d   : > { %8710 = vmatprep.subr.bf16.mxu1 %v8709_v29  ;;  %v8765_v29 = vpack.c.bf16 %v6068_v63, %v6067_v62  ;;  %v8813_v62 = vpack.c.bf16 %v7217_v2, %v7216_v36  ;;  %v7218_v63 = vld [vmem:[%s11688_s1 + $0x1e0] sm:$0xff]  ;;  %v7256_v36 = vld [vmem:[%s11688_s1 + $0x308] sm:$0xff] }
 0xe80   : > { %8712 = vmatpush1.bf16.msra.mxu1 %v8711_v3 }
 0xe81   : > { %8714 = vmatprep.subr.bf16.mxu1 %v8713_v13 }
 0xe84   : > { %8716 = vmatpush1.bf16.msra.mxu1 %v8715_v20  ;;  %v8771_v20 = vpack.c.bf16 %v7188_v18, %v7187_v17  ;;  %v7227_v17 = vld [vmem:[%s11688_s1 + $0x228] sm:$0xff] }
 0xe85   : > { %8718 = vmatprep.subr.bf16.mxu1 %v8717_v26  ;;  %v8774_v26 = vpack.c.bf16 %v7190_v24, %v7189_v22  ;;  %v7230_v24 = vld [vmem:[%s11688_s1 + $0x240] sm:$0xff] }
 0xe88   : > { %8720 = vmatpush1.bf16.msra.mxu1 %v8719_v44  ;;  %v8780_v44 = vpack.c.bf16 %v7194_v48, %v7193_v32  ;;  %v7234_v48 = vld [vmem:[%s11688_s1 + $0x260] sm:$0xff] }
 0xe89   : > { %8722 = vmatprep.subr.bf16.mxu1 %v8721_v6  ;;  %v8783_v6 = vpack.c.bf16 %v7196_v39, %v7195_v33  ;;  %v7236_v39 = vld [vmem:[%s11688_s1 + $0x270] sm:$0xff] }
 0xe8c   : > { %8724 = vmatpush1.bf16.msra.mxu1 %v8723_v27  ;;  %v7199_v27 = vld [vmem:[%s11688_s1 + $0x150] sm:$0xff] }
 0xe8d   : > { %v8789_v40 = vpack.c.bf16 %v7200_v38, %v7199_v27  ;;  %v7240_v38 = vld [vmem:[%s11688_s1 + $0x290] sm:$0xff] }
 0xe8f   : > { %6032 = vmatmul.mubr.f32.vlgmr.msra.gmra.mrb[64].mxu1 %v10819_v61  ;;  %v6055_v61 = vld [vmem:[%s11688_s1 + $0x70] sm:$0xff] }
 0xe90   : > { %v8747_v46 = vpack.c.bf16 %v6056_v52, %v6055_v61  ;;  %v7206_v61 = vld [vmem:[%s11688_s1 + $0x188] sm:$0xff] }
 0xe91   : > { %v8798_v52 = vpack.c.bf16 %v7206_v61, %v7205_v47  ;;  %v7246_v47 = vld [vmem:[%s11688_s1 + $0x2b8] sm:$0xff] }
 0xe92   : > { %8748 = vmatpush1.bf16.msra.mxu0 %v8747_v46  ;;  %v7207_v46 = vld [vmem:[%s11688_s1 + $0x190] sm:$0xff] }
 0xe93   : > { %8749 = vmatprep.subr.bf16.mxu0 %v9878_v14  ;;  %v8801_v30 = vpack.c.bf16 %v7208_v50, %v7207_v46  ;;  %v7247_v46 = vld [vmem:[%s11688_s1 + $0x2c0] sm:$0xff]  ;;  %v7248_v50 = vld [vmem:[%s11688_s1 + $0x2c8] sm:$0xff] }
 0xe96   : > { %8751 = vmatpush1.bf16.msra.mxu0 %v8750_v55  ;;  %v7209_v55 = vld [vmem:[%s11688_s1 + $0x1a0] sm:$0xff] }
 0xe97   : > { %8752 = vmatprep.subr.bf16.mxu0 %v9878_v14  ;;  %v8804_v59 = vpack.c.bf16 %v7210_v56, %v7209_v55  ;;  %v7249_v55 = vld [vmem:[%s11688_s1 + $0x2d0] sm:$0xff]  ;;  %v7250_v56 = vld [vmem:[%s11688_s1 + $0x2d8] sm:$0xff] }
 0xe9a   : > { %8754 = vmatpush1.bf16.msra.mxu0 %v8753_v53  ;;  %v7211_v53 = vld [vmem:[%s11688_s1 + $0x1b0] sm:$0xff] }
 0xe9b   : > { %8755 = vmatprep.subr.bf16.mxu0 %v9878_v14  ;;  %v8807_v54 = vpack.c.bf16 %v7212_v23, %v7211_v53  ;;  %v7251_v53 = vld [vmem:[%s11688_s1 + $0x2e0] sm:$0xff]  ;;  %v7252_v23 = vld [vmem:[%s11688_s1 + $0x2e8] sm:$0xff] }
 0xe9e   : > { %8757 = vmatpush1.bf16.msra.mxu0 %v8756_v57  ;;  %v7214_v57 = vld [vmem:[%s11688_s1 + $0x1c0] sm:$0xff] }
 0xe9f   : > { %8758 = vmatprep.subr.bf16.mxu0 %v9878_v14  ;;  %v8810_v21 = vpack.c.bf16 %v7215_v58, %v7214_v57  ;;  %v7253_v57 = vld [vmem:[%s11688_s1 + $0x2f0] sm:$0xff]  ;;  %v7254_v58 = vld [vmem:[%s11688_s1 + $0x2f8] sm:$0xff] }
 0xea2   : > { %8760 = vmatpush1.bf16.msra.mxu0 %v8759_v60 }
 0xea3   : > { %8761 = vmatprep.subr.bf16.mxu0 %v9878_v14 }
 0xea6   : > { %8763 = vmatpush1.bf16.msra.mxu0 %v8762_v11 }
 0xea7   : > { %8764 = vmatprep.subr.bf16.mxu0 %v9878_v14 }
 0xeaa   : > { %8766 = vmatpush1.bf16.msra.mxu0 %v8765_v29  ;;  %v7219_v29 = vld [vmem:[%s11688_s1 + $0x1e8] sm:$0xff] }
 0xeab   : > { %8767 = vmatprep.subr.bf16.mxu0 %v9878_v14 }
 0xef2   : > { %v5708_v0 = vpop.f32.mrb[62].mxu1 }
 0xef3   : > { %v5710_v45 = vpop.f32.mrb[63].mxu1 }
 0xefa   : > { %v5779_v10 = vpop.f32.mrb[42].mxu0 }
 0xefb   : > { %v5780_v1 = vadd.f32 %v5779_v10, %v5708_v0  ;;  %v5781_v3 = vpop.f32.mrb[43].mxu0  ;;  %v8816_v0 = vpack.c.bf16 %v7219_v29, %v7218_v63  ;;  %v7221_v10 = vld [vmem:[%s11688_s1 + $0x1f8] sm:$0xff]  ;;  %v7259_v29 = vld [vmem:[%s11688_s1 + $0x320] sm:$0xff] }
 0xefc   : > { %v5782_v5 = vadd.f32 %v5781_v3, %v5710_v45  ;;  %v7220_v45 = vld [vmem:[%s11688_s1 + $0x1f0] sm:$0xff]  ;;  %v7222_v3 = vld [vmem:[%s11688_s1 + $0x200] sm:$0xff] }
 0xf62   : > { %v6033_v13 = vpop.f32.mrb[64].mxu1 }
 0xf63   : > { %v10935_v7 = vmax.f32 %v5780_v1, %v6033_v13  ;;  %v6035_v12 = vpop.f32.mrb[65].mxu1  ;;  %v8819_v1 = vpack.c.bf16 %v7221_v10, %v7220_v45  ;;  %v7225_v13 = vld [vmem:[%s11688_s1 + $0x218] sm:$0xff]  ;;  %v7261_v10 = vld [vmem:[%s11688_s1 + $0x330] sm:$0xff] }
 0xf64   : > { %v10937_v15 = vmax.f32 %v5782_v5, %v6035_v12  ;;  %v7223_v5 = vld [vmem:[%s11688_s1 + $0x208] sm:$0xff]  ;;  %v8825_v12 = vpack.c.bf16 %v7225_v13, %v7224_v25  ;;  %v7265_v13 = vld [vmem:[%s11688_s1 + $0x350] sm:$0xff] }
 0xf65   : > { %v6173_v60 = vrot.slane %v10935_v7, 1  ;;  %v8822_v8 = vpack.c.bf16 %v7223_v5, %v7222_v3  ;;  %v6278_v9 = vrot.slane %v10935_v7, 2  ;;  %v7263_v5 = vld [vmem:[%s11688_s1 + $0x340] sm:$0xff] }
 0xf66   : > { %7184 = vmatprep.mubr.msk.f32.mxu0 %vm3759_vm8, %v10937_v15  ;;  %v6174_v19 = vrot.slane %v10937_v15, 1  ;;  %v6279_v11 = vrot.slane %v10937_v15, 2  ;;  %v6384_v61 = vrot.slane %v10937_v15, 3 }
 0xf67   : > { %6137 = vmatmul.mubr.f32.vlgmr.msra.gmra.mrb[44].mxu0 %v10935_v7 }
 0xf68   : > { %8769 = vmatpush1.bf16.msra.mxu0 %v8768_v16  ;;  %7213 = vmatprep.mubr.msk.f32.mxu0 %vm3759_vm8, %v6174_v19  ;;  %v7226_v16 = vld [vmem:[%s11688_s1 + $0x220] sm:$0xff]  ;;  %v7228_v19 = vld [vmem:[%s11688_s1 + $0x230] sm:$0xff] }
 0xf69   : > { %8770 = vmatprep.subr.bf16.mxu0 %v9878_v14  ;;  %v8828_v18 = vpack.c.bf16 %v7227_v17, %v7226_v16  ;;  %v7267_v17 = vld [vmem:[%s11688_s1 + $0x360] sm:$0xff] }
 0xf6c   : > { %8772 = vmatpush1.bf16.msra.mxu0 %v8771_v20  ;;  %v7229_v20 = vld [vmem:[%s11688_s1 + $0x238] sm:$0xff] }
 0xf6d   : > { %8773 = vmatprep.subr.bf16.mxu0 %v9878_v14  ;;  %v8831_v22 = vpack.c.bf16 %v7229_v20, %v7228_v19  ;;  %v7269_v20 = vld [vmem:[%s11688_s1 + $0x370] sm:$0xff] }
 0xf70   : > { %8775 = vmatpush1.bf16.msra.mxu0 %v8774_v26  ;;  %v7231_v26 = vld [vmem:[%s11688_s1 + $0x248] sm:$0xff] }
 0xf71   : > { %8776 = vmatprep.subr.bf16.mxu0 %v9878_v14  ;;  %v8834_v43 = vpack.c.bf16 %v7231_v26, %v7230_v24  ;;  %v7272_v26 = vld [vmem:[%s11688_s1 + $0x380] sm:$0xff] }
 0xf74   : > { %8778 = vmatpush1.bf16.msra.mxu0 %v8777_v31  ;;  %v7233_v31 = vld [vmem:[%s11688_s1 + $0x258] sm:$0xff] }
 0xf75   : > { %8779 = vmatprep.subr.bf16.mxu0 %v9878_v14  ;;  %v8837_v32 = vpack.c.bf16 %v7233_v31, %v7232_v28  ;;  %v6383_v31 = vrot.slane %v10935_v7, 3 }
 0xf78   : > { %8781 = vmatpush1.bf16.msra.mxu0 %v8780_v44  ;;  %v7235_v44 = vld [vmem:[%s11688_s1 + $0x268] sm:$0xff] }
 0xf79   : > { %8782 = vmatprep.subr.bf16.mxu0 %v9878_v14  ;;  %v8840_v33 = vpack.c.bf16 %v7235_v44, %v7234_v48  ;;  %v7275_v48 = vld [vmem:[%s11688_s1 + $0x398] sm:$0xff]  ;;  %v6489_v44 = vrot.slane %v10937_v15, 4 }
 0xf7c   : > { %8784 = vmatpush1.bf16.msra.mxu0 %v8783_v6  ;;  %v7237_v6 = vld [vmem:[%s11688_s1 + $0x278] sm:$0xff] }
 0xf7d   : > { %8785 = vmatprep.subr.bf16.mxu0 %v9878_v14  ;;  %v8843_v34 = vpack.c.bf16 %v7237_v6, %v7236_v39  ;;  %v7276_v39 = vld [vmem:[%s11688_s1 + $0x3a0] sm:$0xff]  ;;  %v7277_v6 = vld [vmem:[%s11688_s1 + $0x3a8] sm:$0xff] }
 0xf80   : > { %8787 = vmatpush1.bf16.msra.mxu0 %v8786_v37  ;;  %v7239_v37 = vld [vmem:[%s11688_s1 + $0x288] sm:$0xff] }
 0xf81   : > { %8788 = vmatprep.subr.bf16.mxu0 %v9878_v14  ;;  %v8846_v27 = vpack.c.bf16 %v7239_v37, %v7238_v51  ;;  %v7278_v51 = vld [vmem:[%s11688_s1 + $0x3b0] sm:$0xff]  ;;  %v7279_v37 = vld [vmem:[%s11688_s1 + $0x3b8] sm:$0xff] }
 0xf84   : > { %8790 = vmatpush1.bf16.msra.mxu0 %v8789_v40  ;;  %v7241_v40 = vld [vmem:[%s11688_s1 + $0x298] sm:$0xff] }
 0xf85   : > { %8791 = vmatprep.subr.bf16.mxu0 %v9878_v14  ;;  %v8849_v49 = vpack.c.bf16 %v7241_v40, %v7240_v38  ;;  %v7280_v38 = vld [vmem:[%s11688_s1 + $0x3c0] sm:$0xff]  ;;  %v7281_v40 = vld [vmem:[%s11688_s1 + $0x3c8] sm:$0xff] }
 0xf88   : > { %8793 = vmatpush1.bf16.msra.mxu0 %v8792_v41  ;;  %v7244_v41 = vld [vmem:[%s11688_s1 + $0x2a8] sm:$0xff] }
 0xf89   : > { %8794 = vmatprep.subr.bf16.mxu0 %v9878_v14  ;;  %v8852_v35 = vpack.c.bf16 %v7244_v41, %v7243_v42  ;;  %v7282_v42 = vld [vmem:[%s11688_s1 + $0x3d0] sm:$0xff]  ;;  %v7283_v41 = vld [vmem:[%s11688_s1 + $0x3d8] sm:$0xff] }
 0xf8c   : > { %8796 = vmatpush1.bf16.msra.mxu0 %v8795_v4  ;;  %v7245_v4 = vld [vmem:[%s11688_s1 + $0x2b0] sm:$0xff] }
 0xf8d   : > { %8797 = vmatprep.subr.bf16.mxu0 %v9878_v14 }
 0xf90   : > { %8799 = vmatpush1.bf16.msra.mxu0 %v8798_v52  ;;  %v8855_v52 = vpack.c.bf16 %v7246_v47, %v7245_v4  ;;  %v7285_v4 = vld [vmem:[%s11688_s1 + $0x3e8] sm:$0xff] }
 0xf91   : > { %8800 = vmatprep.subr.bf16.mxu0 %v9878_v14 }
 0xf94   : > { %8802 = vmatpush1.bf16.msra.mxu0 %v8801_v30  ;;  %v8858_v30 = vpack.c.bf16 %v7248_v50, %v7247_v46  ;;  %v7288_v50 = vld [vmem:[%s11688_s1 + $0x400] sm:$0xff] }
 0xf95   : > { %8803 = vmatprep.subr.bf16.mxu0 %v9878_v14 }
 0xf98   : > { %8805 = vmatpush1.bf16.msra.mxu0 %v8804_v59  ;;  %v8861_v59 = vpack.c.bf16 %v7250_v56, %v7249_v55  ;;  %v7290_v56 = vld [vmem:[%s11688_s1 + $0x410] sm:$0xff] }
 0xf99   : > { %8806 = vmatprep.subr.bf16.mxu0 %v9878_v14 }
 0xf9c   : > { %8808 = vmatpush1.bf16.msra.mxu0 %v8807_v54  ;;  %v8864_v54 = vpack.c.bf16 %v7252_v23, %v7251_v53  ;;  %v7292_v23 = vld [vmem:[%s11688_s1 + $0x420] sm:$0xff] }
 0xf9d   : > { %8809 = vmatprep.subr.bf16.mxu0 %v9878_v14 }
 0xf9f   : > { %6243 = vmatmul.mubr.f32.vlgmr.msra.gmra.mrb[44].mxu0 %v6173_v60  ;;  %v7255_v60 = vld [vmem:[%s11688_s1 + $0x300] sm:$0xff] }
 0xfa0   : > { %8811 = vmatpush1.bf16.msra.mxu0 %v8810_v21  ;;  %7242 = vmatprep.mubr.msk.f32.mxu0 %vm3759_vm8, %v6279_v11  ;;  %v8867_v21 = vpack.c.bf16 %v7254_v58, %v7253_v57  ;;  %v8870_v2 = vpack.c.bf16 %v7256_v36, %v7255_v60  ;;  %v7257_v11 = vld [vmem:[%s11688_s1 + $0x310] sm:$0xff]  ;;  %v7296_v36 = vld [vmem:[%s11688_s1 + $0x440] sm:$0xff] }
 0xfa1   : > { %8812 = vmatprep.subr.bf16.mxu0 %v9878_v14  ;;  %v7294_v58 = vld [vmem:[%s11688_s1 + $0x430] sm:$0xff] }
 0xfa4   : > { %8814 = vmatpush1.bf16.msra.mxu0 %v8813_v62  ;;  %v7258_v62 = vld [vmem:[%s11688_s1 + $0x318] sm:$0xff] }
 0xfa5   : > { %8815 = vmatprep.subr.bf16.mxu0 %v9878_v14  ;;  %v8873_v63 = vpack.c.bf16 %v7258_v62, %v7257_v11  ;;  %v7298_v62 = vld [vmem:[%s11688_s1 + $0x450] sm:$0xff] }
 0xfa8   : > { %8817 = vmatpush1.bf16.msra.mxu0 %v8816_v0  ;;  %v7260_v0 = vld [vmem:[%s11688_s1 + $0x328] sm:$0xff] }
 0xfa9   : > { %8818 = vmatprep.subr.bf16.mxu0 %v9878_v14  ;;  %v8876_v45 = vpack.c.bf16 %v7260_v0, %v7259_v29  ;;  %v7301_v0 = vld [vmem:[%s11688_s1 + $0x460] sm:$0xff] }
 0xfac   : > { %8820 = vmatpush1.bf16.msra.mxu0 %v8819_v1  ;;  %v7262_v1 = vld [vmem:[%s11688_s1 + $0x338] sm:$0xff] }
 0xfad   : > { %8821 = vmatprep.subr.bf16.mxu0 %v9878_v14  ;;  %v8879_v3 = vpack.c.bf16 %v7262_v1, %v7261_v10  ;;  %v6488_v1 = vrot.slane %v10935_v7, 4 }
 0xfb0   : > { %8823 = vmatpush1.bf16.msra.mxu0 %v8822_v8  ;;  %v7264_v8 = vld [vmem:[%s11688_s1 + $0x348] sm:$0xff] }
 0xfb1   : > { %8824 = vmatprep.subr.bf16.mxu0 %v9878_v14  ;;  %v8882_v25 = vpack.c.bf16 %v7264_v8, %v7263_v5  ;;  %v7304_v5 = vld [vmem:[%s11688_s1 + $0x478] sm:$0xff]  ;;  %v6594_v8 = vrot.slane %v10937_v15, 5 }
 0xfb4   : > { %8826 = vmatpush1.bf16.msra.mxu0 %v8825_v12  ;;  %v7266_v12 = vld [vmem:[%s11688_s1 + $0x358] sm:$0xff] }
 0xfb5   : > { %8827 = vmatprep.subr.bf16.mxu0 %v9878_v14  ;;  %v8885_v16 = vpack.c.bf16 %v7266_v12, %v7265_v13  ;;  %v7305_v13 = vld [vmem:[%s11688_s1 + $0x480] sm:$0xff]  ;;  %v7306_v12 = vld [vmem:[%s11688_s1 + $0x488] sm:$0xff] }
 0xfb8   : > { %8829 = vmatpush1.bf16.msra.mxu0 %v8828_v18  ;;  %v7268_v18 = vld [vmem:[%s11688_s1 + $0x368] sm:$0xff] }
 0xfb9   : > { %8830 = vmatprep.subr.bf16.mxu0 %v9878_v14  ;;  %v8888_v19 = vpack.c.bf16 %v7268_v18, %v7267_v17  ;;  %v7307_v17 = vld [vmem:[%s11688_s1 + $0x490] sm:$0xff]  ;;  %v7308_v18 = vld [vmem:[%s11688_s1 + $0x498] sm:$0xff] }
 0xfbc   : > { %8832 = vmatpush1.bf16.msra.mxu0 %v8831_v22  ;;  %v7270_v22 = vld [vmem:[%s11688_s1 + $0x378] sm:$0xff] }
 0xfbd   : > { %8833 = vmatprep.subr.bf16.mxu0 %v9878_v14  ;;  %v8891_v24 = vpack.c.bf16 %v7270_v22, %v7269_v20  ;;  %v7309_v20 = vld [vmem:[%s11688_s1 + $0x4a0] sm:$0xff]  ;;  %v7310_v22 = vld [vmem:[%s11688_s1 + $0x4a8] sm:$0xff] }
 0xfc0   : > { %8835 = vmatpush1.bf16.msra.mxu0 %v8834_v43  ;;  %v7273_v43 = vld [vmem:[%s11688_s1 + $0x388] sm:$0xff] }
 0xfc1   : > { %8836 = vmatprep.subr.bf16.mxu0 %v9878_v14  ;;  %v8894_v28 = vpack.c.bf16 %v7273_v43, %v7272_v26  ;;  %v7311_v26 = vld [vmem:[%s11688_s1 + $0x4b0] sm:$0xff]  ;;  %v7312_v43 = vld [vmem:[%s11688_s1 + $0x4b8] sm:$0xff] }
 0xfc4   : > { %8838 = vmatpush1.bf16.msra.mxu0 %v8837_v32  ;;  %v7274_v32 = vld [vmem:[%s11688_s1 + $0x390] sm:$0xff] }
 0xfc5   : > { %8839 = vmatprep.subr.bf16.mxu0 %v9878_v14 }
 0xfc8   : > { %8841 = vmatpush1.bf16.msra.mxu0 %v8840_v33  ;;  %v8897_v33 = vpack.c.bf16 %v7275_v48, %v7274_v32  ;;  %v7314_v32 = vld [vmem:[%s11688_s1 + $0x4c8] sm:$0xff] }
 0xfc9   : > { %8842 = vmatprep.subr.bf16.mxu0 %v9878_v14 }
 0xfcc   : > { %8844 = vmatpush1.bf16.msra.mxu0 %v8843_v34  ;;  %v8900_v34 = vpack.c.bf16 %v7277_v6, %v7276_v39  ;;  %v7317_v6 = vld [vmem:[%s11688_s1 + $0x4e0] sm:$0xff] }
 0xfcd   : > { %8845 = vmatprep.subr.bf16.mxu0 %v9878_v14 }
 0xfd0   : > { %8847 = vmatpush1.bf16.msra.mxu0 %v8846_v27  ;;  %v8903_v27 = vpack.c.bf16 %v7279_v37, %v7278_v51  ;;  %v7319_v37 = vld [vmem:[%s11688_s1 + $0x4f0] sm:$0xff] }
 0xfd1   : > { %8848 = vmatprep.subr.bf16.mxu0 %v9878_v14 }
 0xfd4   : > { %8850 = vmatpush1.bf16.msra.mxu0 %v8849_v49  ;;  %v8906_v49 = vpack.c.bf16 %v7281_v40, %v7280_v38  ;;  %v7321_v40 = vld [vmem:[%s11688_s1 + $0x500] sm:$0xff] }
 0xfd5   : > { %8851 = vmatprep.subr.bf16.mxu0 %v9878_v14 }
 0xfd7   : > { %6348 = vmatmul.mubr.f32.vlgmr.msra.gmra.mrb[44].mxu0 %v6278_v9  ;;  %v7284_v9 = vld [vmem:[%s11688_s1 + $0x3e0] sm:$0xff] }
 0xfd8   : > { %8853 = vmatpush1.bf16.msra.mxu0 %v8852_v35  ;;  %7271 = vmatprep.mubr.msk.f32.mxu0 %vm3759_vm8, %v6384_v61  ;;  %v8909_v35 = vpack.c.bf16 %v7283_v41, %v7282_v42  ;;  %v8912_v47 = vpack.c.bf16 %v7285_v4, %v7284_v9  ;;  %v7286_v61 = vld [vmem:[%s11688_s1 + $0x3f0] sm:$0xff]  ;;  %v7325_v4 = vld [vmem:[%s11688_s1 + $0x520] sm:$0xff] }
 0xfd9   : > { %8854 = vmatprep.subr.bf16.mxu0 %v9878_v14  ;;  %v7323_v41 = vld [vmem:[%s11688_s1 + $0x510] sm:$0xff] }
 0xfdc   : > { %8856 = vmatpush1.bf16.msra.mxu0 %v8855_v52  ;;  %v7287_v52 = vld [vmem:[%s11688_s1 + $0x3f8] sm:$0xff] }
 0xfdd   : > { %8857 = vmatprep.subr.bf16.mxu0 %v9878_v14  ;;  %v8915_v46 = vpack.c.bf16 %v7287_v52, %v7286_v61  ;;  %v7327_v52 = vld [vmem:[%s11688_s1 + $0x530] sm:$0xff] }
 0xfe0   : > { %8859 = vmatpush1.bf16.msra.mxu0 %v8858_v30  ;;  %v7289_v30 = vld [vmem:[%s11688_s1 + $0x408] sm:$0xff] }
 0xfe1   : > { %8860 = vmatprep.subr.bf16.mxu0 %v9878_v14  ;;  %v8918_v55 = vpack.c.bf16 %v7289_v30, %v7288_v50  ;;  %v7330_v30 = vld [vmem:[%s11688_s1 + $0x540] sm:$0xff] }
 0xfe4   : > { %8862 = vmatpush1.bf16.msra.mxu0 %v8861_v59  ;;  %v7291_v59 = vld [vmem:[%s11688_s1 + $0x418] sm:$0xff] }
 0xfe5   : > { %8863 = vmatprep.subr.bf16.mxu0 %v9878_v14  ;;  %v8921_v53 = vpack.c.bf16 %v7291_v59, %v7290_v56  ;;  %v6593_v59 = vrot.slane %v10935_v7, 5 }
 0xfe8   : > { %8865 = vmatpush1.bf16.msra.mxu0 %v8864_v54  ;;  %v7293_v54 = vld [vmem:[%s11688_s1 + $0x428] sm:$0xff] }
 0xfe9   : > { %8866 = vmatprep.subr.bf16.mxu0 %v9878_v14  ;;  %v8924_v57 = vpack.c.bf16 %v7293_v54, %v7292_v23  ;;  %v7333_v23 = vld [vmem:[%s11688_s1 + $0x558] sm:$0xff]  ;;  %v6699_v54 = vrot.slane %v10937_v15, 6  ;;  %v7336_v15 = vld [vmem:[%s11688_s1 + $0x570] sm:$0xff] }
 0xfec   : > { %8868 = vmatpush1.bf16.msra.mxu0 %v8867_v21  ;;  %v7295_v21 = vld [vmem:[%s11688_s1 + $0x438] sm:$0xff] }
 0xfed   : > { %8869 = vmatprep.subr.bf16.mxu0 %v9878_v14  ;;  %v8927_v60 = vpack.c.bf16 %v7295_v21, %v7294_v58  ;;  %v7334_v58 = vld [vmem:[%s11688_s1 + $0x560] sm:$0xff]  ;;  %v7335_v21 = vld [vmem:[%s11688_s1 + $0x568] sm:$0xff] }
 0xff0   : > { %8871 = vmatpush1.bf16.msra.mxu0 %v8870_v2  ;;  %v7297_v2 = vld [vmem:[%s11688_s1 + $0x448] sm:$0xff] }
 0xff1   : > { %8872 = vmatprep.subr.bf16.mxu0 %v9878_v14  ;;  %v8930_v11 = vpack.c.bf16 %v7297_v2, %v7296_v36  ;;  %v7337_v36 = vld [vmem:[%s11688_s1 + $0x578] sm:$0xff] }
 0xff2   : > { %v8987_v2 = vpack.c.bf16 %v7337_v36, %v7336_v15 }
 0xff4   : > { %8874 = vmatpush1.bf16.msra.mxu0 %v8873_v63  ;;  %v7299_v63 = vld [vmem:[%s11688_s1 + $0x458] sm:$0xff] }
 0xff5   : > { %8875 = vmatprep.subr.bf16.mxu0 %v9878_v14  ;;  %v8933_v29 = vpack.c.bf16 %v7299_v63, %v7298_v62  ;;  %v7339_v62 = vld [vmem:[%s11688_s1 + $0x588] sm:$0xff] }
 0xff8   : > { %8877 = vmatpush1.bf16.msra.mxu0 %v8876_v45  ;;  %v7302_v45 = vld [vmem:[%s11688_s1 + $0x468] sm:$0xff] }
 0xff9   : > { %8878 = vmatprep.subr.bf16.mxu0 %v9878_v14  ;;  %v8936_v10 = vpack.c.bf16 %v7302_v45, %v7301_v0  ;;  %v7341_v0 = vld [vmem:[%s11688_s1 + $0x598] sm:$0xff] }
 0xffc   : > { %8880 = vmatpush1.bf16.msra.mxu0 %v8879_v3  ;;  %v7303_v3 = vld [vmem:[%s11688_s1 + $0x470] sm:$0xff] }
 0xffd   : > { %8881 = vmatprep.subr.bf16.mxu0 %v9878_v14 }
0x1000   : > { %8883 = vmatpush1.bf16.msra.mxu0 %v8882_v25  ;;  %v8939_v25 = vpack.c.bf16 %v7304_v5, %v7303_v3  ;;  %v7344_v5 = vld [vmem:[%s11688_s1 + $0x5b0] sm:$0xff] }
0x1001   : > { %8884 = vmatprep.subr.bf16.mxu0 %v9878_v14 }
0x1004   : > { %8886 = vmatpush1.bf16.msra.mxu0 %v8885_v16  ;;  %v8942_v16 = vpack.c.bf16 %v7306_v12, %v7305_v13  ;;  %v7346_v13 = vld [vmem:[%s11688_s1 + $0x5c0] sm:$0xff]  ;;  %v7347_v12 = vld [vmem:[%s11688_s1 + $0x5c8] sm:$0xff] }
0x1005   : > { %8887 = vmatprep.subr.bf16.mxu0 %v9878_v14 }
0x1008   : > { %8889 = vmatpush1.bf16.msra.mxu0 %v8888_v19  ;;  %v8945_v19 = vpack.c.bf16 %v7308_v18, %v7307_v17  ;;  %v7348_v17 = vld [vmem:[%s11688_s1 + $0x5d0] sm:$0xff]  ;;  %v7349_v18 = vld [vmem:[%s11688_s1 + $0x5d8] sm:$0xff] }
0x1009   : > { %8890 = vmatprep.subr.bf16.mxu0 %v9878_v14 }
0x100c   : > { %8892 = vmatpush1.bf16.msra.mxu0 %v8891_v24  ;;  %v8948_v24 = vpack.c.bf16 %v7310_v22, %v7309_v20  ;;  %v7350_v20 = vld [vmem:[%s11688_s1 + $0x5e0] sm:$0xff]  ;;  %v7351_v22 = vld [vmem:[%s11688_s1 + $0x5e8] sm:$0xff] }
0x100d   : > { %8893 = vmatprep.subr.bf16.mxu0 %v9878_v14 }
0x100f   : > { %6453 = vmatmul.mubr.f32.vlgmr.msra.gmra.mrb[44].mxu0 %v6383_v31  ;;  %v7313_v31 = vld [vmem:[%s11688_s1 + $0x4c0] sm:$0xff] }
0x1010   : > { %8895 = vmatpush1.bf16.msra.mxu0 %v8894_v28  ;;  %7300 = vmatprep.mubr.msk.f32.mxu0 %vm3759_vm8, %v6489_v44  ;;  %v8951_v28 = vpack.c.bf16 %v7312_v43, %v7311_v26  ;;  %v8954_v48 = vpack.c.bf16 %v7314_v32, %v7313_v31  ;;  %v7315_v44 = vld [vmem:[%s11688_s1 + $0x4d0] sm:$0xff]  ;;  %v7353_v43 = vld [vmem:[%s11688_s1 + $0x5f8] sm:$0xff]  ;;  %v7354_v31 = vld [vmem:[%s11688_s1 + $0x600] sm:$0xff] }
0x1011   : > { %8896 = vmatprep.subr.bf16.mxu0 %v9878_v14  ;;  %v7352_v26 = vld [vmem:[%s11688_s1 + $0x5f0] sm:$0xff]  ;;  %v7355_v32 = vld [vmem:[%s11688_s1 + $0x608] sm:$0xff] }
0x1014   : > { %8898 = vmatpush1.bf16.msra.mxu0 %v8897_v33  ;;  %v7316_v33 = vld [vmem:[%s11688_s1 + $0x4d8] sm:$0xff] }
0x1015   : > { %8899 = vmatprep.subr.bf16.mxu0 %v9878_v14  ;;  %v8957_v39 = vpack.c.bf16 %v7316_v33, %v7315_v44  ;;  %v7356_v44 = vld [vmem:[%s11688_s1 + $0x610] sm:$0xff]  ;;  %v7357_v33 = vld [vmem:[%s11688_s1 + $0x618] sm:$0xff] }
0x1018   : > { %8901 = vmatpush1.bf16.msra.mxu0 %v8900_v34  ;;  %v7318_v34 = vld [vmem:[%s11688_s1 + $0x4e8] sm:$0xff] }
0x1019   : > { %8902 = vmatprep.subr.bf16.mxu0 %v9878_v14  ;;  %v8960_v51 = vpack.c.bf16 %v7318_v34, %v7317_v6  ;;  %v6698_v6 = vrot.slane %v10935_v7, 6  ;;  %v6040_v34 = vld [vmem:[#allocation25] sm:$0x1] }
0x101c   : > { %8904 = vmatpush1.bf16.msra.mxu0 %v8903_v27  ;;  %v7320_v27 = vld [vmem:[%s11688_s1 + $0x4f8] sm:$0xff] }
0x101d   : > { %8905 = vmatprep.subr.bf16.mxu0 %v9878_v14  ;;  %v8963_v38 = vpack.c.bf16 %v7320_v27, %v7319_v37 }
0x1020   : > { %8907 = vmatpush1.bf16.msra.mxu0 %v8906_v49  ;;  %v7322_v49 = vld [vmem:[%s11688_s1 + $0x508] sm:$0xff] }
0x1021   : > { %8908 = vmatprep.subr.bf16.mxu0 %v9878_v14  ;;  %v8966_v42 = vpack.c.bf16 %v7322_v49, %v7321_v40 }
0x1024   : > { %8910 = vmatpush1.bf16.msra.mxu0 %v8909_v35  ;;  %v7324_v35 = vld [vmem:[%s11688_s1 + $0x518] sm:$0xff] }
0x1025   : > { %8911 = vmatprep.subr.bf16.mxu0 %v9878_v14  ;;  %v8969_v9 = vpack.c.bf16 %v7324_v35, %v7323_v41 }
0x1028   : > { %8913 = vmatpush1.bf16.msra.mxu0 %v8912_v47  ;;  %v7326_v47 = vld [vmem:[%s11688_s1 + $0x528] sm:$0xff] }
0x1029   : > { %8914 = vmatprep.subr.bf16.mxu0 %v9878_v14  ;;  %v8972_v61 = vpack.c.bf16 %v7326_v47, %v7325_v4 }
0x102c   : > { %8916 = vmatpush1.bf16.msra.mxu0 %v8915_v46  ;;  %v7328_v46 = vld [vmem:[%s11688_s1 + $0x538] sm:$0xff] }
0x102d   : > { %8917 = vmatprep.subr.bf16.mxu0 %v9878_v14  ;;  %v8975_v50 = vpack.c.bf16 %v7328_v46, %v7327_v52 }
0x1030   : > { %8919 = vmatpush1.bf16.msra.mxu0 %v8918_v55  ;;  %v7331_v55 = vld [vmem:[%s11688_s1 + $0x548] sm:$0xff] }
0x1031   : > { %8920 = vmatprep.subr.bf16.mxu0 %v9878_v14  ;;  %v8978_v56 = vpack.c.bf16 %v7331_v55, %v7330_v30 }
0x1034   : > { %8922 = vmatpush1.bf16.msra.mxu0 %v8921_v53  ;;  %v7332_v53 = vld [vmem:[%s11688_s1 + $0x550] sm:$0xff] }
0x1035   : > { %8923 = vmatprep.subr.bf16.mxu0 %v9878_v14 }
0x1038   : > { %8925 = vmatpush1.bf16.msra.mxu0 %v8924_v57  ;;  %v8981_v57 = vpack.c.bf16 %v7333_v23, %v7332_v53 }
0x1039   : > { %8926 = vmatprep.subr.bf16.mxu0 %v9878_v14 }
0x103c   : > { %8928 = vmatpush1.bf16.msra.mxu0 %v8927_v60  ;;  %v8984_v60 = vpack.c.bf16 %v7335_v21, %v7334_v58 }
0x103d   : > { %8929 = vmatprep.subr.bf16.mxu0 %v9878_v14 }
0x1040   : > { %8931 = vmatpush1.bf16.msra.mxu0 %v8930_v11  ;;  %v7338_v11 = vld [vmem:[%s11688_s1 + $0x580] sm:$0xff] }
0x1041   : > { %8932 = vmatprep.subr.bf16.mxu0 %v9878_v14  ;;  %v8990_v63 = vpack.c.bf16 %v7339_v62, %v7338_v11 }
0x1044   : > { %8934 = vmatpush1.bf16.msra.mxu0 %v8933_v29  ;;  %v7340_v29 = vld [vmem:[%s11688_s1 + $0x590] sm:$0xff] }
0x1045   : > { %8935 = vmatprep.subr.bf16.mxu0 %v9878_v14  ;;  %v8993_v45 = vpack.c.bf16 %v7341_v0, %v7340_v29 }
0x1047   : > { %6558 = vmatmul.mubr.f32.vlgmr.msra.gmra.mrb[44].mxu0 %v6488_v1  ;;  %v7343_v1 = vld [vmem:[%s11688_s1 + $0x5a8] sm:$0xff] }
0x1048   : > { %8937 = vmatpush1.bf16.msra.mxu0 %v8936_v10  ;;  %7329 = vmatprep.mubr.msk.f32.mxu0 %vm3759_vm8, %v6594_v8  ;;  %v7342_v10 = vld [vmem:[%s11688_s1 + $0x5a0] sm:$0xff]  ;;  %v7345_v8 = vld [vmem:[%s11688_s1 + $0x5b8] sm:$0xff] }
0x1049   : > { %8938 = vmatprep.subr.bf16.mxu0 %v9878_v14  ;;  %v8996_v3 = vpack.c.bf16 %v7343_v1, %v7342_v10 }
0x104c   : > { %8940 = vmatpush1.bf16.msra.mxu0 %v8939_v25  ;;  %v8999_v25 = vpack.c.bf16 %v7345_v8, %v7344_v5 }
0x104d   : > { %8941 = vmatprep.subr.bf16.mxu0 %v9878_v14 }
0x1050   : > { %8943 = vmatpush1.bf16.msra.mxu0 %v8942_v16  ;;  %v9002_v16 = vpack.c.bf16 %v7347_v12, %v7346_v13 }
0x1051   : > { %8944 = vmatprep.subr.bf16.mxu0 %v9878_v14 }
0x1054   : > { %8946 = vmatpush1.bf16.msra.mxu0 %v8945_v19  ;;  %v9005_v19 = vpack.c.bf16 %v7349_v18, %v7348_v17 }
0x1055   : > { %8947 = vmatprep.subr.bf16.mxu0 %v9878_v14 }
0x1058   : > { %8949 = vmatpush1.bf16.msra.mxu0 %v8948_v24  ;;  %v9008_v24 = vpack.c.bf16 %v7351_v22, %v7350_v20 }
0x1059   : > { %8950 = vmatprep.subr.bf16.mxu0 %v9878_v14 }
0x105c   : > { %8952 = vmatpush1.bf16.msra.mxu0 %v8951_v28  ;;  %v9011_v28 = vpack.c.bf16 %v7353_v43, %v7352_v26 }
0x105d   : > { %8953 = vmatprep.subr.bf16.mxu0 %v9878_v14 }
0x1060   : > { %8955 = vmatpush1.bf16.msra.mxu0 %v8954_v48  ;;  %v9014_v48 = vpack.c.bf16 %v7355_v32, %v7354_v31 }
0x1061   : > { %8956 = vmatprep.subr.bf16.mxu0 %v9878_v14 }
0x1064   : > { %8958 = vmatpush1.bf16.msra.mxu0 %v8957_v39  ;;  %v9017_v39 = vpack.c.bf16 %v7357_v33, %v7356_v44 }
0x1065   : > { %8959 = vmatprep.subr.bf16.mxu0 %v9878_v14 }
0x1068   : > { %8961 = vmatpush1.bf16.msra.mxu0 %v8960_v51 }
0x1069   : > { %8962 = vmatprep.subr.bf16.mxu0 %v9878_v14 }
0x106c   : > { %8964 = vmatpush1.bf16.msra.mxu0 %v8963_v38 }
0x106d   : > { %8965 = vmatprep.subr.bf16.mxu0 %v9878_v14 }
0x1070   : > { %8967 = vmatpush1.bf16.msra.mxu0 %v8966_v42 }
0x1071   : > { %8968 = vmatprep.subr.bf16.mxu0 %v9878_v14 }
0x1074   : > { %8970 = vmatpush1.bf16.msra.mxu0 %v8969_v9 }
0x1075   : > { %8971 = vmatprep.subr.bf16.mxu0 %v9878_v14 }
0x1078   : > { %8973 = vmatpush1.bf16.msra.mxu0 %v8972_v61 }
0x1079   : > { %8974 = vmatprep.subr.bf16.mxu0 %v9878_v14 }
0x107c   : > { %8976 = vmatpush1.bf16.msra.mxu0 %v8975_v50 }
0x107d   : > { %8977 = vmatprep.subr.bf16.mxu0 %v9878_v14 }
0x107f   : > { %6663 = vmatmul.mubr.f32.vlgmr.msra.gmra.mrb[44].mxu0 %v6593_v59 }
0x1080   : > { %8979 = vmatpush1.bf16.msra.mxu0 %v8978_v56  ;;  %7358 = vmatprep.mubr.msk.f32.mxu0 %vm3759_vm8, %v6699_v54 }
0x1081   : > { %8980 = vmatprep.subr.bf16.mxu0 %v9878_v14 }
0x1084   : > { %8982 = vmatpush1.bf16.msra.mxu0 %v8981_v57 }
0x1085   : > { %8983 = vmatprep.subr.bf16.mxu0 %v9878_v14 }
0x1088   : > { %8985 = vmatpush1.bf16.msra.mxu0 %v8984_v60 }
0x1089   : > { %8986 = vmatprep.subr.bf16.mxu0 %v9878_v14 }
0x108c   : > { %8988 = vmatpush1.bf16.msra.mxu0 %v8987_v2 }
0x108d   : > { %8989 = vmatprep.subr.bf16.mxu0 %v9878_v14 }
0x1090   : > { %8991 = vmatpush1.bf16.msra.mxu0 %v8990_v63 }
0x1091   : > { %8992 = vmatprep.subr.bf16.mxu0 %v9878_v14 }
0x1094   : > { %8994 = vmatpush1.bf16.msra.mxu0 %v8993_v45 }
0x1095   : > { %8995 = vmatprep.subr.bf16.mxu0 %v9878_v14 }
0x1098   : > { %8997 = vmatpush1.bf16.msra.mxu0 %v8996_v3 }
0x1099   : > { %8998 = vmatprep.subr.bf16.mxu0 %v9878_v14 }
0x109c   : > { %9000 = vmatpush1.bf16.msra.mxu0 %v8999_v25 }
0x109d   : > { %9001 = vmatprep.subr.bf16.mxu0 %v9878_v14 }
0x10a0   : > { %9003 = vmatpush1.bf16.msra.mxu0 %v9002_v16 }
0x10a1   : > { %9004 = vmatprep.subr.bf16.mxu0 %v9878_v14 }
0x10a4   : > { %9006 = vmatpush1.bf16.msra.mxu0 %v9005_v19 }
0x10a5   : > { %9007 = vmatprep.subr.bf16.mxu0 %v9878_v14 }
0x10a8   : > { %9009 = vmatpush1.bf16.msra.mxu0 %v9008_v24 }
0x10a9   : > { %9010 = vmatprep.subr.bf16.mxu0 %v9878_v14 }
0x10ac   : > { %9012 = vmatpush1.bf16.msra.mxu0 %v9011_v28 }
0x10ad   : > { %9013 = vmatprep.subr.bf16.mxu0 %v9878_v14 }
0x10b0   : > { %9015 = vmatpush1.bf16.msra.mxu0 %v9014_v48 }
0x10b1   : > { %9016 = vmatprep.subr.bf16.mxu0 %v9878_v14 }
0x10b4   : > { %9018 = vmatpush1.bf16.msra.mxu0 %v9017_v39 }
0x10b7   : > { %6768 = vmatmul.mubr.f32.vlgmr.msra.gmra.mrb[44].mxu0 %v6698_v6 }
0x118a   : > { %v6769_v51 = vpop.f32.mrb[44].mxu0 }
0x118b   : > { %v9029_v37 = vadd.f32 %v6769_v51, %v6040_v34  ;;  %v6771_v27 = vpop.f32.mrb[45].mxu0 }
0x118d   : > { %6775 = vst.msk [vmem:[%s748_s26] sm:$0x1] %vm6774_vm9, %v9029_v37 }
0x118e   : > { %9772 = shalt.err (!%p9769_p7)
}
0x118f   : > { %s9773_s30 = scalar_lea.hbm %s11546_s19, 16  ;;  %s9777_s27 = scalar_lea.hbm %s11691_s4, 32 }
0x1190   : > { %p9774_p8 = scmp.ne.s32.totalorder %s11546_s19, %s9773_s30  ;;  %p9778_p1 = scmp.lt.u32.totalorder %s11546_s19, %s11691_s4 }
0x1191   : > { %p9779_p0 = scmp.lt.u32.totalorder %s9777_s27, %s9773_s30  ;;  %p9781_p5 = scmp.lt.u32.totalorder %s9773_s30, %s11546_s19 }
0x1192   : > { %p9775_p11 = pnand %p9774_p8, %p11692_p9 }
0x1193   : > { %p9780_p6 = por %p9779_p0, %p9778_p1 }
0x1194   : > { %p9776_p13 = pneg %p9775_p11 }
0x1195   : > { %p9782_p12 = por %p9781_p5, %p9780_p6 }
0x1197   : > { %p9783_p10 = pnand %p9782_p12, %p9776_p13 }
0x1199   : > { %9786 = shalt.err (!%p9783_p10)
}
0x119a   : > { %9200 = dma.vmem_to_hbm [thread:$0]  (%p11692_p9), %s11548_s6, 16, %s11546_s19, %s6777_s22  }
0x119b PF: > { %s11693_s21 = sld [smem:[#allocation39_spill]]  ;;  %s11694_s29 = sld [smem:[#allocation36_spill]] }
0x119c   : > { %s11695_s26 = sld [smem:[#allocation44_spill]] }
0x11a1   : > { %p9282_p2 = scmp.ge.s32.totalorder %s11693_s21, 2  ;;  %s6801_s8 = sand.u32 1, %s11694_s29  }
0x11a2   : > { %p11696_p3 = scmp.ne.s32.totalorder %s11695_s26, 0  ;;  %s6802_s18 = scalar_lea.sflag [#allocation4], %s6801_s8 }
0x11a4   : > { %p9249_p4 = pnand %p9282_p2, %p11696_p3 }
0x11a6   : > { %9836 = dma.done.wait (!%p9249_p4), %s6802_s18, 16  }
0x11a7   : > { %9838 = vsyncadd (!%p9249_p4), %s6802_s18, 4294967280  ;;  %s11697_s27 = sld [smem:[#allocation41_spill]]  ;;  %s11698_s24 = sld [smem:[#allocation37_spill]] }
0x11a8   : > { %s11699_s25 = sld [smem:[#allocation38_spill]]  ;;  %s11700_s26 = sld [smem:[#allocation42_spill]] }
0x11ad   : > { %p35_p7 = scmp.ge.s32.totalorder %s11697_s27, 4  }
0x11af   :  { %37 = sbr.rel (!%p35_p7) target bundleno = 21 (0x15), region = 206 }
0x11b6   :  { %6806 = vsyncpa [#allocation3], 1 }
0x11b7   :  { %6808 = vsyncpa [#allocation3 + $0x1], 1 }
0x11b8   :  { %6809 = vsyncpa [#allocation6], 1 }
0x11b9   :  { %6810 = vsyncpa [#allocation9], 1 }
0x11ba   :  { %6811 = vsyncpa [#allocation12], 1 }
0x11bb   :  { %6812 = vsyncpa [#allocation15], 1 }
0x11bc   :  { %6813 = vsyncpa [#allocation18], 1 }
0x11bd   :  { %6814 = vsyncpa [#allocation21], 1 }
0x11be   :  { %6815 = vsyncpa [#allocation24], 1 }
0x11bf   :  { %6816 = vsyncpa [#allocation4], 1 }
0x11c0   :  { %6818 = vsyncpa [#allocation4 + $0x1], 1 }

</bundles_post_ra>
